<compile_context>
chip_gen: v6e
topology: v6e:2x2x1
jax: 0.10.0
libtpu: 0.0.40
codegen_flags: <defaults>
</compile_context>

<pallas_src>
import functools

import jax
import jax.numpy as jnp
from jax.experimental import pallas as pl
from jax.experimental.pallas import tpu as pltpu


_PATCH_BUF_BYTES = 8 * 1024 * 1024   # budget for the bf16 patch double-buffer
_TM_MAX = 4096                       # upper bound on the lane tile
_VMEM_LIMIT = 48 * 1024 * 1024       # inside v7x's 64 MiB physical VMEM


def _round_up(x, m):
    return (x + m - 1) // m * m


def _pick_tile_m(m_total, k, tile_cap=_TM_MAX):
    """Lane tile TM (multiple of 128) and padded M for a (k, m_total) patch stream.

    TM is sized so 2 buffers * k * TM * 2 B (bf16) fits the patch budget; prefer
    a 128-aligned divisor of the padded M, otherwise pad M up to a multiple of TM.
    """
    cap = (_PATCH_BUF_BYTES // (4 * k)) // 128 * 128
    cap = max(128, min(int(tile_cap), cap))
    m128 = _round_up(m_total, 128)
    if m128 <= cap:
        return m128, m128
    t = cap
    while t >= 128:
        if m128 % t == 0:
            return t, m128
        t -= 128
    return cap, _round_up(m128, cap)


# ---------------------------------------------------------------------------
# Kernels
# ---------------------------------------------------------------------------
def _matmul_bn_relu_kernel(p_ref, w_ref, g_ref, b_ref, o_ref, sum_ref, sq_ref, *,
                           cout, phases, n_count, tm):
    """One lane-tile of conv = W @ P with exact training-mode BN + ReLU fused.

    p_ref  : (K, TM)      bf16  patch tile (columns = output positions, 0-padded)
    w_ref  : (R, K)       bf16  folded-phase weights, R = phases * cout (resident)
    g_ref  : (R, 1)       f32   per-row gamma
    b_ref  : (R, 1)       f32   per-row beta
    o_ref  : (R, M_pad)   bf16  full layer output, resident in VMEM
    sum_ref: (R, 1)       f32   running per-row sum      (scratch)
    sq_ref : (R, 1)       f32   running per-row sum-sq   (scratch)
    """
    i = pl.program_id(0)

    @pl.when(i == 0)
    def _init():
        sum_ref[...] = jnp.zeros_like(sum_ref)
        sq_ref[...] = jnp.zeros_like(sq_ref)

    acc = jnp.dot(w_ref[...], p_ref[...], preferred_element_type=jnp.float32)
    # Per-tile stats (XLU/VPU) overlap the MXU / next-tile DMA.  Zero-padded
    # columns contribute exactly 0, so dividing by the real n stays exact.
    sum_ref[...] += jnp.sum(acc, axis=1, keepdims=True)
    sq_ref[...] += jnp.sum(acc * acc, axis=1, keepdims=True)
    col0 = pl.multiple_of(i * tm, 128)
    o_ref[:, pl.ds(col0, tm)] = acc.astype(o_ref.dtype)

    @pl.when(i == pl.num_programs(0) - 1)
    def _finalize():
        rs = sum_ref[...]                          # (R, 1)
        rq = sq_ref[...]
        c_sum = rs[0:cout]                         # combine rows of one channel
        c_sq = rq[0:cout]
        for p in range(1, phases):
            c_sum = c_sum + rs[p * cout:(p + 1) * cout]
            c_sq = c_sq + rq[p * cout:(p + 1) * cout]
        inv_n = 1.0 / float(n_count)
        mean = c_sum * inv_n
        var = jnp.maximum(c_sq * inv_n - mean * mean, 0.0)    # biased, as in torch
        inv_std = jax.lax.rsqrt(var + 1e-5)
        mean_r = jnp.concatenate([mean] * phases, axis=0)     # back to per-row
        inv_r = jnp.concatenate([inv_std] * phases, axis=0)
        s = g_ref[...] * inv_r                                # scale, computed once
        t = b_ref[...] - mean_r * s                           # shift
        y = o_ref[...].astype(jnp.float32)
        o_ref[...] = jnp.maximum(y * s + t, 0.0).astype(o_ref.dtype)


def _matmul_tanh_kernel(p_ref, w_ref, o_ref):
    acc = jnp.dot(w_ref[...], p_ref[...], preferred_element_type=jnp.float32)
    o_ref[...] = jnp.tanh(acc)


# ---------------------------------------------------------------------------
# pallas_call wrappers
# ---------------------------------------------------------------------------
def _fused_matmul_bn_relu(patches, wall, g_rows, b_rows, cout, phases, tile_cap):
    k, m_real = patches.shape
    rows = phases * cout
    tm, m_pad = _pick_tile_m(m_real, k, tile_cap)
    nt = m_pad // tm
    p = patches.astype(jnp.bfloat16)
    if m_pad != m_real:
        p = jnp.pad(p, ((0, 0), (0, m_pad - m_real)))
    kern = functools.partial(_matmul_bn_relu_kernel, cout=cout, phases=phases,
                             n_count=phases * m_real, tm=tm)
    out = pl.pallas_call(
        kern,
        out_shape=jax.ShapeDtypeStruct((rows, m_pad), jnp.bfloat16),
        grid=(nt,),
        in_specs=[
            pl.BlockSpec((k, tm), lambda i: (0, i)),        # pipelined patch tiles
            pl.BlockSpec((rows, k), lambda i: (0, 0)),      # resident weights
            pl.BlockSpec((rows, 1), lambda i: (0, 0)),      # gamma
            pl.BlockSpec((rows, 1), lambda i: (0, 0)),      # beta
        ],
        out_specs=pl.BlockSpec((rows, m_pad), lambda i: (0, 0)),   # resident output
        scratch_shapes=[pltpu.VMEM((rows, 1), jnp.float32),
                        pltpu.VMEM((rows, 1), jnp.float32)],
        compiler_params=pltpu.CompilerParams(
            dimension_semantics=("arbitrary",),    # BN finalize needs sequential M
            vmem_limit_bytes=_VMEM_LIMIT),
    )(p, wall, g_rows, b_rows)
    return out[:, :m_real] if m_pad != m_real else out


def _fused_matmul_tanh(patches, wall, tile_cap):
    k, m_real = patches.shape
    rows = wall.shape[0]
    tm, m_pad = _pick_tile_m(m_real, k, tile_cap)
    nt = m_pad // tm
    p = patches.astype(jnp.bfloat16)
    if m_pad != m_real:
        p = jnp.pad(p, ((0, 0), (0, m_pad - m_real)))
    out = pl.pallas_call(
        _matmul_tanh_kernel,
        out_shape=jax.ShapeDtypeStruct((rows, m_pad), jnp.float32),
        grid=(nt,),
        in_specs=[
            pl.BlockSpec((k, tm), lambda i: (0, i)),
            pl.BlockSpec((rows, k), lambda i: (0, 0)),
        ],
        out_specs=pl.BlockSpec((rows, tm), lambda i: (0, i)),
        compiler_params=pltpu.CompilerParams(
            dimension_semantics=("parallel",),     # no cross-tile dependency
            vmem_limit_bytes=_VMEM_LIMIT),
    )(p, wall)
    return out[:, :m_real] if m_pad != m_real else out


# ---------------------------------------------------------------------------
# Layout glue (indexing only; activations stay channel-major (C, B, H, W))
# ---------------------------------------------------------------------------
def _nine_tap_patches(a):
    """a: (Cin, B, H, W) -> shared 9-tap patch matrix (9*Cin, B*H*W) (same dtype).

    TODO(synk): build these 9 shifted rows inside the kernel (overlapping
    windows on the padded activation + pltpu.roll / edge masks) so the 9x slab
    never round-trips through HBM.
    """
    cin, b, h, w = a.shape
    ap = jnp.pad(a, ((0, 0), (0, 0), (1, 1), (1, 1)))
    slabs = [ap[:, :, dy:dy + h, dx:dx + w] for dy in range(3) for dx in range(3)]
    return jnp.stack(slabs, axis=0).reshape(9 * cin, b * h * w)


def _fold_polyphase_weight(w):
    """w: (Cin, Cout, 4, 4) ConvTranspose2d weight -> (4*Cout, 9*Cin) folded-phase.

    Row order is (phase = py*2 + px, cout); K order is (tap = 3*dy + dx, cin).
    """
    cin, cout = w.shape[0], w.shape[1]
    wall = jnp.zeros((4, cout, 9, cin), jnp.float32)
    for py in range(2):
        for px in range(2):
            for r in range(2):
                for s in range(2):
                    tap = (py + r) * 3 + (px + s)
                    ky, kx = 3 - py - 2 * r, 3 - px - 2 * s
                    wall = wall.at[py * 2 + px, :, tap, :].set(w[:, :, ky, kx].T)
    return wall.reshape(4 * cout, 9 * cin)


def _unfold_phases(out_flat, cout, b, h, w):
    # out_flat: (4*Cout, B*H*W), rows (py, px, co), cols (b, jy, jx)
    o = out_flat.reshape(2, 2, cout, b, h, w)        # (py, px, co, b, jy, jx)
    o = jnp.transpose(o, (2, 3, 4, 0, 5, 1))         # (co, b, jy, py, jx, px)
    return o.reshape(cout, b, 2 * h, 2 * w)


def prepare_params(params):
    """Fold weights / tile BN params / cast to bf16 once per parameter set."""
    prepared = []
    w1, g1, b1 = params[0]
    cout1, nz = w1.shape[1], w1.shape[0]
    wall1 = jnp.transpose(w1, (2, 3, 1, 0)).reshape(16 * cout1, nz)
    prepared.append((wall1.astype(jnp.bfloat16),
                     jnp.tile(g1, 16).reshape(-1, 1).astype(jnp.float32),
                     jnp.tile(b1, 16).reshape(-1, 1).astype(jnp.float32)))
    for w, g, bt in params[1:-1]:
        prepared.append((_fold_polyphase_weight(w).astype(jnp.bfloat16),
                         jnp.tile(g, 4).reshape(-1, 1).astype(jnp.float32),
                         jnp.tile(bt, 4).reshape(-1, 1).astype(jnp.float32)))
    prepared.append((_fold_polyphase_weight(params[-1][0]).astype(jnp.bfloat16),))
    return prepared


# ---------------------------------------------------------------------------
# QuickGenerator forward (matches the nn.Sequential in the PyTorch module)
# ---------------------------------------------------------------------------
def quick_generator_forward(x_nchw, prepared, tile_cap=_TM_MAX):
    """x_nchw: (B, nz, 1, 1) -> (B, nc, 64, 64) float32, NCHW like PyTorch."""
    wall1, g1r, b1r = prepared[0]
    b = x_nchw.shape[0]
    nz = x_nchw.shape[1]
    cout1 = wall1.shape[0] // 16

    # Layer 1: ConvTranspose2d(nz, ngf*4, 4, 1, 0) on a 1x1 input == dense matmul.
    xmat = jnp.transpose(x_nchw.reshape(b, nz))                   # (nz, B)
    out = _fused_matmul_bn_relu(xmat, wall1, g1r, b1r, cout1, 16, tile_cap)
    a = out.reshape(4, 4, cout1, b).transpose(2, 3, 0, 1)         # (Cout, B, 4, 4) bf16

    # Layers 2-4: ConvTranspose2d(4, 2, 1) + BN + ReLU, polyphase-folded.
    for wall, gr, br in prepared[1:-1]:
        cout = wall.shape[0] // 4
        _, bb, h, w = a.shape
        out = _fused_matmul_bn_relu(_nine_tap_patches(a), wall, gr, br,
                                    cout, 4, tile_cap)
        a = _unfold_phases(out, cout, bb, h, w)                   # bf16, channel-major

    # Layer 5: ConvTranspose2d(4, 2, 1) + Tanh.
    wall_last = prepared[-1][0]
    cout = wall_last.shape[0] // 4
    _, bb, h, w = a.shape
    out = _fused_matmul_tanh(_nine_tap_patches(a), wall_last, tile_cap)
    a = _unfold_phases(out, cout, bb, h, w)                       # (nc, B, 64, 64) f32
    return jnp.transpose(a, (1, 0, 2, 3))                         # -> NCHW


def quick_generator(x_nchw, params, tile_cap=_TM_MAX):
    return quick_generator_forward(x_nchw, prepare_params(params), tile_cap)


def init_params(key, nz, ngf, nc):
    """Deterministic synthetic weights (DCGAN-style N(0, 0.02) init)."""
    dims = [(nz, ngf * 4), (ngf * 4, ngf * 2), (ngf * 2, ngf),
            (ngf, ngf // 2), (ngf // 2, nc)]
    params = []
    for i, (cin, cout) in enumerate(dims):
        key, kw, kg, kb = jax.random.split(key, 4)
        w = 0.02 * jax.random.normal(kw, (cin, cout, 4, 4), jnp.float32)
        if i < 4:
            gamma = 1.0 + 0.1 * jax.random.normal(kg, (cout,), jnp.float32)
            beta = 0.1 * jax.random.normal(kb, (cout,), jnp.float32)
            params.append((w, gamma, beta))
        else:
            params.append((w,))   # final ConvTranspose has no BatchNorm
    return params


# ---------------------------------------------------------------------------
# Pure-XLA reference (quantizes at the same points as the kernels: bf16 conv
# inputs/weights and bf16 activation storage, f32 accumulation and BN stats)
# ---------------------------------------------------------------------------
def _reference_forward(x_nchw, params):
    cfgs = [(1, 0), (2, 1), (2, 1), (2, 1), (2, 1)]
    a = x_nchw
    for idx, (stride, pad) in enumerate(cfgs):
        w = params[idx][0]
        rhs = jnp.flip(w, (2, 3)).transpose(1, 0, 2, 3)          # (Cout, Cin, 4, 4)
        a = jax.lax.conv_general_dilated(
            a.astype(jnp.bfloat16), rhs.astype(jnp.bfloat16),
            window_strides=(1, 1),
            padding=[(3 - pad, 3 - pad)] * 2,
            lhs_dilation=(stride, stride),
            dimension_numbers=("NCHW", "OIHW", "NCHW"),
            preferred_element_type=jnp.float32)
        if idx < 4:
            _, g, bt = params[idx]
            a = a.astype(jnp.bfloat16).astype(jnp.float32)  # kernels store conv in bf16
            mean = jnp.mean(a, axis=(0, 2, 3), keepdims=True)
            var = jnp.mean(jnp.square(a - mean), axis=(0, 2, 3), keepdims=True)
            a = (a - mean) * jax.lax.rsqrt(var + 1e-5)
            a = jnp.maximum(a * g[None, :, None, None] + bt[None, :, None, None], 0.0)
        else:
            a = jnp.tanh(a)
    return a


if __name__ == "__main__":
    nz, ngf, nc = 16, 8, 3

    key = jax.random.PRNGKey(0)
    pkey, xkey, xkey2 = jax.random.split(key, 3)
    params = init_params(pkey, nz, ngf, nc)
    prepared = prepare_params(params)            # hoisted: once per parameter set

    fwd = jax.jit(quick_generator_forward, static_argnames=("tile_cap",))
    ref_fn = jax.jit(_reference_forward)

    # 1) Default (performance) tiling, batch = 4.
    x = jax.random.normal(xkey, (4, nz, 1, 1), jnp.float32)
    out = jax.block_until_ready(fwd(x, prepared))
    assert out.shape == (4, nc, 64, 64), out.shape
    assert out.dtype == jnp.float32
    assert bool(jnp.all(jnp.isfinite(out)))
    assert bool(jnp.all(jnp.abs(out) <= 1.0 + 1e-6))      # tanh output range
    ref = jax.block_until_ready(ref_fn(x, params))
    max_err = float(jnp.max(jnp.abs(out - ref)))
    assert max_err < 2e-2, max_err

    # 2) Small tile cap + non-128-aligned batch: exercises multi-tile BN stat
    #    accumulation and the padded-column handling.
    x2 = jax.random.normal(xkey2, (5, nz, 1, 1), jnp.float32)
    out2 = jax.block_until_ready(fwd(x2, prepared, tile_cap=256))
    assert out2.shape == (5, nc, 64, 64), out2.shape
    assert bool(jnp.all(jnp.isfinite(out2)))
    ref2 = jax.block_until_ready(ref_fn(x2, params))
    max_err2 = float(jnp.max(jnp.abs(out2 - ref2)))
    assert max_err2 < 2e-2, max_err2

    print("KERNEL_OK")
</pallas_src>

<mosaic_0001>
module attributes {stable_mosaic.version = 11 : i64} {
  func.func @_matmul_bn_relu_kernel(%arg0: i32, %arg1: memref<16x128xbf16, #tpu.memory_space<vmem>>, %arg2: memref<512x16xbf16, #tpu.memory_space<vmem>>, %arg3: memref<512x1xf32, #tpu.memory_space<vmem>>, %arg4: memref<512x1xf32, #tpu.memory_space<vmem>>, %arg5: memref<512x128xbf16, #tpu.memory_space<vmem>>, %arg6: memref<512x1xf32, #tpu.memory_space<vmem>>, %arg7: memref<512x1xf32, #tpu.memory_space<vmem>>) attributes {dimension_semantics = [#tpu.dimension_semantics<arbitrary>], iteration_bounds = array<i64: 1>, scalar_prefetch = 0 : i64, scratch_operands = 2 : i64, tpu.core_type = #tpu.core_type<tc>, window_params = [{transform_indices = @transform_0, window_bounds = array<i64: 16, 128>}, {pipeline_mode = #tpu.pipeline_mode<synchronous>, transform_indices = @transform_1, window_bounds = array<i64: 512, 16>}, {pipeline_mode = #tpu.pipeline_mode<synchronous>, transform_indices = @transform_2, window_bounds = array<i64: 512, 1>}, {pipeline_mode = #tpu.pipeline_mode<synchronous>, transform_indices = @transform_3, window_bounds = array<i64: 512, 1>}, {pipeline_mode = #tpu.pipeline_mode<synchronous>, transform_indices = @transform_4, window_bounds = array<i64: 512, 128>}]} {
    %c0_i32 = arith.constant 0 : i32
    %0 = arith.cmpi eq, %arg0, %c0_i32 : i32
    %1 = arith.extui %0 : i1 to i32
    %c0_i32_0 = arith.constant 0 : i32
    %2 = arith.cmpi ne, %1, %c0_i32_0 : i32
    scf.if %2 {
      %cst_17 = arith.constant 0.000000e+00 : f32
      %25 = vector.broadcast %cst_17 : f32 to vector<512x1xf32>
      %c0_18 = arith.constant 0 : index
      %c0_19 = arith.constant 0 : index
      %26 = vector.load %arg6[%c0_18, %c0_19] : memref<512x1xf32, #tpu.memory_space<vmem>>, vector<512x1xf32>
      tpu.vector_store %arg6[%c0_18, %c0_19], %25 {strides = array<i32>} : memref<512x1xf32, #tpu.memory_space<vmem>>, vector<512x1xf32>,
      %cst_20 = arith.constant 0.000000e+00 : f32
      %27 = vector.broadcast %cst_20 : f32 to vector<512x1xf32>
      %c0_21 = arith.constant 0 : index
      %c0_22 = arith.constant 0 : index
      %28 = vector.load %arg7[%c0_21, %c0_22] : memref<512x1xf32, #tpu.memory_space<vmem>>, vector<512x1xf32>
      tpu.vector_store %arg7[%c0_21, %c0_22], %27 {strides = array<i32>} : memref<512x1xf32, #tpu.memory_space<vmem>>, vector<512x1xf32>,
    } else {
    }
    %c0 = arith.constant 0 : index
    %c0_1 = arith.constant 0 : index
    %3 = vector.load %arg2[%c0, %c0_1] : memref<512x16xbf16, #tpu.memory_space<vmem>>, vector<512x16xbf16>
    %c0_2 = arith.constant 0 : index
    %c0_3 = arith.constant 0 : index
    %4 = vector.load %arg1[%c0_2, %c0_3] : memref<16x128xbf16, #tpu.memory_space<vmem>>, vector<16x128xbf16>
    %cst = arith.constant dense<0.000000e+00> : vector<512x128xf32>
    %5 = tpu.matmul %3, %4, %cst {dimension_numbers = #tpu.dot_dimension_numbers<[1], [0], [0], [1], [0, 0, 1, 1], [], []>} : vector<512x16xbf16>, vector<16x128xbf16>, vector<512x128xf32> -> vector<512x128xf32>
    %c0_4 = arith.constant 0 : index
    %c0_5 = arith.constant 0 : index
    %6 = vector.load %arg6[%c0_4, %c0_5] : memref<512x1xf32, #tpu.memory_space<vmem>>, vector<512x1xf32>
    %cst_6 = arith.constant dense<0.000000e+00> : vector<512xf32>
    %7 = vector.multi_reduction <add>, %5, %cst_6 [1] : vector<512x128xf32> to vector<512xf32>
    %8 = vector.shape_cast %7 : vector<512xf32> to vector<512x1xf32>
    %9 = arith.addf %6, %8 : vector<512x1xf32>
    %c0_7 = arith.constant 0 : index
    %c0_8 = arith.constant 0 : index
    %10 = vector.load %arg6[%c0_7, %c0_8] : memref<512x1xf32, #tpu.memory_space<vmem>>, vector<512x1xf32>
    tpu.vector_store %arg6[%c0_7, %c0_8], %9 {strides = array<i32>} : memref<512x1xf32, #tpu.memory_space<vmem>>, vector<512x1xf32>,
    %c0_9 = arith.constant 0 : index
    %c0_10 = arith.constant 0 : index
    %11 = vector.load %arg7[%c0_9, %c0_10] : memref<512x1xf32, #tpu.memory_space<vmem>>, vector<512x1xf32>
    %12 = arith.mulf %5, %5 : vector<512x128xf32>
    %cst_11 = arith.constant dense<0.000000e+00> : vector<512xf32>
    %13 = vector.multi_reduction <add>, %12, %cst_11 [1] : vector<512x128xf32> to vector<512xf32>
    %14 = vector.shape_cast %13 : vector<512xf32> to vector<512x1xf32>
    %15 = arith.addf %11, %14 : vector<512x1xf32>
    %c0_12 = arith.constant 0 : index
    %c0_13 = arith.constant 0 : index
    %16 = vector.load %arg7[%c0_12, %c0_13] : memref<512x1xf32, #tpu.memory_space<vmem>>, vector<512x1xf32>
    tpu.vector_store %arg7[%c0_12, %c0_13], %15 {strides = array<i32>} : memref<512x1xf32, #tpu.memory_space<vmem>>, vector<512x1xf32>,
    %c128_i32 = arith.constant 128 : i32
    %17 = arith.muli %arg0, %c128_i32 : i32
    %18 = tpu.assume_multiple %17, 128 : i32
    %19 = arith.truncf %5 : vector<512x128xf32> to vector<512x128xbf16>
    %c0_14 = arith.constant 0 : index
    %20 = arith.index_cast %18 : i32 to index
    %21 = vector.load %arg5[%c0_14, %20] : memref<512x128xbf16, #tpu.memory_space<vmem>>, vector<512x128xbf16>
    tpu.vector_store %arg5[%c0_14, %20], %19 {strides = array<i32>} : memref<512x128xbf16, #tpu.memory_space<vmem>>, vector<512x128xbf16>,
    %c0_i32_15 = arith.constant 0 : i32
    %22 = arith.cmpi eq, %arg0, %c0_i32_15 : i32
    %23 = arith.extui %22 : i1 to i32
    %c0_i32_16 = arith.constant 0 : i32
    %24 = arith.cmpi ne, %23, %c0_i32_16 : i32
    scf.if %24 {
      %c0_17 = arith.constant 0 : index
      %c0_18 = arith.constant 0 : index
      %25 = vector.load %arg6[%c0_17, %c0_18] : memref<512x1xf32, #tpu.memory_space<vmem>>, vector<512x1xf32>
      %c0_19 = arith.constant 0 : index
      %c0_20 = arith.constant 0 : index
      %26 = vector.load %arg7[%c0_19, %c0_20] : memref<512x1xf32, #tpu.memory_space<vmem>>, vector<512x1xf32>
      %27 = vector.extract_strided_slice %25 {offsets = [0, 0], sizes = [32, 1], strides = [1, 1]} : vector<512x1xf32> to vector<32x1xf32>
      %28 = vector.extract_strided_slice %26 {offsets = [0, 0], sizes = [32, 1], strides = [1, 1]} : vector<512x1xf32> to vector<32x1xf32>
      %29 = vector.extract_strided_slice %25 {offsets = [32, 0], sizes = [32, 1], strides = [1, 1]} : vector<512x1xf32> to vector<32x1xf32>
      %30 = arith.addf %27, %29 : vector<32x1xf32>
      %31 = vector.extract_strided_slice %26 {offsets = [32, 0], sizes = [32, 1], strides = [1, 1]} : vector<512x1xf32> to vector<32x1xf32>
      %32 = arith.addf %28, %31 : vector<32x1xf32>
      %33 = vector.extract_strided_slice %25 {offsets = [64, 0], sizes = [32, 1], strides = [1, 1]} : vector<512x1xf32> to vector<32x1xf32>
      %34 = arith.addf %30, %33 : vector<32x1xf32>
      %35 = vector.extract_strided_slice %26 {offsets = [64, 0], sizes = [32, 1], strides = [1, 1]} : vector<512x1xf32> to vector<32x1xf32>
      %36 = arith.addf %32, %35 : vector<32x1xf32>
      %37 = vector.extract_strided_slice %25 {offsets = [96, 0], sizes = [32, 1], strides = [1, 1]} : vector<512x1xf32> to vector<32x1xf32>
      %38 = arith.addf %34, %37 : vector<32x1xf32>
      %39 = vector.extract_strided_slice %26 {offsets = [96, 0], sizes = [32, 1], strides = [1, 1]} : vector<512x1xf32> to vector<32x1xf32>
      %40 = arith.addf %36, %39 : vector<32x1xf32>
      %41 = vector.extract_strided_slice %25 {offsets = [128, 0], sizes = [32, 1], strides = [1, 1]} : vector<512x1xf32> to vector<32x1xf32>
      %42 = arith.addf %38, %41 : vector<32x1xf32>
      %43 = vector.extract_strided_slice %26 {offsets = [128, 0], sizes = [32, 1], strides = [1, 1]} : vector<512x1xf32> to vector<32x1xf32>
      %44 = arith.addf %40, %43 : vector<32x1xf32>
      %45 = vector.extract_strided_slice %25 {offsets = [160, 0], sizes = [32, 1], strides = [1, 1]} : vector<512x1xf32> to vector<32x1xf32>
      %46 = arith.addf %42, %45 : vector<32x1xf32>
      %47 = vector.extract_strided_slice %26 {offsets = [160, 0], sizes = [32, 1], strides = [1, 1]} : vector<512x1xf32> to vector<32x1xf32>
      %48 = arith.addf %44, %47 : vector<32x1xf32>
      %49 = vector.extract_strided_slice %25 {offsets = [192, 0], sizes = [32, 1], strides = [1, 1]} : vector<512x1xf32> to vector<32x1xf32>
      %50 = arith.addf %46, %49 : vector<32x1xf32>
      %51 = vector.extract_strided_slice %26 {offsets = [192, 0], sizes = [32, 1], strides = [1, 1]} : vector<512x1xf32> to vector<32x1xf32>
      %52 = arith.addf %48, %51 : vector<32x1xf32>
      %53 = vector.extract_strided_slice %25 {offsets = [224, 0], sizes = [32, 1], strides = [1, 1]} : vector<512x1xf32> to vector<32x1xf32>
      %54 = arith.addf %50, %53 : vector<32x1xf32>
      %55 = vector.extract_strided_slice %26 {offsets = [224, 0], sizes = [32, 1], strides = [1, 1]} : vector<512x1xf32> to vector<32x1xf32>
      %56 = arith.addf %52, %55 : vector<32x1xf32>
      %57 = vector.extract_strided_slice %25 {offsets = [256, 0], sizes = [32, 1], strides = [1, 1]} : vector<512x1xf32> to vector<32x1xf32>
      %58 = arith.addf %54, %57 : vector<32x1xf32>
      %59 = vector.extract_strided_slice %26 {offsets = [256, 0], sizes = [32, 1], strides = [1, 1]} : vector<512x1xf32> to vector<32x1xf32>
      %60 = arith.addf %56, %59 : vector<32x1xf32>
      %61 = vector.extract_strided_slice %25 {offsets = [288, 0], sizes = [32, 1], strides = [1, 1]} : vector<512x1xf32> to vector<32x1xf32>
      %62 = arith.addf %58, %61 : vector<32x1xf32>
      %63 = vector.extract_strided_slice %26 {offsets = [288, 0], sizes = [32, 1], strides = [1, 1]} : vector<512x1xf32> to vector<32x1xf32>
      %64 = arith.addf %60, %63 : vector<32x1xf32>
      %65 = vector.extract_strided_slice %25 {offsets = [320, 0], sizes = [32, 1], strides = [1, 1]} : vector<512x1xf32> to vector<32x1xf32>
      %66 = arith.addf %62, %65 : vector<32x1xf32>
      %67 = vector.extract_strided_slice %26 {offsets = [320, 0], sizes = [32, 1], strides = [1, 1]} : vector<512x1xf32> to vector<32x1xf32>
      %68 = arith.addf %64, %67 : vector<32x1xf32>
      %69 = vector.extract_strided_slice %25 {offsets = [352, 0], sizes = [32, 1], strides = [1, 1]} : vector<512x1xf32> to vector<32x1xf32>
      %70 = arith.addf %66, %69 : vector<32x1xf32>
      %71 = vector.extract_strided_slice %26 {offsets = [352, 0], sizes = [32, 1], strides = [1, 1]} : vector<512x1xf32> to vector<32x1xf32>
      %72 = arith.addf %68, %71 : vector<32x1xf32>
      %73 = vector.extract_strided_slice %25 {offsets = [384, 0], sizes = [32, 1], strides = [1, 1]} : vector<512x1xf32> to vector<32x1xf32>
      %74 = arith.addf %70, %73 : vector<32x1xf32>
      %75 = vector.extract_strided_slice %26 {offsets = [384, 0], sizes = [32, 1], strides = [1, 1]} : vector<512x1xf32> to vector<32x1xf32>
      %76 = arith.addf %72, %75 : vector<32x1xf32>
      %77 = vector.extract_strided_slice %25 {offsets = [416, 0], sizes = [32, 1], strides = [1, 1]} : vector<512x1xf32> to vector<32x1xf32>
      %78 = arith.addf %74, %77 : vector<32x1xf32>
      %79 = vector.extract_strided_slice %26 {offsets = [416, 0], sizes = [32, 1], strides = [1, 1]} : vector<512x1xf32> to vector<32x1xf32>
      %80 = arith.addf %76, %79 : vector<32x1xf32>
      %81 = vector.extract_strided_slice %25 {offsets = [448, 0], sizes = [32, 1], strides = [1, 1]} : vector<512x1xf32> to vector<32x1xf32>
      %82 = arith.addf %78, %81 : vector<32x1xf32>
      %83 = vector.extract_strided_slice %26 {offsets = [448, 0], sizes = [32, 1], strides = [1, 1]} : vector<512x1xf32> to vector<32x1xf32>
      %84 = arith.addf %80, %83 : vector<32x1xf32>
      %85 = vector.extract_strided_slice %25 {offsets = [480, 0], sizes = [32, 1], strides = [1, 1]} : vector<512x1xf32> to vector<32x1xf32>
      %86 = arith.addf %82, %85 : vector<32x1xf32>
      %87 = vector.extract_strided_slice %26 {offsets = [480, 0], sizes = [32, 1], strides = [1, 1]} : vector<512x1xf32> to vector<32x1xf32>
      %88 = arith.addf %84, %87 : vector<32x1xf32>
      %cst_21 = arith.constant 1.562500e-02 : f32
      %89 = vector.broadcast %cst_21 : f32 to vector<32x1xf32>
      %90 = arith.mulf %86, %89 : vector<32x1xf32>
      %cst_22 = arith.constant 1.562500e-02 : f32
      %91 = vector.broadcast %cst_22 : f32 to vector<32x1xf32>
      %92 = arith.mulf %88, %91 : vector<32x1xf32>
      %93 = arith.mulf %90, %90 : vector<32x1xf32>
      %94 = arith.subf %92, %93 : vector<32x1xf32>
      %cst_23 = arith.constant 0.000000e+00 : f32
      %95 = vector.broadcast %cst_23 : f32 to vector<32x1xf32>
      %96 = arith.maximumf %94, %95 : vector<32x1xf32>
      %cst_24 = arith.constant 9.99999974E-6 : f32
      %97 = vector.broadcast %cst_24 : f32 to vector<32x1xf32>
      %98 = arith.addf %96, %97 : vector<32x1xf32>
      %99 = math.rsqrt %98 : vector<32x1xf32>
      %100 = tpu.concatenate %90, %90, %90, %90, %90, %90, %90, %90, %90, %90, %90, %90, %90, %90, %90, %90 in 0 : vector<32x1xf32>, vector<32x1xf32>, vector<32x1xf32>, vector<32x1xf32>, vector<32x1xf32>, vector<32x1xf32>, vector<32x1xf32>, vector<32x1xf32>, vector<32x1xf32>, vector<32x1xf32>, vector<32x1xf32>, vector<32x1xf32>, vector<32x1xf32>, vector<32x1xf32>, vector<32x1xf32>, vector<32x1xf32> -> vector<512x1xf32>
      %101 = tpu.concatenate %99, %99, %99, %99, %99, %99, %99, %99, %99, %99, %99, %99, %99, %99, %99, %99 in 0 : vector<32x1xf32>, vector<32x1xf32>, vector<32x1xf32>, vector<32x1xf32>, vector<32x1xf32>, vector<32x1xf32>, vector<32x1xf32>, vector<32x1xf32>, vector<32x1xf32>, vector<32x1xf32>, vector<32x1xf32>, vector<32x1xf32>, vector<32x1xf32>, vector<32x1xf32>, vector<32x1xf32>, vector<32x1xf32> -> vector<512x1xf32>
      %c0_25 = arith.constant 0 : index
      %c0_26 = arith.constant 0 : index
      %102 = vector.load %arg3[%c0_25, %c0_26] : memref<512x1xf32, #tpu.memory_space<vmem>>, vector<512x1xf32>
      %103 = arith.mulf %102, %101 : vector<512x1xf32>
      %c0_27 = arith.constant 0 : index
      %c0_28 = arith.constant 0 : index
      %104 = vector.load %arg4[%c0_27, %c0_28] : memref<512x1xf32, #tpu.memory_space<vmem>>, vector<512x1xf32>
      %105 = arith.mulf %100, %103 : vector<512x1xf32>
      %106 = arith.subf %104, %105 : vector<512x1xf32>
      %c0_29 = arith.constant 0 : index
      %c0_30 = arith.constant 0 : index
      %107 = vector.load %arg5[%c0_29, %c0_30] : memref<512x128xbf16, #tpu.memory_space<vmem>>, vector<512x128xbf16>
      %108 = arith.extf %107 : vector<512x128xbf16> to vector<512x128xf32>
      %109 = vector.broadcast %103 : vector<512x1xf32> to vector<512x128xf32>
      %110 = arith.mulf %108, %109 : vector<512x128xf32>
      %111 = vector.broadcast %106 : vector<512x1xf32> to vector<512x128xf32>
      %112 = arith.addf %110, %111 : vector<512x128xf32>
      %cst_31 = arith.constant 0.000000e+00 : f32
      %113 = vector.broadcast %cst_31 : f32 to vector<512x128xf32>
      %114 = arith.maximumf %112, %113 : vector<512x128xf32>
      %115 = arith.truncf %114 : vector<512x128xf32> to vector<512x128xbf16>
      %c0_32 = arith.constant 0 : index
      %c0_33 = arith.constant 0 : index
      %116 = vector.load %arg5[%c0_32, %c0_33] : memref<512x128xbf16, #tpu.memory_space<vmem>>, vector<512x128xbf16>
      tpu.vector_store %arg5[%c0_32, %c0_33], %115 {strides = array<i32>} : memref<512x128xbf16, #tpu.memory_space<vmem>>, vector<512x128xbf16>,
    } else {
    }
    return
  }
  func.func @transform_0(%arg0: i32) -> (i32, i32) {
    %c0_i32 = arith.constant 0 : i32
    %c0_i32_0 = arith.constant 0 : i32
    return %c0_i32, %arg0 : i32, i32
  }
  func.func @transform_1(%arg0: i32) -> (i32, i32) {
    %c0_i32 = arith.constant 0 : i32
    %c0_i32_0 = arith.constant 0 : i32
    %c0_i32_1 = arith.constant 0 : i32
    return %c0_i32, %c0_i32_0 : i32, i32
  }
  func.func @transform_2(%arg0: i32) -> (i32, i32) {
    %c0_i32 = arith.constant 0 : i32
    %c0_i32_0 = arith.constant 0 : i32
    %c0_i32_1 = arith.constant 0 : i32
    return %c0_i32, %c0_i32_0 : i32, i32
  }
  func.func @transform_3(%arg0: i32) -> (i32, i32) {
    %c0_i32 = arith.constant 0 : i32
    %c0_i32_0 = arith.constant 0 : i32
    %c0_i32_1 = arith.constant 0 : i32
    return %c0_i32, %c0_i32_0 : i32, i32
  }
  func.func @transform_4(%arg0: i32) -> (i32, i32) {
    %c0_i32 = arith.constant 0 : i32
    %c0_i32_0 = arith.constant 0 : i32
    %c0_i32_1 = arith.constant 0 : i32
    return %c0_i32, %c0_i32_0 : i32, i32
  }
}

module attributes {stable_mosaic.version = 11 : i64} {
  func.func @_matmul_bn_relu_kernel(%arg0: i32, %arg1: memref<288x128xbf16, #tpu.memory_space<vmem>>, %arg2: memref<64x288xbf16, #tpu.memory_space<vmem>>, %arg3: memref<64x1xf32, #tpu.memory_space<vmem>>, %arg4: memref<64x1xf32, #tpu.memory_space<vmem>>, %arg5: memref<64x128xbf16, #tpu.memory_space<vmem>>, %arg6: memref<64x1xf32, #tpu.memory_space<vmem>>, %arg7: memref<64x1xf32, #tpu.memory_space<vmem>>) attributes {dimension_semantics = [#tpu.dimension_semantics<arbitrary>], iteration_bounds = array<i64: 1>, scalar_prefetch = 0 : i64, scratch_operands = 2 : i64, tpu.core_type = #tpu.core_type<tc>, window_params = [{transform_indices = @transform_0, window_bounds = array<i64: 288, 128>}, {pipeline_mode = #tpu.pipeline_mode<synchronous>, transform_indices = @transform_1, window_bounds = array<i64: 64, 288>}, {pipeline_mode = #tpu.pipeline_mode<synchronous>, transform_indices = @transform_2, window_bounds = array<i64: 64, 1>}, {pipeline_mode = #tpu.pipeline_mode<synchronous>, transform_indices = @transform_3, window_bounds = array<i64: 64, 1>}, {pipeline_mode = #tpu.pipeline_mode<synchronous>, transform_indices = @transform_4, window_bounds = array<i64: 64, 128>}]} {
    %c0_i32 = arith.constant 0 : i32
    %0 = arith.cmpi eq, %arg0, %c0_i32 : i32
    %1 = arith.extui %0 : i1 to i32
    %c0_i32_0 = arith.constant 0 : i32
    %2 = arith.cmpi ne, %1, %c0_i32_0 : i32
    scf.if %2 {
      %cst_17 = arith.constant 0.000000e+00 : f32
      %25 = vector.broadcast %cst_17 : f32 to vector<64x1xf32>
      %c0_18 = arith.constant 0 : index
      %c0_19 = arith.constant 0 : index
      %26 = vector.load %arg6[%c0_18, %c0_19] : memref<64x1xf32, #tpu.memory_space<vmem>>, vector<64x1xf32>
      tpu.vector_store %arg6[%c0_18, %c0_19], %25 {strides = array<i32>} : memref<64x1xf32, #tpu.memory_space<vmem>>, vector<64x1xf32>,
      %cst_20 = arith.constant 0.000000e+00 : f32
      %27 = vector.broadcast %cst_20 : f32 to vector<64x1xf32>
      %c0_21 = arith.constant 0 : index
      %c0_22 = arith.constant 0 : index
      %28 = vector.load %arg7[%c0_21, %c0_22] : memref<64x1xf32, #tpu.memory_space<vmem>>, vector<64x1xf32>
      tpu.vector_store %arg7[%c0_21, %c0_22], %27 {strides = array<i32>} : memref<64x1xf32, #tpu.memory_space<vmem>>, vector<64x1xf32>,
    } else {
    }
    %c0 = arith.constant 0 : index
    %c0_1 = arith.constant 0 : index
    %3 = vector.load %arg2[%c0, %c0_1] : memref<64x288xbf16, #tpu.memory_space<vmem>>, vector<64x288xbf16>
    %c0_2 = arith.constant 0 : index
    %c0_3 = arith.constant 0 : index
    %4 = vector.load %arg1[%c0_2, %c0_3] : memref<288x128xbf16, #tpu.memory_space<vmem>>, vector<288x128xbf16>
    %cst = arith.constant dense<0.000000e+00> : vector<64x128xf32>
    %5 = tpu.matmul %3, %4, %cst {dimension_numbers = #tpu.dot_dimension_numbers<[1], [0], [0], [1], [0, 0, 1, 1], [], []>} : vector<64x288xbf16>, vector<288x128xbf16>, vector<64x128xf32> -> vector<64x128xf32>
    %c0_4 = arith.constant 0 : index
    %c0_5 = arith.constant 0 : index
    %6 = vector.load %arg6[%c0_4, %c0_5] : memref<64x1xf32, #tpu.memory_space<vmem>>, vector<64x1xf32>
    %cst_6 = arith.constant dense<0.000000e+00> : vector<64xf32>
    %7 = vector.multi_reduction <add>, %5, %cst_6 [1] : vector<64x128xf32> to vector<64xf32>
    %8 = vector.shape_cast %7 : vector<64xf32> to vector<64x1xf32>
    %9 = arith.addf %6, %8 : vector<64x1xf32>
    %c0_7 = arith.constant 0 : index
    %c0_8 = arith.constant 0 : index
    %10 = vector.load %arg6[%c0_7, %c0_8] : memref<64x1xf32, #tpu.memory_space<vmem>>, vector<64x1xf32>
    tpu.vector_store %arg6[%c0_7, %c0_8], %9 {strides = array<i32>} : memref<64x1xf32, #tpu.memory_space<vmem>>, vector<64x1xf32>,
    %c0_9 = arith.constant 0 : index
    %c0_10 = arith.constant 0 : index
    %11 = vector.load %arg7[%c0_9, %c0_10] : memref<64x1xf32, #tpu.memory_space<vmem>>, vector<64x1xf32>
    %12 = arith.mulf %5, %5 : vector<64x128xf32>
    %cst_11 = arith.constant dense<0.000000e+00> : vector<64xf32>
    %13 = vector.multi_reduction <add>, %12, %cst_11 [1] : vector<64x128xf32> to vector<64xf32>
    %14 = vector.shape_cast %13 : vector<64xf32> to vector<64x1xf32>
    %15 = arith.addf %11, %14 : vector<64x1xf32>
    %c0_12 = arith.constant 0 : index
    %c0_13 = arith.constant 0 : index
    %16 = vector.load %arg7[%c0_12, %c0_13] : memref<64x1xf32, #tpu.memory_space<vmem>>, vector<64x1xf32>
    tpu.vector_store %arg7[%c0_12, %c0_13], %15 {strides = array<i32>} : memref<64x1xf32, #tpu.memory_space<vmem>>, vector<64x1xf32>,
    %c128_i32 = arith.constant 128 : i32
    %17 = arith.muli %arg0, %c128_i32 : i32
    %18 = tpu.assume_multiple %17, 128 : i32
    %19 = arith.truncf %5 : vector<64x128xf32> to vector<64x128xbf16>
    %c0_14 = arith.constant 0 : index
    %20 = arith.index_cast %18 : i32 to index
    %21 = vector.load %arg5[%c0_14, %20] : memref<64x128xbf16, #tpu.memory_space<vmem>>, vector<64x128xbf16>
    tpu.vector_store %arg5[%c0_14, %20], %19 {strides = array<i32>} : memref<64x128xbf16, #tpu.memory_space<vmem>>, vector<64x128xbf16>,
    %c0_i32_15 = arith.constant 0 : i32
    %22 = arith.cmpi eq, %arg0, %c0_i32_15 : i32
    %23 = arith.extui %22 : i1 to i32
    %c0_i32_16 = arith.constant 0 : i32
    %24 = arith.cmpi ne, %23, %c0_i32_16 : i32
    scf.if %24 {
      %c0_17 = arith.constant 0 : index
      %c0_18 = arith.constant 0 : index
      %25 = vector.load %arg6[%c0_17, %c0_18] : memref<64x1xf32, #tpu.memory_space<vmem>>, vector<64x1xf32>
      %c0_19 = arith.constant 0 : index
      %c0_20 = arith.constant 0 : index
      %26 = vector.load %arg7[%c0_19, %c0_20] : memref<64x1xf32, #tpu.memory_space<vmem>>, vector<64x1xf32>
      %27 = vector.extract_strided_slice %25 {offsets = [0, 0], sizes = [16, 1], strides = [1, 1]} : vector<64x1xf32> to vector<16x1xf32>
      %28 = vector.extract_strided_slice %26 {offsets = [0, 0], sizes = [16, 1], strides = [1, 1]} : vector<64x1xf32> to vector<16x1xf32>
      %29 = vector.extract_strided_slice %25 {offsets = [16, 0], sizes = [16, 1], strides = [1, 1]} : vector<64x1xf32> to vector<16x1xf32>
      %30 = arith.addf %27, %29 : vector<16x1xf32>
      %31 = vector.extract_strided_slice %26 {offsets = [16, 0], sizes = [16, 1], strides = [1, 1]} : vector<64x1xf32> to vector<16x1xf32>
      %32 = arith.addf %28, %31 : vector<16x1xf32>
      %33 = vector.extract_strided_slice %25 {offsets = [32, 0], sizes = [16, 1], strides = [1, 1]} : vector<64x1xf32> to vector<16x1xf32>
      %34 = arith.addf %30, %33 : vector<16x1xf32>
      %35 = vector.extract_strided_slice %26 {offsets = [32, 0], sizes = [16, 1], strides = [1, 1]} : vector<64x1xf32> to vector<16x1xf32>
      %36 = arith.addf %32, %35 : vector<16x1xf32>
      %37 = vector.extract_strided_slice %25 {offsets = [48, 0], sizes = [16, 1], strides = [1, 1]} : vector<64x1xf32> to vector<16x1xf32>
      %38 = arith.addf %34, %37 : vector<16x1xf32>
      %39 = vector.extract_strided_slice %26 {offsets = [48, 0], sizes = [16, 1], strides = [1, 1]} : vector<64x1xf32> to vector<16x1xf32>
      %40 = arith.addf %36, %39 : vector<16x1xf32>
      %cst_21 = arith.constant 3.906250e-03 : f32
      %41 = vector.broadcast %cst_21 : f32 to vector<16x1xf32>
      %42 = arith.mulf %38, %41 : vector<16x1xf32>
      %cst_22 = arith.constant 3.906250e-03 : f32
      %43 = vector.broadcast %cst_22 : f32 to vector<16x1xf32>
      %44 = arith.mulf %40, %43 : vector<16x1xf32>
      %45 = arith.mulf %42, %42 : vector<16x1xf32>
      %46 = arith.subf %44, %45 : vector<16x1xf32>
      %cst_23 = arith.constant 0.000000e+00 : f32
      %47 = vector.broadcast %cst_23 : f32 to vector<16x1xf32>
      %48 = arith.maximumf %46, %47 : vector<16x1xf32>
      %cst_24 = arith.constant 9.99999974E-6 : f32
      %49 = vector.broadcast %cst_24 : f32 to vector<16x1xf32>
      %50 = arith.addf %48, %49 : vector<16x1xf32>
      %51 = math.rsqrt %50 : vector<16x1xf32>
      %52 = tpu.concatenate %42, %42, %42, %42 in 0 : vector<16x1xf32>, vector<16x1xf32>, vector<16x1xf32>, vector<16x1xf32> -> vector<64x1xf32>
      %53 = tpu.concatenate %51, %51, %51, %51 in 0 : vector<16x1xf32>, vector<16x1xf32>, vector<16x1xf32>, vector<16x1xf32> -> vector<64x1xf32>
      %c0_25 = arith.constant 0 : index
      %c0_26 = arith.constant 0 : index
      %54 = vector.load %arg3[%c0_25, %c0_26] : memref<64x1xf32, #tpu.memory_space<vmem>>, vector<64x1xf32>
      %55 = arith.mulf %54, %53 : vector<64x1xf32>
      %c0_27 = arith.constant 0 : index
      %c0_28 = arith.constant 0 : index
      %56 = vector.load %arg4[%c0_27, %c0_28] : memref<64x1xf32, #tpu.memory_space<vmem>>, vector<64x1xf32>
      %57 = arith.mulf %52, %55 : vector<64x1xf32>
      %58 = arith.subf %56, %57 : vector<64x1xf32>
      %c0_29 = arith.constant 0 : index
      %c0_30 = arith.constant 0 : index
      %59 = vector.load %arg5[%c0_29, %c0_30] : memref<64x128xbf16, #tpu.memory_space<vmem>>, vector<64x128xbf16>
      %60 = arith.extf %59 : vector<64x128xbf16> to vector<64x128xf32>
      %61 = vector.broadcast %55 : vector<64x1xf32> to vector<64x128xf32>
      %62 = arith.mulf %60, %61 : vector<64x128xf32>
      %63 = vector.broadcast %58 : vector<64x1xf32> to vector<64x128xf32>
      %64 = arith.addf %62, %63 : vector<64x128xf32>
      %cst_31 = arith.constant 0.000000e+00 : f32
      %65 = vector.broadcast %cst_31 : f32 to vector<64x128xf32>
      %66 = arith.maximumf %64, %65 : vector<64x128xf32>
      %67 = arith.truncf %66 : vector<64x128xf32> to vector<64x128xbf16>
      %c0_32 = arith.constant 0 : index
      %c0_33 = arith.constant 0 : index
      %68 = vector.load %arg5[%c0_32, %c0_33] : memref<64x128xbf16, #tpu.memory_space<vmem>>, vector<64x128xbf16>
      tpu.vector_store %arg5[%c0_32, %c0_33], %67 {strides = array<i32>} : memref<64x128xbf16, #tpu.memory_space<vmem>>, vector<64x128xbf16>,
    } else {
    }
    return
  }
  func.func @transform_0(%arg0: i32) -> (i32, i32) {
    %c0_i32 = arith.constant 0 : i32
    %c0_i32_0 = arith.constant 0 : i32
    return %c0_i32, %arg0 : i32, i32
  }
  func.func @transform_1(%arg0: i32) -> (i32, i32) {
    %c0_i32 = arith.constant 0 : i32
    %c0_i32_0 = arith.constant 0 : i32
    %c0_i32_1 = arith.constant 0 : i32
    return %c0_i32, %c0_i32_0 : i32, i32
  }
  func.func @transform_2(%arg0: i32) -> (i32, i32) {
    %c0_i32 = arith.constant 0 : i32
    %c0_i32_0 = arith.constant 0 : i32
    %c0_i32_1 = arith.constant 0 : i32
    return %c0_i32, %c0_i32_0 : i32, i32
  }
  func.func @transform_3(%arg0: i32) -> (i32, i32) {
    %c0_i32 = arith.constant 0 : i32
    %c0_i32_0 = arith.constant 0 : i32
    %c0_i32_1 = arith.constant 0 : i32
    return %c0_i32, %c0_i32_0 : i32, i32
  }
  func.func @transform_4(%arg0: i32) -> (i32, i32) {
    %c0_i32 = arith.constant 0 : i32
    %c0_i32_0 = arith.constant 0 : i32
    %c0_i32_1 = arith.constant 0 : i32
    return %c0_i32, %c0_i32_0 : i32, i32
  }
}

module attributes {stable_mosaic.version = 11 : i64} {
  func.func @_matmul_bn_relu_kernel(%arg0: i32, %arg1: memref<144x256xbf16, #tpu.memory_space<vmem>>, %arg2: memref<32x144xbf16, #tpu.memory_space<vmem>>, %arg3: memref<32x1xf32, #tpu.memory_space<vmem>>, %arg4: memref<32x1xf32, #tpu.memory_space<vmem>>, %arg5: memref<32x256xbf16, #tpu.memory_space<vmem>>, %arg6: memref<32x1xf32, #tpu.memory_space<vmem>>, %arg7: memref<32x1xf32, #tpu.memory_space<vmem>>) attributes {dimension_semantics = [#tpu.dimension_semantics<arbitrary>], iteration_bounds = array<i64: 1>, scalar_prefetch = 0 : i64, scratch_operands = 2 : i64, tpu.core_type = #tpu.core_type<tc>, window_params = [{transform_indices = @transform_0, window_bounds = array<i64: 144, 256>}, {pipeline_mode = #tpu.pipeline_mode<synchronous>, transform_indices = @transform_1, window_bounds = array<i64: 32, 144>}, {pipeline_mode = #tpu.pipeline_mode<synchronous>, transform_indices = @transform_2, window_bounds = array<i64: 32, 1>}, {pipeline_mode = #tpu.pipeline_mode<synchronous>, transform_indices = @transform_3, window_bounds = array<i64: 32, 1>}, {pipeline_mode = #tpu.pipeline_mode<synchronous>, transform_indices = @transform_4, window_bounds = array<i64: 32, 256>}]} {
    %c0_i32 = arith.constant 0 : i32
    %0 = arith.cmpi eq, %arg0, %c0_i32 : i32
    %1 = arith.extui %0 : i1 to i32
    %c0_i32_0 = arith.constant 0 : i32
    %2 = arith.cmpi ne, %1, %c0_i32_0 : i32
    scf.if %2 {
      %cst_17 = arith.constant 0.000000e+00 : f32
      %25 = vector.broadcast %cst_17 : f32 to vector<32x1xf32>
      %c0_18 = arith.constant 0 : index
      %c0_19 = arith.constant 0 : index
      %26 = vector.load %arg6[%c0_18, %c0_19] : memref<32x1xf32, #tpu.memory_space<vmem>>, vector<32x1xf32>
      tpu.vector_store %arg6[%c0_18, %c0_19], %25 {strides = array<i32>} : memref<32x1xf32, #tpu.memory_space<vmem>>, vector<32x1xf32>,
      %cst_20 = arith.constant 0.000000e+00 : f32
      %27 = vector.broadcast %cst_20 : f32 to vector<32x1xf32>
      %c0_21 = arith.constant 0 : index
      %c0_22 = arith.constant 0 : index
      %28 = vector.load %arg7[%c0_21, %c0_22] : memref<32x1xf32, #tpu.memory_space<vmem>>, vector<32x1xf32>
      tpu.vector_store %arg7[%c0_21, %c0_22], %27 {strides = array<i32>} : memref<32x1xf32, #tpu.memory_space<vmem>>, vector<32x1xf32>,
    } else {
    }
    %c0 = arith.constant 0 : index
    %c0_1 = arith.constant 0 : index
    %3 = vector.load %arg2[%c0, %c0_1] : memref<32x144xbf16, #tpu.memory_space<vmem>>, vector<32x144xbf16>
    %c0_2 = arith.constant 0 : index
    %c0_3 = arith.constant 0 : index
    %4 = vector.load %arg1[%c0_2, %c0_3] : memref<144x256xbf16, #tpu.memory_space<vmem>>, vector<144x256xbf16>
    %cst = arith.constant dense<0.000000e+00> : vector<32x256xf32>
    %5 = tpu.matmul %3, %4, %cst {dimension_numbers = #tpu.dot_dimension_numbers<[1], [0], [0], [1], [0, 0, 1, 1], [], []>} : vector<32x144xbf16>, vector<144x256xbf16>, vector<32x256xf32> -> vector<32x256xf32>
    %c0_4 = arith.constant 0 : index
    %c0_5 = arith.constant 0 : index
    %6 = vector.load %arg6[%c0_4, %c0_5] : memref<32x1xf32, #tpu.memory_space<vmem>>, vector<32x1xf32>
    %cst_6 = arith.constant dense<0.000000e+00> : vector<32xf32>
    %7 = vector.multi_reduction <add>, %5, %cst_6 [1] : vector<32x256xf32> to vector<32xf32>
    %8 = vector.shape_cast %7 : vector<32xf32> to vector<32x1xf32>
    %9 = arith.addf %6, %8 : vector<32x1xf32>
    %c0_7 = arith.constant 0 : index
    %c0_8 = arith.constant 0 : index
    %10 = vector.load %arg6[%c0_7, %c0_8] : memref<32x1xf32, #tpu.memory_space<vmem>>, vector<32x1xf32>
    tpu.vector_store %arg6[%c0_7, %c0_8], %9 {strides = array<i32>} : memref<32x1xf32, #tpu.memory_space<vmem>>, vector<32x1xf32>,
    %c0_9 = arith.constant 0 : index
    %c0_10 = arith.constant 0 : index
    %11 = vector.load %arg7[%c0_9, %c0_10] : memref<32x1xf32, #tpu.memory_space<vmem>>, vector<32x1xf32>
    %12 = arith.mulf %5, %5 : vector<32x256xf32>
    %cst_11 = arith.constant dense<0.000000e+00> : vector<32xf32>
    %13 = vector.multi_reduction <add>, %12, %cst_11 [1] : vector<32x256xf32> to vector<32xf32>
    %14 = vector.shape_cast %13 : vector<32xf32> to vector<32x1xf32>
    %15 = arith.addf %11, %14 : vector<32x1xf32>
    %c0_12 = arith.constant 0 : index
    %c0_13 = arith.constant 0 : index
    %16 = vector.load %arg7[%c0_12, %c0_13] : memref<32x1xf32, #tpu.memory_space<vmem>>, vector<32x1xf32>
    tpu.vector_store %arg7[%c0_12, %c0_13], %15 {strides = array<i32>} : memref<32x1xf32, #tpu.memory_space<vmem>>, vector<32x1xf32>,
    %c256_i32 = arith.constant 256 : i32
    %17 = arith.muli %arg0, %c256_i32 : i32
    %18 = tpu.assume_multiple %17, 128 : i32
    %19 = arith.truncf %5 : vector<32x256xf32> to vector<32x256xbf16>
    %c0_14 = arith.constant 0 : index
    %20 = arith.index_cast %18 : i32 to index
    %21 = vector.load %arg5[%c0_14, %20] : memref<32x256xbf16, #tpu.memory_space<vmem>>, vector<32x256xbf16>
    tpu.vector_store %arg5[%c0_14, %20], %19 {strides = array<i32>} : memref<32x256xbf16, #tpu.memory_space<vmem>>, vector<32x256xbf16>,
    %c0_i32_15 = arith.constant 0 : i32
    %22 = arith.cmpi eq, %arg0, %c0_i32_15 : i32
    %23 = arith.extui %22 : i1 to i32
    %c0_i32_16 = arith.constant 0 : i32
    %24 = arith.cmpi ne, %23, %c0_i32_16 : i32
    scf.if %24 {
      %c0_17 = arith.constant 0 : index
      %c0_18 = arith.constant 0 : index
      %25 = vector.load %arg6[%c0_17, %c0_18] : memref<32x1xf32, #tpu.memory_space<vmem>>, vector<32x1xf32>
      %c0_19 = arith.constant 0 : index
      %c0_20 = arith.constant 0 : index
      %26 = vector.load %arg7[%c0_19, %c0_20] : memref<32x1xf32, #tpu.memory_space<vmem>>, vector<32x1xf32>
      %27 = vector.extract_strided_slice %25 {offsets = [0, 0], sizes = [8, 1], strides = [1, 1]} : vector<32x1xf32> to vector<8x1xf32>
      %28 = vector.extract_strided_slice %26 {offsets = [0, 0], sizes = [8, 1], strides = [1, 1]} : vector<32x1xf32> to vector<8x1xf32>
      %29 = vector.extract_strided_slice %25 {offsets = [8, 0], sizes = [8, 1], strides = [1, 1]} : vector<32x1xf32> to vector<8x1xf32>
      %30 = arith.addf %27, %29 : vector<8x1xf32>
      %31 = vector.extract_strided_slice %26 {offsets = [8, 0], sizes = [8, 1], strides = [1, 1]} : vector<32x1xf32> to vector<8x1xf32>
      %32 = arith.addf %28, %31 : vector<8x1xf32>
      %33 = vector.extract_strided_slice %25 {offsets = [16, 0], sizes = [8, 1], strides = [1, 1]} : vector<32x1xf32> to vector<8x1xf32>
      %34 = arith.addf %30, %33 : vector<8x1xf32>
      %35 = vector.extract_strided_slice %26 {offsets = [16, 0], sizes = [8, 1], strides = [1, 1]} : vector<32x1xf32> to vector<8x1xf32>
      %36 = arith.addf %32, %35 : vector<8x1xf32>
      %37 = vector.extract_strided_slice %25 {offsets = [24, 0], sizes = [8, 1], strides = [1, 1]} : vector<32x1xf32> to vector<8x1xf32>
      %38 = arith.addf %34, %37 : vector<8x1xf32>
      %39 = vector.extract_strided_slice %26 {offsets = [24, 0], sizes = [8, 1], strides = [1, 1]} : vector<32x1xf32> to vector<8x1xf32>
      %40 = arith.addf %36, %39 : vector<8x1xf32>
      %cst_21 = arith.constant 9.765625E-4 : f32
      %41 = vector.broadcast %cst_21 : f32 to vector<8x1xf32>
      %42 = arith.mulf %38, %41 : vector<8x1xf32>
      %cst_22 = arith.constant 9.765625E-4 : f32
      %43 = vector.broadcast %cst_22 : f32 to vector<8x1xf32>
      %44 = arith.mulf %40, %43 : vector<8x1xf32>
      %45 = arith.mulf %42, %42 : vector<8x1xf32>
      %46 = arith.subf %44, %45 : vector<8x1xf32>
      %cst_23 = arith.constant 0.000000e+00 : f32
      %47 = vector.broadcast %cst_23 : f32 to vector<8x1xf32>
      %48 = arith.maximumf %46, %47 : vector<8x1xf32>
      %cst_24 = arith.constant 9.99999974E-6 : f32
      %49 = vector.broadcast %cst_24 : f32 to vector<8x1xf32>
      %50 = arith.addf %48, %49 : vector<8x1xf32>
      %51 = math.rsqrt %50 : vector<8x1xf32>
      %52 = tpu.concatenate %42, %42, %42, %42 in 0 : vector<8x1xf32>, vector<8x1xf32>, vector<8x1xf32>, vector<8x1xf32> -> vector<32x1xf32>
      %53 = tpu.concatenate %51, %51, %51, %51 in 0 : vector<8x1xf32>, vector<8x1xf32>, vector<8x1xf32>, vector<8x1xf32> -> vector<32x1xf32>
      %c0_25 = arith.constant 0 : index
      %c0_26 = arith.constant 0 : index
      %54 = vector.load %arg3[%c0_25, %c0_26] : memref<32x1xf32, #tpu.memory_space<vmem>>, vector<32x1xf32>
      %55 = arith.mulf %54, %53 : vector<32x1xf32>
      %c0_27 = arith.constant 0 : index
      %c0_28 = arith.constant 0 : index
      %56 = vector.load %arg4[%c0_27, %c0_28] : memref<32x1xf32, #tpu.memory_space<vmem>>, vector<32x1xf32>
      %57 = arith.mulf %52, %55 : vector<32x1xf32>
      %58 = arith.subf %56, %57 : vector<32x1xf32>
      %c0_29 = arith.constant 0 : index
      %c0_30 = arith.constant 0 : index
      %59 = vector.load %arg5[%c0_29, %c0_30] : memref<32x256xbf16, #tpu.memory_space<vmem>>, vector<32x256xbf16>
      %60 = arith.extf %59 : vector<32x256xbf16> to vector<32x256xf32>
      %61 = vector.broadcast %55 : vector<32x1xf32> to vector<32x256xf32>
      %62 = arith.mulf %60, %61 : vector<32x256xf32>
      %63 = vector.broadcast %58 : vector<32x1xf32> to vector<32x256xf32>
      %64 = arith.addf %62, %63 : vector<32x256xf32>
      %cst_31 = arith.constant 0.000000e+00 : f32
      %65 = vector.broadcast %cst_31 : f32 to vector<32x256xf32>
      %66 = arith.maximumf %64, %65 : vector<32x256xf32>
      %67 = arith.truncf %66 : vector<32x256xf32> to vector<32x256xbf16>
      %c0_32 = arith.constant 0 : index
      %c0_33 = arith.constant 0 : index
      %68 = vector.load %arg5[%c0_32, %c0_33] : memref<32x256xbf16, #tpu.memory_space<vmem>>, vector<32x256xbf16>
      tpu.vector_store %arg5[%c0_32, %c0_33], %67 {strides = array<i32>} : memref<32x256xbf16, #tpu.memory_space<vmem>>, vector<32x256xbf16>,
    } else {
    }
    return
  }
  func.func @transform_0(%arg0: i32) -> (i32, i32) {
    %c0_i32 = arith.constant 0 : i32
    %c0_i32_0 = arith.constant 0 : i32
    return %c0_i32, %arg0 : i32, i32
  }
  func.func @transform_1(%arg0: i32) -> (i32, i32) {
    %c0_i32 = arith.constant 0 : i32
    %c0_i32_0 = arith.constant 0 : i32
    %c0_i32_1 = arith.constant 0 : i32
    return %c0_i32, %c0_i32_0 : i32, i32
  }
  func.func @transform_2(%arg0: i32) -> (i32, i32) {
    %c0_i32 = arith.constant 0 : i32
    %c0_i32_0 = arith.constant 0 : i32
    %c0_i32_1 = arith.constant 0 : i32
    return %c0_i32, %c0_i32_0 : i32, i32
  }
  func.func @transform_3(%arg0: i32) -> (i32, i32) {
    %c0_i32 = arith.constant 0 : i32
    %c0_i32_0 = arith.constant 0 : i32
    %c0_i32_1 = arith.constant 0 : i32
    return %c0_i32, %c0_i32_0 : i32, i32
  }
  func.func @transform_4(%arg0: i32) -> (i32, i32) {
    %c0_i32 = arith.constant 0 : i32
    %c0_i32_0 = arith.constant 0 : i32
    %c0_i32_1 = arith.constant 0 : i32
    return %c0_i32, %c0_i32_0 : i32, i32
  }
}

module attributes {stable_mosaic.version = 11 : i64} {
  func.func @_matmul_bn_relu_kernel(%arg0: i32, %arg1: memref<72x1024xbf16, #tpu.memory_space<vmem>>, %arg2: memref<16x72xbf16, #tpu.memory_space<vmem>>, %arg3: memref<16x1xf32, #tpu.memory_space<vmem>>, %arg4: memref<16x1xf32, #tpu.memory_space<vmem>>, %arg5: memref<16x1024xbf16, #tpu.memory_space<vmem>>, %arg6: memref<16x1xf32, #tpu.memory_space<vmem>>, %arg7: memref<16x1xf32, #tpu.memory_space<vmem>>) attributes {dimension_semantics = [#tpu.dimension_semantics<arbitrary>], iteration_bounds = array<i64: 1>, scalar_prefetch = 0 : i64, scratch_operands = 2 : i64, tpu.core_type = #tpu.core_type<tc>, window_params = [{transform_indices = @transform_0, window_bounds = array<i64: 72, 1024>}, {pipeline_mode = #tpu.pipeline_mode<synchronous>, transform_indices = @transform_1, window_bounds = array<i64: 16, 72>}, {pipeline_mode = #tpu.pipeline_mode<synchronous>, transform_indices = @transform_2, window_bounds = array<i64: 16, 1>}, {pipeline_mode = #tpu.pipeline_mode<synchronous>, transform_indices = @transform_3, window_bounds = array<i64: 16, 1>}, {pipeline_mode = #tpu.pipeline_mode<synchronous>, transform_indices = @transform_4, window_bounds = array<i64: 16, 1024>}]} {
    %c0_i32 = arith.constant 0 : i32
    %0 = arith.cmpi eq, %arg0, %c0_i32 : i32
    %1 = arith.extui %0 : i1 to i32
    %c0_i32_0 = arith.constant 0 : i32
    %2 = arith.cmpi ne, %1, %c0_i32_0 : i32
    scf.if %2 {
      %cst_17 = arith.constant 0.000000e+00 : f32
      %25 = vector.broadcast %cst_17 : f32 to vector<16x1xf32>
      %c0_18 = arith.constant 0 : index
      %c0_19 = arith.constant 0 : index
      %26 = vector.load %arg6[%c0_18, %c0_19] : memref<16x1xf32, #tpu.memory_space<vmem>>, vector<16x1xf32>
      tpu.vector_store %arg6[%c0_18, %c0_19], %25 {strides = array<i32>} : memref<16x1xf32, #tpu.memory_space<vmem>>, vector<16x1xf32>,
      %cst_20 = arith.constant 0.000000e+00 : f32
      %27 = vector.broadcast %cst_20 : f32 to vector<16x1xf32>
      %c0_21 = arith.constant 0 : index
      %c0_22 = arith.constant 0 : index
      %28 = vector.load %arg7[%c0_21, %c0_22] : memref<16x1xf32, #tpu.memory_space<vmem>>, vector<16x1xf32>
      tpu.vector_store %arg7[%c0_21, %c0_22], %27 {strides = array<i32>} : memref<16x1xf32, #tpu.memory_space<vmem>>, vector<16x1xf32>,
    } else {
    }
    %c0 = arith.constant 0 : index
    %c0_1 = arith.constant 0 : index
    %3 = vector.load %arg2[%c0, %c0_1] : memref<16x72xbf16, #tpu.memory_space<vmem>>, vector<16x72xbf16>
    %c0_2 = arith.constant 0 : index
    %c0_3 = arith.constant 0 : index
    %4 = vector.load %arg1[%c0_2, %c0_3] : memref<72x1024xbf16, #tpu.memory_space<vmem>>, vector<72x1024xbf16>
    %cst = arith.constant dense<0.000000e+00> : vector<16x1024xf32>
    %5 = tpu.matmul %3, %4, %cst {dimension_numbers = #tpu.dot_dimension_numbers<[1], [0], [0], [1], [0, 0, 1, 1], [], []>} : vector<16x72xbf16>, vector<72x1024xbf16>, vector<16x1024xf32> -> vector<16x1024xf32>
    %c0_4 = arith.constant 0 : index
    %c0_5 = arith.constant 0 : index
    %6 = vector.load %arg6[%c0_4, %c0_5] : memref<16x1xf32, #tpu.memory_space<vmem>>, vector<16x1xf32>
    %cst_6 = arith.constant dense<0.000000e+00> : vector<16xf32>
    %7 = vector.multi_reduction <add>, %5, %cst_6 [1] : vector<16x1024xf32> to vector<16xf32>
    %8 = vector.shape_cast %7 : vector<16xf32> to vector<16x1xf32>
    %9 = arith.addf %6, %8 : vector<16x1xf32>
    %c0_7 = arith.constant 0 : index
    %c0_8 = arith.constant 0 : index
    %10 = vector.load %arg6[%c0_7, %c0_8] : memref<16x1xf32, #tpu.memory_space<vmem>>, vector<16x1xf32>
    tpu.vector_store %arg6[%c0_7, %c0_8], %9 {strides = array<i32>} : memref<16x1xf32, #tpu.memory_space<vmem>>, vector<16x1xf32>,
    %c0_9 = arith.constant 0 : index
    %c0_10 = arith.constant 0 : index
    %11 = vector.load %arg7[%c0_9, %c0_10] : memref<16x1xf32, #tpu.memory_space<vmem>>, vector<16x1xf32>
    %12 = arith.mulf %5, %5 : vector<16x1024xf32>
    %cst_11 = arith.constant dense<0.000000e+00> : vector<16xf32>
    %13 = vector.multi_reduction <add>, %12, %cst_11 [1] : vector<16x1024xf32> to vector<16xf32>
    %14 = vector.shape_cast %13 : vector<16xf32> to vector<16x1xf32>
    %15 = arith.addf %11, %14 : vector<16x1xf32>
    %c0_12 = arith.constant 0 : index
    %c0_13 = arith.constant 0 : index
    %16 = vector.load %arg7[%c0_12, %c0_13] : memref<16x1xf32, #tpu.memory_space<vmem>>, vector<16x1xf32>
    tpu.vector_store %arg7[%c0_12, %c0_13], %15 {strides = array<i32>} : memref<16x1xf32, #tpu.memory_space<vmem>>, vector<16x1xf32>,
    %c1024_i32 = arith.constant 1024 : i32
    %17 = arith.muli %arg0, %c1024_i32 : i32
    %18 = tpu.assume_multiple %17, 128 : i32
    %19 = arith.truncf %5 : vector<16x1024xf32> to vector<16x1024xbf16>
    %c0_14 = arith.constant 0 : index
    %20 = arith.index_cast %18 : i32 to index
    %21 = vector.load %arg5[%c0_14, %20] : memref<16x1024xbf16, #tpu.memory_space<vmem>>, vector<16x1024xbf16>
    tpu.vector_store %arg5[%c0_14, %20], %19 {strides = array<i32>} : memref<16x1024xbf16, #tpu.memory_space<vmem>>, vector<16x1024xbf16>,
    %c0_i32_15 = arith.constant 0 : i32
    %22 = arith.cmpi eq, %arg0, %c0_i32_15 : i32
    %23 = arith.extui %22 : i1 to i32
    %c0_i32_16 = arith.constant 0 : i32
    %24 = arith.cmpi ne, %23, %c0_i32_16 : i32
    scf.if %24 {
      %c0_17 = arith.constant 0 : index
      %c0_18 = arith.constant 0 : index
      %25 = vector.load %arg6[%c0_17, %c0_18] : memref<16x1xf32, #tpu.memory_space<vmem>>, vector<16x1xf32>
      %c0_19 = arith.constant 0 : index
      %c0_20 = arith.constant 0 : index
      %26 = vector.load %arg7[%c0_19, %c0_20] : memref<16x1xf32, #tpu.memory_space<vmem>>, vector<16x1xf32>
      %27 = vector.extract_strided_slice %25 {offsets = [0, 0], sizes = [4, 1], strides = [1, 1]} : vector<16x1xf32> to vector<4x1xf32>
      %28 = vector.extract_strided_slice %26 {offsets = [0, 0], sizes = [4, 1], strides = [1, 1]} : vector<16x1xf32> to vector<4x1xf32>
      %29 = vector.extract_strided_slice %25 {offsets = [4, 0], sizes = [4, 1], strides = [1, 1]} : vector<16x1xf32> to vector<4x1xf32>
      %30 = arith.addf %27, %29 : vector<4x1xf32>
      %31 = vector.extract_strided_slice %26 {offsets = [4, 0], sizes = [4, 1], strides = [1, 1]} : vector<16x1xf32> to vector<4x1xf32>
      %32 = arith.addf %28, %31 : vector<4x1xf32>
      %33 = vector.extract_strided_slice %25 {offsets = [8, 0], sizes = [4, 1], strides = [1, 1]} : vector<16x1xf32> to vector<4x1xf32>
      %34 = arith.addf %30, %33 : vector<4x1xf32>
      %35 = vector.extract_strided_slice %26 {offsets = [8, 0], sizes = [4, 1], strides = [1, 1]} : vector<16x1xf32> to vector<4x1xf32>
      %36 = arith.addf %32, %35 : vector<4x1xf32>
      %37 = vector.extract_strided_slice %25 {offsets = [12, 0], sizes = [4, 1], strides = [1, 1]} : vector<16x1xf32> to vector<4x1xf32>
      %38 = arith.addf %34, %37 : vector<4x1xf32>
      %39 = vector.extract_strided_slice %26 {offsets = [12, 0], sizes = [4, 1], strides = [1, 1]} : vector<16x1xf32> to vector<4x1xf32>
      %40 = arith.addf %36, %39 : vector<4x1xf32>
      %cst_21 = arith.constant 2.44140625E-4 : f32
      %41 = vector.broadcast %cst_21 : f32 to vector<4x1xf32>
      %42 = arith.mulf %38, %41 : vector<4x1xf32>
      %cst_22 = arith.constant 2.44140625E-4 : f32
      %43 = vector.broadcast %cst_22 : f32 to vector<4x1xf32>
      %44 = arith.mulf %40, %43 : vector<4x1xf32>
      %45 = arith.mulf %42, %42 : vector<4x1xf32>
      %46 = arith.subf %44, %45 : vector<4x1xf32>
      %cst_23 = arith.constant 0.000000e+00 : f32
      %47 = vector.broadcast %cst_23 : f32 to vector<4x1xf32>
      %48 = arith.maximumf %46, %47 : vector<4x1xf32>
      %cst_24 = arith.constant 9.99999974E-6 : f32
      %49 = vector.broadcast %cst_24 : f32 to vector<4x1xf32>
      %50 = arith.addf %48, %49 : vector<4x1xf32>
      %51 = math.rsqrt %50 : vector<4x1xf32>
      %52 = tpu.concatenate %42, %42, %42, %42 in 0 : vector<4x1xf32>, vector<4x1xf32>, vector<4x1xf32>, vector<4x1xf32> -> vector<16x1xf32>
      %53 = tpu.concatenate %51, %51, %51, %51 in 0 : vector<4x1xf32>, vector<4x1xf32>, vector<4x1xf32>, vector<4x1xf32> -> vector<16x1xf32>
      %c0_25 = arith.constant 0 : index
      %c0_26 = arith.constant 0 : index
      %54 = vector.load %arg3[%c0_25, %c0_26] : memref<16x1xf32, #tpu.memory_space<vmem>>, vector<16x1xf32>
      %55 = arith.mulf %54, %53 : vector<16x1xf32>
      %c0_27 = arith.constant 0 : index
      %c0_28 = arith.constant 0 : index
      %56 = vector.load %arg4[%c0_27, %c0_28] : memref<16x1xf32, #tpu.memory_space<vmem>>, vector<16x1xf32>
      %57 = arith.mulf %52, %55 : vector<16x1xf32>
      %58 = arith.subf %56, %57 : vector<16x1xf32>
      %c0_29 = arith.constant 0 : index
      %c0_30 = arith.constant 0 : index
      %59 = vector.load %arg5[%c0_29, %c0_30] : memref<16x1024xbf16, #tpu.memory_space<vmem>>, vector<16x1024xbf16>
      %60 = arith.extf %59 : vector<16x1024xbf16> to vector<16x1024xf32>
      %61 = vector.broadcast %55 : vector<16x1xf32> to vector<16x1024xf32>
      %62 = arith.mulf %60, %61 : vector<16x1024xf32>
      %63 = vector.broadcast %58 : vector<16x1xf32> to vector<16x1024xf32>
      %64 = arith.addf %62, %63 : vector<16x1024xf32>
      %cst_31 = arith.constant 0.000000e+00 : f32
      %65 = vector.broadcast %cst_31 : f32 to vector<16x1024xf32>
      %66 = arith.maximumf %64, %65 : vector<16x1024xf32>
      %67 = arith.truncf %66 : vector<16x1024xf32> to vector<16x1024xbf16>
      %c0_32 = arith.constant 0 : index
      %c0_33 = arith.constant 0 : index
      %68 = vector.load %arg5[%c0_32, %c0_33] : memref<16x1024xbf16, #tpu.memory_space<vmem>>, vector<16x1024xbf16>
      tpu.vector_store %arg5[%c0_32, %c0_33], %67 {strides = array<i32>} : memref<16x1024xbf16, #tpu.memory_space<vmem>>, vector<16x1024xbf16>,
    } else {
    }
    return
  }
  func.func @transform_0(%arg0: i32) -> (i32, i32) {
    %c0_i32 = arith.constant 0 : i32
    %c0_i32_0 = arith.constant 0 : i32
    return %c0_i32, %arg0 : i32, i32
  }
  func.func @transform_1(%arg0: i32) -> (i32, i32) {
    %c0_i32 = arith.constant 0 : i32
    %c0_i32_0 = arith.constant 0 : i32
    %c0_i32_1 = arith.constant 0 : i32
    return %c0_i32, %c0_i32_0 : i32, i32
  }
  func.func @transform_2(%arg0: i32) -> (i32, i32) {
    %c0_i32 = arith.constant 0 : i32
    %c0_i32_0 = arith.constant 0 : i32
    %c0_i32_1 = arith.constant 0 : i32
    return %c0_i32, %c0_i32_0 : i32, i32
  }
  func.func @transform_3(%arg0: i32) -> (i32, i32) {
    %c0_i32 = arith.constant 0 : i32
    %c0_i32_0 = arith.constant 0 : i32
    %c0_i32_1 = arith.constant 0 : i32
    return %c0_i32, %c0_i32_0 : i32, i32
  }
  func.func @transform_4(%arg0: i32) -> (i32, i32) {
    %c0_i32 = arith.constant 0 : i32
    %c0_i32_0 = arith.constant 0 : i32
    %c0_i32_1 = arith.constant 0 : i32
    return %c0_i32, %c0_i32_0 : i32, i32
  }
}

module attributes {stable_mosaic.version = 11 : i64} {
  func.func @_matmul_tanh_kernel(%arg0: i32, %arg1: memref<36x4096xbf16, #tpu.memory_space<vmem>>, %arg2: memref<12x36xbf16, #tpu.memory_space<vmem>>, %arg3: memref<12x4096xf32, #tpu.memory_space<vmem>>) attributes {dimension_semantics = [#tpu.dimension_semantics<parallel>], iteration_bounds = array<i64: 1>, scalar_prefetch = 0 : i64, scratch_operands = 0 : i64, tpu.core_type = #tpu.core_type<tc>, window_params = [{transform_indices = @transform_0, window_bounds = array<i64: 36, 4096>}, {pipeline_mode = #tpu.pipeline_mode<synchronous>, transform_indices = @transform_1, window_bounds = array<i64: 12, 36>}, {transform_indices = @transform_2, window_bounds = array<i64: 12, 4096>}]} {
    %c0 = arith.constant 0 : index
    %c0_0 = arith.constant 0 : index
    %0 = vector.load %arg2[%c0, %c0_0] : memref<12x36xbf16, #tpu.memory_space<vmem>>, vector<12x36xbf16>
    %c0_1 = arith.constant 0 : index
    %c0_2 = arith.constant 0 : index
    %1 = vector.load %arg1[%c0_1, %c0_2] : memref<36x4096xbf16, #tpu.memory_space<vmem>>, vector<36x4096xbf16>
    %cst = arith.constant dense<0.000000e+00> : vector<12x4096xf32>
    %2 = tpu.matmul %0, %1, %cst {dimension_numbers = #tpu.dot_dimension_numbers<[1], [0], [0], [1], [0, 0, 1, 1], [], []>} : vector<12x36xbf16>, vector<36x4096xbf16>, vector<12x4096xf32> -> vector<12x4096xf32>
    %3 = math.tanh %2 : vector<12x4096xf32>
    %c0_3 = arith.constant 0 : index
    %c0_4 = arith.constant 0 : index
    %4 = vector.load %arg3[%c0_3, %c0_4] : memref<12x4096xf32, #tpu.memory_space<vmem>>, vector<12x4096xf32>
    tpu.vector_store %arg3[%c0_3, %c0_4], %3 {strides = array<i32>} : memref<12x4096xf32, #tpu.memory_space<vmem>>, vector<12x4096xf32>,
    return
  }
  func.func @transform_0(%arg0: i32) -> (i32, i32) {
    %c0_i32 = arith.constant 0 : i32
    %c0_i32_0 = arith.constant 0 : i32
    return %c0_i32, %arg0 : i32, i32
  }
  func.func @transform_1(%arg0: i32) -> (i32, i32) {
    %c0_i32 = arith.constant 0 : i32
    %c0_i32_0 = arith.constant 0 : i32
    %c0_i32_1 = arith.constant 0 : i32
    return %c0_i32, %c0_i32_0 : i32, i32
  }
  func.func @transform_2(%arg0: i32) -> (i32, i32) {
    %c0_i32 = arith.constant 0 : i32
    %c0_i32_0 = arith.constant 0 : i32
    return %c0_i32, %arg0 : i32, i32
  }
}

</mosaic_0001>

<bundles_post_ra>
// kernel: quick_generator_forward.6
= control target key start
LH: loop header
LB: loop body
LE: loop exit
PB: predicated region body
PF: predicated region fallthrough
CT: control target
= control target key end

     0   :  { %vm259_vm0 = vcmask 261120   ;;  %vm22_vm1 = vcmask 7168   ;;  %v1034_v30 = vmov 0.0   ;;  %s1271_s0 = inlined_call_operand.vmem [shape: bf16[288,128], index: 0, kind: input, shape index: {}]   ;;  %s1272_s1 = inlined_call_operand.vmem [shape: bf16[64,288], index: 1, kind: input, shape index: {}]   ;;  %s1273_s2 = inlined_call_operand.vmem [shape: f32[64,1], index: 2, kind: input, shape index: {}]   ;;  %s1274_s3 = inlined_call_operand.vmem [shape: f32[64,1], index: 3, kind: input, shape index: {}]   ;;  %s1275_s4 = inlined_call_operand.vmem [shape: bf16[64,128], index: 4, kind: output, shape index: {}]  }
   0x1   :  { %v996_v0 = vld [vmem:[%s1271_s0 + $0x78] sm:$0xff]   ;;  %v998_v2 = vld [vmem:[%s1271_s0 + $0x70] sm:$0xff]   ;;  %v1000_v4 = vld [vmem:[%s1271_s0 + $0x68] sm:$0xff]   ;;  %23 = vst.msk [vmem:[#allocation2] sm:$0xff] %vm22_vm1, %v1034_v30 }
   0x2   :  { %v997_v1 = vld [vmem:[%s1271_s0 + $0x38] sm:$0xff]   ;;  %918 = vmatprep.subr.bf16.mxu0 %v996_v0  ;;  %976 = vmatprep.subr.bf16.mxu1 %v996_v0  ;;  %v999_v3 = vld [vmem:[%s1271_s0 + $0x30] sm:$0xff]   ;;  %v1001_v5 = vld [vmem:[%s1271_s0 + $0x28] sm:$0xff]   ;;  %24 = vst.msk [vmem:[#allocation2 + $0x8] sm:$0xff] %vm22_vm1, %v1034_v30 }
   0x3   :  { %919 = vmatpush3.bf16.msra.mxu0 %v997_v1  ;;  %984 = vmatpush3.bf16.msra.mxu1 %v997_v1  ;;  %v1002_v6 = vld [vmem:[%s1271_s0 + $0x60] sm:$0xff]   ;;  %v1004_v8 = vld [vmem:[%s1271_s0 + $0x58] sm:$0xff]   ;;  %v1006_v10 = vld [vmem:[%s1271_s0 + $0x50] sm:$0xff]   ;;  %25 = vst.msk [vmem:[#allocation2 + $0x10] sm:$0xff] %vm22_vm1, %v1034_v30 }
   0x4   :  { %920 = vmatprep.subr.bf16.mxu0 %v998_v2  ;;  %977 = vmatprep.subr.bf16.mxu1 %v998_v2  ;;  %v1003_v7 = vld [vmem:[%s1271_s0 + $0x20] sm:$0xff]   ;;  %v1005_v9 = vld [vmem:[%s1271_s0 + $0x18] sm:$0xff]   ;;  %v1007_v13 = vld [vmem:[%s1271_s0 + $0x10] sm:$0xff]   ;;  %26 = vst.msk [vmem:[#allocation2 + $0x18] sm:$0xff] %vm22_vm1, %v1034_v30 }
   0x5   :  { %v1014_v11 = vld [vmem:[%s1272_s1 + $0x4] ss:$12 sps:$4 sm:$0xff]   ;;  %v1017_v12 = vld [vmem:[%s1272_s1 + $0x4c] ss:$12 sps:$4 sm:$0xff]   ;;  %v1015_v20 = vld [vmem:[%s1272_s1 + $0x48] ss:$12 sps:$4 sm:$0xff]  }
   0x6   :  { %v1008_v14 = vld [vmem:[%s1271_s0 + $0x48] sm:$0xff]   ;;  %304 = vmatprep.mubr.bf16.mxu0 %v1014_v11  ;;  %328 = vmatprep.mubr.bf16.mxu1 %v1017_v12  ;;  %v1010_v16 = vld [vmem:[%s1271_s0 + $0x40] sm:$0xff]   ;;  %v1026_v28 = vld [vmem:[%s1272_s1 + $0x50] ss:$12 sps:$4 sm:$0xff]   ;;  %27 = vst.msk [vmem:[#allocation2 + $0x20] sm:$0xff] %vm22_vm1, %v1034_v30 }
   0x7   :  { %921 = vmatpush3.bf16.msra.mxu0 %v999_v3  ;;  %985 = vmatpush3.bf16.msra.mxu1 %v999_v3  ;;  %v1009_v15 = vld [vmem:[%s1271_s0 + $0x8] sm:$0xff]   ;;  %v1011_v17 = vld [vmem:[%s1271_s0] sm:$0xff]   ;;  %v1029_v29 = vld [vmem:[%s1272_s1 + $0x30] ss:$12 sps:$4 sm:$0xff]   ;;  %28 = vst.msk [vmem:[#allocation2 + $0x28] sm:$0xff] %vm22_vm1, %v1034_v30 }
   0x8   :  { %922 = vmatprep.subr.bf16.mxu0 %v1000_v4  ;;  %978 = vmatprep.subr.bf16.mxu1 %v1000_v4  ;;  %v1018_v18 = vld [vmem:[%s1271_s0 + $0x88] sm:$0xff]   ;;  %v1019_v22 = vld [vmem:[%s1271_s0 + $0x80] sm:$0xff]   ;;  %29 = vst.msk [vmem:[#allocation2 + $0x30] sm:$0xff] %vm22_vm1, %v1034_v30  ;;  %30 = vst.msk [vmem:[#allocation2 + $0x38] sm:$0xff] %vm22_vm1, %v1034_v30 }
   0x9   :  { %v1012_v19 = vld [vmem:[%s1272_s1] ss:$12 sps:$4 sm:$0xff]   ;;  %v1020_v21 = vld [vmem:[%s1272_s1 + $0x1c] ss:$12 sps:$4 sm:$0xff]   ;;  %v1023_v24 = vld [vmem:[%s1272_s1 + $0x18] ss:$12 sps:$4 sm:$0xff]  }
   0xa   :  { %v1022_v23 = vld [vmem:[%s1272_s1 + $0x8] ss:$12 sps:$4 sm:$0xff]   ;;  %v1024_v25 = vld [vmem:[%s1272_s1 + $0x20] ss:$12 sps:$4 sm:$0xff]   ;;  %v1025_v26 = vld [vmem:[%s1272_s1 + $0x38] ss:$12 sps:$4 sm:$0xff]  }
   0xb   :  { %923 = vmatpush3.bf16.msra.mxu0 %v1001_v5  ;;  %986 = vmatpush3.bf16.msra.mxu1 %v1001_v5  ;;  %v1027_v27 = vld [vmem:[%s1272_s1 + $0x34] ss:$12 sps:$4 sm:$0xff]   ;;  %31 = vst.msk [vmem:[#allocation3] sm:$0xff] %vm22_vm1, %v1034_v30  ;;  %32 = vst.msk [vmem:[#allocation3 + $0x8] sm:$0xff] %vm22_vm1, %v1034_v30 }
   0xc   :  { %924 = vmatprep.subr.bf16.mxu0 %v1002_v6  ;;  %979 = vmatprep.subr.bf16.mxu1 %v1002_v6  ;;  %33 = vst.msk [vmem:[#allocation3 + $0x10] sm:$0xff] %vm22_vm1, %v1034_v30  ;;  %34 = vst.msk [vmem:[#allocation3 + $0x18] sm:$0xff] %vm22_vm1, %v1034_v30 }
   0xd   :  { %35 = vst.msk [vmem:[#allocation3 + $0x20] sm:$0xff] %vm22_vm1, %v1034_v30  ;;  %36 = vst.msk [vmem:[#allocation3 + $0x28] sm:$0xff] %vm22_vm1, %v1034_v30 }
   0xe   :  { %37 = vst.msk [vmem:[#allocation3 + $0x30] sm:$0xff] %vm22_vm1, %v1034_v30  ;;  %38 = vst.msk [vmem:[#allocation3 + $0x38] sm:$0xff] %vm22_vm1, %v1034_v30 }
   0xf   :  { %925 = vmatpush3.bf16.msra.mxu0 %v1003_v7  ;;  %987 = vmatpush3.bf16.msra.mxu1 %v1003_v7 }
  0x10   :  { %926 = vmatprep.subr.bf16.mxu0 %v1004_v8  ;;  %980 = vmatprep.subr.bf16.mxu1 %v1004_v8 }
  0x13   :  { %927 = vmatpush3.bf16.msra.mxu0 %v1005_v9  ;;  %988 = vmatpush3.bf16.msra.mxu1 %v1005_v9 }
  0x14   :  { %928 = vmatprep.subr.bf16.mxu0 %v1006_v10  ;;  %981 = vmatprep.subr.bf16.mxu1 %v1006_v10 }
  0x17   :  { %929 = vmatpush3.bf16.msra.mxu0 %v1007_v13  ;;  %989 = vmatpush3.bf16.msra.mxu1 %v1007_v13 }
  0x18   :  { %930 = vmatprep.subr.bf16.mxu0 %v1008_v14  ;;  %982 = vmatprep.subr.bf16.mxu1 %v1008_v14 }
  0x1b   :  { %931 = vmatpush3.bf16.msra.mxu0 %v1009_v15  ;;  %990 = vmatpush3.bf16.msra.mxu1 %v1009_v15 }
  0x1c   :  { %932 = vmatprep.subr.bf16.mxu0 %v1010_v16  ;;  %983 = vmatprep.subr.bf16.mxu1 %v1010_v16 }
  0x1f   :  { %933 = vmatpush3.bf16.msra.mxu0 %v1011_v17  ;;  %991 = vmatpush3.bf16.msra.mxu1 %v1011_v17 }
  0x20   :  { %964 = vmatprep.subr.bf16.mxu1 %v1018_v18 }
  0x22   :  { %305 = vmatmul.mubr.bf16.vlgmr.msra.gmra.mxu0 %v1012_v19  ;;  %329 = vmatmul.mubr.bf16.vlgmr.msra.gmra.mxu1 %v1015_v20  ;;  %v1035_v19 = vmov 0   ;;  %v402_v20 = vld [vmem:[#allocation2] sm:$0xff] }
  0x23   :  { %965 = vmatpush3.bf16.msra.mxu1 %v1018_v18  ;;  %312 = vmatprep.mubr.bf16.mxu0 %v1020_v21 }
  0x24   :  { %966 = vmatprep.subr.bf16.mxu1 %v1019_v22  ;;  %968 = vmatprep.mubr.msk.bf16.mxu1 %vm259_vm0, %v1022_v23 }
  0x25   :  { %995 = vset.pattern.permute.xlu1 %v1035_v19  ;;  %994 = vset.pattern.permute.xlu0 %v1035_v19 }
  0x27   :  { %967 = vmatpush3.bf16.msra.mxu1 %v1019_v22  ;;  %v404_v22 = vld [vmem:[#allocation2 + $0x10] sm:$0xff] }
  0x2a   :  { %313 = vmatmul.mubr.bf16.gmra.mxu0 %v1023_v24  ;;  %969 = vmatmul.mubr.msk.bf16.vlgmr.msra.gmra.mxu1 %vm259_vm0, %v1024_v25  ;;  %v443_v25 = vld [vmem:[#allocation3] sm:$0xff] }
  0x2b   :  { %972 = vmatprep.mubr.msk.bf16.mxu1 %vm259_vm0, %v1025_v26  ;;  %320 = vmatprep.mubr.bf16.mxu0 %v1027_v27 }
  0x32   :  { %973 = vmatmul.mubr.msk.bf16.gmra.mxu1 %vm259_vm0, %v1026_v28  ;;  %321 = vmatmul.mubr.bf16.gmra.mxu0 %v1029_v29  ;;  %v405_v28 = vld [vmem:[#allocation2 + $0x18] sm:$0xff] }
  0xe2   :  { %v934_v31 = vpop.f32.mrf.mxu0  ;;  %v952_v32 = vpop.f32.mrf.mxu1 }
  0xe4   :  { %v935_v33 = vpop.f32.mrf.mxu0  ;;  %v953_v34 = vpop.f32.mrf.mxu1 }
  0xe5   :  { %v936_v41 = vadd.f32 %v935_v33, %v934_v31  ;;  %v954_v61 = vadd.f32 %v953_v34, %v952_v32  ;;  %v403_v31 = vld [vmem:[#allocation2 + $0x8] sm:$0xff] }
  0xe6   :  { %v937_v35 = vpop.f32.mrf.mxu0  ;;  %v955_v36 = vpop.f32.mrf.mxu1  ;;  %v444_v34 = vld [vmem:[#allocation3 + $0x8] sm:$0xff] }
  0xe8   :  { %v938_v37 = vpop.f32.mrf.mxu0  ;;  %v956_v38 = vpop.f32.mrf.mxu1 }
  0xe9   :  { %v939_v48 = vadd.f32 %v938_v37, %v937_v35  ;;  %v957_v62 = vadd.f32 %v956_v38, %v955_v36  ;;  %v445_v37 = vld [vmem:[#allocation3 + $0x10] sm:$0xff] }
  0xea   :  { %v940_v39 = vpop.f32.mrf.mxu0  ;;  %v970_v40 = vpop.f32.mrf.mxu1 }
  0xec   :  { %v941_v42 = vpop.f32.mrf.mxu0  ;;  %v371_v43 = vpop.f32.mrf.mxu1 }
  0xed   :  { %v942_v44 = vadd.f32 %v941_v42, %v940_v39  ;;  %v372_v45 = vadd.f32 %v936_v41, %v371_v43  ;;  %v408_v43 = vld [vmem:[#allocation2 + $0x30] sm:$0xff] }
  0xee   :  { %v943_v46 = vpop.f32.mrf.mxu0  ;;  %v971_v47 = vpop.f32.mrf.mxu1 }
  0xef   :  { %v380_v49 = vadd.f32 %v970_v40, %v942_v44  ;;  %410 = vadd.xlane.f32.xlu0 %v372_v45  ;;  %v451_v54 = vmul.f32 %v372_v45, %v372_v45  ;;  %v446_v40 = vld [vmem:[#allocation3 + $0x18] sm:$0xff] }
  0xf0   :  { %v944_v50 = vpop.f32.mrf.mxu0  ;;  %v374_v51 = vpop.f32.mrf.mxu1 }
  0xf1   :  { %v945_v52 = vadd.f32 %v944_v50, %v943_v46  ;;  %v375_v53 = vadd.f32 %v939_v48, %v374_v51  ;;  %414 = vadd.xlane.f32.xlu1 %v380_v49  ;;  %v453_v11 = vmul.f32 %v380_v49, %v380_v49  ;;  %v409_v46 = vld [vmem:[#allocation2 + $0x38] sm:$0xff] }
  0xf2   :  { %v974_v55 = vpop.f32.mrf.mxu1  ;;  %v946_v56 = vpop.f32.mrf.mxu0 }
  0xf3   :  { %v383_v57 = vadd.f32 %v971_v47, %v945_v52  ;;  %v1171_v58 = vpack.c.bf16 %v375_v53, %v372_v45  ;;  %459 = vadd.xlane.f32.xlu0 %v451_v54  ;;  %v396_v3 = vadd.f32 %v974_v55, %v954_v61  ;;  %v452_v5 = vmul.f32 %v375_v53, %v375_v53  ;;  %v407_v52 = vld [vmem:[#allocation2 + $0x28] sm:$0xff]  ;;  %v447_v55 = vld [vmem:[#allocation3 + $0x20] sm:$0xff] }
  0xf4   :  { %v387_v59 = vpop.f32.mrf.mxu1  ;;  %v947_v60 = vpop.f32.mrf.mxu0 }
  0xf5   :  { %v1173_v63 = vpack.c.bf16 %v383_v57, %v380_v49  ;;  %416 = vadd.xlane.f32.xlu1 %v383_v57  ;;  %v948_v0 = vadd.f32 %v947_v60, %v946_v56  ;;  %v454_v13 = vmul.f32 %v383_v57, %v383_v57  ;;  %v457_v17 = vmul.f32 %v396_v3, %v396_v3  ;;  %v406_v49 = vld [vmem:[#allocation2 + $0x20] sm:$0xff] }
  0xf6   :  { %v975_v1 = vpop.f32.mrf.mxu1  ;;  %v949_v2 = vpop.f32.mrf.mxu0 }
  0xf7   :  { %v399_v4 = vadd.f32 %v975_v1, %v957_v62  ;;  %412 = vadd.xlane.f32.xlu0 %v375_v53  ;;  %v388_v9 = vadd.f32 %v948_v0, %v387_v59  ;;  %v448_v59 = vld [vmem:[#allocation3 + $0x28] sm:$0xff]  ;;  %v449_v0 = vld [vmem:[#allocation3 + $0x30] sm:$0xff] }
  0xf8   :  { %v950_v6 = vpop.f32.mrf.mxu0  ;;  %v390_v7 = vpop.f32.mrf.mxu1 }
  0xf9   :  { %v1175_v8 = vpack.c.bf16 %v399_v4, %v396_v3  ;;  %461 = vadd.xlane.f32.xlu1 %v452_v5  ;;  %v951_v10 = vadd.f32 %v950_v6, %v949_v2  ;;  %v455_v15 = vmul.f32 %v388_v9, %v388_v9  ;;  %v458_v18 = vmul.f32 %v399_v4, %v399_v4 }
  0xfb   :  { %463 = vadd.xlane.f32.xlu0 %v453_v11  ;;  %v391_v12 = vadd.f32 %v951_v10, %v390_v7 }
  0xfd   :  { %v1177_v14 = vpack.c.bf16 %v391_v12, %v388_v9  ;;  %465 = vadd.xlane.f32.xlu1 %v454_v13  ;;  %v456_v16 = vmul.f32 %v391_v12, %v391_v12 }
  0xff   :  { %422 = vadd.xlane.f32.xlu0 %v396_v3 }
 0x101   :  { %424 = vadd.xlane.f32.xlu1 %v399_v4  ;;  %v450_v4 = vld [vmem:[#allocation3 + $0x38] sm:$0xff] }
 0x103   :  { %418 = vadd.xlane.f32.xlu0 %v388_v9 }
 0x105   :  { %420 = vadd.xlane.f32.xlu1 %v391_v12 }
 0x107   :  { %467 = vadd.xlane.f32.xlu0 %v455_v15 }
 0x109   :  { %469 = vadd.xlane.f32.xlu1 %v456_v16 }
 0x10b   :  { %471 = vadd.xlane.f32.xlu0 %v457_v17 }
 0x10d   :  { %473 = vadd.xlane.f32.xlu1 %v458_v18 }
 0x178   :  { %v411_v21 = vpop.xlane.xlu0 %410 }
 0x179   :  { %v426_v23 = vadd.f32 %v411_v21, %v402_v20 }
 0x17a   :  { %v415_v24 = vpop.xlane.xlu1 %414 }
 0x17b   :  { %435 = vst.msk [vmem:[#allocation2] sm:$0xff] %vm22_vm1, %v426_v23  ;;  %v428_v26 = vadd.f32 %v415_v24, %v404_v22 }
 0x17c   :  { %v460_v27 = vpop.xlane.xlu0 %459 }
 0x17d   :  { %437 = vst.msk [vmem:[#allocation2 + $0x10] sm:$0xff] %vm22_vm1, %v428_v26  ;;  %v475_v29 = vadd.f32 %v460_v27, %v443_v25 }
 0x17e   :  { %v417_v30 = vpop.xlane.xlu1 %416 }
 0x17f   :  { %483 = vst.msk [vmem:[#allocation3] sm:$0xff] %vm22_vm1, %v475_v29  ;;  %v429_v32 = vadd.f32 %v417_v30, %v405_v28 }
 0x180   :  { %v413_v33 = vpop.xlane.xlu0 %412 }
 0x181   :  { %438 = vst.msk [vmem:[#allocation2 + $0x18] sm:$0xff] %vm22_vm1, %v429_v32  ;;  %v427_v35 = vadd.f32 %v413_v33, %v403_v31 }
 0x182   :  { %v462_v36 = vpop.xlane.xlu1 %461  ;;  %v539_v2 = vld [vmem:[#allocation2] sm:$0xff] }
 0x183   :  { %436 = vst.msk [vmem:[#allocation2 + $0x8] sm:$0xff] %vm22_vm1, %v427_v35  ;;  %v476_v38 = vadd.f32 %v462_v36, %v444_v34 }
 0x184   :  { %v464_v39 = vpop.xlane.xlu0 %463  ;;  %v541_v61 = vld [vmem:[#allocation2 + $0x10] sm:$0xff] }
 0x185   :  { %484 = vst.msk [vmem:[#allocation3 + $0x8] sm:$0xff] %vm22_vm1, %v476_v38  ;;  %v477_v41 = vadd.f32 %v464_v39, %v445_v37  ;;  %v555_v6 = vadd.f32 %v541_v61, %v539_v2  ;;  %v586_v61 = vld [vmem:[%s1273_s2 + $0x28] sm:$0xff] }
 0x186   :  { %v466_v42 = vpop.xlane.xlu1 %465  ;;  %v547_v19 = vld [vmem:[#allocation3] sm:$0xff] }
 0x187   :  { %485 = vst.msk [vmem:[#allocation3 + $0x10] sm:$0xff] %vm22_vm1, %v477_v41  ;;  %v478_v44 = vadd.f32 %v466_v42, %v446_v40 }
 0x188   :  { %v423_v45 = vpop.xlane.xlu0 %422  ;;  %v542_v11 = vld [vmem:[#allocation2 + $0x18] sm:$0xff] }
 0x189   :  { %486 = vst.msk [vmem:[#allocation3 + $0x18] sm:$0xff] %vm22_vm1, %v478_v44  ;;  %v432_v47 = vadd.f32 %v423_v45, %v408_v43 }
 0x18a   :  { %v425_v48 = vpop.xlane.xlu1 %424  ;;  %v540_v5 = vld [vmem:[#allocation2 + $0x8] sm:$0xff] }
 0x18b   :  { %441 = vst.msk [vmem:[#allocation2 + $0x30] sm:$0xff] %vm22_vm1, %v432_v47  ;;  %v433_v50 = vadd.f32 %v425_v48, %v409_v46  ;;  %v556_v15 = vadd.f32 %v542_v11, %v540_v5  ;;  %v583_v48 = vld [vmem:[%s1273_s2 + $0x10] sm:$0xff]  ;;  %v600_v5 = vld [vmem:[%s1274_s3 + $0x18] sm:$0xff] }
 0x18c   :  { %v419_v51 = vpop.xlane.xlu0 %418  ;;  %v548_v27 = vld [vmem:[#allocation3 + $0x8] sm:$0xff] }
 0x18d   :  { %442 = vst.msk [vmem:[#allocation2 + $0x38] sm:$0xff] %vm22_vm1, %v433_v50  ;;  %v430_v53 = vadd.f32 %v419_v51, %v406_v49  ;;  %v581_v49 = vld [vmem:[%s1273_s2] sm:$0xff]  ;;  %v582_v51 = vld [vmem:[%s1273_s2 + $0x8] sm:$0xff] }
 0x18e   :  { %v421_v54 = vpop.xlane.xlu1 %420  ;;  %v549_v16 = vld [vmem:[#allocation3 + $0x10] sm:$0xff] }
 0x18f   :  { %439 = vst.msk [vmem:[#allocation2 + $0x20] sm:$0xff] %vm22_vm1, %v430_v53  ;;  %v431_v56 = vadd.f32 %v421_v54, %v407_v52  ;;  %v557_v25 = vadd.f32 %v549_v16, %v547_v19  ;;  %v584_v52 = vld [vmem:[%s1273_s2 + $0x18] sm:$0xff]  ;;  %v597_v19 = vld [vmem:[%s1274_s3] sm:$0xff] }
 0x190   :  { %v468_v57 = vpop.xlane.xlu0 %467  ;;  %v550_v22 = vld [vmem:[#allocation3 + $0x18] sm:$0xff] }
 0x191   :  { %440 = vst.msk [vmem:[#allocation2 + $0x28] sm:$0xff] %vm22_vm1, %v431_v56  ;;  %v479_v60 = vadd.f32 %v468_v57, %v447_v55  ;;  %v558_v29 = vadd.f32 %v550_v22, %v548_v27  ;;  %v585_v56 = vld [vmem:[%s1273_s2 + $0x20] sm:$0xff]  ;;  %v604_v16 = vld [vmem:[%s1274_s3 + $0x38] sm:$0xff]  ;;  %v599_v22 = vld [vmem:[%s1274_s3 + $0x10] sm:$0xff] }
 0x192   :  { %v470_v62 = vpop.xlane.xlu1 %469  ;;  %v545_v17 = vld [vmem:[#allocation2 + $0x30] sm:$0xff] }
 0x193   :  { %487 = vst.msk [vmem:[#allocation3 + $0x20] sm:$0xff] %vm22_vm1, %v479_v60  ;;  %v480_v1 = vadd.f32 %v470_v62, %v448_v59  ;;  %v598_v60 = vld [vmem:[%s1274_s3 + $0x8] sm:$0xff] }
 0x194   :  { %v472_v3 = vpop.xlane.xlu0 %471  ;;  %v546_v24 = vld [vmem:[#allocation2 + $0x38] sm:$0xff] }
 0x195   :  { %488 = vst.msk [vmem:[#allocation3 + $0x28] sm:$0xff] %vm22_vm1, %v480_v1  ;;  %v481_v7 = vadd.f32 %v472_v3, %v449_v0  ;;  %v587_v1 = vld [vmem:[%s1273_s2 + $0x30] sm:$0xff] }
 0x196   :  { %v543_v9 = vld [vmem:[#allocation2 + $0x20] sm:$0xff]  ;;  %v474_v10 = vpop.xlane.xlu1 %473 }
 0x197   :  { %v559_v12 = vadd.f32 %v555_v6, %v543_v9  ;;  %489 = vst.msk [vmem:[#allocation3 + $0x30] sm:$0xff] %vm22_vm1, %v481_v7  ;;  %v482_v13 = vadd.f32 %v474_v10, %v450_v4  ;;  %v588_v6 = vld [vmem:[%s1273_s2 + $0x38] sm:$0xff] }
 0x198   :  { %v544_v18 = vld [vmem:[#allocation2 + $0x28] sm:$0xff] }
 0x199   :  { %v563_v20 = vadd.f32 %v559_v12, %v545_v17  ;;  %490 = vst.msk [vmem:[#allocation3 + $0x38] sm:$0xff] %vm22_vm1, %v482_v13  ;;  %v560_v21 = vadd.f32 %v556_v15, %v544_v18  ;;  %v602_v12 = vld [vmem:[%s1274_s3 + $0x28] sm:$0xff] }
 0x19a   :  { %v551_v23 = vld [vmem:[#allocation3 + $0x20] sm:$0xff] }
 0x19b   :  { %v564_v26 = vadd.f32 %v560_v21, %v546_v24  ;;  %v1195_v30 = vmul.f32 0.00390625, %v563_v20  ;;  %v561_v31 = vadd.f32 %v557_v25, %v551_v23  ;;  %v601_v25 = vld [vmem:[%s1274_s3 + $0x20] sm:$0xff] }
 0x19c   :  { %v552_v28 = vld [vmem:[#allocation3 + $0x28] sm:$0xff] }
 0x19d   :  { %v562_v34 = vadd.f32 %v558_v29, %v552_v28  ;;  %v568_v35 = vmul.f32 0.00390625, %v564_v26  ;;  %v571_v37 = vmul.f32 %v1195_v30, %v1195_v30  ;;  %v603_v28 = vld [vmem:[%s1274_s3 + $0x30] sm:$0xff] }
 0x19e   :  { %v553_v32 = vld [vmem:[#allocation3 + $0x30] sm:$0xff] }
 0x19f   :  { %v565_v33 = vadd.f32 %v561_v31, %v553_v32  ;;  %v572_v42 = vmul.f32 %v568_v35, %v568_v35 }
 0x1a0   :  { %v554_v36 = vld [vmem:[#allocation3 + $0x38] sm:$0xff] }
 0x1a1   :  { %v569_v38 = vmul.f32 0.00390625, %v565_v33  ;;  %v566_v39 = vadd.f32 %v562_v34, %v554_v36 }
 0x1a3   :  { %v573_v40 = vsub.f32 %v569_v38, %v571_v37  ;;  %v570_v41 = vmul.f32 0.00390625, %v566_v39  ;;  %v876_v39 = vunpack.c.h.bf16 %v1171_v58 }
 0x1a5   :  { %v575_v43 = vmax.f32 %v573_v40, 0.0  ;;  %v574_v44 = vsub.f32 %v570_v41, %v572_v42  ;;  %v880_v42 = vunpack.c.h.bf16 %v1173_v63 }
 0x1a7   :  { %v577_v45 = vadd.f32 1e-05, %v575_v43  ;;  %v576_v46 = vmax.f32 %v574_v44, 0.0 }
 0x1a9   :  { %1030 = vrsqrt.f32 %v577_v45  ;;  %v578_v47 = vadd.f32 1e-05, %v576_v46 }
 0x1ab   :  { %1032 = vrsqrt.f32 %v578_v47  ;;  %v879_v47 = vunpack.c.l.bf16 %v1173_v63 }
 0x1b6   :  { %v1031_v50 = vpop.eup %1030 }
 0x1b7   :  { %v591_v53 = vmul.f32 %v1031_v50, %v583_v48  ;;  %v589_v54 = vmul.f32 %v1031_v50, %v581_v49  ;;  %v593_v62 = vmul.f32 %v1031_v50, %v585_v56  ;;  %v595_v7 = vmul.f32 %v1031_v50, %v587_v1 }
 0x1b8   :  { %v1033_v55 = vpop.eup %1032  ;;  %v884_v49 = vunpack.c.h.bf16 %v1177_v14  ;;  %v883_v56 = vunpack.c.l.bf16 %v1177_v14 }
 0x1b9   :  { %649 = vperm.xlu1 %995, %v591_v53   ;;  %639 = vperm.xlu0 %994, %v589_v54   ;;  %v590_v57 = vmul.f32 %v1033_v55, %v582_v51  ;;  %v592_v59 = vmul.f32 %v1033_v55, %v584_v52  ;;  %v594_v4 = vmul.f32 %v1033_v55, %v586_v61 }
 0x1ba   :  { %v596_v11 = vmul.f32 %v1033_v55, %v588_v6  ;;  %v605_v18 = vmul.f32 %v589_v54, %v1195_v30  ;;  %v607_v21 = vmul.f32 %v591_v53, %v1195_v30  ;;  %v609_v24 = vmul.f32 %v593_v62, %v1195_v30 }
 0x1bb   :  { %v606_v0 = vmul.f32 %v590_v57, %v568_v35  ;;  %v608_v3 = vmul.f32 %v592_v59, %v568_v35  ;;  %v610_v10 = vmul.f32 %v594_v4, %v568_v35  ;;  %v611_v27 = vmul.f32 %v595_v7, %v1195_v30 }
 0x1bc   :  { %v612_v15 = vmul.f32 %v596_v11, %v568_v35  ;;  %v613_v20 = vsub.f32 %v597_v19, %v605_v18  ;;  %v615_v23 = vsub.f32 %v599_v22, %v607_v21  ;;  %v617_v26 = vsub.f32 %v601_v25, %v609_v24 }
 0x1bd   :  { %659 = vperm.xlu1 %995, %v593_v62   ;;  %v614_v2 = vsub.f32 %v598_v60, %v606_v0  ;;  %v616_v9 = vsub.f32 %v600_v5, %v608_v3  ;;  %v618_v13 = vsub.f32 %v602_v12, %v610_v10  ;;  %v619_v29 = vsub.f32 %v603_v28, %v611_v27 }
 0x1be   :  { %v620_v17 = vsub.f32 %v604_v16, %v612_v15  ;;  %v875_v30 = vunpack.c.l.bf16 %v1171_v58 }
 0x1bf   :  { %692 = vperm.xlu0 %994, %v614_v2  }
 0x1c1   :  { %669 = vperm.xlu1 %995, %v595_v7  }
 0x1c3   :  { %702 = vperm.xlu0 %994, %v616_v9  }
 0x1c5   :  { %644 = vperm.xlu1 %995, %v590_v57  }
 0x1c7   :  { %712 = vperm.xlu0 %994, %v618_v13  }
 0x1c9   :  { %654 = vperm.xlu1 %995, %v592_v59   ;;  %v888_v59 = vunpack.c.h.bf16 %v1175_v8 }
 0x1cb   :  { %722 = vperm.xlu0 %994, %v620_v17  }
 0x1cd   :  { %664 = vperm.xlu1 %995, %v594_v4   ;;  %v887_v4 = vunpack.c.l.bf16 %v1175_v8 }
 0x1d1   :  { %674 = vperm.xlu1 %995, %v596_v11  }
 0x1d5   :  { %687 = vperm.xlu1 %995, %v613_v20  }
 0x1d9   :  { %697 = vperm.xlu1 %995, %v615_v23  }
 0x1dd   :  { %707 = vperm.xlu1 %995, %v617_v26  }
 0x1e1   :  { %717 = vperm.xlu1 %995, %v619_v29  }
 0x234   :  { %v650_v31 = vpop.permute.xlu1 %649  ;;  %v640_v35 = vpop.permute.xlu0 %639 }
 0x235   :  { %v677_v44 = vmul.f32 %v875_v30, %v640_v35  ;;  %v679_v51 = vmul.f32 %v879_v47, %v650_v31 }
 0x238   :  { %v660_v32 = vpop.permute.xlu1 %659 }
 0x239   :  { %v681_v62 = vmul.f32 %v883_v56, %v660_v32 }
 0x23a   :  { %v693_v37 = vpop.permute.xlu0 %692 }
 0x23c   :  { %v670_v33 = vpop.permute.xlu1 %669 }
 0x23d   :  { %v683_v7 = vmul.f32 %v887_v4, %v670_v33 }
 0x23e   :  { %v703_v43 = vpop.permute.xlu0 %702 }
 0x240   :  { %v645_v34 = vpop.permute.xlu1 %644 }
 0x241   :  { %v678_v40 = vmul.f32 %v876_v39, %v645_v34 }
 0x242   :  { %v713_v58 = vpop.permute.xlu0 %712 }
 0x243   :  { %v726_v45 = vadd.f32 %v693_v37, %v678_v40 }
 0x244   :  { %v655_v36 = vpop.permute.xlu1 %654 }
 0x245   :  { %v680_v46 = vmul.f32 %v880_v42, %v655_v36  ;;  %v734_v52 = vmax.f32 %v726_v45, 0.0 }
 0x246   :  { %v723_v6 = vpop.permute.xlu0 %722 }
 0x247   :  { %v728_v53 = vadd.f32 %v703_v43, %v680_v46 }
 0x248   :  { %v665_v38 = vpop.permute.xlu1 %664 }
 0x249   :  { %v682_v54 = vmul.f32 %v884_v49, %v665_v38  ;;  %v736_v0 = vmax.f32 %v728_v53, 0.0 }
 0x24b   :  { %v730_v63 = vadd.f32 %v713_v58, %v682_v54 }
 0x24c   :  { %v675_v41 = vpop.permute.xlu1 %674 }
 0x24d   :  { %v684_v1 = vmul.f32 %v888_v59, %v675_v41  ;;  %v738_v9 = vmax.f32 %v730_v63, 0.0 }
 0x24f   :  { %v732_v10 = vadd.f32 %v723_v6, %v684_v1 }
 0x250   :  { %v688_v48 = vpop.permute.xlu1 %687 }
 0x251   :  { %v725_v50 = vadd.f32 %v688_v48, %v677_v44  ;;  %v740_v16 = vmax.f32 %v732_v10, 0.0 }
 0x253   :  { %v733_v55 = vmax.f32 %v725_v50, 0.0 }
 0x254   :  { %v698_v57 = vpop.permute.xlu1 %697 }
 0x255   :  { %v892_v60 = vpack.c.bf16 %v734_v52, %v733_v55  ;;  %v727_v61 = vadd.f32 %v698_v57, %v679_v51 }
 0x257   :  { %893 = vst [vmem:[%s1275_s4] sm:$0xff] %v892_v60   ;;  %v735_v2 = vmax.f32 %v727_v61, 0.0 }
 0x258   :  { %v708_v3 = vpop.permute.xlu1 %707 }
 0x259   :  { %v897_v5 = vpack.c.bf16 %v736_v0, %v735_v2  ;;  %v729_v14 = vadd.f32 %v708_v3, %v681_v62 }
 0x25b   :  { %915 = vst [vmem:[%s1275_s4 + $0x8] sm:$0xff] %v897_v5   ;;  %v737_v11 = vmax.f32 %v729_v14, 0.0 }
 0x25c   :  { %v718_v12 = vpop.permute.xlu1 %717 }
 0x25d   :  { %v902_v13 = vpack.c.bf16 %v738_v9, %v737_v11  ;;  %v731_v15 = vadd.f32 %v718_v12, %v683_v7 }
 0x25f   :  { %916 = vst [vmem:[%s1275_s4 + $0x10] sm:$0xff] %v902_v13   ;;  %v739_v8 = vmax.f32 %v731_v15, 0.0 }
 0x261   :  { %v907_v17 = vpack.c.bf16 %v740_v16, %v739_v8 }
 0x263   :  { %917 = vst [vmem:[%s1275_s4 + $0x18] sm:$0xff] %v907_v17  }

// kernel: quick_generator_forward.5
= control target key start
LH: loop header
LB: loop body
LE: loop exit
PB: predicated region body
PF: predicated region fallthrough
CT: control target
= control target key end

     0   :  { %vm383_vm0 = vcmask 130048   ;;  %vm22_vm1 = vcmask 7168   ;;  %v4692_v39 = vmov 0.0   ;;  %s7022_s0 = inlined_call_operand.vmem [shape: bf16[16,128], index: 0, kind: input, shape index: {}]   ;;  %s7023_s1 = inlined_call_operand.vmem [shape: bf16[512,16], index: 1, kind: input, shape index: {}]   ;;  %s7024_s4 = inlined_call_operand.vmem [shape: bf16[512,128], index: 4, kind: output, shape index: {}]   ;;  %s7025_s2 = inlined_call_operand.vmem [shape: f32[512,1], index: 2, kind: input, shape index: {}]   ;;  %s7026_s3 = inlined_call_operand.vmem [shape: f32[512,1], index: 3, kind: input, shape index: {}]  }
   0x1   :  { %v4651_v0 = vld [vmem:[%s7022_s0] sm:$0xff]   ;;  %v4654_v3 = vld [vmem:[%s7023_s1 + $0x8] sm:$0xff]   ;;  %v4656_v5 = vld [vmem:[%s7023_s1 + $0x10] sm:$0xff]   ;;  %57 = vst.msk [vmem:[#allocation2 + $0x110] sm:$0xff] %vm22_vm1, %v4692_v39 }
   0x2   :  { %v4652_v1 = vld [vmem:[%s7023_s1] sm:$0xff]   ;;  %4579 = vmatprep.subr.bf16.mxu0 %v4651_v0  ;;  %4645 = vmatprep.subr.bf16.mxu1 %v4651_v0  ;;  %v4655_v4 = vld [vmem:[%s7023_s1 + $0x88] sm:$0xff]   ;;  %v4658_v6 = vld [vmem:[%s7023_s1 + $0x90] sm:$0xff]   ;;  %23 = vst.msk [vmem:[#allocation2] sm:$0xff] %vm22_vm1, %v4692_v39 }
   0x3   :  { %v4653_v2 = vld [vmem:[%s7023_s1 + $0x80] sm:$0xff]   ;;  %4580 = vmatpush3.bf16.msra.mxu0 %v4651_v0  ;;  %4646 = vmatpush3.bf16.msra.mxu1 %v4651_v0  ;;  %v4657_v7 = vld [vmem:[%s7023_s1 + $0x18] sm:$0xff]   ;;  %v4661_v11 = vld [vmem:[%s7023_s1 + $0x28] sm:$0xff]   ;;  %24 = vst.msk [vmem:[#allocation2 + $0x8] sm:$0xff] %vm22_vm1, %v4692_v39 }
   0x4   :  { %4581 = vmatprep.mubr.msk.bf16.mxu0 %vm383_vm0, %v4652_v1  ;;  %4613 = vmatprep.mubr.msk.bf16.mxu1 %vm383_vm0, %v4653_v2  ;;  %v4659_v8 = vld [vmem:[%s7023_s1 + $0x98] sm:$0xff]   ;;  %v4660_v9 = vld [vmem:[%s7023_s1 + $0x20] sm:$0xff]   ;;  %v4663_v12 = vld [vmem:[%s7023_s1 + $0xa8] sm:$0xff]   ;;  %25 = vst.msk [vmem:[#allocation2 + $0x10] sm:$0xff] %vm22_vm1, %v4692_v39 }
   0x5   :  { %v4662_v10 = vld [vmem:[%s7023_s1 + $0xa0] sm:$0xff]   ;;  %v4664_v13 = vld [vmem:[%s7023_s1 + $0x30] sm:$0xff]   ;;  %v4665_v15 = vld [vmem:[%s7023_s1 + $0x38] sm:$0xff]   ;;  %26 = vst.msk [vmem:[#allocation2 + $0x18] sm:$0xff] %vm22_vm1, %v4692_v39 }
   0x6   :  { %4582 = vmatmul.mubr.msk.bf16.vlgmr.msra.gmra.mxu0 %vm383_vm0, %v4654_v3  ;;  %4614 = vmatmul.mubr.msk.bf16.vlgmr.msra.gmra.mxu1 %vm383_vm0, %v4655_v4  ;;  %v4666_v14 = vld [vmem:[%s7023_s1 + $0xb0] sm:$0xff]   ;;  %v4667_v16 = vld [vmem:[%s7023_s1 + $0xb8] sm:$0xff]   ;;  %v4668_v17 = vld [vmem:[%s7023_s1 + $0x40] sm:$0xff]   ;;  %27 = vst.msk [vmem:[#allocation2 + $0x20] sm:$0xff] %vm22_vm1, %v4692_v39 }
   0x7   :  { %4585 = vmatprep.mubr.msk.bf16.mxu0 %vm383_vm0, %v4656_v5  ;;  %4617 = vmatprep.mubr.msk.bf16.mxu1 %vm383_vm0, %v4658_v6  ;;  %v4670_v18 = vld [vmem:[%s7023_s1 + $0xc0] sm:$0xff]   ;;  %v4669_v19 = vld [vmem:[%s7023_s1 + $0x48] sm:$0xff]   ;;  %v4672_v21 = vld [vmem:[%s7023_s1 + $0x50] sm:$0xff]   ;;  %28 = vst.msk [vmem:[#allocation2 + $0x28] sm:$0xff] %vm22_vm1, %v4692_v39 }
   0x8   :  { %v4671_v20 = vld [vmem:[%s7023_s1 + $0xc8] sm:$0xff]   ;;  %v4674_v22 = vld [vmem:[%s7023_s1 + $0xd0] sm:$0xff]   ;;  %v4673_v23 = vld [vmem:[%s7023_s1 + $0x58] sm:$0xff]   ;;  %29 = vst.msk [vmem:[#allocation2 + $0x30] sm:$0xff] %vm22_vm1, %v4692_v39 }
   0x9   :  { %v4675_v24 = vld [vmem:[%s7023_s1 + $0xd8] sm:$0xff]   ;;  %v4676_v25 = vld [vmem:[%s7023_s1 + $0x60] sm:$0xff]   ;;  %v4677_v27 = vld [vmem:[%s7023_s1 + $0x68] sm:$0xff]   ;;  %30 = vst.msk [vmem:[#allocation2 + $0x38] sm:$0xff] %vm22_vm1, %v4692_v39 }
   0xa   :  { %v4678_v26 = vld [vmem:[%s7023_s1 + $0xe0] sm:$0xff]   ;;  %v4679_v28 = vld [vmem:[%s7023_s1 + $0xe8] sm:$0xff]   ;;  %v4680_v29 = vld [vmem:[%s7023_s1 + $0x70] sm:$0xff]   ;;  %31 = vst.msk [vmem:[#allocation2 + $0x40] sm:$0xff] %vm22_vm1, %v4692_v39 }
   0xb   :  { %v4681_v30 = vld [vmem:[%s7023_s1 + $0x78] sm:$0xff]   ;;  %v4682_v31 = vld [vmem:[%s7023_s1 + $0xf0] sm:$0xff]   ;;  %32 = vst.msk [vmem:[#allocation2 + $0x48] sm:$0xff] %vm22_vm1, %v4692_v39  ;;  %33 = vst.msk [vmem:[#allocation2 + $0x50] sm:$0xff] %vm22_vm1, %v4692_v39 }
   0xc   :  { %v4683_v32 = vld [vmem:[%s7023_s1 + $0xf8] sm:$0xff]   ;;  %34 = vst.msk [vmem:[#allocation2 + $0x58] sm:$0xff] %vm22_vm1, %v4692_v39  ;;  %35 = vst.msk [vmem:[#allocation2 + $0x60] sm:$0xff] %vm22_vm1, %v4692_v39 }
   0xd   :  { %36 = vst.msk [vmem:[#allocation2 + $0x68] sm:$0xff] %vm22_vm1, %v4692_v39  ;;  %37 = vst.msk [vmem:[#allocation2 + $0x70] sm:$0xff] %vm22_vm1, %v4692_v39 }
   0xe   :  { %4586 = vmatmul.mubr.msk.bf16.gmra.mxu0 %vm383_vm0, %v4657_v7  ;;  %4618 = vmatmul.mubr.msk.bf16.gmra.mxu1 %vm383_vm0, %v4659_v8  ;;  %38 = vst.msk [vmem:[#allocation2 + $0x78] sm:$0xff] %vm22_vm1, %v4692_v39  ;;  %39 = vst.msk [vmem:[#allocation2 + $0x80] sm:$0xff] %vm22_vm1, %v4692_v39 }
   0xf   :  { %4589 = vmatprep.mubr.msk.bf16.mxu0 %vm383_vm0, %v4660_v9  ;;  %4621 = vmatprep.mubr.msk.bf16.mxu1 %vm383_vm0, %v4662_v10  ;;  %40 = vst.msk [vmem:[#allocation2 + $0x88] sm:$0xff] %vm22_vm1, %v4692_v39  ;;  %41 = vst.msk [vmem:[#allocation2 + $0x90] sm:$0xff] %vm22_vm1, %v4692_v39 }
  0x10   :  { %42 = vst.msk [vmem:[#allocation2 + $0x98] sm:$0xff] %vm22_vm1, %v4692_v39  ;;  %43 = vst.msk [vmem:[#allocation2 + $0xa0] sm:$0xff] %vm22_vm1, %v4692_v39 }
  0x11   :  { %44 = vst.msk [vmem:[#allocation2 + $0xa8] sm:$0xff] %vm22_vm1, %v4692_v39  ;;  %45 = vst.msk [vmem:[#allocation2 + $0xb0] sm:$0xff] %vm22_vm1, %v4692_v39 }
  0x12   :  { %46 = vst.msk [vmem:[#allocation2 + $0xb8] sm:$0xff] %vm22_vm1, %v4692_v39  ;;  %47 = vst.msk [vmem:[#allocation2 + $0xc0] sm:$0xff] %vm22_vm1, %v4692_v39 }
  0x13   :  { %48 = vst.msk [vmem:[#allocation2 + $0xc8] sm:$0xff] %vm22_vm1, %v4692_v39  ;;  %49 = vst.msk [vmem:[#allocation2 + $0xd0] sm:$0xff] %vm22_vm1, %v4692_v39 }
  0x14   :  { %50 = vst.msk [vmem:[#allocation2 + $0xd8] sm:$0xff] %vm22_vm1, %v4692_v39  ;;  %51 = vst.msk [vmem:[#allocation2 + $0xe0] sm:$0xff] %vm22_vm1, %v4692_v39 }
  0x15   :  { %52 = vst.msk [vmem:[#allocation2 + $0xe8] sm:$0xff] %vm22_vm1, %v4692_v39  ;;  %53 = vst.msk [vmem:[#allocation2 + $0xf0] sm:$0xff] %vm22_vm1, %v4692_v39 }
  0x16   :  { %4590 = vmatmul.mubr.msk.bf16.gmra.mxu0 %vm383_vm0, %v4661_v11  ;;  %4622 = vmatmul.mubr.msk.bf16.gmra.mxu1 %vm383_vm0, %v4663_v12  ;;  %54 = vst.msk [vmem:[#allocation2 + $0xf8] sm:$0xff] %vm22_vm1, %v4692_v39  ;;  %55 = vst.msk [vmem:[#allocation2 + $0x100] sm:$0xff] %vm22_vm1, %v4692_v39 }
  0x17   :  { %4593 = vmatprep.mubr.msk.bf16.mxu0 %vm383_vm0, %v4664_v13  ;;  %4625 = vmatprep.mubr.msk.bf16.mxu1 %vm383_vm0, %v4666_v14  ;;  %56 = vst.msk [vmem:[#allocation2 + $0x108] sm:$0xff] %vm22_vm1, %v4692_v39  ;;  %58 = vst.msk [vmem:[#allocation2 + $0x118] sm:$0xff] %vm22_vm1, %v4692_v39 }
  0x18   :  { %59 = vst.msk [vmem:[#allocation2 + $0x120] sm:$0xff] %vm22_vm1, %v4692_v39  ;;  %60 = vst.msk [vmem:[#allocation2 + $0x128] sm:$0xff] %vm22_vm1, %v4692_v39 }
  0x19   :  { %61 = vst.msk [vmem:[#allocation2 + $0x130] sm:$0xff] %vm22_vm1, %v4692_v39  ;;  %62 = vst.msk [vmem:[#allocation2 + $0x138] sm:$0xff] %vm22_vm1, %v4692_v39 }
  0x1a   :  { %63 = vst.msk [vmem:[#allocation2 + $0x140] sm:$0xff] %vm22_vm1, %v4692_v39  ;;  %64 = vst.msk [vmem:[#allocation2 + $0x148] sm:$0xff] %vm22_vm1, %v4692_v39 }
  0x1b   :  { %65 = vst.msk [vmem:[#allocation2 + $0x150] sm:$0xff] %vm22_vm1, %v4692_v39  ;;  %66 = vst.msk [vmem:[#allocation2 + $0x158] sm:$0xff] %vm22_vm1, %v4692_v39 }
  0x1c   :  { %67 = vst.msk [vmem:[#allocation2 + $0x160] sm:$0xff] %vm22_vm1, %v4692_v39  ;;  %68 = vst.msk [vmem:[#allocation2 + $0x168] sm:$0xff] %vm22_vm1, %v4692_v39 }
  0x1d   :  { %69 = vst.msk [vmem:[#allocation2 + $0x170] sm:$0xff] %vm22_vm1, %v4692_v39  ;;  %70 = vst.msk [vmem:[#allocation2 + $0x178] sm:$0xff] %vm22_vm1, %v4692_v39 }
  0x1e   :  { %4594 = vmatmul.mubr.msk.bf16.gmra.mxu0 %vm383_vm0, %v4665_v15  ;;  %4626 = vmatmul.mubr.msk.bf16.gmra.mxu1 %vm383_vm0, %v4667_v16  ;;  %71 = vst.msk [vmem:[#allocation2 + $0x180] sm:$0xff] %vm22_vm1, %v4692_v39  ;;  %72 = vst.msk [vmem:[#allocation2 + $0x188] sm:$0xff] %vm22_vm1, %v4692_v39 }
  0x1f   :  { %4597 = vmatprep.mubr.msk.bf16.mxu0 %vm383_vm0, %v4668_v17  ;;  %4629 = vmatprep.mubr.msk.bf16.mxu1 %vm383_vm0, %v4670_v18  ;;  %73 = vst.msk [vmem:[#allocation2 + $0x190] sm:$0xff] %vm22_vm1, %v4692_v39  ;;  %74 = vst.msk [vmem:[#allocation2 + $0x198] sm:$0xff] %vm22_vm1, %v4692_v39 }
  0x20   :  { %75 = vst.msk [vmem:[#allocation2 + $0x1a0] sm:$0xff] %vm22_vm1, %v4692_v39  ;;  %76 = vst.msk [vmem:[#allocation2 + $0x1a8] sm:$0xff] %vm22_vm1, %v4692_v39 }
  0x21   :  { %77 = vst.msk [vmem:[#allocation2 + $0x1b0] sm:$0xff] %vm22_vm1, %v4692_v39  ;;  %78 = vst.msk [vmem:[#allocation2 + $0x1b8] sm:$0xff] %vm22_vm1, %v4692_v39 }
  0x22   :  { %79 = vst.msk [vmem:[#allocation2 + $0x1c0] sm:$0xff] %vm22_vm1, %v4692_v39  ;;  %80 = vst.msk [vmem:[#allocation2 + $0x1c8] sm:$0xff] %vm22_vm1, %v4692_v39 }
  0x23   :  { %81 = vst.msk [vmem:[#allocation2 + $0x1d0] sm:$0xff] %vm22_vm1, %v4692_v39  ;;  %82 = vst.msk [vmem:[#allocation2 + $0x1d8] sm:$0xff] %vm22_vm1, %v4692_v39 }
  0x24   :  { %83 = vst.msk [vmem:[#allocation2 + $0x1e0] sm:$0xff] %vm22_vm1, %v4692_v39  ;;  %84 = vst.msk [vmem:[#allocation2 + $0x1e8] sm:$0xff] %vm22_vm1, %v4692_v39 }
  0x25   :  { %85 = vst.msk [vmem:[#allocation2 + $0x1f0] sm:$0xff] %vm22_vm1, %v4692_v39  ;;  %86 = vst.msk [vmem:[#allocation2 + $0x1f8] sm:$0xff] %vm22_vm1, %v4692_v39 }
  0x26   :  { %4598 = vmatmul.mubr.msk.bf16.gmra.mxu0 %vm383_vm0, %v4669_v19  ;;  %4630 = vmatmul.mubr.msk.bf16.gmra.mxu1 %vm383_vm0, %v4671_v20  ;;  %87 = vst.msk [vmem:[#allocation3] sm:$0xff] %vm22_vm1, %v4692_v39  ;;  %88 = vst.msk [vmem:[#allocation3 + $0x8] sm:$0xff] %vm22_vm1, %v4692_v39 }
  0x27   :  { %4601 = vmatprep.mubr.msk.bf16.mxu0 %vm383_vm0, %v4672_v21  ;;  %4633 = vmatprep.mubr.msk.bf16.mxu1 %vm383_vm0, %v4674_v22  ;;  %89 = vst.msk [vmem:[#allocation3 + $0x10] sm:$0xff] %vm22_vm1, %v4692_v39  ;;  %90 = vst.msk [vmem:[#allocation3 + $0x18] sm:$0xff] %vm22_vm1, %v4692_v39 }
  0x28   :  { %91 = vst.msk [vmem:[#allocation3 + $0x20] sm:$0xff] %vm22_vm1, %v4692_v39  ;;  %92 = vst.msk [vmem:[#allocation3 + $0x28] sm:$0xff] %vm22_vm1, %v4692_v39 }
  0x29   :  { %93 = vst.msk [vmem:[#allocation3 + $0x30] sm:$0xff] %vm22_vm1, %v4692_v39  ;;  %94 = vst.msk [vmem:[#allocation3 + $0x38] sm:$0xff] %vm22_vm1, %v4692_v39 }
  0x2a   :  { %95 = vst.msk [vmem:[#allocation3 + $0x40] sm:$0xff] %vm22_vm1, %v4692_v39  ;;  %96 = vst.msk [vmem:[#allocation3 + $0x48] sm:$0xff] %vm22_vm1, %v4692_v39 }
  0x2b   :  { %97 = vst.msk [vmem:[#allocation3 + $0x50] sm:$0xff] %vm22_vm1, %v4692_v39  ;;  %98 = vst.msk [vmem:[#allocation3 + $0x58] sm:$0xff] %vm22_vm1, %v4692_v39 }
  0x2c   :  { %99 = vst.msk [vmem:[#allocation3 + $0x60] sm:$0xff] %vm22_vm1, %v4692_v39  ;;  %100 = vst.msk [vmem:[#allocation3 + $0x68] sm:$0xff] %vm22_vm1, %v4692_v39 }
  0x2d   :  { %101 = vst.msk [vmem:[#allocation3 + $0x70] sm:$0xff] %vm22_vm1, %v4692_v39  ;;  %102 = vst.msk [vmem:[#allocation3 + $0x78] sm:$0xff] %vm22_vm1, %v4692_v39 }
  0x2e   :  { %4602 = vmatmul.mubr.msk.bf16.gmra.mxu0 %vm383_vm0, %v4673_v23  ;;  %4634 = vmatmul.mubr.msk.bf16.gmra.mxu1 %vm383_vm0, %v4675_v24  ;;  %103 = vst.msk [vmem:[#allocation3 + $0x80] sm:$0xff] %vm22_vm1, %v4692_v39  ;;  %104 = vst.msk [vmem:[#allocation3 + $0x88] sm:$0xff] %vm22_vm1, %v4692_v39 }
  0x2f   :  { %4605 = vmatprep.mubr.msk.bf16.mxu0 %vm383_vm0, %v4676_v25  ;;  %4637 = vmatprep.mubr.msk.bf16.mxu1 %vm383_vm0, %v4678_v26  ;;  %105 = vst.msk [vmem:[#allocation3 + $0x90] sm:$0xff] %vm22_vm1, %v4692_v39  ;;  %106 = vst.msk [vmem:[#allocation3 + $0x98] sm:$0xff] %vm22_vm1, %v4692_v39 }
  0x30   :  { %107 = vst.msk [vmem:[#allocation3 + $0xa0] sm:$0xff] %vm22_vm1, %v4692_v39  ;;  %108 = vst.msk [vmem:[#allocation3 + $0xa8] sm:$0xff] %vm22_vm1, %v4692_v39 }
  0x31   :  { %109 = vst.msk [vmem:[#allocation3 + $0xb0] sm:$0xff] %vm22_vm1, %v4692_v39  ;;  %110 = vst.msk [vmem:[#allocation3 + $0xb8] sm:$0xff] %vm22_vm1, %v4692_v39 }
  0x32   :  { %111 = vst.msk [vmem:[#allocation3 + $0xc0] sm:$0xff] %vm22_vm1, %v4692_v39  ;;  %112 = vst.msk [vmem:[#allocation3 + $0xc8] sm:$0xff] %vm22_vm1, %v4692_v39 }
  0x33   :  { %113 = vst.msk [vmem:[#allocation3 + $0xd0] sm:$0xff] %vm22_vm1, %v4692_v39  ;;  %114 = vst.msk [vmem:[#allocation3 + $0xd8] sm:$0xff] %vm22_vm1, %v4692_v39 }
  0x34   :  { %115 = vst.msk [vmem:[#allocation3 + $0xe0] sm:$0xff] %vm22_vm1, %v4692_v39  ;;  %116 = vst.msk [vmem:[#allocation3 + $0xe8] sm:$0xff] %vm22_vm1, %v4692_v39 }
  0x35   :  { %117 = vst.msk [vmem:[#allocation3 + $0xf0] sm:$0xff] %vm22_vm1, %v4692_v39  ;;  %118 = vst.msk [vmem:[#allocation3 + $0xf8] sm:$0xff] %vm22_vm1, %v4692_v39 }
  0x36   :  { %4606 = vmatmul.mubr.msk.bf16.gmra.mxu0 %vm383_vm0, %v4677_v27  ;;  %4638 = vmatmul.mubr.msk.bf16.gmra.mxu1 %vm383_vm0, %v4679_v28  ;;  %119 = vst.msk [vmem:[#allocation3 + $0x100] sm:$0xff] %vm22_vm1, %v4692_v39  ;;  %120 = vst.msk [vmem:[#allocation3 + $0x108] sm:$0xff] %vm22_vm1, %v4692_v39 }
  0x37   :  { %4609 = vmatprep.mubr.msk.bf16.mxu0 %vm383_vm0, %v4680_v29  ;;  %4641 = vmatprep.mubr.msk.bf16.mxu1 %vm383_vm0, %v4682_v31  ;;  %121 = vst.msk [vmem:[#allocation3 + $0x110] sm:$0xff] %vm22_vm1, %v4692_v39  ;;  %122 = vst.msk [vmem:[#allocation3 + $0x118] sm:$0xff] %vm22_vm1, %v4692_v39 }
  0x38   :  { %123 = vst.msk [vmem:[#allocation3 + $0x120] sm:$0xff] %vm22_vm1, %v4692_v39  ;;  %124 = vst.msk [vmem:[#allocation3 + $0x128] sm:$0xff] %vm22_vm1, %v4692_v39 }
  0x39   :  { %125 = vst.msk [vmem:[#allocation3 + $0x130] sm:$0xff] %vm22_vm1, %v4692_v39  ;;  %126 = vst.msk [vmem:[#allocation3 + $0x138] sm:$0xff] %vm22_vm1, %v4692_v39 }
  0x3a   :  { %127 = vst.msk [vmem:[#allocation3 + $0x140] sm:$0xff] %vm22_vm1, %v4692_v39  ;;  %128 = vst.msk [vmem:[#allocation3 + $0x148] sm:$0xff] %vm22_vm1, %v4692_v39 }
  0x3b   :  { %129 = vst.msk [vmem:[#allocation3 + $0x150] sm:$0xff] %vm22_vm1, %v4692_v39  ;;  %130 = vst.msk [vmem:[#allocation3 + $0x158] sm:$0xff] %vm22_vm1, %v4692_v39 }
  0x3c   :  { %131 = vst.msk [vmem:[#allocation3 + $0x160] sm:$0xff] %vm22_vm1, %v4692_v39  ;;  %132 = vst.msk [vmem:[#allocation3 + $0x168] sm:$0xff] %vm22_vm1, %v4692_v39 }
  0x3d   :  { %133 = vst.msk [vmem:[#allocation3 + $0x170] sm:$0xff] %vm22_vm1, %v4692_v39  ;;  %134 = vst.msk [vmem:[#allocation3 + $0x178] sm:$0xff] %vm22_vm1, %v4692_v39 }
  0x3e   :  { %4610 = vmatmul.mubr.msk.bf16.gmra.mxu0 %vm383_vm0, %v4681_v30  ;;  %4642 = vmatmul.mubr.msk.bf16.gmra.mxu1 %vm383_vm0, %v4683_v32  ;;  %135 = vst.msk [vmem:[#allocation3 + $0x180] sm:$0xff] %vm22_vm1, %v4692_v39  ;;  %136 = vst.msk [vmem:[#allocation3 + $0x188] sm:$0xff] %vm22_vm1, %v4692_v39 }
  0x3f   :  { %137 = vst.msk [vmem:[#allocation3 + $0x190] sm:$0xff] %vm22_vm1, %v4692_v39  ;;  %138 = vst.msk [vmem:[#allocation3 + $0x198] sm:$0xff] %vm22_vm1, %v4692_v39 }
  0x40   :  { %139 = vst.msk [vmem:[#allocation3 + $0x1a0] sm:$0xff] %vm22_vm1, %v4692_v39  ;;  %140 = vst.msk [vmem:[#allocation3 + $0x1a8] sm:$0xff] %vm22_vm1, %v4692_v39 }
  0x41   :  { %141 = vst.msk [vmem:[#allocation3 + $0x1b0] sm:$0xff] %vm22_vm1, %v4692_v39  ;;  %142 = vst.msk [vmem:[#allocation3 + $0x1b8] sm:$0xff] %vm22_vm1, %v4692_v39 }
  0x42   :  { %143 = vst.msk [vmem:[#allocation3 + $0x1c0] sm:$0xff] %vm22_vm1, %v4692_v39  ;;  %144 = vst.msk [vmem:[#allocation3 + $0x1c8] sm:$0xff] %vm22_vm1, %v4692_v39 }
  0x43   :  { %145 = vst.msk [vmem:[#allocation3 + $0x1d0] sm:$0xff] %vm22_vm1, %v4692_v39  ;;  %146 = vst.msk [vmem:[#allocation3 + $0x1d8] sm:$0xff] %vm22_vm1, %v4692_v39 }
  0x44   :  { %147 = vst.msk [vmem:[#allocation3 + $0x1e0] sm:$0xff] %vm22_vm1, %v4692_v39  ;;  %148 = vst.msk [vmem:[#allocation3 + $0x1e8] sm:$0xff] %vm22_vm1, %v4692_v39 }
  0x45   :  { %149 = vst.msk [vmem:[#allocation3 + $0x1f0] sm:$0xff] %vm22_vm1, %v4692_v39  ;;  %150 = vst.msk [vmem:[#allocation3 + $0x1f8] sm:$0xff] %vm22_vm1, %v4692_v39 }
  0xc6   :  { %v4850_v33 = vpop.f32.mrf.mxu0  ;;  %v4852_v34 = vpop.f32.mrf.mxu1 }
  0xc7   :  { %901 = vadd.xlane.f32.xlu0 %v4852_v34  ;;  %837 = vadd.xlane.f32.xlu1 %v4850_v33  ;;  %v1156_v50 = vmul.f32 %v4850_v33, %v4850_v33  ;;  %v1188_v57 = vmul.f32 %v4852_v34, %v4852_v34 }
  0xc8   :  { %v4856_v35 = vpop.f32.mrf.mxu0  ;;  %v4858_v36 = vpop.f32.mrf.mxu1 }
  0xc9   :  { %v1154_v1 = vmul.f32 %v4856_v35, %v4856_v35  ;;  %v1186_v9 = vmul.f32 %v4858_v36, %v4858_v36 }
  0xca   :  { %v4860_v37 = vpop.f32.mrf.mxu0  ;;  %v4862_v38 = vpop.f32.mrf.mxu1 }
  0xcb   :  { %v4013_v40 = vpack.c.bf16 %v4860_v37, %v4850_v33  ;;  %v4093_v41 = vpack.c.bf16 %v4862_v38, %v4852_v34  ;;  %833 = vadd.xlane.f32.xlu0 %v4856_v35  ;;  %839 = vadd.xlane.f32.xlu1 %v4860_v37  ;;  %v1157_v58 = vmul.f32 %v4860_v37, %v4860_v37 }
  0xcc   :  { %v5126_v42 = vpop.f32.mrf.mxu0  ;;  %v645_v43 = vpop.f32.mrf.mxu1  ;;  %v1189_v2 = vmul.f32 %v4862_v38, %v4862_v38 }
  0xcd   :  { %4453 = vst [vmem:[%s7024_s4 + $0x8] sm:$0xff] %v4013_v40   ;;  %4469 = vst [vmem:[%s7024_s4 + $0x88] sm:$0xff] %v4093_v41   ;;  %v4008_v44 = vpack.c.bf16 %v5126_v42, %v4856_v35  ;;  %v4088_v45 = vpack.c.bf16 %v645_v43, %v4858_v36  ;;  %v1155_v10 = vmul.f32 %v5126_v42, %v5126_v42 }
  0xce   :  { %v5137_v46 = vpop.f32.mrf.mxu0  ;;  %v5139_v47 = vpop.f32.mrf.mxu1  ;;  %v1187_v17 = vmul.f32 %v645_v43, %v645_v43 }
  0xcf   :  { %4009 = vst [vmem:[%s7024_s4] sm:$0xff] %v4008_v44   ;;  %4468 = vst [vmem:[%s7024_s4 + $0x80] sm:$0xff] %v4088_v45   ;;  %897 = vadd.xlane.f32.xlu0 %v4858_v36  ;;  %903 = vadd.xlane.f32.xlu1 %v4862_v38 }
  0xd0   :  { %v5149_v48 = vpop.f32.mrf.mxu0  ;;  %v5151_v49 = vpop.f32.mrf.mxu1 }
  0xd2   :  { %v5155_v51 = vpop.f32.mrf.mxu0  ;;  %v5157_v52 = vpop.f32.mrf.mxu1 }
  0xd3   :  { %1222 = vadd.xlane.f32.xlu0 %v1156_v50  ;;  %899 = vadd.xlane.f32.xlu1 %v645_v43  ;;  %v4023_v53 = vpack.c.bf16 %v5155_v51, %v5137_v46  ;;  %v4103_v54 = vpack.c.bf16 %v5157_v52, %v5139_v47 }
  0xd4   :  { %v5163_v55 = vpop.f32.mrf.mxu0  ;;  %v5165_v56 = vpop.f32.mrf.mxu1 }
  0xd5   :  { %4455 = vst [vmem:[%s7024_s4 + $0x18] sm:$0xff] %v4023_v53   ;;  %v4018_v59 = vpack.c.bf16 %v5163_v55, %v5149_v48  ;;  %4471 = vst [vmem:[%s7024_s4 + $0x98] sm:$0xff] %v4103_v54   ;;  %v4098_v60 = vpack.c.bf16 %v5165_v56, %v5151_v49  ;;  %v1160_v54 = vmul.f32 %v5137_v46, %v5137_v46 }
  0xd6   :  { %v5181_v61 = vpop.f32.mrf.mxu0  ;;  %v5183_v62 = vpop.f32.mrf.mxu1 }
  0xd7   :  { %1286 = vadd.xlane.f32.xlu0 %v1188_v57  ;;  %1224 = vadd.xlane.f32.xlu1 %v1157_v58  ;;  %4454 = vst [vmem:[%s7024_s4 + $0x10] sm:$0xff] %v4018_v59   ;;  %4470 = vst [vmem:[%s7024_s4 + $0x90] sm:$0xff] %v4098_v60   ;;  %v1161_v57 = vmul.f32 %v5155_v51, %v5155_v51  ;;  %v1158_v60 = vmul.f32 %v5149_v48, %v5149_v48 }
  0xd8   :  { %v5191_v63 = vpop.f32.mrf.mxu0  ;;  %v5193_v0 = vpop.f32.mrf.mxu1 }
  0xda   :  { %v5199_v3 = vpop.f32.mrf.mxu0  ;;  %v5201_v4 = vpop.f32.mrf.mxu1 }
  0xdb   :  { %1218 = vadd.xlane.f32.xlu0 %v1154_v1  ;;  %1288 = vadd.xlane.f32.xlu1 %v1189_v2  ;;  %v4033_v5 = vpack.c.bf16 %v5199_v3, %v5181_v61  ;;  %v4113_v6 = vpack.c.bf16 %v5201_v4, %v5183_v62  ;;  %v1159_v1 = vmul.f32 %v5163_v55, %v5163_v55 }
  0xdc   :  { %v5207_v7 = vpop.f32.mrf.mxu0  ;;  %v5209_v8 = vpop.f32.mrf.mxu1  ;;  %v1190_v2 = vmul.f32 %v5151_v49, %v5151_v49 }
  0xdd   :  { %4457 = vst [vmem:[%s7024_s4 + $0x28] sm:$0xff] %v4033_v5   ;;  %v4028_v11 = vpack.c.bf16 %v5207_v7, %v5191_v63  ;;  %4473 = vst [vmem:[%s7024_s4 + $0xa8] sm:$0xff] %v4113_v6   ;;  %v4108_v12 = vpack.c.bf16 %v5209_v8, %v5193_v0  ;;  %v1191_v5 = vmul.f32 %v5165_v56, %v5165_v56 }
  0xde   :  { %v5225_v13 = vpop.f32.mrf.mxu0  ;;  %v5227_v14 = vpop.f32.mrf.mxu1 }
  0xdf   :  { %1282 = vadd.xlane.f32.xlu0 %v1186_v9  ;;  %1220 = vadd.xlane.f32.xlu1 %v1155_v10  ;;  %4456 = vst [vmem:[%s7024_s4 + $0x20] sm:$0xff] %v4028_v11   ;;  %4472 = vst [vmem:[%s7024_s4 + $0xa0] sm:$0xff] %v4108_v12  }
  0xe0   :  { %v5235_v15 = vpop.f32.mrf.mxu0  ;;  %v5237_v16 = vpop.f32.mrf.mxu1 }
  0xe2   :  { %v5239_v18 = vpop.f32.mrf.mxu0  ;;  %v5241_v19 = vpop.f32.mrf.mxu1 }
  0xe3   :  { %835 = vadd.xlane.f32.xlu0 %v5126_v42  ;;  %1284 = vadd.xlane.f32.xlu1 %v1187_v17  ;;  %v4043_v20 = vpack.c.bf16 %v5239_v18, %v5225_v13  ;;  %v4123_v21 = vpack.c.bf16 %v5241_v19, %v5227_v14 }
  0xe4   :  { %v5248_v22 = vpop.f32.mrf.mxu0  ;;  %v5250_v23 = vpop.f32.mrf.mxu1 }
  0xe5   :  { %4459 = vst [vmem:[%s7024_s4 + $0x38] sm:$0xff] %v4043_v20   ;;  %v4038_v24 = vpack.c.bf16 %v5248_v22, %v5235_v15  ;;  %4475 = vst [vmem:[%s7024_s4 + $0xb8] sm:$0xff] %v4123_v21   ;;  %v4118_v25 = vpack.c.bf16 %v5250_v23, %v5237_v16  ;;  %v1164_v20 = vmul.f32 %v5181_v61, %v5181_v61 }
  0xe6   :  { %v5262_v26 = vpop.f32.mrf.mxu0  ;;  %v5264_v27 = vpop.f32.mrf.mxu1  ;;  %v1165_v21 = vmul.f32 %v5199_v3, %v5199_v3 }
  0xe7   :  { %845 = vadd.xlane.f32.xlu0 %v5137_v46  ;;  %847 = vadd.xlane.f32.xlu1 %v5155_v51  ;;  %4458 = vst [vmem:[%s7024_s4 + $0x30] sm:$0xff] %v4038_v24   ;;  %4474 = vst [vmem:[%s7024_s4 + $0xb0] sm:$0xff] %v4118_v25   ;;  %v1192_v46 = vmul.f32 %v5139_v47, %v5139_v47  ;;  %v1193_v51 = vmul.f32 %v5157_v52, %v5157_v52 }
  0xe8   :  { %v5274_v28 = vpop.f32.mrf.mxu0  ;;  %v5276_v29 = vpop.f32.mrf.mxu1  ;;  %v1196_v24 = vmul.f32 %v5183_v62, %v5183_v62  ;;  %v1197_v25 = vmul.f32 %v5201_v4, %v5201_v4 }
  0xea   :  { %v5278_v30 = vpop.f32.mrf.mxu0  ;;  %v5280_v31 = vpop.f32.mrf.mxu1 }
  0xeb   :  { %909 = vadd.xlane.f32.xlu0 %v5139_v47  ;;  %911 = vadd.xlane.f32.xlu1 %v5157_v52  ;;  %v4053_v32 = vpack.c.bf16 %v5278_v30, %v5262_v26  ;;  %v4133_v33 = vpack.c.bf16 %v5280_v31, %v5264_v27 }
  0xec   :  { %v5288_v34 = vpop.f32.mrf.mxu0  ;;  %v5290_v35 = vpop.f32.mrf.mxu1 }
  0xed   :  { %4461 = vst [vmem:[%s7024_s4 + $0x48] sm:$0xff] %v4053_v32   ;;  %v4048_v36 = vpack.c.bf16 %v5288_v34, %v5274_v28  ;;  %4477 = vst [vmem:[%s7024_s4 + $0xc8] sm:$0xff] %v4133_v33   ;;  %v4128_v37 = vpack.c.bf16 %v5290_v35, %v5276_v29  ;;  %v1162_v32 = vmul.f32 %v5191_v63, %v5191_v63 }
  0xee   :  { %v5302_v38 = vpop.f32.mrf.mxu0  ;;  %v5304_v39 = vpop.f32.mrf.mxu1  ;;  %v1163_v33 = vmul.f32 %v5207_v7, %v5207_v7 }
  0xef   :  { %841 = vadd.xlane.f32.xlu0 %v5149_v48  ;;  %843 = vadd.xlane.f32.xlu1 %v5163_v55  ;;  %4460 = vst [vmem:[%s7024_s4 + $0x40] sm:$0xff] %v4048_v36   ;;  %4476 = vst [vmem:[%s7024_s4 + $0xc0] sm:$0xff] %v4128_v37  }
  0xf0   :  { %v5314_v40 = vpop.f32.mrf.mxu0  ;;  %v5316_v41 = vpop.f32.mrf.mxu1 }
  0xf2   :  { %v5318_v42 = vpop.f32.mrf.mxu0  ;;  %v5320_v43 = vpop.f32.mrf.mxu1 }
  0xf3   :  { %905 = vadd.xlane.f32.xlu0 %v5151_v49  ;;  %907 = vadd.xlane.f32.xlu1 %v5165_v56  ;;  %v4063_v44 = vpack.c.bf16 %v5318_v42, %v5302_v38  ;;  %v4143_v45 = vpack.c.bf16 %v5320_v43, %v5304_v39 }
  0xf4   :  { %v5328_v50 = vpop.f32.mrf.mxu0  ;;  %v5330_v53 = vpop.f32.mrf.mxu1 }
  0xf5   :  { %4463 = vst [vmem:[%s7024_s4 + $0x58] sm:$0xff] %v4063_v44   ;;  %v4058_v58 = vpack.c.bf16 %v5328_v50, %v5314_v40  ;;  %4479 = vst [vmem:[%s7024_s4 + $0xd8] sm:$0xff] %v4143_v45   ;;  %v4138_v59 = vpack.c.bf16 %v5330_v53, %v5316_v41 }
  0xf6   :  { %v5364_v47 = vpop.f32.mrf.mxu0  ;;  %v5368_v6 = vpop.f32.mrf.mxu1 }
  0xf7   :  { %1230 = vadd.xlane.f32.xlu0 %v1160_v54  ;;  %1232 = vadd.xlane.f32.xlu1 %v1161_v57  ;;  %4462 = vst [vmem:[%s7024_s4 + $0x50] sm:$0xff] %v4058_v58   ;;  %4478 = vst [vmem:[%s7024_s4 + $0xd0] sm:$0xff] %v4138_v59   ;;  %v1168_v58 = vmul.f32 %v5225_v13, %v5225_v13  ;;  %v1169_v59 = vmul.f32 %v5239_v18, %v5239_v18 }
  0xf8   :  { %v5366_v52 = vpop.f32.mrf.mxu0  ;;  %v5376_v49 = vpop.f32.mrf.mxu1 }
  0xfa   :  { %v5370_v48 = vpop.f32.mrf.mxu0  ;;  %v5382_v10 = vpop.f32.mrf.mxu1 }
  0xfb   :  { %1294 = vadd.xlane.f32.xlu0 %v1192_v46  ;;  %1296 = vadd.xlane.f32.xlu1 %v1193_v51  ;;  %v4073_v56 = vpack.c.bf16 %v5370_v48, %v5364_v47  ;;  %v4153_v12 = vpack.c.bf16 %v5382_v10, %v5368_v6  ;;  %v1200_v46 = vmul.f32 %v5227_v14, %v5227_v14 }
  0xfc   :  { %v5374_v55 = vpop.f32.mrf.mxu0  ;;  %v5392_v11 = vpop.f32.mrf.mxu1  ;;  %v1201_v51 = vmul.f32 %v5241_v19, %v5241_v19 }
  0xfd   :  { %v4068_v9 = vpack.c.bf16 %v5374_v55, %v5366_v52  ;;  %4465 = vst [vmem:[%s7024_s4 + $0x68] sm:$0xff] %v4073_v56   ;;  %v4148_v17 = vpack.c.bf16 %v5392_v11, %v5376_v49  ;;  %4481 = vst [vmem:[%s7024_s4 + $0xe8] sm:$0xff] %v4153_v12  }
  0xfe   :  { %v5428_v36 = vpop.f32.mrf.mxu1 }
  0xff   :  { %1226 = vadd.xlane.f32.xlu0 %v1158_v60  ;;  %1228 = vadd.xlane.f32.xlu1 %v1159_v1  ;;  %4464 = vst [vmem:[%s7024_s4 + $0x60] sm:$0xff] %v4068_v9   ;;  %4480 = vst [vmem:[%s7024_s4 + $0xe0] sm:$0xff] %v4148_v17   ;;  %v1166_v60 = vmul.f32 %v5235_v15, %v5235_v15  ;;  %v1167_v1 = vmul.f32 %v5248_v22, %v5248_v22 }
 0x103   :  { %1290 = vadd.xlane.f32.xlu0 %v1190_v2  ;;  %1292 = vadd.xlane.f32.xlu1 %v1191_v5  ;;  %v769_v2 = vld [vmem:[#allocation2] sm:$0xff]  ;;  %v772_v5 = vld [vmem:[#allocation2 + $0x18] sm:$0xff] }
 0x107   :  { %853 = vadd.xlane.f32.xlu0 %v5181_v61  ;;  %855 = vadd.xlane.f32.xlu1 %v5199_v3  ;;  %v1194_v61 = vmul.f32 %v5193_v0, %v5193_v0  ;;  %v1195_v3 = vmul.f32 %v5209_v8, %v5209_v8 }
 0x10b   :  { %917 = vadd.xlane.f32.xlu0 %v5183_v62  ;;  %919 = vadd.xlane.f32.xlu1 %v5201_v4  ;;  %v5424_v62 = vpop.f32.mrf.mxu0 }
 0x10d   :  { %v5426_v4 = vpop.f32.mrf.mxu0 }
 0x10f   :  { %849 = vadd.xlane.f32.xlu0 %v5191_v63  ;;  %851 = vadd.xlane.f32.xlu1 %v5207_v7  ;;  %v5430_v63 = vpop.f32.mrf.mxu0 }
 0x111   :  { %v5434_v7 = vpop.f32.mrf.mxu0 }
 0x112   :  { %v4078_v37 = vpack.c.bf16 %v5434_v7, %v5426_v4 }
 0x113   :  { %913 = vadd.xlane.f32.xlu0 %v5193_v0  ;;  %915 = vadd.xlane.f32.xlu1 %v5209_v8  ;;  %v5436_v0 = vpop.f32.mrf.mxu1  ;;  %v4083_v8 = vpack.c.bf16 %v5430_v63, %v5424_v62 }
 0x114   :  { %4466 = vst [vmem:[%s7024_s4 + $0x70] sm:$0xff] %v4078_v37   ;;  %v1092_v37 = vld [vmem:[#allocation3 + $0x10] sm:$0xff] }
 0x115   :  { %v5442_v44 = vpop.f32.mrf.mxu1  ;;  %4467 = vst [vmem:[%s7024_s4 + $0x78] sm:$0xff] %v4083_v8   ;;  %v1204_v8 = vmul.f32 %v5264_v27, %v5264_v27 }
 0x116   :  { %v4163_v54 = vpack.c.bf16 %v5442_v44, %v5428_v36 }
 0x117   :  { %1238 = vadd.xlane.f32.xlu0 %v1164_v20  ;;  %1240 = vadd.xlane.f32.xlu1 %v1165_v21  ;;  %v5452_v45 = vpop.f32.mrf.mxu1  ;;  %v1172_v20 = vmul.f32 %v5262_v26, %v5262_v26  ;;  %v1173_v21 = vmul.f32 %v5278_v30, %v5278_v30 }
 0x118   :  { %v4158_v57 = vpack.c.bf16 %v5452_v45, %v5436_v0  ;;  %4483 = vst [vmem:[%s7024_s4 + $0xf8] sm:$0xff] %v4163_v54  }
 0x11a   :  { %4482 = vst [vmem:[%s7024_s4 + $0xf0] sm:$0xff] %v4158_v57  }
 0x11b   :  { %1302 = vadd.xlane.f32.xlu0 %v1196_v24  ;;  %1304 = vadd.xlane.f32.xlu1 %v1197_v25  ;;  %v801_v24 = vld [vmem:[#allocation2 + $0x100] sm:$0xff]  ;;  %v804_v25 = vld [vmem:[#allocation2 + $0x118] sm:$0xff] }
 0x11f   :  { %1234 = vadd.xlane.f32.xlu0 %v1162_v32  ;;  %1236 = vadd.xlane.f32.xlu1 %v1163_v33 }
 0x123   :  { %1298 = vadd.xlane.f32.xlu0 %v1194_v61  ;;  %1300 = vadd.xlane.f32.xlu1 %v1195_v3 }
 0x127   :  { %861 = vadd.xlane.f32.xlu0 %v5225_v13  ;;  %863 = vadd.xlane.f32.xlu1 %v5239_v18  ;;  %v1198_v13 = vmul.f32 %v5237_v16, %v5237_v16  ;;  %v1199_v18 = vmul.f32 %v5250_v23, %v5250_v23 }
 0x12b   :  { %925 = vadd.xlane.f32.xlu0 %v5227_v14  ;;  %927 = vadd.xlane.f32.xlu1 %v5241_v19  ;;  %v803_v14 = vld [vmem:[#allocation2 + $0x110] sm:$0xff] }
 0x12f   :  { %857 = vadd.xlane.f32.xlu0 %v5235_v15  ;;  %859 = vadd.xlane.f32.xlu1 %v5248_v22  ;;  %v771_v15 = vld [vmem:[#allocation2 + $0x10] sm:$0xff] }
 0x133   :  { %921 = vadd.xlane.f32.xlu0 %v5237_v16  ;;  %923 = vadd.xlane.f32.xlu1 %v5250_v23 }
 0x137   :  { %1246 = vadd.xlane.f32.xlu0 %v1168_v58  ;;  %1248 = vadd.xlane.f32.xlu1 %v1169_v59 }
 0x13b   :  { %1310 = vadd.xlane.f32.xlu0 %v1200_v46  ;;  %1312 = vadd.xlane.f32.xlu1 %v1201_v51  ;;  %v1170_v46 = vmul.f32 %v5274_v28, %v5274_v28  ;;  %v1124_v51 = vld [vmem:[#allocation3 + $0x110] sm:$0xff] }
 0x13f   :  { %1242 = vadd.xlane.f32.xlu0 %v1166_v60  ;;  %1244 = vadd.xlane.f32.xlu1 %v1167_v1 }
 0x143   :  { %1306 = vadd.xlane.f32.xlu0 %v1198_v13  ;;  %1308 = vadd.xlane.f32.xlu1 %v1199_v18 }
 0x147   :  { %869 = vadd.xlane.f32.xlu0 %v5262_v26  ;;  %871 = vadd.xlane.f32.xlu1 %v5278_v30  ;;  %v1205_v26 = vmul.f32 %v5280_v31, %v5280_v31  ;;  %v802_v30 = vld [vmem:[#allocation2 + $0x108] sm:$0xff] }
 0x14b   :  { %933 = vadd.xlane.f32.xlu0 %v5264_v27  ;;  %935 = vadd.xlane.f32.xlu1 %v5280_v31  ;;  %v1171_v27 = vmul.f32 %v5288_v34, %v5288_v34  ;;  %v1093_v31 = vld [vmem:[#allocation3 + $0x18] sm:$0xff] }
 0x14f   :  { %865 = vadd.xlane.f32.xlu0 %v5274_v28  ;;  %867 = vadd.xlane.f32.xlu1 %v5288_v34  ;;  %v1203_v28 = vmul.f32 %v5290_v35, %v5290_v35  ;;  %v1125_v34 = vld [vmem:[#allocation3 + $0x118] sm:$0xff] }
 0x150   :  { %v902_v16 = vpop.xlane.xlu0 %901  ;;  %v838_v19 = vpop.xlane.xlu1 %837 }
 0x151   :  { %v995_v22 = vadd.f32 %v902_v16, %v803_v14  ;;  %v963_v23 = vadd.f32 %v838_v19, %v771_v15  ;;  %v1202_v14 = vmul.f32 %v5276_v29, %v5276_v29  ;;  %v1090_v15 = vld [vmem:[#allocation3] sm:$0xff] }
 0x153   :  { %1060 = vst.msk [vmem:[#allocation2 + $0x110] sm:$0xff] %vm22_vm1, %v995_v22  ;;  %1028 = vst.msk [vmem:[#allocation2 + $0x10] sm:$0xff] %vm22_vm1, %v963_v23  ;;  %929 = vadd.xlane.f32.xlu0 %v5276_v29  ;;  %931 = vadd.xlane.f32.xlu1 %v5290_v35 }
 0x154   :  { %v834_v56 = vpop.xlane.xlu0 %833  ;;  %v840_v9 = vpop.xlane.xlu1 %839 }
 0x155   :  { %v961_v12 = vadd.f32 %v834_v56, %v769_v2  ;;  %v964_v17 = vadd.f32 %v840_v9, %v772_v5  ;;  %v1122_v2 = vld [vmem:[#allocation3 + $0x100] sm:$0xff]  ;;  %v1091_v5 = vld [vmem:[#allocation3 + $0x8] sm:$0xff] }
 0x157   :  { %1026 = vst.msk [vmem:[#allocation2] sm:$0xff] %vm22_vm1, %v961_v12  ;;  %1029 = vst.msk [vmem:[#allocation2 + $0x18] sm:$0xff] %vm22_vm1, %v964_v17  ;;  %1254 = vadd.xlane.f32.xlu0 %v1172_v20  ;;  %1256 = vadd.xlane.f32.xlu1 %v1173_v21  ;;  %v770_v12 = vld [vmem:[#allocation2 + $0x8] sm:$0xff] }
 0x158   :  { %v898_v32 = vpop.xlane.xlu0 %897  ;;  %v904_v33 = vpop.xlane.xlu1 %903  ;;  %v1123_v17 = vld [vmem:[#allocation3 + $0x108] sm:$0xff] }
 0x159   :  { %v993_v61 = vadd.f32 %v898_v32, %v801_v24  ;;  %v996_v3 = vadd.f32 %v904_v33, %v804_v25  ;;  %v775_v32 = vld [vmem:[#allocation2 + $0x30] sm:$0xff]  ;;  %v776_v33 = vld [vmem:[#allocation2 + $0x38] sm:$0xff] }
 0x15b   :  { %1058 = vst.msk [vmem:[#allocation2 + $0x100] sm:$0xff] %vm22_vm1, %v993_v61  ;;  %1061 = vst.msk [vmem:[#allocation2 + $0x118] sm:$0xff] %vm22_vm1, %v996_v3  ;;  %1318 = vadd.xlane.f32.xlu0 %v1204_v8  ;;  %1320 = vadd.xlane.f32.xlu1 %v1205_v26 }
 0x15c   :  { %v1223_v54 = vpop.xlane.xlu0 %1222  ;;  %v900_v57 = vpop.xlane.xlu1 %899 }
 0x15d   :  { %v1348_v58 = vadd.f32 %v1223_v54, %v1092_v37  ;;  %v994_v59 = vadd.f32 %v900_v57, %v802_v30  ;;  %v807_v37 = vld [vmem:[#allocation2 + $0x130] sm:$0xff]  ;;  %v808_v30 = vld [vmem:[#allocation2 + $0x138] sm:$0xff] }
 0x15f   :  { %1412 = vst.msk [vmem:[#allocation3 + $0x10] sm:$0xff] %vm22_vm1, %v1348_v58  ;;  %1059 = vst.msk [vmem:[#allocation2 + $0x108] sm:$0xff] %vm22_vm1, %v994_v59  ;;  %1250 = vadd.xlane.f32.xlu0 %v1170_v46  ;;  %1252 = vadd.xlane.f32.xlu1 %v1171_v27  ;;  %v1176_v46 = vmul.f32 %v5302_v38, %v5302_v38  ;;  %v1177_v27 = vmul.f32 %v5318_v42, %v5318_v42 }
 0x160   :  { %v1287_v60 = vpop.xlane.xlu0 %1286  ;;  %v1225_v1 = vpop.xlane.xlu1 %1224 }
 0x161   :  { %v1380_v13 = vadd.f32 %v1287_v60, %v1124_v51  ;;  %v1349_v18 = vadd.f32 %v1225_v1, %v1093_v31  ;;  %v773_v51 = vld [vmem:[#allocation2 + $0x20] sm:$0xff]  ;;  %v774_v31 = vld [vmem:[#allocation2 + $0x28] sm:$0xff] }
 0x163   :  { %1444 = vst.msk [vmem:[#allocation3 + $0x110] sm:$0xff] %vm22_vm1, %v1380_v13  ;;  %1413 = vst.msk [vmem:[#allocation3 + $0x18] sm:$0xff] %vm22_vm1, %v1349_v18  ;;  %1314 = vadd.xlane.f32.xlu0 %v1202_v14  ;;  %1316 = vadd.xlane.f32.xlu1 %v1203_v28  ;;  %v1208_v14 = vmul.f32 %v5304_v39, %v5304_v39  ;;  %v805_v28 = vld [vmem:[#allocation2 + $0x120] sm:$0xff] }
 0x164   :  { %v1219_v16 = vpop.xlane.xlu0 %1218  ;;  %v1289_v19 = vpop.xlane.xlu1 %1288 }
 0x165   :  { %v1346_v22 = vadd.f32 %v1219_v16, %v1090_v15  ;;  %v1381_v23 = vadd.f32 %v1289_v19, %v1125_v34 }
 0x167   :  { %1410 = vst.msk [vmem:[#allocation3] sm:$0xff] %vm22_vm1, %v1346_v22  ;;  %1445 = vst.msk [vmem:[#allocation3 + $0x118] sm:$0xff] %vm22_vm1, %v1381_v23  ;;  %877 = vadd.xlane.f32.xlu0 %v5302_v38  ;;  %879 = vadd.xlane.f32.xlu1 %v5318_v42  ;;  %v1209_v38 = vmul.f32 %v5320_v43, %v5320_v43  ;;  %v806_v42 = vld [vmem:[#allocation2 + $0x128] sm:$0xff]  ;;  %v1174_v22 = vmul.f32 %v5314_v40, %v5314_v40  ;;  %v1096_v23 = vld [vmem:[#allocation3 + $0x30] sm:$0xff] }
 0x168   :  { %v1283_v29 = vpop.xlane.xlu0 %1282  ;;  %v1221_v35 = vpop.xlane.xlu1 %1220 }
 0x169   :  { %v1378_v56 = vadd.f32 %v1283_v29, %v1122_v2  ;;  %v1347_v9 = vadd.f32 %v1221_v35, %v1091_v5 }
 0x16b   :  { %1442 = vst.msk [vmem:[#allocation3 + $0x100] sm:$0xff] %vm22_vm1, %v1378_v56  ;;  %1411 = vst.msk [vmem:[#allocation3 + $0x8] sm:$0xff] %vm22_vm1, %v1347_v9  ;;  %941 = vadd.xlane.f32.xlu0 %v5304_v39  ;;  %943 = vadd.xlane.f32.xlu1 %v5320_v43  ;;  %v1175_v39 = vmul.f32 %v5328_v50, %v5328_v50  ;;  %v1097_v43 = vld [vmem:[#allocation3 + $0x38] sm:$0xff]  ;;  %v1206_v56 = vmul.f32 %v5316_v41, %v5316_v41  ;;  %v1128_v9 = vld [vmem:[#allocation3 + $0x130] sm:$0xff] }
 0x16c   :  { %v836_v20 = vpop.xlane.xlu0 %835  ;;  %v1285_v21 = vpop.xlane.xlu1 %1284 }
 0x16d   :  { %v962_v24 = vadd.f32 %v836_v20, %v770_v12  ;;  %v1379_v25 = vadd.f32 %v1285_v21, %v1123_v17 }
 0x16f   :  { %1027 = vst.msk [vmem:[#allocation2 + $0x8] sm:$0xff] %vm22_vm1, %v962_v24  ;;  %1443 = vst.msk [vmem:[#allocation3 + $0x108] sm:$0xff] %vm22_vm1, %v1379_v25  ;;  %873 = vadd.xlane.f32.xlu0 %v5314_v40  ;;  %875 = vadd.xlane.f32.xlu1 %v5328_v50  ;;  %v1207_v40 = vmul.f32 %v5330_v53, %v5330_v53  ;;  %v1129_v50 = vld [vmem:[#allocation3 + $0x138] sm:$0xff]  ;;  %v1094_v24 = vld [vmem:[#allocation3 + $0x20] sm:$0xff] }
 0x170   :  { %v846_v61 = vpop.xlane.xlu0 %845  ;;  %v848_v3 = vpop.xlane.xlu1 %847  ;;  %v1095_v25 = vld [vmem:[#allocation3 + $0x28] sm:$0xff] }
 0x171   :  { %v967_v8 = vadd.f32 %v846_v61, %v775_v32  ;;  %v968_v26 = vadd.f32 %v848_v3, %v776_v33  ;;  %v1126_v61 = vld [vmem:[#allocation3 + $0x120] sm:$0xff]  ;;  %v1127_v3 = vld [vmem:[#allocation3 + $0x128] sm:$0xff] }
 0x173   :  { %1032 = vst.msk [vmem:[#allocation2 + $0x30] sm:$0xff] %vm22_vm1, %v967_v8  ;;  %1033 = vst.msk [vmem:[#allocation2 + $0x38] sm:$0xff] %vm22_vm1, %v968_v26  ;;  %937 = vadd.xlane.f32.xlu0 %v5316_v41  ;;  %939 = vadd.xlane.f32.xlu1 %v5330_v53 }
 0x174   :  { %v910_v54 = vpop.xlane.xlu0 %909  ;;  %v912_v57 = vpop.xlane.xlu1 %911 }
 0x175   :  { %v999_v58 = vadd.f32 %v910_v54, %v807_v37  ;;  %v1000_v59 = vadd.f32 %v912_v57, %v808_v30  ;;  %v779_v54 = vld [vmem:[#allocation2 + $0x50] sm:$0xff]  ;;  %v780_v57 = vld [vmem:[#allocation2 + $0x58] sm:$0xff] }
 0x177   :  { %1064 = vst.msk [vmem:[#allocation2 + $0x130] sm:$0xff] %vm22_vm1, %v999_v58  ;;  %1065 = vst.msk [vmem:[#allocation2 + $0x138] sm:$0xff] %vm22_vm1, %v1000_v59  ;;  %1262 = vadd.xlane.f32.xlu0 %v1176_v46  ;;  %1264 = vadd.xlane.f32.xlu1 %v1177_v27 }
 0x178   :  { %v842_v60 = vpop.xlane.xlu0 %841  ;;  %v844_v1 = vpop.xlane.xlu1 %843 }
 0x179   :  { %v965_v13 = vadd.f32 %v842_v60, %v773_v51  ;;  %v966_v18 = vadd.f32 %v844_v1, %v774_v31  ;;  %v811_v51 = vld [vmem:[#allocation2 + $0x150] sm:$0xff]  ;;  %v812_v31 = vld [vmem:[#allocation2 + $0x158] sm:$0xff] }
 0x17b   :  { %1030 = vst.msk [vmem:[#allocation2 + $0x20] sm:$0xff] %vm22_vm1, %v965_v13  ;;  %1031 = vst.msk [vmem:[#allocation2 + $0x28] sm:$0xff] %vm22_vm1, %v966_v18  ;;  %1326 = vadd.xlane.f32.xlu0 %v1208_v14  ;;  %1328 = vadd.xlane.f32.xlu1 %v1209_v38  ;;  %v1180_v13 = vmul.f32 %v5364_v47, %v5364_v47  ;;  %v1181_v18 = vmul.f32 %v5370_v48, %v5370_v48 }
 0x17c   :  { %v906_v15 = vpop.xlane.xlu0 %905  ;;  %v908_v34 = vpop.xlane.xlu1 %907 }
 0x17d   :  { %v997_v16 = vadd.f32 %v906_v15, %v805_v28  ;;  %v998_v19 = vadd.f32 %v908_v34, %v806_v42  ;;  %v777_v28 = vld [vmem:[#allocation2 + $0x40] sm:$0xff]  ;;  %v778_v42 = vld [vmem:[#allocation2 + $0x48] sm:$0xff] }
 0x17f   :  { %1062 = vst.msk [vmem:[#allocation2 + $0x120] sm:$0xff] %vm22_vm1, %v997_v16  ;;  %1063 = vst.msk [vmem:[#allocation2 + $0x128] sm:$0xff] %vm22_vm1, %v998_v19  ;;  %1258 = vadd.xlane.f32.xlu0 %v1174_v22  ;;  %1260 = vadd.xlane.f32.xlu1 %v1175_v39  ;;  %v1212_v16 = vmul.f32 %v5368_v6, %v5368_v6  ;;  %v809_v22 = vld [vmem:[#allocation2 + $0x140] sm:$0xff]  ;;  %v810_v39 = vld [vmem:[#allocation2 + $0x148] sm:$0xff] }
 0x180   :  { %v1231_v2 = vpop.xlane.xlu0 %1230  ;;  %v1233_v5 = vpop.xlane.xlu1 %1232 }
 0x181   :  { %v1352_v29 = vadd.f32 %v1231_v2, %v1096_v23  ;;  %v1353_v35 = vadd.f32 %v1233_v5, %v1097_v43  ;;  %v1178_v2 = vmul.f32 %v5366_v52, %v5366_v52 }
 0x183   :  { %1416 = vst.msk [vmem:[#allocation3 + $0x30] sm:$0xff] %vm22_vm1, %v1352_v29  ;;  %1417 = vst.msk [vmem:[#allocation3 + $0x38] sm:$0xff] %vm22_vm1, %v1353_v35  ;;  %1322 = vadd.xlane.f32.xlu0 %v1206_v56  ;;  %1324 = vadd.xlane.f32.xlu1 %v1207_v40  ;;  %v1100_v29 = vld [vmem:[#allocation3 + $0x50] sm:$0xff]  ;;  %v1101_v35 = vld [vmem:[#allocation3 + $0x58] sm:$0xff] }
 0x184   :  { %v1295_v12 = vpop.xlane.xlu0 %1294  ;;  %v1297_v17 = vpop.xlane.xlu1 %1296 }
 0x185   :  { %v1384_v20 = vadd.f32 %v1295_v12, %v1128_v9  ;;  %v1385_v21 = vadd.f32 %v1297_v17, %v1129_v50  ;;  %v1210_v9 = vmul.f32 %v5376_v49, %v5376_v49  ;;  %v1132_v12 = vld [vmem:[#allocation3 + $0x150] sm:$0xff]  ;;  %v1133_v17 = vld [vmem:[#allocation3 + $0x158] sm:$0xff] }
 0x187   :  { %1448 = vst.msk [vmem:[#allocation3 + $0x130] sm:$0xff] %vm22_vm1, %v1384_v20  ;;  %1449 = vst.msk [vmem:[#allocation3 + $0x138] sm:$0xff] %vm22_vm1, %v1385_v21  ;;  %885 = vadd.xlane.f32.xlu0 %v5364_v47  ;;  %887 = vadd.xlane.f32.xlu1 %v5370_v48  ;;  %v1213_v47 = vmul.f32 %v5382_v10, %v5382_v10 }
 0x188   :  { %v1227_v41 = vpop.xlane.xlu0 %1226  ;;  %v1229_v53 = vpop.xlane.xlu1 %1228 }
 0x189   :  { %v1350_v32 = vadd.f32 %v1227_v41, %v1094_v24  ;;  %v1351_v33 = vadd.f32 %v1229_v53, %v1095_v25  ;;  %v1098_v41 = vld [vmem:[#allocation3 + $0x40] sm:$0xff]  ;;  %v1099_v53 = vld [vmem:[#allocation3 + $0x48] sm:$0xff] }
 0x18b   :  { %1414 = vst.msk [vmem:[#allocation3 + $0x20] sm:$0xff] %vm22_vm1, %v1350_v32  ;;  %1415 = vst.msk [vmem:[#allocation3 + $0x28] sm:$0xff] %vm22_vm1, %v1351_v33  ;;  %949 = vadd.xlane.f32.xlu0 %v5368_v6  ;;  %951 = vadd.xlane.f32.xlu1 %v5382_v10  ;;  %v1179_v6 = vmul.f32 %v5374_v55, %v5374_v55 }
 0x18c   :  { %v1291_v8 = vpop.xlane.xlu0 %1290  ;;  %v1293_v26 = vpop.xlane.xlu1 %1292 }
 0x18d   :  { %v1382_v37 = vadd.f32 %v1291_v8, %v1126_v61  ;;  %v1383_v30 = vadd.f32 %v1293_v26, %v1127_v3  ;;  %v1130_v61 = vld [vmem:[#allocation3 + $0x140] sm:$0xff]  ;;  %v1131_v3 = vld [vmem:[#allocation3 + $0x148] sm:$0xff] }
 0x18f   :  { %1446 = vst.msk [vmem:[#allocation3 + $0x120] sm:$0xff] %vm22_vm1, %v1382_v37  ;;  %1447 = vst.msk [vmem:[#allocation3 + $0x128] sm:$0xff] %vm22_vm1, %v1383_v30  ;;  %881 = vadd.xlane.f32.xlu0 %v5366_v52  ;;  %883 = vadd.xlane.f32.xlu1 %v5374_v55  ;;  %v1211_v52 = vmul.f32 %v5392_v11, %v5392_v11 }
 0x190   :  { %v854_v58 = vpop.xlane.xlu0 %853  ;;  %v856_v59 = vpop.xlane.xlu1 %855 }
 0x191   :  { %v971_v46 = vadd.f32 %v854_v58, %v779_v54  ;;  %v972_v27 = vadd.f32 %v856_v59, %v780_v57  ;;  %v783_v54 = vld [vmem:[#allocation2 + $0x70] sm:$0xff]  ;;  %v784_v57 = vld [vmem:[#allocation2 + $0x78] sm:$0xff] }
 0x193   :  { %1036 = vst.msk [vmem:[#allocation2 + $0x50] sm:$0xff] %vm22_vm1, %v971_v46  ;;  %1037 = vst.msk [vmem:[#allocation2 + $0x58] sm:$0xff] %vm22_vm1, %v972_v27  ;;  %945 = vadd.xlane.f32.xlu0 %v5376_v49  ;;  %947 = vadd.xlane.f32.xlu1 %v5392_v11 }
 0x194   :  { %v918_v60 = vpop.xlane.xlu0 %917  ;;  %v920_v1 = vpop.xlane.xlu1 %919 }
 0x195   :  { %v1003_v14 = vadd.f32 %v918_v60, %v811_v51  ;;  %v1004_v38 = vadd.f32 %v920_v1, %v812_v31  ;;  %v815_v51 = vld [vmem:[#allocation2 + $0x170] sm:$0xff]  ;;  %v816_v31 = vld [vmem:[#allocation2 + $0x178] sm:$0xff] }
 0x197   :  { %1068 = vst.msk [vmem:[#allocation2 + $0x150] sm:$0xff] %vm22_vm1, %v1003_v14  ;;  %1069 = vst.msk [vmem:[#allocation2 + $0x158] sm:$0xff] %vm22_vm1, %v1004_v38  ;;  %1270 = vadd.xlane.f32.xlu0 %v1180_v13  ;;  %1272 = vadd.xlane.f32.xlu1 %v1181_v18  ;;  %v1184_v13 = vmul.f32 %v5424_v62, %v5424_v62  ;;  %v1185_v18 = vmul.f32 %v5430_v63, %v5430_v63 }
 0x198   :  { %v850_v15 = vpop.xlane.xlu0 %849  ;;  %v852_v34 = vpop.xlane.xlu1 %851 }
 0x199   :  { %v969_v19 = vadd.f32 %v850_v15, %v777_v28  ;;  %v970_v48 = vadd.f32 %v852_v34, %v778_v42  ;;  %v781_v28 = vld [vmem:[#allocation2 + $0x60] sm:$0xff]  ;;  %v782_v42 = vld [vmem:[#allocation2 + $0x68] sm:$0xff] }
 0x19b   :  { %1034 = vst.msk [vmem:[#allocation2 + $0x40] sm:$0xff] %vm22_vm1, %v969_v19  ;;  %1035 = vst.msk [vmem:[#allocation2 + $0x48] sm:$0xff] %vm22_vm1, %v970_v48  ;;  %1334 = vadd.xlane.f32.xlu0 %v1212_v16  ;;  %1336 = vadd.xlane.f32.xlu1 %v1213_v47  ;;  %v1216_v16 = vmul.f32 %v5428_v36, %v5428_v36  ;;  %v813_v19 = vld [vmem:[#allocation2 + $0x160] sm:$0xff]  ;;  %v814_v48 = vld [vmem:[#allocation2 + $0x168] sm:$0xff] }
 0x19c   :  { %v914_v23 = vpop.xlane.xlu0 %913  ;;  %v916_v43 = vpop.xlane.xlu1 %915 }
 0x19d   :  { %v1001_v5 = vadd.f32 %v914_v23, %v809_v22  ;;  %v1002_v10 = vadd.f32 %v916_v43, %v810_v39  ;;  %v1182_v23 = vmul.f32 %v5426_v4, %v5426_v4 }
 0x19f   :  { %1066 = vst.msk [vmem:[#allocation2 + $0x140] sm:$0xff] %vm22_vm1, %v1001_v5  ;;  %1067 = vst.msk [vmem:[#allocation2 + $0x148] sm:$0xff] %vm22_vm1, %v1002_v10  ;;  %1266 = vadd.xlane.f32.xlu0 %v1178_v2  ;;  %1268 = vadd.xlane.f32.xlu1 %v1179_v6  ;;  %v1104_v2 = vld [vmem:[#allocation3 + $0x70] sm:$0xff]  ;;  %v1105_v6 = vld [vmem:[#allocation3 + $0x78] sm:$0xff] }
 0x1a0   :  { %v1239_v56 = vpop.xlane.xlu0 %1238  ;;  %v1241_v40 = vpop.xlane.xlu1 %1240 }
 0x1a1   :  { %v1356_v50 = vadd.f32 %v1239_v56, %v1100_v29  ;;  %v1357_v55 = vadd.f32 %v1241_v40, %v1101_v35  ;;  %v1214_v29 = vmul.f32 %v5436_v0, %v5436_v0  ;;  %v1136_v56 = vld [vmem:[#allocation3 + $0x170] sm:$0xff]  ;;  %v1137_v40 = vld [vmem:[#allocation3 + $0x178] sm:$0xff] }
 0x1a3   :  { %1420 = vst.msk [vmem:[#allocation3 + $0x50] sm:$0xff] %vm22_vm1, %v1356_v50  ;;  %1421 = vst.msk [vmem:[#allocation3 + $0x58] sm:$0xff] %vm22_vm1, %v1357_v55  ;;  %1330 = vadd.xlane.f32.xlu0 %v1210_v9  ;;  %1332 = vadd.xlane.f32.xlu1 %v1211_v52 }
 0x1a4   :  { %v1303_v20 = vpop.xlane.xlu0 %1302  ;;  %v1305_v21 = vpop.xlane.xlu1 %1304 }
 0x1a5   :  { %v1388_v24 = vadd.f32 %v1303_v20, %v1132_v12  ;;  %v1389_v25 = vadd.f32 %v1305_v21, %v1133_v17  ;;  %v1102_v12 = vld [vmem:[#allocation3 + $0x60] sm:$0xff]  ;;  %v1103_v17 = vld [vmem:[#allocation3 + $0x68] sm:$0xff] }
 0x1a7   :  { %1452 = vst.msk [vmem:[#allocation3 + $0x150] sm:$0xff] %vm22_vm1, %v1388_v24  ;;  %1453 = vst.msk [vmem:[#allocation3 + $0x158] sm:$0xff] %vm22_vm1, %v1389_v25  ;;  %893 = vadd.xlane.f32.xlu0 %v5424_v62  ;;  %895 = vadd.xlane.f32.xlu1 %v5430_v63  ;;  %v1217_v62 = vmul.f32 %v5442_v44, %v5442_v44  ;;  %v1134_v24 = vld [vmem:[#allocation3 + $0x160] sm:$0xff]  ;;  %v1135_v25 = vld [vmem:[#allocation3 + $0x168] sm:$0xff] }
 0x1a8   :  { %v1235_v49 = vpop.xlane.xlu0 %1234  ;;  %v1237_v11 = vpop.xlane.xlu1 %1236 }
 0x1a9   :  { %v1354_v32 = vadd.f32 %v1235_v49, %v1098_v41  ;;  %v1355_v33 = vadd.f32 %v1237_v11, %v1099_v53 }
 0x1ab   :  { %1418 = vst.msk [vmem:[#allocation3 + $0x40] sm:$0xff] %vm22_vm1, %v1354_v32  ;;  %1419 = vst.msk [vmem:[#allocation3 + $0x48] sm:$0xff] %vm22_vm1, %v1355_v33  ;;  %957 = vadd.xlane.f32.xlu0 %v5428_v36  ;;  %959 = vadd.xlane.f32.xlu1 %v5442_v44  ;;  %v1183_v36 = vmul.f32 %v5434_v7, %v5434_v7  ;;  %v787_v32 = vld [vmem:[#allocation2 + $0x90] sm:$0xff]  ;;  %v788_v33 = vld [vmem:[#allocation2 + $0x98] sm:$0xff] }
 0x1ac   :  { %v1299_v8 = vpop.xlane.xlu0 %1298  ;;  %v1301_v26 = vpop.xlane.xlu1 %1300 }
 0x1ad   :  { %v1386_v37 = vadd.f32 %v1299_v8, %v1130_v61  ;;  %v1387_v30 = vadd.f32 %v1301_v26, %v1131_v3 }
 0x1af   :  { %1450 = vst.msk [vmem:[#allocation3 + $0x140] sm:$0xff] %vm22_vm1, %v1386_v37  ;;  %1451 = vst.msk [vmem:[#allocation3 + $0x148] sm:$0xff] %vm22_vm1, %v1387_v30  ;;  %889 = vadd.xlane.f32.xlu0 %v5426_v4  ;;  %891 = vadd.xlane.f32.xlu1 %v5434_v7  ;;  %v1215_v4 = vmul.f32 %v5452_v45, %v5452_v45  ;;  %v819_v37 = vld [vmem:[#allocation2 + $0x190] sm:$0xff]  ;;  %v820_v30 = vld [vmem:[#allocation2 + $0x198] sm:$0xff] }
 0x1b0   :  { %v862_v58 = vpop.xlane.xlu0 %861  ;;  %v864_v59 = vpop.xlane.xlu1 %863 }
 0x1b1   :  { %v975_v46 = vadd.f32 %v862_v58, %v783_v54  ;;  %v976_v27 = vadd.f32 %v864_v59, %v784_v57 }
 0x1b3   :  { %1040 = vst.msk [vmem:[#allocation2 + $0x70] sm:$0xff] %vm22_vm1, %v975_v46  ;;  %1041 = vst.msk [vmem:[#allocation2 + $0x78] sm:$0xff] %vm22_vm1, %v976_v27  ;;  %953 = vadd.xlane.f32.xlu0 %v5436_v0  ;;  %955 = vadd.xlane.f32.xlu1 %v5452_v45  ;;  %v785_v46 = vld [vmem:[#allocation2 + $0x80] sm:$0xff]  ;;  %v786_v27 = vld [vmem:[#allocation2 + $0x88] sm:$0xff] }
 0x1b4   :  { %v926_v60 = vpop.xlane.xlu0 %925  ;;  %v928_v1 = vpop.xlane.xlu1 %927 }
 0x1b5   :  { %v1007_v14 = vadd.f32 %v926_v60, %v815_v51  ;;  %v1008_v38 = vadd.f32 %v928_v1, %v816_v31 }
 0x1b7   :  { %1072 = vst.msk [vmem:[#allocation2 + $0x170] sm:$0xff] %vm22_vm1, %v1007_v14  ;;  %1073 = vst.msk [vmem:[#allocation2 + $0x178] sm:$0xff] %vm22_vm1, %v1008_v38  ;;  %1278 = vadd.xlane.f32.xlu0 %v1184_v13  ;;  %1280 = vadd.xlane.f32.xlu1 %v1185_v18  ;;  %v817_v13 = vld [vmem:[#allocation2 + $0x180] sm:$0xff]  ;;  %v818_v18 = vld [vmem:[#allocation2 + $0x188] sm:$0xff] }
 0x1b8   :  { %v858_v15 = vpop.xlane.xlu0 %857  ;;  %v860_v34 = vpop.xlane.xlu1 %859 }
 0x1b9   :  { %v973_v47 = vadd.f32 %v858_v15, %v781_v28  ;;  %v974_v63 = vadd.f32 %v860_v34, %v782_v42  ;;  %v1108_v15 = vld [vmem:[#allocation3 + $0x90] sm:$0xff]  ;;  %v1109_v34 = vld [vmem:[#allocation3 + $0x98] sm:$0xff] }
 0x1bb   :  { %1038 = vst.msk [vmem:[#allocation2 + $0x60] sm:$0xff] %vm22_vm1, %v973_v47  ;;  %1039 = vst.msk [vmem:[#allocation2 + $0x68] sm:$0xff] %vm22_vm1, %v974_v63  ;;  %1342 = vadd.xlane.f32.xlu0 %v1216_v16  ;;  %1344 = vadd.xlane.f32.xlu1 %v1217_v62 }
 0x1bc   :  { %v922_v22 = vpop.xlane.xlu0 %921  ;;  %v924_v39 = vpop.xlane.xlu1 %923 }
 0x1bd   :  { %v1005_v43 = vadd.f32 %v922_v22, %v813_v19  ;;  %v1006_v44 = vadd.f32 %v924_v39, %v814_v48  ;;  %v1140_v19 = vld [vmem:[#allocation3 + $0x190] sm:$0xff]  ;;  %v1141_v48 = vld [vmem:[#allocation3 + $0x198] sm:$0xff] }
 0x1bf   :  { %1070 = vst.msk [vmem:[#allocation2 + $0x160] sm:$0xff] %vm22_vm1, %v1005_v43  ;;  %1071 = vst.msk [vmem:[#allocation2 + $0x168] sm:$0xff] %vm22_vm1, %v1006_v44  ;;  %1274 = vadd.xlane.f32.xlu0 %v1182_v23  ;;  %1276 = vadd.xlane.f32.xlu1 %v1183_v36  ;;  %v1106_v43 = vld [vmem:[#allocation3 + $0x80] sm:$0xff]  ;;  %v1107_v44 = vld [vmem:[#allocation3 + $0x88] sm:$0xff] }
 0x1c0   :  { %v1247_v5 = vpop.xlane.xlu0 %1246  ;;  %v1249_v10 = vpop.xlane.xlu1 %1248 }
 0x1c1   :  { %v1360_v35 = vadd.f32 %v1247_v5, %v1104_v2  ;;  %v1361_v7 = vadd.f32 %v1249_v10, %v1105_v6 }
 0x1c3   :  { %1424 = vst.msk [vmem:[#allocation3 + $0x70] sm:$0xff] %vm22_vm1, %v1360_v35  ;;  %1425 = vst.msk [vmem:[#allocation3 + $0x78] sm:$0xff] %vm22_vm1, %v1361_v7  ;;  %1338 = vadd.xlane.f32.xlu0 %v1214_v29  ;;  %1340 = vadd.xlane.f32.xlu1 %v1215_v4  ;;  %v1138_v29 = vld [vmem:[#allocation3 + $0x180] sm:$0xff]  ;;  %v1139_v4 = vld [vmem:[#allocation3 + $0x188] sm:$0xff] }
 0x1c4   :  { %v1311_v9 = vpop.xlane.xlu0 %1310  ;;  %v1313_v52 = vpop.xlane.xlu1 %1312 }
 0x1c5   :  { %v1392_v50 = vadd.f32 %v1311_v9, %v1136_v56  ;;  %v1393_v55 = vadd.f32 %v1313_v52, %v1137_v40  ;;  %v791_v9 = vld [vmem:[#allocation2 + $0xb0] sm:$0xff]  ;;  %v792_v52 = vld [vmem:[#allocation2 + $0xb8] sm:$0xff] }
 0x1c7   :  { %1456 = vst.msk [vmem:[#allocation3 + $0x170] sm:$0xff] %vm22_vm1, %v1392_v50  ;;  %1457 = vst.msk [vmem:[#allocation3 + $0x178] sm:$0xff] %vm22_vm1, %v1393_v55 }
 0x1c8   :  { %v1243_v0 = vpop.xlane.xlu0 %1242  ;;  %v1245_v45 = vpop.xlane.xlu1 %1244 }
 0x1c9   :  { %v1358_v20 = vadd.f32 %v1243_v0, %v1102_v12  ;;  %v1359_v21 = vadd.f32 %v1245_v45, %v1103_v17  ;;  %v4693_v12 = vmov 0   ;;  %v823_v45 = vld [vmem:[#allocation2 + $0x1b0] sm:$0xff] }
 0x1ca   :  { %4649 = vset.pattern.permute.xlu1 %v4693_v12  ;;  %4650 = vset.pattern.permute.xlu0 %v4693_v12  ;;  %v826_v12 = vld [vmem:[#allocation2 + $0x1c8] sm:$0xff] }
 0x1cb   :  { %1422 = vst.msk [vmem:[#allocation3 + $0x60] sm:$0xff] %vm22_vm1, %v1358_v20  ;;  %1423 = vst.msk [vmem:[#allocation3 + $0x68] sm:$0xff] %vm22_vm1, %v1359_v21  ;;  %v824_v20 = vld [vmem:[#allocation2 + $0x1b8] sm:$0xff] }
 0x1cc   :  { %v1307_v41 = vpop.xlane.xlu0 %1306  ;;  %v1309_v53 = vpop.xlane.xlu1 %1308 }
 0x1cd   :  { %v1390_v49 = vadd.f32 %v1307_v41, %v1134_v24  ;;  %v1391_v11 = vadd.f32 %v1309_v53, %v1135_v25  ;;  %v789_v53 = vld [vmem:[#allocation2 + $0xa0] sm:$0xff] }
 0x1cf   :  { %1454 = vst.msk [vmem:[#allocation3 + $0x160] sm:$0xff] %vm22_vm1, %v1390_v49  ;;  %1455 = vst.msk [vmem:[#allocation3 + $0x168] sm:$0xff] %vm22_vm1, %v1391_v11  ;;  %v790_v49 = vld [vmem:[#allocation2 + $0xa8] sm:$0xff] }
 0x1d0   :  { %v870_v61 = vpop.xlane.xlu0 %869  ;;  %v872_v3 = vpop.xlane.xlu1 %871 }
 0x1d1   :  { %v979_v8 = vadd.f32 %v870_v61, %v787_v32  ;;  %v980_v26 = vadd.f32 %v872_v3, %v788_v33  ;;  %v821_v3 = vld [vmem:[#allocation2 + $0x1a0] sm:$0xff] }
 0x1d3   :  { %1044 = vst.msk [vmem:[#allocation2 + $0x90] sm:$0xff] %vm22_vm1, %v979_v8  ;;  %1045 = vst.msk [vmem:[#allocation2 + $0x98] sm:$0xff] %vm22_vm1, %v980_v26  ;;  %v822_v8 = vld [vmem:[#allocation2 + $0x1a8] sm:$0xff] }
 0x1d4   :  { %v934_v54 = vpop.xlane.xlu0 %933  ;;  %v936_v57 = vpop.xlane.xlu1 %935 }
 0x1d5   :  { %v1011_v58 = vadd.f32 %v934_v54, %v819_v37  ;;  %v1012_v59 = vadd.f32 %v936_v57, %v820_v30  ;;  %v1112_v57 = vld [vmem:[#allocation3 + $0xb0] sm:$0xff] }
 0x1d7   :  { %1076 = vst.msk [vmem:[#allocation2 + $0x190] sm:$0xff] %vm22_vm1, %v1011_v58  ;;  %1077 = vst.msk [vmem:[#allocation2 + $0x198] sm:$0xff] %vm22_vm1, %v1012_v59  ;;  %v1113_v58 = vld [vmem:[#allocation3 + $0xb8] sm:$0xff] }
 0x1d8   :  { %v866_v51 = vpop.xlane.xlu0 %865  ;;  %v868_v31 = vpop.xlane.xlu1 %867 }
 0x1d9   :  { %v977_v60 = vadd.f32 %v866_v51, %v785_v46  ;;  %v978_v1 = vadd.f32 %v868_v31, %v786_v27  ;;  %v1144_v31 = vld [vmem:[#allocation3 + $0x1b0] sm:$0xff] }
 0x1db   :  { %1042 = vst.msk [vmem:[#allocation2 + $0x80] sm:$0xff] %vm22_vm1, %v977_v60  ;;  %1043 = vst.msk [vmem:[#allocation2 + $0x88] sm:$0xff] %vm22_vm1, %v978_v1  ;;  %v1145_v60 = vld [vmem:[#allocation3 + $0x1b8] sm:$0xff] }
 0x1dc   :  { %v930_v14 = vpop.xlane.xlu0 %929  ;;  %v932_v38 = vpop.xlane.xlu1 %931 }
 0x1dd   :  { %v1009_v28 = vadd.f32 %v930_v14, %v817_v13  ;;  %v1010_v42 = vadd.f32 %v932_v38, %v818_v18  ;;  %v1110_v38 = vld [vmem:[#allocation3 + $0xa0] sm:$0xff] }
 0x1df   :  { %1074 = vst.msk [vmem:[#allocation2 + $0x180] sm:$0xff] %vm22_vm1, %v1009_v28  ;;  %1075 = vst.msk [vmem:[#allocation2 + $0x188] sm:$0xff] %vm22_vm1, %v1010_v42  ;;  %v1111_v28 = vld [vmem:[#allocation3 + $0xa8] sm:$0xff] }
 0x1e0   :  { %v1255_v16 = vpop.xlane.xlu0 %1254  ;;  %v1257_v62 = vpop.xlane.xlu1 %1256 }
 0x1e1   :  { %v1364_v47 = vadd.f32 %v1255_v16, %v1108_v15  ;;  %v1365_v63 = vadd.f32 %v1257_v62, %v1109_v34  ;;  %v1142_v62 = vld [vmem:[#allocation3 + $0x1a0] sm:$0xff] }
 0x1e3   :  { %1428 = vst.msk [vmem:[#allocation3 + $0x90] sm:$0xff] %vm22_vm1, %v1364_v47  ;;  %1429 = vst.msk [vmem:[#allocation3 + $0x98] sm:$0xff] %vm22_vm1, %v1365_v63  ;;  %v1143_v47 = vld [vmem:[#allocation3 + $0x1a8] sm:$0xff] }
 0x1e4   :  { %v1319_v22 = vpop.xlane.xlu0 %1318  ;;  %v1321_v39 = vpop.xlane.xlu1 %1320 }
 0x1e5   :  { %v1396_v23 = vadd.f32 %v1319_v22, %v1140_v19  ;;  %v1397_v36 = vadd.f32 %v1321_v39, %v1141_v48  ;;  %v795_v39 = vld [vmem:[#allocation2 + $0xd0] sm:$0xff] }
 0x1e7   :  { %1460 = vst.msk [vmem:[#allocation3 + $0x190] sm:$0xff] %vm22_vm1, %v1396_v23  ;;  %1461 = vst.msk [vmem:[#allocation3 + $0x198] sm:$0xff] %vm22_vm1, %v1397_v36  ;;  %v796_v23 = vld [vmem:[#allocation2 + $0xd8] sm:$0xff] }
 0x1e8   :  { %v1251_v2 = vpop.xlane.xlu0 %1250  ;;  %v1253_v6 = vpop.xlane.xlu1 %1252 }
 0x1e9   :  { %v1362_v5 = vadd.f32 %v1251_v2, %v1106_v43  ;;  %v1363_v10 = vadd.f32 %v1253_v6, %v1107_v44  ;;  %v827_v6 = vld [vmem:[#allocation2 + $0x1d0] sm:$0xff] }
 0x1eb   :  { %1426 = vst.msk [vmem:[#allocation3 + $0x80] sm:$0xff] %vm22_vm1, %v1362_v5  ;;  %1427 = vst.msk [vmem:[#allocation3 + $0x88] sm:$0xff] %vm22_vm1, %v1363_v10  ;;  %v828_v5 = vld [vmem:[#allocation2 + $0x1d8] sm:$0xff] }
 0x1ec   :  { %v1315_v35 = vpop.xlane.xlu0 %1314  ;;  %v1317_v7 = vpop.xlane.xlu1 %1316 }
 0x1ed   :  { %v1394_v56 = vadd.f32 %v1315_v35, %v1138_v29  ;;  %v1395_v40 = vadd.f32 %v1317_v7, %v1139_v4  ;;  %v793_v7 = vld [vmem:[#allocation2 + $0xc0] sm:$0xff] }
 0x1ef   :  { %1458 = vst.msk [vmem:[#allocation3 + $0x180] sm:$0xff] %vm22_vm1, %v1394_v56  ;;  %1459 = vst.msk [vmem:[#allocation3 + $0x188] sm:$0xff] %vm22_vm1, %v1395_v40  ;;  %v794_v56 = vld [vmem:[#allocation2 + $0xc8] sm:$0xff] }
 0x1f0   :  { %v878_v50 = vpop.xlane.xlu0 %877  ;;  %v880_v55 = vpop.xlane.xlu1 %879 }
 0x1f1   :  { %v983_v17 = vadd.f32 %v878_v50, %v791_v9  ;;  %v984_v0 = vadd.f32 %v880_v55, %v792_v52  ;;  %v825_v55 = vld [vmem:[#allocation2 + $0x1c0] sm:$0xff] }
 0x1f3   :  { %1048 = vst.msk [vmem:[#allocation2 + $0xb0] sm:$0xff] %vm22_vm1, %v983_v17  ;;  %1049 = vst.msk [vmem:[#allocation2 + $0xb8] sm:$0xff] %vm22_vm1, %v984_v0 }
 0x1f4   :  { %v942_v21 = vpop.xlane.xlu0 %941  ;;  %v944_v24 = vpop.xlane.xlu1 %943 }
 0x1f5   :  { %v1015_v25 = vadd.f32 %v942_v21, %v823_v45  ;;  %v1016_v41 = vadd.f32 %v944_v24, %v824_v20  ;;  %v1116_v21 = vld [vmem:[#allocation3 + $0xd0] sm:$0xff]  ;;  %v1117_v24 = vld [vmem:[#allocation3 + $0xd8] sm:$0xff] }
 0x1f7   :  { %1080 = vst.msk [vmem:[#allocation2 + $0x1b0] sm:$0xff] %vm22_vm1, %v1015_v25  ;;  %1081 = vst.msk [vmem:[#allocation2 + $0x1b8] sm:$0xff] %vm22_vm1, %v1016_v41 }
 0x1f8   :  { %v874_v11 = vpop.xlane.xlu0 %873  ;;  %v876_v32 = vpop.xlane.xlu1 %875 }
 0x1f9   :  { %v981_v33 = vadd.f32 %v874_v11, %v789_v53  ;;  %v982_v61 = vadd.f32 %v876_v32, %v790_v49  ;;  %v1148_v11 = vld [vmem:[#allocation3 + $0x1d0] sm:$0xff]  ;;  %v1149_v32 = vld [vmem:[#allocation3 + $0x1d8] sm:$0xff] }
 0x1fb   :  { %1046 = vst.msk [vmem:[#allocation2 + $0xa0] sm:$0xff] %vm22_vm1, %v981_v33  ;;  %1047 = vst.msk [vmem:[#allocation2 + $0xa8] sm:$0xff] %vm22_vm1, %v982_v61 }
 0x1fc   :  { %v938_v26 = vpop.xlane.xlu0 %937  ;;  %v940_v37 = vpop.xlane.xlu1 %939 }
 0x1fd   :  { %v1013_v30 = vadd.f32 %v938_v26, %v821_v3  ;;  %v1014_v54 = vadd.f32 %v940_v37, %v822_v8  ;;  %v1114_v26 = vld [vmem:[#allocation3 + $0xc0] sm:$0xff]  ;;  %v1115_v37 = vld [vmem:[#allocation3 + $0xc8] sm:$0xff] }
 0x1ff   :  { %1078 = vst.msk [vmem:[#allocation2 + $0x1a0] sm:$0xff] %vm22_vm1, %v1013_v30  ;;  %1079 = vst.msk [vmem:[#allocation2 + $0x1a8] sm:$0xff] %vm22_vm1, %v1014_v54 }
 0x200   :  { %v1263_v59 = vpop.xlane.xlu0 %1262  ;;  %v1265_v46 = vpop.xlane.xlu1 %1264 }
 0x201   :  { %v1368_v27 = vadd.f32 %v1263_v59, %v1112_v57  ;;  %v1369_v51 = vadd.f32 %v1265_v46, %v1113_v58  ;;  %v1146_v59 = vld [vmem:[#allocation3 + $0x1c0] sm:$0xff]  ;;  %v1147_v46 = vld [vmem:[#allocation3 + $0x1c8] sm:$0xff] }
 0x203   :  { %1432 = vst.msk [vmem:[#allocation3 + $0xb0] sm:$0xff] %vm22_vm1, %v1368_v27  ;;  %1433 = vst.msk [vmem:[#allocation3 + $0xb8] sm:$0xff] %vm22_vm1, %v1369_v51  ;;  %v1808_v27 = vld [vmem:[#allocation2 + $0x30] sm:$0xff]  ;;  %v1809_v51 = vld [vmem:[#allocation2 + $0x38] sm:$0xff] }
 0x204   :  { %v1327_v1 = vpop.xlane.xlu0 %1326  ;;  %v1329_v13 = vpop.xlane.xlu1 %1328 }
 0x205   :  { %v1400_v18 = vadd.f32 %v1327_v1, %v1144_v31  ;;  %v1401_v14 = vadd.f32 %v1329_v13, %v1145_v60  ;;  %v1804_v1 = vld [vmem:[#allocation2 + $0x10] sm:$0xff]  ;;  %v1805_v13 = vld [vmem:[#allocation2 + $0x18] sm:$0xff] }
 0x207   :  { %1464 = vst.msk [vmem:[#allocation3 + $0x1b0] sm:$0xff] %vm22_vm1, %v1400_v18  ;;  %1465 = vst.msk [vmem:[#allocation3 + $0x1b8] sm:$0xff] %vm22_vm1, %v1401_v14  ;;  %v1812_v18 = vld [vmem:[#allocation2 + $0x50] sm:$0xff] }
 0x208   :  { %v1259_v42 = vpop.xlane.xlu0 %1258  ;;  %v1261_v15 = vpop.xlane.xlu1 %1260 }
 0x209   :  { %v1366_v34 = vadd.f32 %v1259_v42, %v1110_v38  ;;  %v1367_v16 = vadd.f32 %v1261_v15, %v1111_v28  ;;  %v1813_v28 = vld [vmem:[#allocation2 + $0x58] sm:$0xff]  ;;  %v799_v42 = vld [vmem:[#allocation2 + $0xf0] sm:$0xff] }
 0x20a   :  { %v800_v15 = vld [vmem:[#allocation2 + $0xf8] sm:$0xff] }
 0x20b   :  { %1430 = vst.msk [vmem:[#allocation3 + $0xa0] sm:$0xff] %vm22_vm1, %v1366_v34  ;;  %1431 = vst.msk [vmem:[#allocation3 + $0xa8] sm:$0xff] %vm22_vm1, %v1367_v16  ;;  %v1932_v34 = vadd.f32 %v1808_v27, %v1804_v1  ;;  %v1933_v16 = vadd.f32 %v1809_v51, %v1805_v13  ;;  %v830_v1 = vld [vmem:[#allocation2 + $0x1e8] sm:$0xff]  ;;  %v1837_v13 = vld [vmem:[#allocation2 + $0x118] sm:$0xff] }
 0x20c   :  { %v1323_v63 = vpop.xlane.xlu0 %1322  ;;  %v1325_v19 = vpop.xlane.xlu1 %1324 }
 0x20d   :  { %v1398_v48 = vadd.f32 %v1323_v63, %v1142_v62  ;;  %v1399_v22 = vadd.f32 %v1325_v19, %v1143_v47  ;;  %v1816_v62 = vld [vmem:[#allocation2 + $0x70] sm:$0xff]  ;;  %v1817_v47 = vld [vmem:[#allocation2 + $0x78] sm:$0xff] }
 0x20f   :  { %1462 = vst.msk [vmem:[#allocation3 + $0x1a0] sm:$0xff] %vm22_vm1, %v1398_v48  ;;  %1463 = vst.msk [vmem:[#allocation3 + $0x1a8] sm:$0xff] %vm22_vm1, %v1399_v22  ;;  %v1940_v48 = vadd.f32 %v1932_v34, %v1812_v18  ;;  %v1941_v22 = vadd.f32 %v1933_v16, %v1813_v28  ;;  %v1822_v18 = vld [vmem:[#allocation2 + $0xa0] sm:$0xff]  ;;  %v1872_v34 = vld [vmem:[#allocation3 + $0x30] sm:$0xff] }
 0x210   :  { %v886_v36 = vpop.xlane.xlu0 %885  ;;  %v888_v43 = vpop.xlane.xlu1 %887 }
 0x211   :  { %v987_v44 = vadd.f32 %v886_v36, %v795_v39  ;;  %v988_v2 = vadd.f32 %v888_v43, %v796_v23  ;;  %v831_v36 = vld [vmem:[#allocation2 + $0x1f0] sm:$0xff] }
 0x212   :  { %v1820_v43 = vld [vmem:[#allocation2 + $0x90] sm:$0xff] }
 0x213   :  { %1052 = vst.msk [vmem:[#allocation2 + $0xd0] sm:$0xff] %vm22_vm1, %v987_v44  ;;  %1053 = vst.msk [vmem:[#allocation2 + $0xd8] sm:$0xff] %vm22_vm1, %v988_v2  ;;  %v1821_v44 = vld [vmem:[#allocation2 + $0x98] sm:$0xff] }
 0x214   :  { %v950_v10 = vpop.xlane.xlu0 %949  ;;  %v952_v29 = vpop.xlane.xlu1 %951  ;;  %v832_v2 = vld [vmem:[#allocation2 + $0x1f8] sm:$0xff] }
 0x215   :  { %v1019_v4 = vadd.f32 %v950_v10, %v827_v6  ;;  %v1020_v35 = vadd.f32 %v952_v29, %v828_v5  ;;  %v1802_v6 = vld [vmem:[#allocation2] sm:$0xff]  ;;  %v1807_v10 = vld [vmem:[#allocation2 + $0x28] sm:$0xff]  ;;  %v1948_v29 = vadd.f32 %v1940_v48, %v1816_v62  ;;  %v1869_v48 = vld [vmem:[#allocation3 + $0x18] sm:$0xff] }
 0x216   :  { %v1806_v5 = vld [vmem:[#allocation2 + $0x20] sm:$0xff] }
 0x217   :  { %1084 = vst.msk [vmem:[#allocation2 + $0x1d0] sm:$0xff] %vm22_vm1, %v1019_v4  ;;  %1085 = vst.msk [vmem:[#allocation2 + $0x1d8] sm:$0xff] %vm22_vm1, %v1020_v35  ;;  %v1949_v4 = vadd.f32 %v1941_v22, %v1817_v47  ;;  %v1803_v35 = vld [vmem:[#allocation2 + $0x8] sm:$0xff]  ;;  %v1873_v22 = vld [vmem:[#allocation3 + $0x38] sm:$0xff] }
 0x218   :  { %v882_v40 = vpop.xlane.xlu0 %881  ;;  %v884_v9 = vpop.xlane.xlu1 %883 }
 0x219   :  { %v985_v52 = vadd.f32 %v882_v40, %v793_v7  ;;  %v986_v50 = vadd.f32 %v884_v9, %v794_v56  ;;  %v1824_v7 = vld [vmem:[#allocation2 + $0xb0] sm:$0xff]  ;;  %v1825_v56 = vld [vmem:[#allocation2 + $0xb8] sm:$0xff] }
 0x21b   :  { %1050 = vst.msk [vmem:[#allocation2 + $0xc0] sm:$0xff] %vm22_vm1, %v985_v52  ;;  %1051 = vst.msk [vmem:[#allocation2 + $0xc8] sm:$0xff] %vm22_vm1, %v986_v50  ;;  %v1810_v52 = vld [vmem:[#allocation2 + $0x40] sm:$0xff]  ;;  %v1811_v50 = vld [vmem:[#allocation2 + $0x48] sm:$0xff] }
 0x21c   :  { %v946_v17 = vpop.xlane.xlu0 %945  ;;  %v948_v0 = vpop.xlane.xlu1 %947 }
 0x21d   :  { %v1017_v45 = vadd.f32 %v946_v17, %v825_v55  ;;  %v1018_v20 = vadd.f32 %v948_v0, %v826_v12  ;;  %v1956_v55 = vadd.f32 %v1948_v29, %v1820_v43  ;;  %v1957_v12 = vadd.f32 %v1949_v4, %v1821_v44  ;;  %v1120_v29 = vld [vmem:[#allocation3 + $0xf0] sm:$0xff]  ;;  %v1121_v4 = vld [vmem:[#allocation3 + $0xf8] sm:$0xff] }
 0x21f   :  { %1082 = vst.msk [vmem:[#allocation2 + $0x1c0] sm:$0xff] %vm22_vm1, %v1017_v45  ;;  %1083 = vst.msk [vmem:[#allocation2 + $0x1c8] sm:$0xff] %vm22_vm1, %v1018_v20  ;;  %v797_v45 = vld [vmem:[#allocation2 + $0xe0] sm:$0xff]  ;;  %v1930_v20 = vadd.f32 %v1806_v5, %v1802_v6 }
 0x220   :  { %v1271_v25 = vpop.xlane.xlu0 %1270  ;;  %v1273_v41 = vpop.xlane.xlu1 %1272  ;;  %v1870_v6 = vld [vmem:[#allocation3 + $0x20] sm:$0xff] }
 0x221   :  { %v1372_v53 = vadd.f32 %v1271_v25, %v1116_v21  ;;  %v1373_v49 = vadd.f32 %v1273_v41, %v1117_v24  ;;  %v1931_v21 = vadd.f32 %v1807_v10, %v1803_v35  ;;  %v1828_v24 = vld [vmem:[#allocation2 + $0xd0] sm:$0xff]  ;;  %v1829_v25 = vld [vmem:[#allocation2 + $0xd8] sm:$0xff]  ;;  %v798_v41 = vld [vmem:[#allocation2 + $0xe8] sm:$0xff] }
 0x222   :  { %v1866_v35 = vld [vmem:[#allocation3] sm:$0xff] }
 0x223   :  { %1436 = vst.msk [vmem:[#allocation3 + $0xd0] sm:$0xff] %vm22_vm1, %v1372_v53  ;;  %1437 = vst.msk [vmem:[#allocation3 + $0xd8] sm:$0xff] %vm22_vm1, %v1373_v49  ;;  %v1814_v53 = vld [vmem:[#allocation2 + $0x60] sm:$0xff]  ;;  %v1815_v49 = vld [vmem:[#allocation2 + $0x68] sm:$0xff] }
 0x224   :  { %v1335_v33 = vpop.xlane.xlu0 %1334  ;;  %v1337_v61 = vpop.xlane.xlu1 %1336 }
 0x225   :  { %v1404_v3 = vadd.f32 %v1335_v33, %v1148_v11  ;;  %v1405_v8 = vadd.f32 %v1337_v61, %v1149_v32  ;;  %v1964_v11 = vadd.f32 %v1956_v55, %v1824_v7  ;;  %v1965_v32 = vadd.f32 %v1957_v12, %v1825_v56  ;;  %v1867_v7 = vld [vmem:[#allocation3 + $0x8] sm:$0xff] }
 0x226   :  { %v1938_v33 = vadd.f32 %v1930_v20, %v1810_v52  ;;  %v1939_v61 = vadd.f32 %v1931_v21, %v1811_v50  ;;  %v1871_v56 = vld [vmem:[#allocation3 + $0x28] sm:$0xff]  ;;  %v1937_v12 = vadd.f32 %v1873_v22, %v1869_v48 }
 0x227   :  { %1468 = vst.msk [vmem:[#allocation3 + $0x1d0] sm:$0xff] %vm22_vm1, %v1404_v3  ;;  %1469 = vst.msk [vmem:[#allocation3 + $0x1d8] sm:$0xff] %vm22_vm1, %v1405_v8 }
 0x228   :  { %v1267_v30 = vpop.xlane.xlu0 %1266  ;;  %v1269_v54 = vpop.xlane.xlu1 %1268  ;;  %v1946_v27 = vadd.f32 %v1938_v33, %v1814_v53  ;;  %v1947_v51 = vadd.f32 %v1939_v61, %v1815_v49  ;;  %v1880_v53 = vld [vmem:[#allocation3 + $0x70] sm:$0xff]  ;;  %v1881_v49 = vld [vmem:[#allocation3 + $0x78] sm:$0xff] }
 0x229   :  { %v1370_v57 = vadd.f32 %v1267_v30, %v1114_v26  ;;  %v1371_v58 = vadd.f32 %v1269_v54, %v1115_v37  ;;  %v1818_v26 = vld [vmem:[#allocation2 + $0x80] sm:$0xff]  ;;  %v1819_v37 = vld [vmem:[#allocation2 + $0x88] sm:$0xff]  ;;  %v1972_v30 = vadd.f32 %v1964_v11, %v1828_v24  ;;  %v1973_v54 = vadd.f32 %v1965_v32, %v1829_v25 }
 0x22a   :  { %v1954_v16 = vadd.f32 %v1946_v27, %v1818_v26  ;;  %v1955_v62 = vadd.f32 %v1947_v51, %v1819_v37  ;;  %v1934_v26 = vadd.f32 %v1870_v6, %v1866_v35  ;;  %v1935_v37 = vadd.f32 %v1871_v56, %v1867_v7  ;;  %v1885_v27 = vld [vmem:[#allocation3 + $0x98] sm:$0xff]  ;;  %v1119_v7 = vld [vmem:[#allocation3 + $0xe8] sm:$0xff] }
 0x22b   :  { %1434 = vst.msk [vmem:[#allocation3 + $0xc0] sm:$0xff] %vm22_vm1, %v1370_v57  ;;  %1435 = vst.msk [vmem:[#allocation3 + $0xc8] sm:$0xff] %vm22_vm1, %v1371_v58  ;;  %v1843_v56 = vld [vmem:[#allocation2 + $0x148] sm:$0xff] }
 0x22c   :  { %v1331_v31 = vpop.xlane.xlu0 %1330  ;;  %v1333_v60 = vpop.xlane.xlu1 %1332  ;;  %v1962_v5 = vadd.f32 %v1954_v16, %v1822_v18 }
 0x22d   :  { %v1402_v14 = vadd.f32 %v1331_v31, %v1146_v59  ;;  %v1403_v38 = vadd.f32 %v1333_v60, %v1147_v46  ;;  %v829_v59 = vld [vmem:[#allocation2 + $0x1e0] sm:$0xff]  ;;  %v1836_v46 = vld [vmem:[#allocation2 + $0x110] sm:$0xff] }
 0x22f   :  { %1466 = vst.msk [vmem:[#allocation3 + $0x1c0] sm:$0xff] %vm22_vm1, %v1402_v14  ;;  %1467 = vst.msk [vmem:[#allocation3 + $0x1c8] sm:$0xff] %vm22_vm1, %v1403_v38  ;;  %v1823_v14 = vld [vmem:[#allocation2 + $0xa8] sm:$0xff] }
 0x230   :  { %v894_v63 = vpop.xlane.xlu0 %893  ;;  %v896_v19 = vpop.xlane.xlu1 %895  ;;  %v1963_v10 = vadd.f32 %v1955_v62, %v1823_v14  ;;  %v1848_v14 = vld [vmem:[#allocation2 + $0x170] sm:$0xff]  ;;  %v1879_v62 = vld [vmem:[#allocation3 + $0x68] sm:$0xff] }
 0x231   :  { %v991_v39 = vadd.f32 %v894_v63, %v799_v42  ;;  %v992_v23 = vadd.f32 %v896_v19, %v800_v15  ;;  %v1840_v42 = vld [vmem:[#allocation2 + $0x130] sm:$0xff]  ;;  %v1841_v15 = vld [vmem:[#allocation2 + $0x138] sm:$0xff] }
 0x232   :  { %v1868_v19 = vld [vmem:[#allocation3 + $0x10] sm:$0xff] }
 0x233   :  { %1056 = vst.msk [vmem:[#allocation2 + $0xf0] sm:$0xff] %vm22_vm1, %v991_v39  ;;  %1057 = vst.msk [vmem:[#allocation2 + $0xf8] sm:$0xff] %vm22_vm1, %v992_v23  ;;  %v1826_v39 = vld [vmem:[#allocation2 + $0xc0] sm:$0xff]  ;;  %v1827_v23 = vld [vmem:[#allocation2 + $0xc8] sm:$0xff]  ;;  %v1936_v55 = vadd.f32 %v1872_v34, %v1868_v19 }
 0x234   :  { %v958_v40 = vpop.xlane.xlu0 %957  ;;  %v960_v9 = vpop.xlane.xlu1 %959  ;;  %v1970_v20 = vadd.f32 %v1962_v5, %v1826_v39  ;;  %v1971_v21 = vadd.f32 %v1963_v10, %v1827_v23  ;;  %v1839_v23 = vld [vmem:[#allocation2 + $0x128] sm:$0xff]  ;;  %v1118_v5 = vld [vmem:[#allocation3 + $0xe0] sm:$0xff]  ;;  %v1892_v10 = vld [vmem:[#allocation3 + $0xd0] sm:$0xff] }
 0x235   :  { %v1023_v17 = vadd.f32 %v958_v40, %v831_v36  ;;  %v1024_v0 = vadd.f32 %v960_v9, %v832_v2  ;;  %v1876_v40 = vld [vmem:[#allocation3 + $0x50] sm:$0xff]  ;;  %v1877_v9 = vld [vmem:[#allocation3 + $0x58] sm:$0xff] }
 0x237   :  { %1088 = vst.msk [vmem:[#allocation2 + $0x1f0] sm:$0xff] %vm22_vm1, %v1023_v17  ;;  %1089 = vst.msk [vmem:[#allocation2 + $0x1f8] sm:$0xff] %vm22_vm1, %v1024_v0  ;;  %v1844_v17 = vld [vmem:[#allocation2 + $0x150] sm:$0xff]  ;;  %v1845_v0 = vld [vmem:[#allocation2 + $0x158] sm:$0xff] }
 0x238   :  { %v890_v3 = vpop.xlane.xlu0 %889  ;;  %v892_v8 = vpop.xlane.xlu1 %891 }
 0x239   :  { %v989_v57 = vadd.f32 %v890_v3, %v797_v45  ;;  %v990_v58 = vadd.f32 %v892_v8, %v798_v41  ;;  %v1874_v45 = vld [vmem:[#allocation3 + $0x40] sm:$0xff]  ;;  %v1875_v41 = vld [vmem:[#allocation3 + $0x48] sm:$0xff] }
 0x23a   :  { %v1832_v31 = vld [vmem:[#allocation2 + $0xf0] sm:$0xff]  ;;  %v1833_v60 = vld [vmem:[#allocation2 + $0xf8] sm:$0xff]  ;;  %v1834_v3 = vld [vmem:[#allocation2 + $0x100] sm:$0xff]  ;;  %v1943_v18 = vadd.f32 %v1935_v37, %v1875_v41 }
 0x23b   :  { %v1980_v38 = vadd.f32 %v1972_v30, %v1832_v31  ;;  %v1981_v28 = vadd.f32 %v1973_v54, %v1833_v60  ;;  %1054 = vst.msk [vmem:[#allocation2 + $0xe0] sm:$0xff] %vm22_vm1, %v989_v57  ;;  %1055 = vst.msk [vmem:[#allocation2 + $0xe8] sm:$0xff] %vm22_vm1, %v990_v58  ;;  %v1835_v8 = vld [vmem:[#allocation2 + $0x108] sm:$0xff]  ;;  %v1944_v30 = vadd.f32 %v1936_v55, %v1876_v40  ;;  %v1153_v60 = vld [vmem:[#allocation3 + $0x1f8] sm:$0xff] }
 0x23c   :  { %v954_v47 = vpop.xlane.xlu0 %953  ;;  %v956_v63 = vpop.xlane.xlu1 %955  ;;  %v1945_v54 = vadd.f32 %v1937_v12, %v1877_v9  ;;  %v1951_v9 = vadd.f32 %v1943_v18, %v1879_v62  ;;  %v1151_v37 = vld [vmem:[#allocation3 + $0x1e8] sm:$0xff] }
 0x23d   :  { %v1988_v36 = vadd.f32 %v1980_v38, %v1836_v46  ;;  %v1989_v43 = vadd.f32 %v1981_v28, %v1837_v13  ;;  %v1021_v44 = vadd.f32 %v954_v47, %v829_v59  ;;  %v1022_v2 = vadd.f32 %v956_v63, %v830_v1  ;;  %v1152_v59 = vld [vmem:[#allocation3 + $0x1f0] sm:$0xff]  ;;  %v1838_v1 = vld [vmem:[#allocation2 + $0x120] sm:$0xff]  ;;  %v1849_v38 = vld [vmem:[#allocation2 + $0x178] sm:$0xff] }
 0x23e   :  { %v1884_v46 = vld [vmem:[#allocation3 + $0x90] sm:$0xff]  ;;  %v1942_v13 = vadd.f32 %v1934_v26, %v1874_v45  ;;  %v1952_v28 = vadd.f32 %v1944_v30, %v1880_v53  ;;  %v1889_v63 = vld [vmem:[#allocation3 + $0xb8] sm:$0xff]  ;;  %v1882_v45 = vld [vmem:[#allocation3 + $0x80] sm:$0xff] }
 0x23f   :  { %v1996_v52 = vadd.f32 %v1988_v36, %v1840_v42  ;;  %v1997_v50 = vadd.f32 %v1989_v43, %v1841_v15  ;;  %1086 = vst.msk [vmem:[#allocation2 + $0x1e0] sm:$0xff] %vm22_vm1, %v1021_v44  ;;  %1087 = vst.msk [vmem:[#allocation2 + $0x1e8] sm:$0xff] %vm22_vm1, %v1022_v2  ;;  %v1953_v42 = vadd.f32 %v1945_v54, %v1881_v49  ;;  %v1878_v15 = vld [vmem:[#allocation3 + $0x60] sm:$0xff]  ;;  %v1888_v47 = vld [vmem:[#allocation3 + $0xb0] sm:$0xff] }
 0x240   :  { %v1279_v24 = vpop.xlane.xlu0 %1278  ;;  %v1281_v25 = vpop.xlane.xlu1 %1280  ;;  %v1842_v36 = vld [vmem:[#allocation2 + $0x140] sm:$0xff]  ;;  %v1960_v43 = vadd.f32 %v1952_v28, %v1884_v46  ;;  %v1950_v40 = vadd.f32 %v1942_v13, %v1878_v15  ;;  %v1847_v30 = vld [vmem:[#allocation2 + $0x168] sm:$0xff]  ;;  %v1905_v15 = vld [vmem:[#allocation3 + $0x138] sm:$0xff] }
 0x241   :  { %v2004_v11 = vadd.f32 %v1996_v52, %v1844_v17  ;;  %v2005_v32 = vadd.f32 %v1997_v50, %v1845_v0  ;;  %v1376_v33 = vadd.f32 %v1279_v24, %v1120_v29  ;;  %v1377_v61 = vadd.f32 %v1281_v25, %v1121_v4  ;;  %v1893_v29 = vld [vmem:[#allocation3 + $0xd8] sm:$0xff]  ;;  %v1852_v52 = vld [vmem:[#allocation2 + $0x190] sm:$0xff]  ;;  %v1150_v26 = vld [vmem:[#allocation3 + $0x1e0] sm:$0xff] }
 0x242   :  { %v1830_v57 = vld [vmem:[#allocation2 + $0xe0] sm:$0xff]  ;;  %v1831_v58 = vld [vmem:[#allocation2 + $0xe8] sm:$0xff]  ;;  %v1961_v44 = vadd.f32 %v1953_v42, %v1885_v27  ;;  %v1853_v50 = vld [vmem:[#allocation2 + $0x198] sm:$0xff]  ;;  %v1968_v55 = vadd.f32 %v1960_v43, %v1888_v47  ;;  %v1958_v54 = vadd.f32 %v1950_v40, %v1882_v45 }
 0x243   :  { %v1978_v51 = vadd.f32 %v1970_v20, %v1830_v57  ;;  %v1979_v31 = vadd.f32 %v1971_v21, %v1831_v58  ;;  %1440 = vst.msk [vmem:[#allocation3 + $0xf0] sm:$0xff] %vm22_vm1, %v1376_v33  ;;  %1441 = vst.msk [vmem:[#allocation3 + $0xf8] sm:$0xff] %vm22_vm1, %v1377_v61  ;;  %v2012_v19 = vadd.f32 %v2004_v11, %v1848_v14  ;;  %v1883_v20 = vld [vmem:[#allocation3 + $0x88] sm:$0xff]  ;;  %v1856_v58 = vld [vmem:[#allocation2 + $0x1b0] sm:$0xff] }
 0x244   :  { %v1343_v34 = vpop.xlane.xlu0 %1342  ;;  %v1345_v16 = vpop.xlane.xlu1 %1344  ;;  %v2013_v48 = vadd.f32 %v2005_v32, %v1849_v38  ;;  %v1969_v12 = vadd.f32 %v1961_v44, %v1889_v63  ;;  %v1976_v53 = vadd.f32 %v1968_v55, %v1892_v10  ;;  %v1959_v57 = vadd.f32 %v1951_v9, %v1883_v20  ;;  %v1887_v13 = vld [vmem:[#allocation3 + $0xa8] sm:$0xff]  ;;  %v1904_v42 = vld [vmem:[#allocation3 + $0x130] sm:$0xff]  ;;  %v1850_v63 = vld [vmem:[#allocation2 + $0x180] sm:$0xff] }
 0x245   :  { %v1986_v22 = vadd.f32 %v1978_v51, %v1834_v3  ;;  %v1987_v39 = vadd.f32 %v1979_v31, %v1835_v8  ;;  %v1408_v2 = vadd.f32 %v1343_v34, %v1152_v59  ;;  %v1409_v6 = vadd.f32 %v1345_v16, %v1153_v60  ;;  %v1900_v3 = vld [vmem:[#allocation3 + $0x110] sm:$0xff]  ;;  %v1846_v8 = vld [vmem:[#allocation2 + $0x160] sm:$0xff]  ;;  %v1857_v59 = vld [vmem:[#allocation2 + $0x1b8] sm:$0xff] }
 0x246   :  { %v2020_v21 = vadd.f32 %v2012_v19, %v1852_v52  ;;  %v2021_v24 = vadd.f32 %v2013_v48, %v1853_v50  ;;  %v1977_v49 = vadd.f32 %v1969_v12, %v1893_v29  ;;  %v1901_v60 = vld [vmem:[#allocation3 + $0x118] sm:$0xff]  ;;  %v1890_v19 = vld [vmem:[#allocation3 + $0xc0] sm:$0xff]  ;;  %v1891_v48 = vld [vmem:[#allocation3 + $0xc8] sm:$0xff] }
 0x247   :  { %v1994_v4 = vadd.f32 %v1986_v22, %v1838_v1  ;;  %v1995_v35 = vadd.f32 %v1987_v39, %v1839_v23  ;;  %1472 = vst.msk [vmem:[#allocation3 + $0x1f0] sm:$0xff] %vm22_vm1, %v1408_v2  ;;  %1473 = vst.msk [vmem:[#allocation3 + $0x1f8] sm:$0xff] %vm22_vm1, %v1409_v6  ;;  %v1886_v1 = vld [vmem:[#allocation3 + $0xa0] sm:$0xff]  ;;  %v1851_v22 = vld [vmem:[#allocation2 + $0x188] sm:$0xff]  ;;  %v1967_v23 = vadd.f32 %v1959_v57, %v1887_v13 }
 0x248   :  { %v1275_v17 = vpop.xlane.xlu0 %1274  ;;  %v1277_v0 = vpop.xlane.xlu1 %1276  ;;  %v2028_v18 = vadd.f32 %v2020_v21, %v1856_v58  ;;  %v2029_v14 = vadd.f32 %v2021_v24, %v1857_v59  ;;  %v1966_v39 = vadd.f32 %v1958_v54, %v1886_v1  ;;  %v1861_v43 = vld [vmem:[#allocation2 + $0x1d8] sm:$0xff]  ;;  %v1908_v6 = vld [vmem:[#allocation3 + $0x150] sm:$0xff]  ;;  %v1898_v55 = vld [vmem:[#allocation3 + $0x100] sm:$0xff] }
 0x249   :  { %v2002_v25 = vadd.f32 %v1994_v4, %v1842_v36  ;;  %v2003_v41 = vadd.f32 %v1995_v35, %v1843_v56  ;;  %v1374_v33 = vadd.f32 %v1275_v17, %v1118_v5  ;;  %v1375_v61 = vadd.f32 %v1277_v0, %v1119_v7  ;;  %v1860_v36 = vld [vmem:[#allocation2 + $0x1d0] sm:$0xff]  ;;  %v1909_v5 = vld [vmem:[#allocation3 + $0x158] sm:$0xff]  ;;  %v1854_v12 = vld [vmem:[#allocation2 + $0x1a0] sm:$0xff] }
 0x24a   :  { %v1896_v11 = vld [vmem:[#allocation3 + $0xf0] sm:$0xff]  ;;  %v1897_v32 = vld [vmem:[#allocation3 + $0xf8] sm:$0xff]  ;;  %v2036_v10 = vadd.f32 %v2028_v18, %v1860_v36  ;;  %v2037_v29 = vadd.f32 %v2029_v14, %v1861_v43  ;;  %v1974_v40 = vadd.f32 %v1966_v39, %v1890_v19  ;;  %v1975_v9 = vadd.f32 %v1967_v23, %v1891_v48  ;;  %v1855_v45 = vld [vmem:[#allocation2 + $0x1a8] sm:$0xff] }
 0x24b   :  { %v1984_v46 = vadd.f32 %v1976_v53, %v1896_v11  ;;  %v1985_v27 = vadd.f32 %v1977_v49, %v1897_v32  ;;  %1438 = vst.msk [vmem:[#allocation3 + $0xe0] sm:$0xff] %vm22_vm1, %v1374_v33  ;;  %1439 = vst.msk [vmem:[#allocation3 + $0xe8] sm:$0xff] %vm22_vm1, %v1375_v61  ;;  %v2010_v38 = vadd.f32 %v2002_v25, %v1846_v8  ;;  %v1912_v7 = vld [vmem:[#allocation3 + $0x170] sm:$0xff]  ;;  %v1913_v56 = vld [vmem:[#allocation3 + $0x178] sm:$0xff] }
 0x24c   :  { %v1339_v51 = vpop.xlane.xlu0 %1338  ;;  %v1341_v31 = vpop.xlane.xlu1 %1340  ;;  %v2011_v28 = vadd.f32 %v2003_v41, %v1847_v30  ;;  %v1864_v20 = vld [vmem:[#allocation2 + $0x1f0] sm:$0xff]  ;;  %v1865_v21 = vld [vmem:[#allocation2 + $0x1f8] sm:$0xff]  ;;  %v1899_v49 = vld [vmem:[#allocation3 + $0x108] sm:$0xff] }
 0x24d   :  { %v1992_v34 = vadd.f32 %v1984_v46, %v1900_v3  ;;  %v1993_v16 = vadd.f32 %v1985_v27, %v1901_v60  ;;  %v1406_v62 = vadd.f32 %v1339_v51, %v1150_v26  ;;  %v1407_v47 = vadd.f32 %v1341_v31, %v1151_v37  ;;  %v1916_v11 = vld [vmem:[#allocation3 + $0x190] sm:$0xff]  ;;  %v1917_v32 = vld [vmem:[#allocation3 + $0x198] sm:$0xff]  ;;  %v1902_v26 = vld [vmem:[#allocation3 + $0x120] sm:$0xff] }
 0x24e   :  { %v2018_v4 = vadd.f32 %v2010_v38, %v1850_v63  ;;  %v2019_v35 = vadd.f32 %v2011_v28, %v1851_v22  ;;  %v2044_v33 = vadd.f32 %v2036_v10, %v1864_v20  ;;  %v2045_v61 = vadd.f32 %v2037_v29, %v1865_v21  ;;  %v1903_v58 = vld [vmem:[#allocation3 + $0x128] sm:$0xff]  ;;  %v1920_v59 = vld [vmem:[#allocation3 + $0x1b0] sm:$0xff]  ;;  %v1921_v46 = vld [vmem:[#allocation3 + $0x1b8] sm:$0xff] }
 0x24f   :  { %v2000_v44 = vadd.f32 %v1992_v34, %v1904_v42  ;;  %v2001_v2 = vadd.f32 %v1993_v16, %v1905_v15  ;;  %1470 = vst.msk [vmem:[#allocation3 + $0x1e0] sm:$0xff] %vm22_vm1, %v1406_v62  ;;  %1471 = vst.msk [vmem:[#allocation3 + $0x1e8] sm:$0xff] %vm22_vm1, %v1407_v47  ;;  %v1906_v27 = vld [vmem:[#allocation3 + $0x140] sm:$0xff]  ;;  %v1859_v31 = vld [vmem:[#allocation2 + $0x1c8] sm:$0xff] }
 0x250   :  { %v2026_v3 = vadd.f32 %v2018_v4, %v1854_v12  ;;  %v2027_v8 = vadd.f32 %v2019_v35, %v1855_v45  ;;  %v1858_v51 = vld [vmem:[#allocation2 + $0x1c0] sm:$0xff]  ;;  %v1907_v14 = vld [vmem:[#allocation3 + $0x148] sm:$0xff]  ;;  %v1924_v38 = vld [vmem:[#allocation3 + $0x1d0] sm:$0xff]  ;;  %v5708_v42 = vmul.f32 0.015625, %v2044_v33  ;;  %v5710_v15 = vmul.f32 0.015625, %v2045_v61 }
 0x251   :  { %v2008_v52 = vadd.f32 %v2000_v44, %v1908_v6  ;;  %v2009_v50 = vadd.f32 %v2001_v2, %v1909_v5  ;;  %v1925_v28 = vld [vmem:[#allocation3 + $0x1d8] sm:$0xff]  ;;  %v1910_v62 = vld [vmem:[#allocation3 + $0x160] sm:$0xff]  ;;  %v1911_v22 = vld [vmem:[#allocation3 + $0x168] sm:$0xff] }
 0x252   :  { %v1894_v17 = vld [vmem:[#allocation3 + $0xe0] sm:$0xff]  ;;  %v1895_v0 = vld [vmem:[#allocation3 + $0xe8] sm:$0xff]  ;;  %v2034_v34 = vadd.f32 %v2026_v3, %v1858_v51  ;;  %v2035_v16 = vadd.f32 %v2027_v8, %v1859_v31  ;;  %v1928_v39 = vld [vmem:[#allocation3 + $0x1f0] sm:$0xff] }
 0x253   :  { %v2016_v24 = vadd.f32 %v2008_v52, %v1912_v7  ;;  %v2017_v25 = vadd.f32 %v2009_v50, %v1913_v56  ;;  %v1982_v41 = vadd.f32 %v1974_v40, %v1894_v17  ;;  %v1983_v53 = vadd.f32 %v1975_v9, %v1895_v0  ;;  %v1929_v23 = vld [vmem:[#allocation3 + $0x1f8] sm:$0xff]  ;;  %v1862_v36 = vld [vmem:[#allocation2 + $0x1e0] sm:$0xff]  ;;  %v1863_v43 = vld [vmem:[#allocation2 + $0x1e8] sm:$0xff] }
 0x254   :  { %v1914_v10 = vld [vmem:[#allocation3 + $0x180] sm:$0xff]  ;;  %v1915_v29 = vld [vmem:[#allocation3 + $0x188] sm:$0xff]  ;;  %v2042_v4 = vadd.f32 %v2034_v34, %v1862_v36  ;;  %v2043_v35 = vadd.f32 %v2035_v16, %v1863_v43  ;;  %v2060_v7 = vmul.f32 %v5708_v42, %v5708_v42  ;;  %v2061_v56 = vmul.f32 %v5710_v15, %v5710_v15 }
 0x255   :  { %v2024_v37 = vadd.f32 %v2016_v24, %v1916_v11  ;;  %v2025_v30 = vadd.f32 %v2017_v25, %v1917_v32  ;;  %v1990_v54 = vadd.f32 %v1982_v41, %v1898_v55  ;;  %v1991_v57 = vadd.f32 %v1983_v53, %v1899_v49  ;;  %v1918_v55 = vld [vmem:[#allocation3 + $0x1a0] sm:$0xff]  ;;  %v1919_v12 = vld [vmem:[#allocation3 + $0x1a8] sm:$0xff] }
 0x256   :  { %v1922_v21 = vld [vmem:[#allocation3 + $0x1c0] sm:$0xff]  ;;  %v1923_v24 = vld [vmem:[#allocation3 + $0x1c8] sm:$0xff]  ;;  %v5716_v25 = vmul.f32 0.015625, %v2042_v4  ;;  %v5718_v41 = vmul.f32 0.015625, %v2043_v35 }
 0x257   :  { %v2032_v60 = vadd.f32 %v2024_v37, %v1920_v59  ;;  %v2033_v1 = vadd.f32 %v2025_v30, %v1921_v46  ;;  %v1998_v13 = vadd.f32 %v1990_v54, %v1902_v26  ;;  %v1999_v18 = vadd.f32 %v1991_v57, %v1903_v58  ;;  %v1926_v33 = vld [vmem:[#allocation3 + $0x1e0] sm:$0xff]  ;;  %v1927_v61 = vld [vmem:[#allocation3 + $0x1e8] sm:$0xff] }
 0x258   :  { %7066 = vst [vmem:[#allocation4_spill] sm:$0xff] %v5718_v41  ;;  %v2058_v37 = vmul.f32 %v5716_v25, %v5716_v25  ;;  %v2059_v54 = vmul.f32 %v5718_v41, %v5718_v41 }
 0x259   :  { %v2040_v47 = vadd.f32 %v2032_v60, %v1924_v38  ;;  %v2041_v63 = vadd.f32 %v2033_v1, %v1925_v28  ;;  %v2006_v19 = vadd.f32 %v1998_v13, %v1906_v27  ;;  %v2007_v48 = vadd.f32 %v1999_v18, %v1907_v14  ;;  %v2080_v1 = vld [vmem:[%s7025_s2 + $0x10] sm:$0xff]  ;;  %v2078_v38 = vld [vmem:[%s7025_s2] sm:$0xff] }
 0x25a   :  { %v2084_v14 = vld [vmem:[%s7025_s2 + $0x30] sm:$0xff] }
 0x25b   :  { %v2048_v44 = vadd.f32 %v2040_v47, %v1928_v39  ;;  %v2049_v2 = vadd.f32 %v2041_v63, %v1929_v23  ;;  %v2014_v6 = vadd.f32 %v2006_v19, %v1910_v62  ;;  %v2015_v5 = vadd.f32 %v2007_v48, %v1911_v22  ;;  %v2088_v28 = vld [vmem:[%s7025_s2 + $0x50] sm:$0xff]  ;;  %v2141_v62 = vld [vmem:[%s7025_s2 + $0x1f8] sm:$0xff]  ;;  %v2082_v19 = vld [vmem:[%s7025_s2 + $0x20] sm:$0xff] }
 0x25c   :  { %v2081_v47 = vld [vmem:[%s7025_s2 + $0x18] sm:$0xff]  ;;  %v2086_v48 = vld [vmem:[%s7025_s2 + $0x40] sm:$0xff] }
 0x25d   :  { %v2056_v40 = vmul.f32 0.015625, %v2048_v44  ;;  %v2057_v9 = vmul.f32 0.015625, %v2049_v2  ;;  %v2022_v52 = vadd.f32 %v2014_v6, %v1914_v10  ;;  %v2023_v50 = vadd.f32 %v2015_v5, %v1915_v29  ;;  %v2085_v63 = vld [vmem:[%s7025_s2 + $0x38] sm:$0xff]  ;;  %v2090_v22 = vld [vmem:[%s7025_s2 + $0x60] sm:$0xff] }
 0x25e   :  { %v2094_v39 = vld [vmem:[%s7025_s2 + $0x80] sm:$0xff]  ;;  %v2089_v29 = vld [vmem:[%s7025_s2 + $0x58] sm:$0xff] }
 0x25f   :  { %v2064_v17 = vsub.f32 %v2056_v40, %v2060_v7  ;;  %v2065_v0 = vsub.f32 %v2057_v9, %v2061_v56  ;;  %v2030_v45 = vadd.f32 %v2022_v52, %v1918_v55  ;;  %v2031_v20 = vadd.f32 %v2023_v50, %v1919_v12  ;;  %v2098_v44 = vld [vmem:[%s7025_s2 + $0xa0] sm:$0xff]  ;;  %v2092_v9 = vld [vmem:[%s7025_s2 + $0x70] sm:$0xff] }
 0x260   :  { %v2102_v2 = vld [vmem:[%s7025_s2 + $0xc0] sm:$0xff] }
 0x261   :  { %v2068_v53 = vmax.f32 %v2064_v17, 0.0  ;;  %v2038_v49 = vadd.f32 %v2030_v45, %v1922_v21  ;;  %v2039_v11 = vadd.f32 %v2031_v20, %v1923_v24  ;;  %v2069_v32 = vmax.f32 %v2065_v0, 0.0  ;;  %v2106_v56 = vld [vmem:[%s7025_s2 + $0xe0] sm:$0xff] }
 0x262   :  { %v2110_v40 = vld [vmem:[%s7025_s2 + $0x100] sm:$0xff] }
 0x263   :  { %v2072_v3 = vadd.f32 1e-05, %v2068_v53  ;;  %v2046_v8 = vadd.f32 %v2038_v49, %v1926_v33  ;;  %v2047_v26 = vadd.f32 %v2039_v11, %v1927_v61  ;;  %v2073_v58 = vadd.f32 1e-05, %v2069_v32  ;;  %v2114_v50 = vld [vmem:[%s7025_s2 + $0x120] sm:$0xff] }
 0x264   :  { %v2118_v55 = vld [vmem:[%s7025_s2 + $0x140] sm:$0xff] }
 0x265   :  { %4684 = vrsqrt.f32 %v2072_v3  ;;  %v2054_v30 = vmul.f32 0.015625, %v2046_v8  ;;  %v2055_v57 = vmul.f32 0.015625, %v2047_v26  ;;  %v2122_v0 = vld [vmem:[%s7025_s2 + $0x160] sm:$0xff]  ;;  %v2139_v8 = vld [vmem:[%s7025_s2 + $0x1e8] sm:$0xff]  ;;  %v2093_v26 = vld [vmem:[%s7025_s2 + $0x78] sm:$0xff] }
 0x266   :  { %4686 = vrsqrt.f32 %v2073_v58  ;;  %v2126_v45 = vld [vmem:[%s7025_s2 + $0x180] sm:$0xff] }
 0x267   :  { %v2062_v59 = vsub.f32 %v2054_v30, %v2058_v37  ;;  %v2063_v46 = vsub.f32 %v2055_v57, %v2059_v54  ;;  %v2130_v24 = vld [vmem:[%s7025_s2 + $0x1a0] sm:$0xff]  ;;  %v2096_v37 = vld [vmem:[%s7025_s2 + $0x90] sm:$0xff] }
 0x268   :  { %v2134_v61 = vld [vmem:[%s7025_s2 + $0x1c0] sm:$0xff] }
 0x269   :  { %v2066_v27 = vmax.f32 %v2062_v59, 0.0  ;;  %v2067_v51 = vmax.f32 %v2063_v46, 0.0  ;;  %v2138_v3 = vld [vmem:[%s7025_s2 + $0x1e0] sm:$0xff] }
 0x26b   :  { %v2070_v31 = vadd.f32 1e-05, %v2066_v27  ;;  %v2071_v60 = vadd.f32 1e-05, %v2067_v51 }
 0x26d   :  { %4688 = vrsqrt.f32 %v2070_v31  ;;  %v2097_v31 = vld [vmem:[%s7025_s2 + $0x98] sm:$0xff] }
 0x26e   :  { %4690 = vrsqrt.f32 %v2071_v60  ;;  %v2100_v60 = vld [vmem:[%s7025_s2 + $0xb0] sm:$0xff] }
 0x272   :  { %v5727_v13 = vpop.eup %4684 }
 0x273   :  { %v5730_v18 = vmul.f32 %v5727_v13, %v2080_v1  ;;  %v5742_v34 = vpop.eup %4686  ;;  %v5745_v16 = vmul.f32 %v5727_v13, %v2084_v14  ;;  %v5770_v36 = vmul.f32 %v5727_v13, %v2088_v28  ;;  %v5840_v11 = vmul.f32 %v5727_v13, %v2092_v9  ;;  %v2079_v1 = vld [vmem:[%s7025_s2 + $0x8] sm:$0xff] }
 0x274   :  { %v5773_v43 = vmul.f32 %v5742_v34, %v2141_v62  ;;  %v5782_v6 = vmul.f32 %v5742_v34, %v2081_v47  ;;  %v5785_v5 = vmul.f32 %v5742_v34, %v2085_v63  ;;  %v5837_v49 = vmul.f32 %v5742_v34, %v2089_v29  ;;  %v2083_v14 = vld [vmem:[%s7025_s2 + $0x28] sm:$0xff]  ;;  %v2101_v62 = vld [vmem:[%s7025_s2 + $0xb8] sm:$0xff]  ;;  %v2104_v47 = vld [vmem:[%s7025_s2 + $0xd0] sm:$0xff] }
 0x275   :  { %2538 = vperm.xlu1 %4649, %v5730_v18   ;;  %v5877_v27 = vmul.f32 %v5742_v34, %v2093_v26  ;;  %v5880_v51 = vmul.f32 %v5727_v13, %v2096_v37  ;;  %v5900_v28 = vmul.f32 %v5727_v13, %v2100_v60  ;;  %v2117_v29 = vld [vmem:[%s7025_s2 + $0x138] sm:$0xff] }
 0x276   :  { %v2125_v60 = vld [vmem:[%s7025_s2 + $0x178] sm:$0xff] }
 0x277   :  { %7068 = vst [vmem:[#allocation6_spill] sm:$0xff] %v5900_v28 }
 0x279   :  { %2558 = vperm.xlu1 %4649, %v5745_v16  }
 0x27a   :  { %v4689_v23 = vpop.eup %4688 }
 0x27b   :  { %v5787_v10 = vmul.f32 %v4689_v23, %v2078_v38  ;;  %v5792_v4 = vmul.f32 %v4689_v23, %v2082_v19  ;;  %v5794_v35 = vmul.f32 %v4689_v23, %v2086_v48  ;;  %v5796_v7 = vmul.f32 %v4689_v23, %v2090_v22  ;;  %v5834_v53 = vpop.eup %4690 }
 0x27c   :  { %v5807_v52 = vmul.f32 %v4689_v23, %v2094_v39  ;;  %v5817_v12 = vmul.f32 %v4689_v23, %v2098_v44  ;;  %v5819_v17 = vmul.f32 %v4689_v23, %v2102_v2  ;;  %v5827_v20 = vmul.f32 %v4689_v23, %v2106_v56  ;;  %v2105_v39 = vld [vmem:[%s7025_s2 + $0xd8] sm:$0xff]  ;;  %v2111_v2 = vld [vmem:[%s7025_s2 + $0x108] sm:$0xff] }
 0x27d   :  { %7067 = vst [vmem:[#allocation5_spill] sm:$0xff] %v5787_v10  ;;  %2528 = vperm.xlu0 %4650, %v5787_v10   ;;  %2578 = vperm.xlu1 %4649, %v5770_v36   ;;  %v5829_v21 = vmul.f32 %v4689_v23, %v2110_v40  ;;  %v5842_v32 = vmul.f32 %v4689_v23, %v2114_v50  ;;  %v2113_v44 = vld [vmem:[%s7025_s2 + $0x118] sm:$0xff]  ;;  %v2112_v40 = vld [vmem:[%s7025_s2 + $0x110] sm:$0xff]  ;;  %v6068_v10 = vld [vmem:[%s7026_s3 + $0x100] sm:$0xff] }
 0x27e   :  { %v5844_v33 = vmul.f32 %v4689_v23, %v2118_v55  ;;  %v5861_v30 = vmul.f32 %v4689_v23, %v2122_v0  ;;  %v5863_v54 = vmul.f32 %v4689_v23, %v2126_v45  ;;  %v5867_v57 = vmul.f32 %v4689_v23, %v2130_v24  ;;  %v2109_v56 = vld [vmem:[%s7025_s2 + $0xf8] sm:$0xff]  ;;  %v2116_v0 = vld [vmem:[%s7025_s2 + $0x130] sm:$0xff] }
 0x27f   :  { %v5869_v58 = vmul.f32 %v4689_v23, %v2134_v61  ;;  %v5871_v59 = vmul.f32 %v4689_v23, %v2138_v3  ;;  %v5874_v46 = vmul.f32 %v5834_v53, %v2139_v8  ;;  %v5897_v38 = vmul.f32 %v5742_v34, %v2097_v31  ;;  %v2108_v23 = vld [vmem:[%s7025_s2 + $0xf0] sm:$0xff]  ;;  %v5959_v61 = vld [vmem:[%s7026_s3 + $0xc0] sm:$0xff]  ;;  %v2121_v8 = vld [vmem:[%s7025_s2 + $0x158] sm:$0xff] }
 0x280   :  { %v5909_v63 = vmul.f32 %v5834_v53, %v2079_v1  ;;  %v5912_v19 = vmul.f32 %v5834_v53, %v2083_v14  ;;  %v5917_v48 = vmul.f32 %v5742_v34, %v2101_v62  ;;  %v2168_v22 = vmul.f32 %v5727_v13, %v2104_v47  ;;  %v2120_v45 = vld [vmem:[%s7025_s2 + $0x150] sm:$0xff]  ;;  %7072 = vst [vmem:[#allocation10_spill] sm:$0xff] %v5959_v61  ;;  %v2129_v47 = vld [vmem:[%s7025_s2 + $0x198] sm:$0xff] }
 0x281   :  { %2583 = vperm.xlu0 %4650, %v5837_v49   ;;  %2598 = vperm.xlu1 %4649, %v5840_v11   ;;  %v5943_v9 = vmul.f32 %v5742_v34, %v2105_v39  ;;  %v2172_v50 = vmul.f32 %v5727_v13, %v2108_v23  ;;  %v2177_v55 = vmul.f32 %v5742_v34, %v2113_v44  ;;  %v2124_v31 = vld [vmem:[%s7025_s2 + $0x170] sm:$0xff]  ;;  %v5991_v39 = vld [vmem:[%s7026_s3 + $0x108] sm:$0xff]  ;;  %v6001_v44 = vld [vmem:[%s7026_s3 + $0x118] sm:$0xff] }
 0x282   :  { %7069 = vst [vmem:[#allocation7_spill] sm:$0xff] %v5909_v63  ;;  %7070 = vst [vmem:[#allocation8_spill] sm:$0xff] %v5912_v19  ;;  %v5954_v24 = vmul.f32 %v5834_v53, %v2111_v2  ;;  %v5962_v3 = vmul.f32 %v5742_v34, %v2117_v29  ;;  %v5969_v26 = vmul.f32 %v5819_v17, %v5716_v25  ;;  %v5996_v23 = vld [vmem:[%s7026_s3 + $0xd0] sm:$0xff] }
 0x283   :  { %7071 = vst [vmem:[#allocation9_spill] sm:$0xff] %v5943_v9  ;;  %v5973_v37 = vmul.f32 %v5742_v34, %v2109_v56  ;;  %v2176_v1 = vmul.f32 %v5727_v13, %v2112_v40  ;;  %v2180_v14 = vmul.f32 %v5727_v13, %v2116_v0  ;;  %v5984_v62 = vmul.f32 %v5727_v13, %v2120_v45  ;;  %v6019_v0 = vld [vmem:[%s7026_s3 + $0xe0] sm:$0xff]  ;;  %v6024_v45 = vld [vmem:[%s7026_s3 + $0x138] sm:$0xff] }
 0x284   :  { %7073 = vst [vmem:[#allocation11_spill] sm:$0xff] %v5969_v26  ;;  %7075 = vst [vmem:[#allocation13_spill] sm:$0xff] %v5996_v23  ;;  %v6004_v2 = vmul.f32 %v5742_v34, %v2121_v8  ;;  %v6008_v29 = vmul.f32 %v5954_v24, %v5718_v41  ;;  %v6011_v56 = vmul.f32 %v2168_v22, %v5708_v42  ;;  %v6029_v8 = vld [vmem:[%s7026_s3 + $0xf0] sm:$0xff] }
 0x285   :  { %2603 = vperm.xlu0 %4650, %v5877_v27   ;;  %2618 = vperm.xlu1 %4649, %v5880_v51   ;;  %7074 = vst [vmem:[#allocation12_spill] sm:$0xff] %v5973_v37  ;;  %7076 = vst [vmem:[#allocation14_spill] sm:$0xff] %v6001_v44  ;;  %v6014_v40 = vmul.f32 %v2177_v55, %v5710_v15  ;;  %v6039_v26 = vmul.f32 %v5827_v20, %v5716_v25  ;;  %v6147_v44 = vld [vmem:[%s7026_s3 + $0x198] sm:$0xff] }
 0x286   :  { %7077 = vst [vmem:[#allocation15_spill] sm:$0xff] %v6008_v29  ;;  %7078 = vst [vmem:[#allocation16_spill] sm:$0xff] %v6011_v56  ;;  %v6043_v61 = vmul.f32 %v5962_v3, %v5710_v15  ;;  %v2188_v63 = vmul.f32 %v5727_v13, %v2124_v31  ;;  %v6078_v31 = vld [vmem:[%s7026_s3 + $0x110] sm:$0xff]  ;;  %v6085_v41 = vmul.f32 %v5829_v21, %v5716_v25  ;;  %v6142_v29 = vld [vmem:[%s7026_s3 + $0x140] sm:$0xff] }
 0x287   :  { %7079 = vst [vmem:[#allocation17_spill] sm:$0xff] %v6014_v40  ;;  %7080 = vst [vmem:[#allocation18_spill] sm:$0xff] %v6019_v0  ;;  %v6092_v19 = vmul.f32 %v2176_v1, %v5708_v42  ;;  %v6122_v0 = vmul.f32 %v2180_v14, %v5708_v42  ;;  %v6152_v23 = vmul.f32 %v5844_v33, %v5716_v25 }
 0x288   :  { %7081 = vst [vmem:[#allocation19_spill] sm:$0xff] %v6024_v45  ;;  %7082 = vst [vmem:[#allocation20_spill] sm:$0xff] %v6029_v8  ;;  %v6107_v8 = vld [vmem:[%s7026_s3 + $0x130] sm:$0xff]  ;;  %v6115_v45 = vmul.f32 %v5842_v32, %v5716_v25  ;;  %v6165_v40 = vmul.f32 %v5984_v62, %v5708_v42 }
 0x289   :  { %2623 = vperm.xlu0 %4650, %v5897_v38   ;;  %2638 = vperm.xlu1 %4649, %v5900_v28   ;;  %7083 = vst [vmem:[#allocation21_spill] sm:$0xff] %v6039_v26  ;;  %7084 = vst [vmem:[#allocation22_spill] sm:$0xff] %v6043_v61  ;;  %v6073_v28 = vld [vmem:[%s7026_s3 + $0x158] sm:$0xff] }
 0x28a   :  { %7086 = vst [vmem:[#allocation24_spill] sm:$0xff] %v6073_v28  ;;  %7087 = vst [vmem:[#allocation25_spill] sm:$0xff] %v6078_v31  ;;  %v6218_v31 = vld [vmem:[%s7026_s3 + $0x190] sm:$0xff] }
 0x28b   :  { %7089 = vst [vmem:[#allocation27_spill] sm:$0xff] %v6092_v19  ;;  %7092 = vst [vmem:[#allocation30_spill] sm:$0xff] %v6107_v8  ;;  %v2136_v8 = vld [vmem:[%s7025_s2 + $0x1d0] sm:$0xff] }
 0x28c   :  { %7093 = vst [vmem:[#allocation31_spill] sm:$0xff] %v6115_v45  ;;  %7095 = vst [vmem:[#allocation33_spill] sm:$0xff] %v6122_v0  ;;  %v2132_v0 = vld [vmem:[%s7025_s2 + $0x1b0] sm:$0xff]  ;;  %v6188_v45 = vmul.f32 %v2188_v63, %v5708_v42  ;;  %v2200_v28 = vmul.f32 %v5727_v13, %v2136_v8 }
 0x28d   :  { %2643 = vperm.xlu0 %4650, %v5917_v48   ;;  %2658 = vperm.xlu1 %4649, %v2168_v22   ;;  %v6032_v22 = vmul.f32 %v5742_v34, %v2125_v60  ;;  %v2133_v60 = vld [vmem:[%s7025_s2 + $0x1b8] sm:$0xff] }
 0x28e   :  { %v2197_v61 = vmul.f32 %v5742_v34, %v2133_v60  ;;  %v2128_v60 = vld [vmem:[%s7025_s2 + $0x190] sm:$0xff]  ;;  %7098 = vst [vmem:[#allocation36_spill] sm:$0xff] %v6188_v45 }
 0x28f   :  { %v6119_v26 = vmul.f32 %v6032_v22, %v5710_v15 }
 0x291   :  { %2663 = vperm.xlu0 %4650, %v5943_v9   ;;  %2678 = vperm.xlu1 %4649, %v2172_v50   ;;  %v6046_v9 = vmul.f32 %v2172_v50, %v5708_v42  ;;  %v6089_v50 = vmul.f32 %v6004_v2, %v5710_v15  ;;  %7094 = vst [vmem:[#allocation32_spill] sm:$0xff] %v6119_v26 }
 0x292   :  { %v6180_v26 = vmul.f32 %v2197_v61, %v5710_v15 }
 0x293   :  { %7085 = vst [vmem:[#allocation23_spill] sm:$0xff] %v6046_v9  ;;  %7088 = vst [vmem:[#allocation26_spill] sm:$0xff] %v6089_v50  ;;  %v6097_v9 = vld [vmem:[%s7026_s3 + $0x120] sm:$0xff]  ;;  %v6223_v50 = vld [vmem:[%s7026_s3 + $0x1f8] sm:$0xff] }
 0x294   :  { %7090 = vst [vmem:[#allocation28_spill] sm:$0xff] %v6097_v9  ;;  %7096 = vst [vmem:[#allocation34_spill] sm:$0xff] %v6180_v26  ;;  %v6231_v9 = vmul.f32 %v5773_v43, %v5710_v15  ;;  %v6259_v26 = vld [vmem:[%s7026_s3 + $0x1f0] sm:$0xff] }
 0x295   :  { %2683 = vperm.xlu0 %4650, %v5973_v37   ;;  %2698 = vperm.xlu1 %4649, %v2176_v1   ;;  %v6081_v37 = vmul.f32 %v5742_v34, %v2129_v47  ;;  %v6102_v47 = vld [vmem:[%s7026_s3 + $0x178] sm:$0xff]  ;;  %7099 = vst [vmem:[#allocation37_spill] sm:$0xff] %v6223_v50  ;;  %7102 = vst [vmem:[#allocation40_spill] sm:$0xff] %v6259_v26  ;;  %v2281_v26 = vmul.f32 %v5837_v49, %v5710_v15 }
 0x296   :  { %7091 = vst [vmem:[#allocation29_spill] sm:$0xff] %v6102_v47  ;;  %v2137_v1 = vld [vmem:[%s7025_s2 + $0x1d8] sm:$0xff]  ;;  %v6185_v47 = vld [vmem:[%s7026_s3 + $0x170] sm:$0xff]  ;;  %7100 = vst [vmem:[#allocation38_spill] sm:$0xff] %v6231_v9  ;;  %v2285_v49 = vmul.f32 %v5877_v27, %v5710_v15  ;;  %v2289_v27 = vmul.f32 %v5897_v38, %v5710_v15  ;;  %v2293_v38 = vmul.f32 %v5917_v48, %v5710_v15 }
 0x297   :  { %v2201_v56 = vmul.f32 %v5742_v34, %v2137_v1  ;;  %v6170_v34 = vld [vmem:[%s7026_s3 + $0x1b8] sm:$0xff]  ;;  %v2192_v1 = vmul.f32 %v5727_v13, %v2128_v60  ;;  %7097 = vst [vmem:[#allocation35_spill] sm:$0xff] %v6185_v47  ;;  %v2140_v60 = vld [vmem:[%s7025_s2 + $0x1f0] sm:$0xff]  ;;  %v7108_v48 = vld [vmem:[#allocation4_spill] sm:$0xff] }
 0x298   :  { %v2213_v9 = vld [vmem:[%s7026_s3 + $0x38] sm:$0xff] }
 0x299   :  { %2703 = vperm.xlu0 %4650, %v2177_v55   ;;  %2718 = vperm.xlu1 %4649, %v2180_v14   ;;  %v6156_v55 = vmul.f32 %v6081_v37, %v5710_v15  ;;  %v6161_v14 = vld [vmem:[%s7026_s3 + $0x150] sm:$0xff]  ;;  %v6213_v19 = vmul.f32 %v2201_v56, %v5710_v15  ;;  %v6227_v8 = vmul.f32 %v2192_v1, %v5708_v42 }
 0x29d   :  { %2723 = vperm.xlu0 %4650, %v5962_v3   ;;  %2738 = vperm.xlu1 %4649, %v5984_v62   ;;  %v6206_v3 = vld [vmem:[%s7026_s3 + $0x1d8] sm:$0xff]  ;;  %v2196_v62 = vmul.f32 %v5727_v13, %v2132_v0  ;;  %v2204_v0 = vmul.f32 %v5727_v13, %v2140_v60  ;;  %v6243_v13 = vld [vmem:[%s7026_s3 + $0x1b0] sm:$0xff] }
 0x29e   :  { %v6248_v60 = vld [vmem:[%s7026_s3 + $0x1d0] sm:$0xff] }
 0x29f   :  { %v6262_v47 = vmul.f32 %v2204_v0, %v5708_v42 }
 0x2a1   :  { %2743 = vperm.xlu0 %4650, %v6004_v2   ;;  %2758 = vperm.xlu1 %4649, %v2188_v63   ;;  %v6251_v63 = vmul.f32 %v2196_v62, %v5708_v42  ;;  %v6254_v2 = vmul.f32 %v2200_v28, %v5708_v42  ;;  %7103 = vst [vmem:[#allocation41_spill] sm:$0xff] %v6262_v47 }
 0x2a2   :  { %v2272_v47 = vmul.f32 %v5730_v18, %v5708_v42  ;;  %v2276_v18 = vmul.f32 %v5745_v16, %v5708_v42  ;;  %v2280_v16 = vmul.f32 %v5770_v36, %v5708_v42  ;;  %v2284_v36 = vmul.f32 %v5840_v11, %v5708_v42 }
 0x2a3   :  { %7101 = vst [vmem:[#allocation39_spill] sm:$0xff] %v6254_v2  ;;  %v2217_v2 = vld [vmem:[%s7026_s3 + $0x58] sm:$0xff]  ;;  %v2288_v11 = vmul.f32 %v5880_v51, %v5708_v42  ;;  %v7112_v51 = vld [vmem:[#allocation6_spill] sm:$0xff] }
 0x2a5   :  { %2763 = vperm.xlu0 %4650, %v6032_v22   ;;  %2778 = vperm.xlu1 %4649, %v2192_v1   ;;  %v2087_v22 = vld [vmem:[%s7025_s2 + $0x48] sm:$0xff] }
 0x2a6   :  { %v6278_v1 = vmul.f32 %v5834_v53, %v2087_v22 }
 0x2a9   :  { %2783 = vperm.xlu0 %4650, %v6081_v37   ;;  %2798 = vperm.xlu1 %4649, %v2196_v62   ;;  %v2091_v37 = vld [vmem:[%s7025_s2 + $0x68] sm:$0xff] }
 0x2ad   :  { %2803 = vperm.xlu0 %4650, %v2197_v61   ;;  %2818 = vperm.xlu1 %4649, %v2200_v28   ;;  %v6286_v28 = vmul.f32 %v5834_v53, %v2091_v37  ;;  %v2107_v37 = vld [vmem:[%s7025_s2 + $0xe8] sm:$0xff] }
 0x2b1   :  { %2823 = vperm.xlu0 %4650, %v2201_v56   ;;  %2838 = vperm.xlu1 %4649, %v2204_v0   ;;  %v2099_v56 = vld [vmem:[%s7025_s2 + $0xa8] sm:$0xff] }
 0x2b2   :  { %v6302_v62 = vmul.f32 %v5834_v53, %v2099_v56  ;;  %v2103_v0 = vld [vmem:[%s7025_s2 + $0xc8] sm:$0xff] }
 0x2b3   :  { %v6310_v22 = vmul.f32 %v5834_v53, %v2103_v0  ;;  %v2115_v56 = vld [vmem:[%s7025_s2 + $0x128] sm:$0xff] }
 0x2b4   :  { %v6328_v0 = vmul.f32 %v5834_v53, %v2115_v56 }
 0x2b5   :  { %2843 = vperm.xlu0 %4650, %v5773_v43   ;;  %2548 = vperm.xlu1 %4649, %v5792_v4   ;;  %v2095_v43 = vld [vmem:[%s7025_s2 + $0x88] sm:$0xff] }
 0x2b6   :  { %v6294_v61 = vmul.f32 %v5834_v53, %v2095_v43  ;;  %v6318_v43 = vmul.f32 %v5834_v53, %v2107_v37 }
 0x2b9   :  { %2568 = vperm.xlu1 %4649, %v5794_v35   ;;  %2573 = vperm.xlu0 %4650, %v6278_v1  }
 0x2bd   :  { %2588 = vperm.xlu1 %4649, %v5796_v7   ;;  %2593 = vperm.xlu0 %4650, %v6286_v28  }
 0x2c1   :  { %2608 = vperm.xlu1 %4649, %v5807_v52   ;;  %2613 = vperm.xlu0 %4650, %v6294_v61  }
 0x2c5   :  { %2628 = vperm.xlu1 %4649, %v5817_v12   ;;  %2633 = vperm.xlu0 %4650, %v6302_v62  }
 0x2c9   :  { %2648 = vperm.xlu1 %4649, %v5819_v17   ;;  %2653 = vperm.xlu0 %4650, %v6310_v22   ;;  %v2119_v17 = vld [vmem:[%s7025_s2 + $0x148] sm:$0xff] }
 0x2cd   :  { %2668 = vperm.xlu1 %4649, %v5827_v20   ;;  %2673 = vperm.xlu0 %4650, %v6318_v43   ;;  %v6336_v20 = vmul.f32 %v5834_v53, %v2119_v17  ;;  %v2135_v17 = vld [vmem:[%s7025_s2 + $0x1c8] sm:$0xff] }
 0x2d1   :  { %2688 = vperm.xlu1 %4649, %v5829_v21   ;;  %2693 = vperm.xlu0 %4650, %v5954_v24   ;;  %v2123_v21 = vld [vmem:[%s7025_s2 + $0x168] sm:$0xff] }
 0x2d2   :  { %v6344_v24 = vmul.f32 %v5834_v53, %v2123_v21  ;;  %v6368_v21 = vmul.f32 %v5834_v53, %v2135_v17 }
 0x2d5   :  { %2708 = vperm.xlu1 %4649, %v5842_v32   ;;  %2713 = vperm.xlu0 %4650, %v6328_v0   ;;  %v2127_v32 = vld [vmem:[%s7025_s2 + $0x188] sm:$0xff] }
 0x2d6   :  { %v6352_v37 = vmul.f32 %v5834_v53, %v2127_v32  ;;  %v2273_v32 = vmul.f32 %v5782_v6, %v5710_v15 }
 0x2d9   :  { %2728 = vperm.xlu1 %4649, %v5844_v33   ;;  %2733 = vperm.xlu0 %4650, %v6336_v20   ;;  %v2131_v33 = vld [vmem:[%s7025_s2 + $0x1a8] sm:$0xff] }
 0x2da   :  { %v6360_v56 = vmul.f32 %v5834_v53, %v2131_v33  ;;  %v2209_v33 = vld [vmem:[%s7026_s3 + $0x18] sm:$0xff]  ;;  %v2277_v53 = vmul.f32 %v5785_v5, %v5710_v15 }
 0x2db   :  { %v2337_v50 = vsub.f32 %v2209_v33, %v2273_v32  ;;  %v2208_v33 = vld [vmem:[%s7026_s3 + $0x10] sm:$0xff] }
 0x2dc   :  { %v2341_v45 = vsub.f32 %v2213_v9, %v2277_v53  ;;  %v2345_v9 = vsub.f32 %v2217_v2, %v2281_v26 }
 0x2dd   :  { %2748 = vperm.xlu1 %4649, %v5861_v30   ;;  %2753 = vperm.xlu0 %4650, %v6344_v24  }
 0x2e1   :  { %2768 = vperm.xlu1 %4649, %v5863_v54   ;;  %2773 = vperm.xlu0 %4650, %v6352_v37  }
 0x2e5   :  { %2788 = vperm.xlu1 %4649, %v5867_v57   ;;  %2793 = vperm.xlu0 %4650, %v6360_v56  }
 0x2e9   :  { %2808 = vperm.xlu1 %4649, %v5869_v58   ;;  %2813 = vperm.xlu0 %4650, %v6368_v21  }
 0x2ed   :  { %2828 = vperm.xlu1 %4649, %v5871_v59   ;;  %2833 = vperm.xlu0 %4650, %v5874_v46  }
 0x2f0   :  { %v6381_v17 = vpop.permute.xlu1 %2538 }
 0x2f1   :  { %2543 = vperm.xlu1 %4649, %v5782_v6   ;;  %2927 = vperm.xlu0 %4650, %v2337_v50   ;;  %v2336_v6 = vsub.f32 %v2208_v33, %v2272_v47  ;;  %v2216_v33 = vld [vmem:[%s7026_s3 + $0x50] sm:$0xff] }
 0x2f4   :  { %v6391_v32 = vpop.permute.xlu1 %2558 }
 0x2f5   :  { %7104 = vst [vmem:[#allocation42_spill] sm:$0xff] %v6391_v32  ;;  %2563 = vperm.xlu1 %4649, %v5785_v5   ;;  %2947 = vperm.xlu0 %4650, %v2341_v45   ;;  %v2212_v32 = vld [vmem:[%s7026_s3 + $0x30] sm:$0xff]  ;;  %v2221_v5 = vld [vmem:[%s7026_s3 + $0x78] sm:$0xff] }
 0x2f6   :  { %v2340_v26 = vsub.f32 %v2212_v32, %v2276_v18  ;;  %v2349_v45 = vsub.f32 %v2221_v5, %v2285_v49  ;;  %v2344_v32 = vsub.f32 %v2216_v33, %v2280_v16  ;;  %v2220_v5 = vld [vmem:[%s7026_s3 + $0x70] sm:$0xff] }
 0x2f8   :  { %v6404_v50 = vpop.permute.xlu0 %2528  ;;  %v6406_v53 = vpop.permute.xlu1 %2578 }
 0x2f9   :  { %7105 = vst [vmem:[#allocation43_spill] sm:$0xff] %v6404_v50  ;;  %2922 = vperm.xlu1 %4649, %v2336_v6   ;;  %2967 = vperm.xlu0 %4650, %v2345_v9   ;;  %v2225_v6 = vld [vmem:[%s7026_s3 + $0x98] sm:$0xff] }
 0x2fa   :  { %v2353_v9 = vsub.f32 %v2225_v6, %v2289_v27  ;;  %v7109_v27 = vld [vmem:[#allocation7_spill] sm:$0xff] }
 0x2fb   :  { %v2271_v33 = vmul.f32 %v7109_v27, %v7108_v48 }
 0x2fc   :  { %v6418_v47 = vpop.permute.xlu0 %2583  ;;  %v6420_v2 = vpop.permute.xlu1 %2598 }
 0x2fd   :  { %7106 = vst [vmem:[#allocation44_spill] sm:$0xff] %v6420_v2  ;;  %2942 = vperm.xlu1 %4649, %v2340_v26   ;;  %2987 = vperm.xlu0 %4650, %v2349_v45   ;;  %v2229_v26 = vld [vmem:[%s7026_s3 + $0xb8] sm:$0xff]  ;;  %v2348_v45 = vsub.f32 %v2220_v5, %v2284_v36  ;;  %v7113_v5 = vld [vmem:[#allocation8_spill] sm:$0xff]  ;;  %v2228_v2 = vld [vmem:[%s7026_s3 + $0xb0] sm:$0xff] }
 0x2fe   :  { %v2357_v16 = vsub.f32 %v2229_v26, %v2293_v38  ;;  %v2292_v38 = vmul.f32 %v7112_v51, %v5708_v42  ;;  %v2275_v26 = vmul.f32 %v7113_v5, %v7108_v48  ;;  %v2279_v42 = vmul.f32 %v6278_v1, %v7108_v48  ;;  %v2219_v1 = vld [vmem:[%s7026_s3 + $0x68] sm:$0xff] }
 0x300   :  { %v6432_v18 = vpop.permute.xlu0 %2603  ;;  %v6434_v49 = vpop.permute.xlu1 %2618 }
 0x301   :  { %7107 = vst [vmem:[#allocation45_spill] sm:$0xff] %v6434_v49  ;;  %2962 = vperm.xlu1 %4649, %v2344_v32   ;;  %3007 = vperm.xlu0 %4650, %v2353_v9   ;;  %v2224_v49 = vld [vmem:[%s7026_s3 + $0x90] sm:$0xff]  ;;  %v2207_v32 = vld [vmem:[%s7026_s3 + $0x8] sm:$0xff] }
 0x302   :  { %v2352_v9 = vsub.f32 %v2224_v49, %v2288_v11  ;;  %v2335_v36 = vsub.f32 %v2207_v32, %v2271_v33  ;;  %v2356_v49 = vsub.f32 %v2228_v2, %v2292_v38  ;;  %v2215_v32 = vld [vmem:[%s7026_s3 + $0x48] sm:$0xff] }
 0x303   :  { %v2343_v51 = vsub.f32 %v2215_v32, %v2279_v42  ;;  %v2206_v42 = vld [vmem:[%s7026_s3] sm:$0xff] }
 0x304   :  { %v6446_v6 = vpop.permute.xlu0 %2623  ;;  %v6448_v50 = vpop.permute.xlu1 %2638 }
 0x305   :  { %7110 = vst [vmem:[#allocation4_spill] sm:$0xff] %v6446_v6  ;;  %7111 = vst [vmem:[#allocation7_spill] sm:$0xff] %v6448_v50  ;;  %2982 = vperm.xlu1 %4649, %v2348_v45   ;;  %3027 = vperm.xlu0 %4650, %v2357_v16   ;;  %v2211_v45 = vld [vmem:[%s7026_s3 + $0x28] sm:$0xff] }
 0x306   :  { %v2339_v16 = vsub.f32 %v2211_v45, %v2275_v26  ;;  %v7114_v26 = vld [vmem:[#allocation5_spill] sm:$0xff] }
 0x307   :  { %v2270_v45 = vmul.f32 %v7114_v26, %v5716_v25 }
 0x308   :  { %v6460_v6 = vpop.permute.xlu0 %2643  ;;  %v6462_v50 = vpop.permute.xlu1 %2658 }
 0x309   :  { %3002 = vperm.xlu1 %4649, %v2352_v9   ;;  %2917 = vperm.xlu0 %4650, %v2335_v36   ;;  %v2283_v9 = vmul.f32 %v6286_v28, %v7108_v48  ;;  %v2334_v32 = vsub.f32 %v2206_v42, %v2270_v45 }
 0x30b   :  { %v2347_v38 = vsub.f32 %v2219_v1, %v2283_v9  ;;  %v2291_v9 = vmul.f32 %v6302_v62, %v7108_v48  ;;  %v2295_v62 = vmul.f32 %v6310_v22, %v7108_v48  ;;  %v7119_v22 = vld [vmem:[#allocation9_spill] sm:$0xff] }
 0x30c   :  { %v6472_v11 = vpop.permute.xlu0 %2663  ;;  %v6474_v33 = vpop.permute.xlu1 %2678 }
 0x30d   :  { %3022 = vperm.xlu1 %4649, %v2356_v49   ;;  %2937 = vperm.xlu0 %4650, %v2339_v16   ;;  %v2287_v49 = vmul.f32 %v6294_v61, %v7108_v48  ;;  %v2274_v61 = vmul.f32 %v5792_v4, %v5716_v25  ;;  %v2278_v4 = vmul.f32 %v5794_v35, %v5716_v25 }
 0x30e   :  { %v2282_v35 = vmul.f32 %v5796_v7, %v5716_v25  ;;  %v2286_v7 = vmul.f32 %v5807_v52, %v5716_v25  ;;  %v2290_v52 = vmul.f32 %v5817_v12, %v5716_v25 }
 0x310   :  { %v6481_v36 = vpop.permute.xlu0 %2683  ;;  %v6483_v2 = vpop.permute.xlu1 %2698 }
 0x311   :  { %2533 = vperm.xlu1 %4649, %v7109_v27   ;;  %2957 = vperm.xlu0 %4650, %v2343_v51   ;;  %v2223_v27 = vld [vmem:[%s7026_s3 + $0x88] sm:$0xff] }
 0x312   :  { %v2351_v51 = vsub.f32 %v2223_v27, %v2287_v49  ;;  %v2214_v27 = vld [vmem:[%s7026_s3 + $0x40] sm:$0xff] }
 0x314   :  { %v6493_v16 = vpop.permute.xlu0 %2703  ;;  %v6495_v28 = vpop.permute.xlu1 %2718 }
 0x315   :  { %7115 = vst [vmem:[#allocation6_spill] sm:$0xff] %v6495_v28  ;;  %2553 = vperm.xlu1 %4649, %v7113_v5   ;;  %2977 = vperm.xlu0 %4650, %v2347_v38   ;;  %v2210_v28 = vld [vmem:[%s7026_s3 + $0x20] sm:$0xff]  ;;  %v2227_v5 = vld [vmem:[%s7026_s3 + $0xa8] sm:$0xff] }
 0x316   :  { %v2338_v38 = vsub.f32 %v2210_v28, %v2274_v61  ;;  %v2355_v45 = vsub.f32 %v2227_v5, %v2291_v9  ;;  %v2342_v28 = vsub.f32 %v2214_v27, %v2278_v4  ;;  %v2297_v61 = vmul.f32 %v7119_v22, %v5710_v15  ;;  %v2222_v22 = vld [vmem:[%s7026_s3 + $0x80] sm:$0xff] }
 0x318   :  { %v6508_v1 = vpop.permute.xlu0 %2723  ;;  %v6510_v26 = vpop.permute.xlu1 %2738 }
 0x319   :  { %7116 = vst [vmem:[#allocation8_spill] sm:$0xff] %v6510_v26  ;;  %2912 = vperm.xlu1 %4649, %v2334_v32   ;;  %2997 = vperm.xlu0 %4650, %v2351_v51   ;;  %v2231_v32 = vld [vmem:[%s7026_s3 + $0xc8] sm:$0xff]  ;;  %v2319_v26 = vmul.f32 %v6352_v37, %v7108_v48 }
 0x31a   :  { %v2359_v51 = vsub.f32 %v2231_v32, %v2295_v62  ;;  %v2299_v62 = vmul.f32 %v6318_v43, %v7108_v48  ;;  %v7124_v43 = vld [vmem:[#allocation12_spill] sm:$0xff] }
 0x31c   :  { %v6522_v49 = vpop.permute.xlu0 %2743  ;;  %v6524_v42 = vpop.permute.xlu1 %2758 }
 0x31d   :  { %7117 = vst [vmem:[#allocation5_spill] sm:$0xff] %v6522_v49  ;;  %7118 = vst [vmem:[#allocation46_spill] sm:$0xff] %v6524_v42  ;;  %2932 = vperm.xlu1 %4649, %v2338_v38   ;;  %3017 = vperm.xlu0 %4650, %v2355_v45   ;;  %v2218_v42 = vld [vmem:[%s7026_s3 + $0x60] sm:$0xff]  ;;  %v2233_v38 = vld [vmem:[%s7026_s3 + $0xd8] sm:$0xff] }
 0x31e   :  { %v2346_v45 = vsub.f32 %v2218_v42, %v2282_v35  ;;  %v2361_v4 = vsub.f32 %v2233_v38, %v2297_v61  ;;  %v2350_v42 = vsub.f32 %v2222_v22, %v2286_v7  ;;  %v2301_v35 = vmul.f32 %v7124_v43, %v5710_v15  ;;  %v7131_v43 = vld [vmem:[#allocation11_spill] sm:$0xff] }
 0x320   :  { %v6536_v9 = vpop.permute.xlu0 %2763  ;;  %v6538_v5 = vpop.permute.xlu1 %2778 }
 0x321   :  { %7120 = vst [vmem:[#allocation9_spill] sm:$0xff] %v6536_v9  ;;  %7121 = vst [vmem:[#allocation47_spill] sm:$0xff] %v6538_v5  ;;  %2952 = vperm.xlu1 %4649, %v2342_v28   ;;  %3037 = vperm.xlu0 %4650, %v2359_v51   ;;  %v2235_v28 = vld [vmem:[%s7026_s3 + $0xe8] sm:$0xff] }
 0x322   :  { %v2363_v51 = vsub.f32 %v2235_v28, %v2299_v62  ;;  %v7130_v28 = vld [vmem:[#allocation10_spill] sm:$0xff] }
 0x324   :  { %v6550_v27 = vpop.permute.xlu0 %2783  ;;  %v6552_v32 = vpop.permute.xlu1 %2798 }
 0x325   :  { %7122 = vst [vmem:[#allocation48_spill] sm:$0xff] %v6550_v27  ;;  %7123 = vst [vmem:[#allocation49_spill] sm:$0xff] %v6552_v32  ;;  %2972 = vperm.xlu1 %4649, %v2346_v45   ;;  %3047 = vperm.xlu0 %4650, %v2361_v4   ;;  %v2226_v32 = vld [vmem:[%s7026_s3 + $0xa0] sm:$0xff]  ;;  %v2237_v45 = vld [vmem:[%s7026_s3 + $0xf8] sm:$0xff] }
 0x326   :  { %v2354_v4 = vsub.f32 %v2226_v32, %v2290_v52  ;;  %v2365_v7 = vsub.f32 %v2237_v45, %v2301_v35  ;;  %v2307_v32 = vmul.f32 %v6328_v0, %v7108_v48  ;;  %v2243_v35 = vld [vmem:[%s7026_s3 + $0x128] sm:$0xff] }
 0x327   :  { %v7135_v45 = vld [vmem:[#allocation13_spill] sm:$0xff] }
 0x328   :  { %v6564_v61 = vpop.permute.xlu0 %2803  ;;  %v6566_v38 = vpop.permute.xlu1 %2818 }
 0x329   :  { %7125 = vst [vmem:[#allocation12_spill] sm:$0xff] %v6564_v61  ;;  %7126 = vst [vmem:[#allocation50_spill] sm:$0xff] %v6566_v38  ;;  %2992 = vperm.xlu1 %4649, %v2350_v42   ;;  %3057 = vperm.xlu0 %4650, %v2363_v51   ;;  %v7132_v38 = vsub.f32 %v7130_v28, %v7131_v43  ;;  %v7133_v61 = vld [vmem:[#allocation15_spill] sm:$0xff]  ;;  %v7139_v28 = vld [vmem:[#allocation17_spill] sm:$0xff] }
 0x32a   :  { %v7134_v42 = vsub.f32 %v5991_v39, %v7133_v61  ;;  %v2371_v39 = vsub.f32 %v2243_v35, %v2307_v32  ;;  %v2247_v32 = vld [vmem:[%s7026_s3 + $0x148] sm:$0xff]  ;;  %v7144_v35 = vld [vmem:[#allocation19_spill] sm:$0xff] }
 0x32c   :  { %v6574_v12 = vpop.permute.xlu0 %2823  ;;  %v6576_v62 = vpop.permute.xlu1 %2838 }
 0x32d   :  { %7127 = vst [vmem:[#allocation51_spill] sm:$0xff] %v6574_v12  ;;  %7128 = vst [vmem:[#allocation52_spill] sm:$0xff] %v6576_v62  ;;  %3012 = vperm.xlu1 %4649, %v2354_v4   ;;  %3067 = vperm.xlu0 %4650, %v2365_v7   ;;  %v7136_v4 = vld [vmem:[#allocation16_spill] sm:$0xff]  ;;  %v7142_v62 = vld [vmem:[#allocation21_spill] sm:$0xff]  ;;  %v2311_v12 = vmul.f32 %v6336_v20, %v7108_v48 }
 0x32e   :  { %v7137_v7 = vsub.f32 %v7135_v45, %v7136_v4  ;;  %v7145_v4 = vld [vmem:[#allocation22_spill] sm:$0xff] }
 0x330   :  { %v6578_v15 = vpop.permute.xlu0 %2843  ;;  %v6580_v22 = vpop.permute.xlu1 %2548 }
 0x331   :  { %7129 = vst [vmem:[#allocation53_spill] sm:$0xff] %v6578_v15  ;;  %3032 = vperm.xlu1 %4649, %v7132_v38   ;;  %3077 = vperm.xlu0 %4650, %v7134_v42   ;;  %v7138_v38 = vld [vmem:[#allocation14_spill] sm:$0xff] }
 0x332   :  { %v7140_v43 = vsub.f32 %v7138_v38, %v7139_v28  ;;  %v7141_v42 = vld [vmem:[#allocation18_spill] sm:$0xff]  ;;  %v7147_v38 = vld [vmem:[#allocation20_spill] sm:$0xff]  ;;  %v7148_v28 = vld [vmem:[#allocation23_spill] sm:$0xff] }
 0x333   :  { %v7143_v15 = vsub.f32 %v7141_v42, %v7142_v62  ;;  %v2375_v62 = vsub.f32 %v2247_v32, %v2311_v12  ;;  %v2315_v42 = vmul.f32 %v6344_v24, %v7108_v48  ;;  %v2251_v12 = vld [vmem:[%s7026_s3 + $0x168] sm:$0xff]  ;;  %v7151_v32 = vld [vmem:[#allocation24_spill] sm:$0xff] }
 0x334   :  { %v6590_v51 = vpop.permute.xlu0 %2573  ;;  %v6592_v52 = vpop.permute.xlu1 %2568 }
 0x335   :  { %3042 = vperm.xlu1 %4649, %v7137_v7   ;;  %3087 = vperm.xlu0 %4650, %v7140_v43   ;;  %v7146_v7 = vsub.f32 %v7144_v35, %v7145_v4  ;;  %v7149_v43 = vsub.f32 %v7147_v38, %v7148_v28  ;;  %v7152_v4 = vld [vmem:[#allocation26_spill] sm:$0xff]  ;;  %v7154_v38 = vld [vmem:[#allocation25_spill] sm:$0xff]  ;;  %v7155_v28 = vld [vmem:[#allocation27_spill] sm:$0xff] }
 0x338   :  { %v6603_v61 = vpop.permute.xlu0 %2593  ;;  %v6605_v0 = vpop.permute.xlu1 %2588 }
 0x339   :  { %3097 = vperm.xlu0 %4650, %v2371_v39   ;;  %3052 = vperm.xlu1 %4649, %v7143_v15   ;;  %v7150_v39 = vsub.f32 %v6068_v10, %v6085_v41  ;;  %v2379_v41 = vsub.f32 %v2251_v12, %v2315_v42  ;;  %v2255_v42 = vld [vmem:[%s7026_s3 + $0x188] sm:$0xff] }
 0x33a   :  { %v7160_v12 = vld [vmem:[#allocation29_spill] sm:$0xff] }
 0x33c   :  { %v6612_v5 = vpop.permute.xlu0 %2613  ;;  %v6614_v45 = vpop.permute.xlu1 %2608 }
 0x33d   :  { %3107 = vperm.xlu0 %4650, %v7146_v7   ;;  %3062 = vperm.xlu1 %4649, %v7149_v43   ;;  %v7153_v7 = vsub.f32 %v7151_v32, %v7152_v4  ;;  %v7156_v43 = vsub.f32 %v7154_v38, %v7155_v28  ;;  %v7161_v4 = vld [vmem:[#allocation32_spill] sm:$0xff]  ;;  %v7163_v38 = vld [vmem:[#allocation30_spill] sm:$0xff]  ;;  %v7164_v28 = vld [vmem:[#allocation33_spill] sm:$0xff] }
 0x340   :  { %v6625_v15 = vpop.permute.xlu0 %2633  ;;  %v6627_v20 = vpop.permute.xlu1 %2628 }
 0x341   :  { %3117 = vperm.xlu0 %4650, %v2375_v62   ;;  %3072 = vperm.xlu1 %4649, %v7150_v39   ;;  %v7157_v62 = vld [vmem:[#allocation28_spill] sm:$0xff]  ;;  %v7158_v39 = vld [vmem:[#allocation31_spill] sm:$0xff] }
 0x342   :  { %v7159_v9 = vsub.f32 %v7157_v62, %v7158_v39  ;;  %v7166_v62 = vsub.f32 %v6142_v29, %v6152_v23  ;;  %v2323_v39 = vmul.f32 %v6360_v56, %v7108_v48  ;;  %v7167_v23 = vsub.f32 %v6147_v44, %v6156_v55 }
 0x343   :  { %v7168_v29 = vsub.f32 %v6161_v14, %v6165_v40  ;;  %v2263_v40 = vld [vmem:[%s7026_s3 + $0x1c8] sm:$0xff]  ;;  %v2254_v14 = vld [vmem:[%s7026_s3 + $0x180] sm:$0xff] }
 0x344   :  { %v6634_v27 = vpop.permute.xlu0 %2653  ;;  %v6636_v35 = vpop.permute.xlu1 %2648 }
 0x345   :  { %3127 = vperm.xlu0 %4650, %v7153_v7   ;;  %3082 = vperm.xlu1 %4649, %v7156_v43   ;;  %v7162_v7 = vsub.f32 %v7160_v12, %v7161_v4  ;;  %v7165_v43 = vsub.f32 %v7163_v38, %v7164_v28  ;;  %v2314_v12 = vmul.f32 %v5861_v30, %v5716_v25 }
 0x348   :  { %v6647_v10 = vpop.permute.xlu0 %2673  ;;  %v6649_v24 = vpop.permute.xlu1 %2668 }
 0x349   :  { %3137 = vperm.xlu0 %4650, %v2379_v41   ;;  %3092 = vperm.xlu1 %4649, %v7159_v9   ;;  %v2383_v9 = vsub.f32 %v2255_v42, %v2319_v26  ;;  %v2259_v26 = vld [vmem:[%s7026_s3 + $0x1a8] sm:$0xff]  ;;  %v2250_v42 = vld [vmem:[%s7026_s3 + $0x160] sm:$0xff] }
 0x34a   :  { %v2387_v30 = vsub.f32 %v2259_v26, %v2323_v39  ;;  %v2378_v56 = vsub.f32 %v2250_v42, %v2314_v12  ;;  %v7172_v12 = vld [vmem:[#allocation36_spill] sm:$0xff] }
 0x34c   :  { %v6656_v49 = vpop.permute.xlu0 %2693  ;;  %v6658_v32 = vpop.permute.xlu1 %2688 }
 0x34d   :  { %3147 = vperm.xlu0 %4650, %v7162_v7   ;;  %3102 = vperm.xlu1 %4649, %v7165_v43   ;;  %v2327_v43 = vmul.f32 %v6368_v21, %v7108_v48  ;;  %v7171_v21 = vld [vmem:[#allocation35_spill] sm:$0xff] }
 0x34e   :  { %v7173_v26 = vsub.f32 %v7171_v21, %v7172_v12  ;;  %v4484_v21 = vld [vmem:[%s7024_s4 + $0x8] sm:$0xff]  }
 0x350   :  { %v6669_v41 = vpop.permute.xlu0 %2713  ;;  %v6671_v37 = vpop.permute.xlu1 %2708 }
 0x351   :  { %3157 = vperm.xlu0 %4650, %v2383_v9   ;;  %3112 = vperm.xlu1 %4649, %v7166_v62   ;;  %v2318_v9 = vmul.f32 %v5863_v54, %v5716_v25  ;;  %v7169_v62 = vld [vmem:[#allocation34_spill] sm:$0xff]  ;;  %v2391_v54 = vsub.f32 %v2263_v40, %v2327_v43  ;;  %v2267_v43 = vld [vmem:[%s7026_s3 + $0x1e8] sm:$0xff]  ;;  %v7174_v40 = vsub.f32 %v6206_v3, %v6213_v19 }
 0x352   :  { %v7170_v39 = vsub.f32 %v6170_v34, %v7169_v62  ;;  %v2326_v19 = vmul.f32 %v5869_v58, %v5716_v25 }
 0x353   :  { %v2382_v42 = vsub.f32 %v2254_v14, %v2318_v9  ;;  %v2258_v9 = vld [vmem:[%s7026_s3 + $0x1a0] sm:$0xff] }
 0x354   :  { %v6680_v4 = vpop.permute.xlu0 %2733  ;;  %v6682_v7 = vpop.permute.xlu1 %2728 }
 0x355   :  { %3167 = vperm.xlu0 %4650, %v7167_v23   ;;  %3122 = vperm.xlu1 %4649, %v7168_v29  }
 0x358   :  { %v6696_v38 = vpop.permute.xlu0 %2753  ;;  %v6698_v28 = vpop.permute.xlu1 %2748 }
 0x359   :  { %3177 = vperm.xlu0 %4650, %v2387_v30   ;;  %3132 = vperm.xlu1 %4649, %v2378_v56   ;;  %v2331_v30 = vmul.f32 %v5874_v46, %v7108_v48  ;;  %v2322_v56 = vmul.f32 %v5867_v57, %v5716_v25  ;;  %v7175_v46 = vsub.f32 %v6218_v31, %v6227_v8  ;;  %v2262_v31 = vld [vmem:[%s7026_s3 + $0x1c0] sm:$0xff]  ;;  %v4172_v8 = vunpack.c.h.bf16 %v4484_v21 }
 0x35b   :  { %v2395_v57 = vsub.f32 %v2267_v43, %v2331_v30  ;;  %v2386_v48 = vsub.f32 %v2258_v9, %v2322_v56  ;;  %v7181_v30 = vsub.f32 %v6243_v13, %v6251_v63  ;;  %v4486_v56 = vld [vmem:[%s7024_s4 + $0x18] sm:$0xff]   ;;  %v2390_v43 = vsub.f32 %v2262_v31, %v2326_v19  ;;  %v4488_v13 = vld [vmem:[%s7024_s4 + $0x28] sm:$0xff]   ;;  %v2266_v19 = vld [vmem:[%s7026_s3 + $0x1e0] sm:$0xff] }
 0x35c   :  { %v6704_v44 = vpop.permute.xlu0 %2773  ;;  %v6706_v55 = vpop.permute.xlu1 %2768 }
 0x35d   :  { %3187 = vperm.xlu0 %4650, %v7170_v39   ;;  %3142 = vperm.xlu1 %4649, %v7173_v26   ;;  %v7178_v26 = vld [vmem:[#allocation37_spill] sm:$0xff] }
 0x360   :  { %v6720_v23 = vpop.permute.xlu0 %2793  ;;  %v6722_v29 = vpop.permute.xlu1 %2788 }
 0x361   :  { %3197 = vperm.xlu0 %4650, %v2391_v54   ;;  %3152 = vperm.xlu1 %4649, %v2382_v42   ;;  %v7179_v54 = vld [vmem:[#allocation38_spill] sm:$0xff] }
 0x362   :  { %v7180_v42 = vsub.f32 %v7178_v26, %v7179_v54 }
 0x364   :  { %v6728_v34 = vpop.permute.xlu0 %2813  ;;  %v6730_v62 = vpop.permute.xlu1 %2808 }
 0x365   :  { %3207 = vperm.xlu0 %4650, %v7174_v40   ;;  %3162 = vperm.xlu1 %4649, %v7175_v46   ;;  %v4171_v46 = vunpack.c.l.bf16 %v4484_v21  ;;  %v4179_v21 = vunpack.c.l.bf16 %v4486_v56 }
 0x367   :  { %v2848_v26 = vmul.f32 %v4171_v46, %v6381_v17  ;;  %v7184_v17 = vld [vmem:[#allocation42_spill] sm:$0xff] }
 0x368   :  { %v6744_v14 = vpop.permute.xlu0 %2833  ;;  %v6746_v39 = vpop.permute.xlu1 %2828 }
 0x369   :  { %7176 = vst [vmem:[#allocation10_spill] sm:$0xff] %v6744_v14  ;;  %7177 = vst [vmem:[#allocation11_spill] sm:$0xff] %v6746_v39  ;;  %3217 = vperm.xlu0 %4650, %v2395_v57   ;;  %3172 = vperm.xlu1 %4649, %v2386_v48   ;;  %v4180_v57 = vunpack.c.h.bf16 %v4486_v56  ;;  %v2330_v48 = vmul.f32 %v5871_v59, %v5716_v25  ;;  %v4188_v25 = vunpack.c.h.bf16 %v4488_v13  ;;  %v4187_v14 = vunpack.c.l.bf16 %v4488_v13 }
 0x36b   :  { %v2394_v59 = vsub.f32 %v2266_v19, %v2330_v48  ;;  %v2857_v56 = vmul.f32 %v4188_v25, %v6418_v47  ;;  %v2856_v48 = vmul.f32 %v4187_v14, %v6406_v53  ;;  %v4492_v19 = vld [vmem:[%s7024_s4 + $0x48] sm:$0xff]  }
 0x36c   :  { %v2928_v3 = vpop.permute.xlu0 %2927  ;;  %v2544_v12 = vpop.permute.xlu1 %2543  ;;  %v7186_v53 = vld [vmem:[#allocation41_spill] sm:$0xff]  ;;  %v4204_v25 = vunpack.c.h.bf16 %v4492_v19 }
 0x36d   :  { %3227 = vperm.xlu0 %4650, %v7180_v42   ;;  %3182 = vperm.xlu1 %4649, %v7181_v30   ;;  %v2849_v58 = vmul.f32 %v4172_v8, %v2544_v12  ;;  %v7182_v42 = vld [vmem:[#allocation39_spill] sm:$0xff] }
 0x36e   :  { %v7183_v30 = vsub.f32 %v6248_v60, %v7182_v42 }
 0x36f   :  { %v3233_v63 = vadd.f32 %v2928_v3, %v2849_v58  ;;  %v4490_v3 = vld [vmem:[%s7024_s4 + $0x38] sm:$0xff]  }
 0x370   :  { %v2948_v9 = vpop.permute.xlu0 %2947  ;;  %v2564_v40 = vpop.permute.xlu1 %2563  ;;  %v4196_v60 = vunpack.c.h.bf16 %v4490_v3  ;;  %v4195_v47 = vunpack.c.l.bf16 %v4490_v3 }
 0x371   :  { %3192 = vperm.xlu1 %4649, %v2390_v43   ;;  %v2853_v54 = vmul.f32 %v4180_v57, %v2564_v40  ;;  %v2852_v43 = vmul.f32 %v4179_v21, %v7184_v17  ;;  %v3297_v58 = vmax.f32 %v3233_v63, 0.0 }
 0x373   :  { %v3237_v40 = vadd.f32 %v2948_v9, %v2853_v54 }
 0x374   :  { %v2968_v12 = vpop.permute.xlu0 %2967  ;;  %v2923_v31 = vpop.permute.xlu1 %2922 }
 0x375   :  { %v3232_v8 = vadd.f32 %v2923_v31, %v2848_v26  ;;  %3202 = vperm.xlu1 %4649, %v7183_v30   ;;  %v3301_v21 = vmax.f32 %v3237_v40, 0.0  ;;  %v3241_v42 = vadd.f32 %v2968_v12, %v2857_v56  ;;  %v7185_v30 = vld [vmem:[#allocation40_spill] sm:$0xff]  ;;  %v4494_v12 = vld [vmem:[%s7024_s4 + $0x58] sm:$0xff]  }
 0x376   :  { %v7187_v14 = vsub.f32 %v7185_v30, %v7186_v53  ;;  %v7189_v56 = vld [vmem:[#allocation4_spill] sm:$0xff]  ;;  %v7191_v53 = vld [vmem:[#allocation7_spill] sm:$0xff] }
 0x377   :  { %v3296_v46 = vmax.f32 %v3232_v8, 0.0 }
 0x378   :  { %v2988_v57 = vpop.permute.xlu0 %2987  ;;  %v2943_v39 = vpop.permute.xlu1 %2942 }
 0x379   :  { %v4301_v26 = vpack.c.bf16 %v3297_v58, %v3296_v46  ;;  %v3236_v31 = vadd.f32 %v2943_v39, %v2852_v43  ;;  %3212 = vperm.xlu1 %4649, %v2394_v59   ;;  %v2861_v39 = vmul.f32 %v4196_v60, %v6432_v18  ;;  %v7188_v59 = vld [vmem:[#allocation44_spill] sm:$0xff]  ;;  %v3305_v43 = vmax.f32 %v3241_v42, 0.0 }
 0x37a   :  { %v2860_v17 = vmul.f32 %v4195_v47, %v7188_v59  ;;  %v4203_v46 = vunpack.c.l.bf16 %v4492_v19 }
 0x37b   :  { %4515 = vst [vmem:[%s7024_s4 + $0x8] sm:$0xff] %v4301_v26   ;;  %v3300_v9 = vmax.f32 %v3236_v31, 0.0  ;;  %v3245_v58 = vadd.f32 %v2988_v57, %v2861_v39  ;;  %v2865_v26 = vmul.f32 %v4204_v25, %v7189_v56 }
 0x37c   :  { %v3008_v13 = vpop.permute.xlu0 %3007  ;;  %v2963_v63 = vpop.permute.xlu1 %2962 }
 0x37d   :  { %v4311_v54 = vpack.c.bf16 %v3301_v21, %v3300_v9  ;;  %v3240_v8 = vadd.f32 %v2963_v63, %v2856_v48  ;;  %3222 = vperm.xlu1 %4649, %v7187_v14   ;;  %v4212_v48 = vunpack.c.h.bf16 %v4494_v12  ;;  %v7190_v21 = vld [vmem:[#allocation45_spill] sm:$0xff]  ;;  %v3309_v63 = vmax.f32 %v3245_v58, 0.0 }
 0x37e   :  { %v2864_v9 = vmul.f32 %v4203_v46, %v7190_v21  ;;  %v3249_v47 = vadd.f32 %v3008_v13, %v2865_v26 }
 0x37f   :  { %4517 = vst [vmem:[%s7024_s4 + $0x18] sm:$0xff] %v4311_v54   ;;  %v3304_v18 = vmax.f32 %v3240_v8, 0.0  ;;  %v4211_v54 = vunpack.c.l.bf16 %v4494_v12  ;;  %v2869_v8 = vmul.f32 %v4212_v48, %v6460_v6  ;;  %v4166_v12 = vld [vmem:[%s7024_s4] sm:$0xff]  }
 0x380   :  { %v3028_v3 = vpop.permute.xlu0 %3027  ;;  %v2983_v40 = vpop.permute.xlu1 %2982  ;;  %v3313_v25 = vmax.f32 %v3249_v47, 0.0  ;;  %v4168_v26 = vunpack.c.h.bf16 %v4166_v12  ;;  %v7192_v47 = vld [vmem:[#allocation43_spill] sm:$0xff] }
 0x381   :  { %v4321_v31 = vpack.c.bf16 %v3305_v43, %v3304_v18  ;;  %v3244_v60 = vadd.f32 %v2983_v40, %v2860_v17  ;;  %v2868_v14 = vmul.f32 %v4211_v54, %v7191_v53  ;;  %v3253_v59 = vadd.f32 %v3028_v3, %v2869_v8 }
 0x383   :  { %4519 = vst [vmem:[%s7024_s4 + $0x28] sm:$0xff] %v4321_v31   ;;  %v3308_v57 = vmax.f32 %v3244_v60, 0.0  ;;  %v3317_v6 = vmax.f32 %v3253_v59, 0.0  ;;  %v4485_v31 = vld [vmem:[%s7024_s4 + $0x10] sm:$0xff]  }
 0x384   :  { %v2918_v42 = vpop.permute.xlu0 %2917  ;;  %v3003_v39 = vpop.permute.xlu1 %3002  ;;  %v4175_v53 = vunpack.c.l.bf16 %v4485_v31 }
 0x385   :  { %v4331_v19 = vpack.c.bf16 %v3309_v63, %v3308_v57  ;;  %v3248_v30 = vadd.f32 %v3003_v39, %v2864_v9  ;;  %v4167_v9 = vunpack.c.l.bf16 %v4166_v12  ;;  %v4176_v63 = vunpack.c.h.bf16 %v4485_v31  ;;  %v4487_v39 = vld [vmem:[%s7024_s4 + $0x20] sm:$0xff]  }
 0x386   :  { %v2850_v59 = vmul.f32 %v4175_v53, %v6580_v22  ;;  %v4491_v22 = vld [vmem:[%s7024_s4 + $0x40] sm:$0xff]  }
 0x387   :  { %4521 = vst [vmem:[%s7024_s4 + $0x38] sm:$0xff] %v4331_v19   ;;  %v3312_v13 = vmax.f32 %v3248_v30, 0.0  ;;  %v2846_v57 = vmul.f32 %v4167_v9, %v7192_v47 }
 0x388   :  { %v2938_v17 = vpop.permute.xlu0 %2937  ;;  %v3023_v43 = vpop.permute.xlu1 %3022 }
 0x389   :  { %v4341_v58 = vpack.c.bf16 %v3313_v25, %v3312_v13  ;;  %v3252_v18 = vadd.f32 %v3023_v43, %v2868_v14  ;;  %v4184_v25 = vunpack.c.h.bf16 %v4487_v39  ;;  %v4489_v13 = vld [vmem:[%s7024_s4 + $0x30] sm:$0xff]  }
 0x38a   :  { %v4191_v47 = vunpack.c.l.bf16 %v4489_v13 }
 0x38b   :  { %4523 = vst [vmem:[%s7024_s4 + $0x48] sm:$0xff] %v4341_v58   ;;  %v3316_v40 = vmax.f32 %v3252_v18, 0.0 }
 0x38c   :  { %v2958_v3 = vpop.permute.xlu0 %2957  ;;  %v2534_v46 = vpop.permute.xlu1 %2533 }
 0x38d   :  { %v4351_v56 = vpack.c.bf16 %v3317_v6, %v3316_v40  ;;  %v2847_v60 = vmul.f32 %v4168_v26, %v2534_v46  ;;  %v2855_v40 = vmul.f32 %v4184_v25, %v6590_v51  ;;  %v4192_v26 = vunpack.c.h.bf16 %v4489_v13 }
 0x38f   :  { %4525 = vst [vmem:[%s7024_s4 + $0x58] sm:$0xff] %v4351_v56   ;;  %v3231_v54 = vadd.f32 %v2918_v42, %v2847_v60  ;;  %v4183_v42 = vunpack.c.l.bf16 %v4487_v39  ;;  %v3239_v60 = vadd.f32 %v2958_v3, %v2855_v40  ;;  %v2859_v51 = vmul.f32 %v4192_v26, %v6603_v61  ;;  %v4493_v3 = vld [vmem:[%s7024_s4 + $0x50] sm:$0xff]  }
 0x390   :  { %v2978_v48 = vpop.permute.xlu0 %2977  ;;  %v2554_v21 = vpop.permute.xlu1 %2553 }
 0x391   :  { %v2851_v8 = vmul.f32 %v4176_v63, %v2554_v21  ;;  %v3295_v43 = vmax.f32 %v3231_v54, 0.0  ;;  %v2854_v31 = vmul.f32 %v4183_v42, %v6592_v52  ;;  %v4200_v54 = vunpack.c.h.bf16 %v4491_v22 }
 0x392   :  { %v2858_v52 = vmul.f32 %v4191_v47, %v6605_v0 }
 0x393   :  { %v3235_v58 = vadd.f32 %v2938_v17, %v2851_v8  ;;  %v3303_v8 = vmax.f32 %v3239_v60, 0.0  ;;  %v2863_v61 = vmul.f32 %v4200_v54, %v6612_v5 }
 0x394   :  { %v2998_v19 = vpop.permute.xlu0 %2997  ;;  %v2913_v30 = vpop.permute.xlu1 %2912 }
 0x395   :  { %v3230_v14 = vadd.f32 %v2913_v30, %v2846_v57  ;;  %v3299_v21 = vmax.f32 %v3235_v58, 0.0  ;;  %v3243_v30 = vadd.f32 %v2978_v48, %v2859_v51  ;;  %v4208_v58 = vunpack.c.h.bf16 %v4493_v3 }
 0x397   :  { %v3294_v18 = vmax.f32 %v3230_v14, 0.0  ;;  %v3307_v48 = vmax.f32 %v3243_v30, 0.0  ;;  %v2867_v5 = vmul.f32 %v4208_v58, %v6625_v15 }
 0x398   :  { %v3018_v12 = vpop.permute.xlu0 %3017  ;;  %v2933_v6 = vpop.permute.xlu1 %2932 }
 0x399   :  { %v4296_v46 = vpack.c.bf16 %v3295_v43, %v3294_v18  ;;  %v3234_v56 = vadd.f32 %v2933_v6, %v2850_v59  ;;  %v4199_v59 = vunpack.c.l.bf16 %v4491_v22  ;;  %v4495_v18 = vld [vmem:[%s7024_s4 + $0x60] sm:$0xff]   ;;  %v3247_v6 = vadd.f32 %v2998_v19, %v2863_v61 }
 0x39a   :  { %v4216_v22 = vunpack.c.h.bf16 %v4495_v18  ;;  %v4215_v47 = vunpack.c.l.bf16 %v4495_v18 }
 0x39b   :  { %4297 = vst [vmem:[%s7024_s4] sm:$0xff] %v4296_v46   ;;  %v3298_v17 = vmax.f32 %v3234_v56, 0.0  ;;  %v2862_v0 = vmul.f32 %v4199_v59, %v6614_v45  ;;  %v4207_v56 = vunpack.c.l.bf16 %v4493_v3  ;;  %v4496_v45 = vld [vmem:[%s7024_s4 + $0x68] sm:$0xff]   ;;  %v3311_v19 = vmax.f32 %v3247_v6, 0.0 }
 0x39c   :  { %v3038_v9 = vpop.permute.xlu0 %3037  ;;  %v2953_v63 = vpop.permute.xlu1 %2952  ;;  %v2871_v15 = vmul.f32 %v4216_v22, %v6634_v27  ;;  %v4220_v54 = vunpack.c.h.bf16 %v4496_v45  ;;  %v4219_v27 = vunpack.c.l.bf16 %v4496_v45 }
 0x39d   :  { %v4306_v57 = vpack.c.bf16 %v3299_v21, %v3298_v17  ;;  %v3238_v39 = vadd.f32 %v2953_v63, %v2854_v31  ;;  %v2866_v60 = vmul.f32 %v4207_v56, %v6627_v20  ;;  %v3251_v21 = vadd.f32 %v3018_v12, %v2867_v5  ;;  %v4497_v20 = vld [vmem:[%s7024_s4 + $0x70] sm:$0xff]   ;;  %v4499_v56 = vld [vmem:[%s7024_s4 + $0x80] sm:$0xff]  }
 0x39e   :  { %v3255_v3 = vadd.f32 %v3038_v9, %v2871_v15  ;;  %v4223_v6 = vunpack.c.l.bf16 %v4497_v20 }
 0x39f   :  { %4516 = vst [vmem:[%s7024_s4 + $0x10] sm:$0xff] %v4306_v57   ;;  %v3302_v53 = vmax.f32 %v3238_v39, 0.0  ;;  %v3315_v12 = vmax.f32 %v3251_v21, 0.0 }
 0x3a0   :  { %v3048_v14 = vpop.permute.xlu0 %3047  ;;  %v2973_v25 = vpop.permute.xlu1 %2972  ;;  %v3319_v9 = vmax.f32 %v3255_v3, 0.0  ;;  %v4501_v3 = vld [vmem:[%s7024_s4 + $0x90] sm:$0xff]  }
 0x3a1   :  { %v4316_v13 = vpack.c.bf16 %v3303_v8, %v3302_v53  ;;  %v3242_v43 = vadd.f32 %v2973_v25, %v2858_v52  ;;  %v2870_v52 = vmul.f32 %v4215_v47, %v6636_v35  ;;  %v2873_v25 = vmul.f32 %v4220_v54, %v6472_v11 }
 0x3a2   :  { %v2872_v35 = vmul.f32 %v4219_v27, %v6462_v50  ;;  %v2874_v50 = vmul.f32 %v4223_v6, %v6649_v24  ;;  %v4231_v54 = vunpack.c.l.bf16 %v4499_v56 }
 0x3a3   :  { %4518 = vst [vmem:[%s7024_s4 + $0x20] sm:$0xff] %v4316_v13   ;;  %v3306_v40 = vmax.f32 %v3242_v43, 0.0  ;;  %v4224_v13 = vunpack.c.h.bf16 %v4497_v20  ;;  %v4498_v43 = vld [vmem:[%s7024_s4 + $0x78] sm:$0xff]   ;;  %v3257_v58 = vadd.f32 %v3048_v14, %v2873_v25 }
 0x3a4   :  { %v3058_v42 = vpop.permute.xlu0 %3057  ;;  %v2993_v46 = vpop.permute.xlu1 %2992  ;;  %v4228_v5 = vunpack.c.h.bf16 %v4498_v43 }
 0x3a5   :  { %v4326_v26 = vpack.c.bf16 %v3307_v48, %v3306_v40  ;;  %v3246_v31 = vadd.f32 %v2993_v46, %v2862_v0  ;;  %v2875_v11 = vmul.f32 %v4224_v13, %v6647_v10  ;;  %v3321_v14 = vmax.f32 %v3257_v58, 0.0 }
 0x3a6   :  { %v4227_v10 = vunpack.c.l.bf16 %v4498_v43  ;;  %v4502_v43 = vld [vmem:[%s7024_s4 + $0x98] sm:$0xff]  }
 0x3a7   :  { %4520 = vst [vmem:[%s7024_s4 + $0x30] sm:$0xff] %v4326_v26   ;;  %v3310_v17 = vmax.f32 %v3246_v31, 0.0  ;;  %v3259_v26 = vadd.f32 %v3058_v42, %v2875_v11  ;;  %v4239_v11 = vunpack.c.l.bf16 %v4501_v3 }
 0x3a8   :  { %v3068_v63 = vpop.permute.xlu0 %3067  ;;  %v3013_v51 = vpop.permute.xlu1 %3012  ;;  %v2876_v24 = vmul.f32 %v4227_v10, %v6474_v33  ;;  %v2878_v33 = vmul.f32 %v4231_v54, %v6658_v32 }
 0x3a9   :  { %v4336_v57 = vpack.c.bf16 %v3311_v19, %v3310_v17  ;;  %v3250_v39 = vadd.f32 %v3013_v51, %v2866_v60  ;;  %v2877_v60 = vmul.f32 %v4228_v5, %v6481_v36  ;;  %v4232_v17 = vunpack.c.h.bf16 %v4499_v56  ;;  %v4500_v51 = vld [vmem:[%s7024_s4 + $0x88] sm:$0xff]   ;;  %v4503_v5 = vld [vmem:[%s7024_s4 + $0xa0] sm:$0xff]  }
 0x3aa   :  { %v3323_v42 = vmax.f32 %v3259_v26, 0.0 }
 0x3ab   :  { %4522 = vst [vmem:[%s7024_s4 + $0x40] sm:$0xff] %v4336_v57   ;;  %v3314_v8 = vmax.f32 %v3250_v39, 0.0  ;;  %v3261_v15 = vadd.f32 %v3068_v63, %v2877_v60  ;;  %v2879_v36 = vmul.f32 %v4232_v17, %v6656_v49  ;;  %v4235_v49 = vunpack.c.l.bf16 %v4500_v51 }
 0x3ac   :  { %v3078_v30 = vpop.permute.xlu0 %3077  ;;  %v3033_v53 = vpop.permute.xlu1 %3032  ;;  %v4248_v60 = vunpack.c.h.bf16 %v4503_v5 }
 0x3ad   :  { %v4346_v61 = vpack.c.bf16 %v3315_v12, %v3314_v8  ;;  %v3254_v59 = vadd.f32 %v3033_v53, %v2870_v52  ;;  %v4236_v12 = vunpack.c.h.bf16 %v4500_v51  ;;  %v3325_v63 = vmax.f32 %v3261_v15, 0.0 }
 0x3ae   :  { %v3263_v8 = vadd.f32 %v3078_v30, %v2879_v36  ;;  %v2880_v32 = vmul.f32 %v4235_v49, %v6483_v2  ;;  %v2882_v2 = vmul.f32 %v4239_v11, %v6671_v37  ;;  %v7193_v37 = vld [vmem:[#allocation6_spill] sm:$0xff]  ;;  %v4247_v15 = vunpack.c.l.bf16 %v4503_v5 }
 0x3af   :  { %4524 = vst [vmem:[%s7024_s4 + $0x50] sm:$0xff] %v4346_v61   ;;  %v3318_v0 = vmax.f32 %v3254_v59, 0.0  ;;  %v2881_v61 = vmul.f32 %v4236_v12, %v6493_v16 }
 0x3b0   :  { %v3088_v18 = vpop.permute.xlu0 %3087  ;;  %v3043_v48 = vpop.permute.xlu1 %3042  ;;  %v3327_v30 = vmax.f32 %v3263_v8, 0.0  ;;  %v2886_v54 = vmul.f32 %v4247_v15, %v6682_v7  ;;  %v7195_v7 = vld [vmem:[#allocation8_spill] sm:$0xff] }
 0x3b1   :  { %v4356_v40 = vpack.c.bf16 %v3319_v9, %v3318_v0  ;;  %v3256_v46 = vadd.f32 %v3043_v48, %v2872_v35  ;;  %v4240_v35 = vunpack.c.h.bf16 %v4501_v3  ;;  %v3265_v9 = vadd.f32 %v3088_v18, %v2881_v61 }
 0x3b3   :  { %4526 = vst [vmem:[%s7024_s4 + $0x60] sm:$0xff] %v4356_v40   ;;  %v3320_v31 = vmax.f32 %v3256_v46, 0.0  ;;  %v2883_v16 = vmul.f32 %v4240_v35, %v6669_v41  ;;  %v4244_v46 = vunpack.c.h.bf16 %v4502_v43  ;;  %v3329_v18 = vmax.f32 %v3265_v9, 0.0 }
 0x3b4   :  { %v3098_v22 = vpop.permute.xlu0 %3097  ;;  %v3053_v45 = vpop.permute.xlu1 %3052  ;;  %v4243_v41 = vunpack.c.l.bf16 %v4502_v43 }
 0x3b5   :  { %v4361_v19 = vpack.c.bf16 %v3321_v14, %v3320_v31  ;;  %v3258_v21 = vadd.f32 %v3053_v45, %v2874_v50  ;;  %v3267_v50 = vadd.f32 %v3098_v22, %v2883_v16  ;;  %v2885_v31 = vmul.f32 %v4244_v46, %v6508_v1 }
 0x3b6   :  { %v2887_v1 = vmul.f32 %v4248_v60, %v6680_v4 }
 0x3b7   :  { %4527 = vst [vmem:[%s7024_s4 + $0x68] sm:$0xff] %v4361_v19   ;;  %v3322_v47 = vmax.f32 %v3258_v21, 0.0  ;;  %v2884_v19 = vmul.f32 %v4243_v41, %v7193_v37  ;;  %v4504_v21 = vld [vmem:[%s7024_s4 + $0xa8] sm:$0xff]   ;;  %v3331_v22 = vmax.f32 %v3267_v50, 0.0 }
 0x3b8   :  { %v3108_v57 = vpop.permute.xlu0 %3107  ;;  %v3063_v39 = vpop.permute.xlu1 %3062  ;;  %v4252_v36 = vunpack.c.h.bf16 %v4504_v21  ;;  %v4251_v4 = vunpack.c.l.bf16 %v4504_v21 }
 0x3b9   :  { %v4366_v52 = vpack.c.bf16 %v3323_v42, %v3322_v47  ;;  %v3260_v20 = vadd.f32 %v3063_v39, %v2876_v24  ;;  %v3269_v17 = vadd.f32 %v3108_v57, %v2885_v31 }
 0x3ba   :  { %v2888_v61 = vmul.f32 %v4251_v4, %v7195_v7  ;;  %v4510_v4 = vld [vmem:[%s7024_s4 + $0xd8] sm:$0xff]  }
 0x3bb   :  { %4528 = vst [vmem:[%s7024_s4 + $0x70] sm:$0xff] %v4366_v52   ;;  %v3324_v53 = vmax.f32 %v3260_v20, 0.0  ;;  %v4505_v52 = vld [vmem:[%s7024_s4 + $0xb0] sm:$0xff]   ;;  %v3333_v57 = vmax.f32 %v3269_v17, 0.0 }
 0x3bc   :  { %v3118_v27 = vpop.permute.xlu0 %3117  ;;  %v3073_v25 = vpop.permute.xlu1 %3072  ;;  %v4256_v49 = vunpack.c.h.bf16 %v4505_v52  ;;  %v4255_v9 = vunpack.c.l.bf16 %v4505_v52 }
 0x3bd   :  { %v4371_v59 = vpack.c.bf16 %v3325_v63, %v3324_v53  ;;  %v3262_v13 = vadd.f32 %v3073_v25, %v2878_v33  ;;  %v3271_v20 = vadd.f32 %v3118_v27, %v2887_v1  ;;  %v7194_v63 = vld [vmem:[#allocation5_spill] sm:$0xff]  ;;  %v4509_v1 = vld [vmem:[%s7024_s4 + $0xd0] sm:$0xff]  }
 0x3be   :  { %v2889_v8 = vmul.f32 %v4252_v36, %v7194_v63  ;;  %v2890_v11 = vmul.f32 %v4255_v9, %v6698_v28  ;;  %v7197_v28 = vld [vmem:[#allocation46_spill] sm:$0xff] }
 0x3bf   :  { %4529 = vst [vmem:[%s7024_s4 + $0x78] sm:$0xff] %v4371_v59   ;;  %v3326_v58 = vmax.f32 %v3262_v13, 0.0  ;;  %v4506_v59 = vld [vmem:[%s7024_s4 + $0xb8] sm:$0xff]   ;;  %v3335_v27 = vmax.f32 %v3271_v20, 0.0 }
 0x3c0   :  { %v3128_v0 = vpop.permute.xlu0 %3127  ;;  %v3083_v48 = vpop.permute.xlu1 %3082  ;;  %v4260_v16 = vunpack.c.h.bf16 %v4506_v59  ;;  %v4259_v5 = vunpack.c.l.bf16 %v4506_v59  ;;  %v4276_v59 = vunpack.c.h.bf16 %v4510_v4 }
 0x3c1   :  { %v4376_v6 = vpack.c.bf16 %v3327_v30, %v3326_v58  ;;  %v3264_v40 = vadd.f32 %v3083_v48, %v2880_v32  ;;  %v3273_v13 = vadd.f32 %v3128_v0, %v2889_v8  ;;  %v2891_v30 = vmul.f32 %v4256_v49, %v6696_v38  ;;  %v7196_v38 = vld [vmem:[#allocation9_spill] sm:$0xff] }
 0x3c2   :  { %v2892_v31 = vmul.f32 %v4259_v5, %v7197_v28  ;;  %v4271_v49 = vunpack.c.l.bf16 %v4509_v1 }
 0x3c3   :  { %4530 = vst [vmem:[%s7024_s4 + $0x80] sm:$0xff] %v4376_v6   ;;  %v3328_v56 = vmax.f32 %v3264_v40, 0.0  ;;  %v4507_v6 = vld [vmem:[%s7024_s4 + $0xc0] sm:$0xff]   ;;  %v3337_v0 = vmax.f32 %v3273_v13, 0.0 }
 0x3c4   :  { %v3138_v14 = vpop.permute.xlu0 %3137  ;;  %v3093_v26 = vpop.permute.xlu1 %3092  ;;  %v4263_v21 = vunpack.c.l.bf16 %v4507_v6  ;;  %v2898_v13 = vmul.f32 %v4271_v49, %v6722_v29  ;;  %v7206_v49 = vld [vmem:[#allocation53_spill] sm:$0xff] }
 0x3c5   :  { %v4381_v45 = vpack.c.bf16 %v3329_v18, %v3328_v56  ;;  %v3266_v10 = vadd.f32 %v3093_v26, %v2882_v2  ;;  %v3275_v40 = vadd.f32 %v3138_v14, %v2891_v30  ;;  %v2893_v18 = vmul.f32 %v4260_v16, %v7196_v38 }
 0x3c6   :  { %v4264_v26 = vunpack.c.h.bf16 %v4507_v6 }
 0x3c7   :  { %4531 = vst [vmem:[%s7024_s4 + $0x88] sm:$0xff] %v4381_v45   ;;  %v3330_v24 = vmax.f32 %v3266_v10, 0.0  ;;  %v4508_v45 = vld [vmem:[%s7024_s4 + $0xc8] sm:$0xff]   ;;  %v3339_v14 = vmax.f32 %v3275_v40, 0.0 }
 0x3c8   :  { %v3148_v51 = vpop.permute.xlu0 %3147  ;;  %v3103_v42 = vpop.permute.xlu1 %3102  ;;  %v4512_v40 = vld [vmem:[%s7024_s4 + $0xe8] sm:$0xff]  }
 0x3c9   :  { %v4386_v47 = vpack.c.bf16 %v3331_v22, %v3330_v24  ;;  %v3268_v39 = vadd.f32 %v3103_v42, %v2884_v19  ;;  %v3277_v10 = vadd.f32 %v3148_v51, %v2893_v18  ;;  %v2895_v19 = vmul.f32 %v4264_v26, %v6704_v44 }
 0x3ca   :  { %v4268_v24 = vunpack.c.h.bf16 %v4508_v45  ;;  %v2894_v42 = vmul.f32 %v4263_v21, %v6706_v55  ;;  %v4267_v44 = vunpack.c.l.bf16 %v4508_v45  ;;  %v7199_v55 = vld [vmem:[#allocation47_spill] sm:$0xff]  ;;  %v4284_v28 = vunpack.c.h.bf16 %v4512_v40  ;;  %v4513_v45 = vld [vmem:[%s7024_s4 + $0xf0] sm:$0xff]  }
 0x3cb   :  { %4532 = vst [vmem:[%s7024_s4 + $0x90] sm:$0xff] %v4386_v47   ;;  %v3332_v12 = vmax.f32 %v3268_v39, 0.0  ;;  %v3341_v15 = vmax.f32 %v3277_v10, 0.0 }
 0x3cc   :  { %v3158_v33 = vpop.permute.xlu0 %3157  ;;  %v3113_v3 = vpop.permute.xlu1 %3112 }
 0x3cd   :  { %v4391_v53 = vpack.c.bf16 %v3333_v57, %v3332_v12  ;;  %v3270_v25 = vadd.f32 %v3113_v3, %v2886_v54  ;;  %v3279_v51 = vadd.f32 %v3158_v33, %v2895_v19  ;;  %v7198_v54 = vld [vmem:[#allocation48_spill] sm:$0xff]  ;;  %v4272_v12 = vunpack.c.h.bf16 %v4509_v1 }
 0x3ce   :  { %v2897_v52 = vmul.f32 %v4268_v24, %v7198_v54  ;;  %v2896_v3 = vmul.f32 %v4267_v44, %v7199_v55  ;;  %v4283_v19 = vunpack.c.l.bf16 %v4512_v40  ;;  %v4288_v24 = vunpack.c.h.bf16 %v4513_v45  ;;  %v7204_v44 = vld [vmem:[#allocation10_spill] sm:$0xff]  ;;  %v7205_v55 = vld [vmem:[#allocation11_spill] sm:$0xff] }
 0x3cf   :  { %4533 = vst [vmem:[%s7024_s4 + $0x98] sm:$0xff] %v4391_v53   ;;  %v3334_v35 = vmax.f32 %v3270_v25, 0.0  ;;  %v3343_v33 = vmax.f32 %v3279_v51, 0.0  ;;  %v2899_v25 = vmul.f32 %v4272_v12, %v6720_v23  ;;  %v4275_v23 = vunpack.c.l.bf16 %v4510_v4 }
 0x3d0   :  { %v3168_v32 = vpop.permute.xlu0 %3167  ;;  %v3123_v43 = vpop.permute.xlu1 %3122  ;;  %v2907_v54 = vmul.f32 %v4288_v24, %v7204_v44 }
 0x3d1   :  { %v4396_v58 = vpack.c.bf16 %v3335_v27, %v3334_v35  ;;  %v3272_v48 = vadd.f32 %v3123_v43, %v2888_v61  ;;  %v3281_v63 = vadd.f32 %v3168_v32, %v2897_v52  ;;  %v4511_v35 = vld [vmem:[%s7024_s4 + $0xe0] sm:$0xff]   ;;  %v4287_v52 = vunpack.c.l.bf16 %v4513_v45 }
 0x3d2   :  { %v4280_v6 = vunpack.c.h.bf16 %v4511_v35 }
 0x3d3   :  { %4534 = vst [vmem:[%s7024_s4 + $0xa0] sm:$0xff] %v4396_v58   ;;  %v3336_v46 = vmax.f32 %v3272_v48, 0.0  ;;  %v3345_v32 = vmax.f32 %v3281_v63, 0.0  ;;  %v7200_v58 = vld [vmem:[#allocation12_spill] sm:$0xff] }
 0x3d4   :  { %v3133_v2 = vpop.permute.xlu1 %3132  ;;  %v3178_v41 = vpop.permute.xlu0 %3177  ;;  %v2901_v48 = vmul.f32 %v4276_v59, %v7200_v58 }
 0x3d5   :  { %v4401_v50 = vpack.c.bf16 %v3337_v0, %v3336_v46  ;;  %v3274_v56 = vadd.f32 %v3133_v2, %v2890_v11  ;;  %v3283_v43 = vadd.f32 %v3178_v41, %v2899_v25  ;;  %v7201_v0 = vld [vmem:[#allocation49_spill] sm:$0xff] }
 0x3d6   :  { %v2900_v29 = vmul.f32 %v4275_v23, %v7201_v0 }
 0x3d7   :  { %4535 = vst [vmem:[%s7024_s4 + $0xa8] sm:$0xff] %v4401_v50   ;;  %v3338_v60 = vmax.f32 %v3274_v56, 0.0  ;;  %v3347_v46 = vmax.f32 %v3283_v43, 0.0  ;;  %v2903_v50 = vmul.f32 %v4280_v6, %v6728_v34  ;;  %v4279_v56 = vunpack.c.l.bf16 %v4511_v35  ;;  %v7202_v34 = vld [vmem:[#allocation51_spill] sm:$0xff] }
 0x3d8   :  { %v3143_v37 = vpop.permute.xlu1 %3142  ;;  %v3188_v39 = vpop.permute.xlu0 %3187  ;;  %v2905_v21 = vmul.f32 %v4284_v28, %v7202_v34 }
 0x3d9   :  { %v4406_v22 = vpack.c.bf16 %v3339_v14, %v3338_v60  ;;  %v3276_v17 = vadd.f32 %v3143_v37, %v2892_v31  ;;  %v3285_v2 = vadd.f32 %v3188_v39, %v2901_v48  ;;  %v2902_v31 = vmul.f32 %v4279_v56, %v6730_v62  ;;  %v7203_v62 = vld [vmem:[#allocation50_spill] sm:$0xff] }
 0x3da   :  { %v2904_v1 = vmul.f32 %v4283_v19, %v7203_v62 }
 0x3db   :  { %4536 = vst [vmem:[%s7024_s4 + $0xb0] sm:$0xff] %v4406_v22   ;;  %v3340_v47 = vmax.f32 %v3276_v17, 0.0  ;;  %v3349_v14 = vmax.f32 %v3285_v2, 0.0 }
 0x3dc   :  { %v3153_v36 = vpop.permute.xlu1 %3152  ;;  %v3198_v27 = vpop.permute.xlu0 %3197 }
 0x3dd   :  { %v4411_v57 = vpack.c.bf16 %v3341_v15, %v3340_v47  ;;  %v3278_v20 = vadd.f32 %v3153_v36, %v2894_v42  ;;  %v3287_v10 = vadd.f32 %v3198_v27, %v2903_v50  ;;  %v4514_v15 = vld [vmem:[%s7024_s4 + $0xf8] sm:$0xff]   ;;  %v7207_v27 = vld [vmem:[#allocation52_spill] sm:$0xff] }
 0x3de   :  { %v4292_v12 = vunpack.c.h.bf16 %v4514_v15  ;;  %v4291_v25 = vunpack.c.l.bf16 %v4514_v15 }
 0x3df   :  { %4537 = vst [vmem:[%s7024_s4 + $0xb8] sm:$0xff] %v4411_v57   ;;  %v3342_v8 = vmax.f32 %v3278_v20, 0.0  ;;  %v3351_v51 = vmax.f32 %v3287_v10, 0.0 }
 0x3e0   :  { %v3163_v53 = vpop.permute.xlu1 %3162  ;;  %v3208_v38 = vpop.permute.xlu0 %3207 }
 0x3e1   :  { %v4416_v7 = vpack.c.bf16 %v3343_v33, %v3342_v8  ;;  %v3280_v61 = vadd.f32 %v3163_v53, %v2896_v3  ;;  %v3289_v47 = vadd.f32 %v3208_v38, %v2905_v21  ;;  %v2906_v3 = vmul.f32 %v4287_v52, %v7205_v55 }
 0x3e3   :  { %4538 = vst [vmem:[%s7024_s4 + $0xc0] sm:$0xff] %v4416_v7   ;;  %v3344_v30 = vmax.f32 %v3280_v61, 0.0  ;;  %v3353_v4 = vmax.f32 %v3289_v47, 0.0  ;;  %v2909_v7 = vmul.f32 %v4292_v12, %v7206_v49 }
 0x3e4   :  { %v3173_v9 = vpop.permute.xlu1 %3172  ;;  %v3218_v42 = vpop.permute.xlu0 %3217 }
 0x3e5   :  { %v4421_v16 = vpack.c.bf16 %v3345_v32, %v3344_v30  ;;  %v3282_v11 = vadd.f32 %v3173_v9, %v2898_v13  ;;  %v3291_v33 = vadd.f32 %v3218_v42, %v2907_v54  ;;  %v2908_v13 = vmul.f32 %v4291_v25, %v7207_v27 }
 0x3e7   :  { %4539 = vst [vmem:[%s7024_s4 + $0xc8] sm:$0xff] %v4421_v16   ;;  %v3346_v5 = vmax.f32 %v3282_v11, 0.0  ;;  %v3355_v35 = vmax.f32 %v3291_v33, 0.0 }
 0x3e8   :  { %v3183_v18 = vpop.permute.xlu1 %3182  ;;  %v3228_v8 = vpop.permute.xlu0 %3227 }
 0x3e9   :  { %v4426_v26 = vpack.c.bf16 %v3347_v46, %v3346_v5  ;;  %v3284_v41 = vadd.f32 %v3183_v18, %v2900_v29  ;;  %v3293_v32 = vadd.f32 %v3228_v8, %v2909_v7 }
 0x3eb   :  { %4540 = vst [vmem:[%s7024_s4 + $0xd0] sm:$0xff] %v4426_v26   ;;  %v3348_v60 = vmax.f32 %v3284_v41, 0.0  ;;  %v3357_v58 = vmax.f32 %v3293_v32, 0.0 }
 0x3ec   :  { %v3193_v37 = vpop.permute.xlu1 %3192 }
 0x3ed   :  { %v4431_v22 = vpack.c.bf16 %v3349_v14, %v3348_v60  ;;  %v3286_v17 = vadd.f32 %v3193_v37, %v2902_v31 }
 0x3ef   :  { %4541 = vst [vmem:[%s7024_s4 + $0xd8] sm:$0xff] %v4431_v22   ;;  %v3350_v39 = vmax.f32 %v3286_v17, 0.0 }
 0x3f0   :  { %v3203_v36 = vpop.permute.xlu1 %3202 }
 0x3f1   :  { %v4436_v57 = vpack.c.bf16 %v3351_v51, %v3350_v39  ;;  %v3288_v20 = vadd.f32 %v3203_v36, %v2904_v1 }
 0x3f3   :  { %4542 = vst [vmem:[%s7024_s4 + $0xe0] sm:$0xff] %v4436_v57   ;;  %v3352_v63 = vmax.f32 %v3288_v20, 0.0 }
 0x3f4   :  { %v3213_v53 = vpop.permute.xlu1 %3212 }
 0x3f5   :  { %v4441_v61 = vpack.c.bf16 %v3353_v4, %v3352_v63  ;;  %v3290_v59 = vadd.f32 %v3213_v53, %v2906_v3 }
 0x3f7   :  { %4543 = vst [vmem:[%s7024_s4 + $0xe8] sm:$0xff] %v4441_v61   ;;  %v3354_v43 = vmax.f32 %v3290_v59, 0.0 }
 0x3f8   :  { %v3223_v30 = vpop.permute.xlu1 %3222 }
 0x3f9   :  { %v4446_v9 = vpack.c.bf16 %v3355_v35, %v3354_v43  ;;  %v3292_v23 = vadd.f32 %v3223_v30, %v2908_v13 }
 0x3fb   :  { %4544 = vst [vmem:[%s7024_s4 + $0xf0] sm:$0xff] %v4446_v9   ;;  %v3356_v48 = vmax.f32 %v3292_v23, 0.0 }
 0x3fd   :  { %v4451_v16 = vpack.c.bf16 %v3357_v58, %v3356_v48 }
 0x3ff   :  { %4545 = vst [vmem:[%s7024_s4 + $0xf8] sm:$0xff] %v4451_v16  }

// kernel: quick_generator_forward.7
= control target key start
LH: loop header
LB: loop body
LE: loop exit
PB: predicated region body
PF: predicated region fallthrough
CT: control target
= control target key end

     0   :  { %vm161_vm0 = vcmask 130048   ;;  %vm22_vm1 = vcmask 7168   ;;  %v562_v22 = vmov 0.0   ;;  %v563_v51 = vmov 0   ;;  %s723_s0 = inlined_call_operand.vmem [shape: bf16[144,256], index: 0, kind: input, shape index: {}]   ;;  %s724_s1 = inlined_call_operand.vmem [shape: bf16[32,144], index: 1, kind: input, shape index: {}]   ;;  %s725_s2 = inlined_call_operand.vmem [shape: f32[32,1], index: 2, kind: input, shape index: {}]   ;;  %s726_s3 = inlined_call_operand.vmem [shape: f32[32,1], index: 3, kind: input, shape index: {}]   ;;  %s727_s4 = inlined_call_operand.vmem [shape: bf16[32,256], index: 4, kind: output, shape index: {}]  }
   0x1   :  { %v527_v0 = vld [vmem:[%s723_s0 + $0x74] ss:$8 sps:$4 sm:$0xff]   ;;  %v529_v1 = vld [vmem:[%s723_s0 + $0x70] ss:$8 sps:$4 sm:$0xff]   ;;  %v530_v2 = vld [vmem:[%s723_s0 + $0x64] ss:$8 sps:$4 sm:$0xff]   ;;  %526 = vset.pattern.permute.xlu1 %v563_v51  ;;  %525 = vset.pattern.permute.xlu0 %v563_v51 }
   0x2   :  { %168 = vmatprep.subr.bf16.mxu0 %v527_v0  ;;  %505 = vmatprep.subr.bf16.mxu1 %v527_v0  ;;  %v532_v3 = vld [vmem:[%s723_s0 + $0x60] ss:$8 sps:$4 sm:$0xff]   ;;  %v533_v4 = vld [vmem:[%s723_s0 + $0x54] ss:$8 sps:$4 sm:$0xff]   ;;  %v535_v5 = vld [vmem:[%s723_s0 + $0x50] ss:$8 sps:$4 sm:$0xff]  }
   0x3   :  { %169 = vmatpush1.bf16.msra.mxu0 %v529_v1  ;;  %514 = vmatpush1.bf16.msra.mxu1 %v529_v1  ;;  %v536_v6 = vld [vmem:[%s723_s0 + $0x44] ss:$8 sps:$4 sm:$0xff]   ;;  %v538_v7 = vld [vmem:[%s723_s0 + $0x40] ss:$8 sps:$4 sm:$0xff]   ;;  %v539_v8 = vld [vmem:[%s723_s0 + $0x34] ss:$8 sps:$4 sm:$0xff]  }
   0x4   :  { %170 = vmatprep.subr.bf16.mxu0 %v530_v2  ;;  %506 = vmatprep.subr.bf16.mxu1 %v530_v2  ;;  %v556_v9 = vld [vmem:[%s724_s1 + $0x4] ss:$8 sps:$4 sm:$0xff]   ;;  %v559_v10 = vld [vmem:[%s724_s1 + $0x14] ss:$8 sps:$4 sm:$0xff]   ;;  %v541_v11 = vld [vmem:[%s723_s0 + $0x30] ss:$8 sps:$4 sm:$0xff]  }
   0x5   :  { %v542_v12 = vld [vmem:[%s723_s0 + $0x24] ss:$8 sps:$4 sm:$0xff]   ;;  %487 = vmatprep.mubr.msk.bf16.mxu0 %vm161_vm0, %v556_v9  ;;  %488 = vmatprep.mubr.msk.bf16.mxu1 %vm161_vm0, %v559_v10  ;;  %v544_v13 = vld [vmem:[%s723_s0 + $0x20] ss:$8 sps:$4 sm:$0xff]   ;;  %v545_v14 = vld [vmem:[%s723_s0 + $0x14] ss:$8 sps:$4 sm:$0xff]  }
   0x6   :  { %v547_v15 = vld [vmem:[%s723_s0 + $0x10] ss:$8 sps:$4 sm:$0xff]   ;;  %v548_v16 = vld [vmem:[%s723_s0 + $0x4] ss:$8 sps:$4 sm:$0xff]   ;;  %v550_v17 = vld [vmem:[%s723_s0] ss:$8 sps:$4 sm:$0xff]  }
   0x7   :  { %171 = vmatpush1.bf16.msra.mxu0 %v532_v3  ;;  %515 = vmatpush1.bf16.msra.mxu1 %v532_v3  ;;  %v551_v18 = vld [vmem:[%s723_s0 + $0x84] ss:$8 sps:$4 sm:$0xff]   ;;  %v553_v19 = vld [vmem:[%s723_s0 + $0x80] ss:$8 sps:$4 sm:$0xff]   ;;  %v557_v21 = vld [vmem:[%s724_s1 + $0x10] ss:$8 sps:$4 sm:$0xff]  }
   0x8   :  { %172 = vmatprep.subr.bf16.mxu0 %v533_v4  ;;  %507 = vmatprep.subr.bf16.mxu1 %v533_v4  ;;  %v554_v20 = vld [vmem:[%s724_s1] ss:$8 sps:$4 sm:$0xff]   ;;  %25 = vst.msk [vmem:[#allocation2 + $0x10] sm:$0xff] %vm22_vm1, %v562_v22  ;;  %23 = vst.msk [vmem:[#allocation2] sm:$0xff] %vm22_vm1, %v562_v22 }
   0x9   :  { %24 = vst.msk [vmem:[#allocation2 + $0x8] sm:$0xff] %vm22_vm1, %v562_v22  ;;  %26 = vst.msk [vmem:[#allocation2 + $0x18] sm:$0xff] %vm22_vm1, %v562_v22 }
   0xa   :  { %27 = vst.msk [vmem:[#allocation3] sm:$0xff] %vm22_vm1, %v562_v22  ;;  %28 = vst.msk [vmem:[#allocation3 + $0x8] sm:$0xff] %vm22_vm1, %v562_v22 }
   0xb   :  { %173 = vmatpush1.bf16.msra.mxu0 %v535_v5  ;;  %516 = vmatpush1.bf16.msra.mxu1 %v535_v5  ;;  %29 = vst.msk [vmem:[#allocation3 + $0x10] sm:$0xff] %vm22_vm1, %v562_v22  ;;  %30 = vst.msk [vmem:[#allocation3 + $0x18] sm:$0xff] %vm22_vm1, %v562_v22 }
   0xc   :  { %174 = vmatprep.subr.bf16.mxu0 %v536_v6  ;;  %508 = vmatprep.subr.bf16.mxu1 %v536_v6 }
   0xf   :  { %175 = vmatpush1.bf16.msra.mxu0 %v538_v7  ;;  %517 = vmatpush1.bf16.msra.mxu1 %v538_v7  ;;  %v223_v52 = vld [vmem:[#allocation2 + $0x10] sm:$0xff]  ;;  %v221_v53 = vld [vmem:[#allocation2] sm:$0xff] }
  0x10   :  { %176 = vmatprep.subr.bf16.mxu0 %v539_v8  ;;  %509 = vmatprep.subr.bf16.mxu1 %v539_v8  ;;  %v222_v59 = vld [vmem:[#allocation2 + $0x8] sm:$0xff]  ;;  %v224_v0 = vld [vmem:[#allocation2 + $0x18] sm:$0xff] }
  0x11   :  { %v246_v58 = vld [vmem:[#allocation3] sm:$0xff]  ;;  %v247_v1 = vld [vmem:[#allocation3 + $0x8] sm:$0xff] }
  0x12   :  { %v249_v6 = vld [vmem:[#allocation3 + $0x18] sm:$0xff]  ;;  %v248_v7 = vld [vmem:[#allocation3 + $0x10] sm:$0xff] }
  0x13   :  { %177 = vmatpush1.bf16.msra.mxu0 %v541_v11  ;;  %518 = vmatpush1.bf16.msra.mxu1 %v541_v11 }
  0x14   :  { %178 = vmatprep.subr.bf16.mxu0 %v542_v12  ;;  %510 = vmatprep.subr.bf16.mxu1 %v542_v12 }
  0x17   :  { %179 = vmatpush1.bf16.msra.mxu0 %v544_v13  ;;  %519 = vmatpush1.bf16.msra.mxu1 %v544_v13 }
  0x18   :  { %180 = vmatprep.subr.bf16.mxu0 %v545_v14  ;;  %511 = vmatprep.subr.bf16.mxu1 %v545_v14 }
  0x1b   :  { %181 = vmatpush1.bf16.msra.mxu0 %v547_v15  ;;  %520 = vmatpush1.bf16.msra.mxu1 %v547_v15 }
  0x1c   :  { %182 = vmatprep.subr.bf16.mxu0 %v548_v16  ;;  %512 = vmatprep.subr.bf16.mxu1 %v548_v16 }
  0x1f   :  { %183 = vmatpush1.bf16.msra.mxu0 %v550_v17  ;;  %521 = vmatpush1.bf16.msra.mxu1 %v550_v17 }
  0x20   :  { %198 = vmatprep.subr.bf16.mxu0 %v551_v18  ;;  %513 = vmatprep.subr.bf16.mxu1 %v551_v18 }
  0x23   :  { %199 = vmatpush2.bf16.msra.mxu0 %v553_v19  ;;  %522 = vmatpush2.bf16.msra.mxu1 %v553_v19 }
  0x26   :  { %201 = vmatmul.mubr.bf16.vlgmr.msra.gmra.mxu0 %v554_v20  ;;  %211 = vmatmul.mubr.bf16.vlgmr.msra.gmra.mxu1 %v557_v21 }
  0xe6   :  { %v202_v23 = vpop.f32.mrf.mxu0  ;;  %v212_v24 = vpop.f32.mrf.mxu1 }
  0xe7   :  { %v250_v34 = vmul.f32 %v202_v23, %v202_v23  ;;  %v254_v46 = vmul.f32 %v212_v24, %v212_v24 }
  0xe8   :  { %v204_v25 = vpop.f32.mrf.mxu0  ;;  %v214_v26 = vpop.f32.mrf.mxu1 }
  0xe9   :  { %v663_v27 = vpack.c.bf16 %v204_v25, %v202_v23  ;;  %v665_v28 = vpack.c.bf16 %v214_v26, %v212_v24  ;;  %v231_v29 = vadd.f32 %v214_v26, %v212_v24  ;;  %v225_v30 = vadd.f32 %v204_v25, %v202_v23 }
  0xea   :  { %v206_v31 = vpop.f32.mrf.mxu0  ;;  %v216_v32 = vpop.f32.mrf.mxu1  ;;  %v251_v33 = vmul.f32 %v204_v25, %v204_v25  ;;  %v255_v47 = vmul.f32 %v214_v26, %v214_v26 }
  0xeb   :  { %232 = vadd.xlane.f32.xlu1 %v231_v29  ;;  %226 = vadd.xlane.f32.xlu0 %v225_v30  ;;  %v252_v42 = vmul.f32 %v206_v31, %v206_v31  ;;  %v256_v48 = vmul.f32 %v216_v32, %v216_v32 }
  0xec   :  { %v208_v35 = vpop.f32.mrf.mxu0  ;;  %v218_v36 = vpop.f32.mrf.mxu1  ;;  %v258_v39 = vadd.f32 %v251_v33, %v250_v34  ;;  %v264_v50 = vadd.f32 %v255_v47, %v254_v46  ;;  %v336_v34 = vld [vmem:[%s725_s2 + $0x8] sm:$0xff]  ;;  %v343_v46 = vld [vmem:[%s726_s3] sm:$0xff] }
  0xed   :  { %v667_v37 = vpack.c.bf16 %v208_v35, %v206_v31  ;;  %v669_v38 = vpack.c.bf16 %v218_v36, %v216_v32  ;;  %v253_v40 = vmul.f32 %v208_v35, %v208_v35  ;;  %v228_v41 = vadd.f32 %v208_v35, %v206_v31  ;;  %v335_v35 = vld [vmem:[%s725_s2] sm:$0xff] }
  0xee   :  { %v257_v43 = vmul.f32 %v218_v36, %v218_v36  ;;  %v234_v44 = vadd.f32 %v218_v36, %v216_v32 }
  0xef   :  { %259 = vadd.xlane.f32.xlu1 %v258_v39  ;;  %229 = vadd.xlane.f32.xlu0 %v228_v41  ;;  %v261_v45 = vadd.f32 %v253_v40, %v252_v42  ;;  %v337_v41 = vld [vmem:[%s725_s2 + $0x10] sm:$0xff] }
  0xf0   :  { %v267_v49 = vadd.f32 %v257_v43, %v256_v48  ;;  %v338_v43 = vld [vmem:[%s725_s2 + $0x18] sm:$0xff] }
  0xf3   :  { %235 = vadd.xlane.f32.xlu1 %v234_v44  ;;  %262 = vadd.xlane.f32.xlu0 %v261_v45 }
  0xf7   :  { %268 = vadd.xlane.f32.xlu1 %v267_v49  ;;  %265 = vadd.xlane.f32.xlu0 %v264_v50  ;;  %v344_v49 = vld [vmem:[%s726_s3 + $0x8] sm:$0xff] }
 0x174   :  { %v233_v54 = vpop.xlane.xlu1 %232  ;;  %v227_v55 = vpop.xlane.xlu0 %226 }
 0x175   :  { %v239_v56 = vadd.f32 %v233_v54, %v223_v52  ;;  %v237_v57 = vadd.f32 %v227_v55, %v221_v53  ;;  %v345_v52 = vld [vmem:[%s726_s3 + $0x10] sm:$0xff]  ;;  %v346_v55 = vld [vmem:[%s726_s3 + $0x18] sm:$0xff] }
 0x177   :  { %244 = vst.msk [vmem:[#allocation2 + $0x10] sm:$0xff] %vm22_vm1, %v239_v56  ;;  %242 = vst.msk [vmem:[#allocation2] sm:$0xff] %vm22_vm1, %v237_v57 }
 0x178   :  { %v260_v60 = vpop.xlane.xlu1 %259  ;;  %v230_v62 = vpop.xlane.xlu0 %229 }
 0x179   :  { %v270_v61 = vadd.f32 %v260_v60, %v246_v58  ;;  %v238_v63 = vadd.f32 %v230_v62, %v222_v59  ;;  %v360_v62 = vunpack.c.h.bf16 %v663_v27 }
 0x17b   :  { %274 = vst.msk [vmem:[#allocation3] sm:$0xff] %vm22_vm1, %v270_v61  ;;  %243 = vst.msk [vmem:[#allocation2 + $0x8] sm:$0xff] %vm22_vm1, %v238_v63  ;;  %v359_v61 = vunpack.c.l.bf16 %v663_v27 }
 0x17c   :  { %v236_v2 = vpop.xlane.xlu1 %235  ;;  %v263_v4 = vpop.xlane.xlu0 %262 }
 0x17d   :  { %v240_v3 = vadd.f32 %v236_v2, %v224_v0  ;;  %v271_v5 = vadd.f32 %v263_v4, %v247_v1  ;;  %v361_v2 = vunpack.c.l.bf16 %v667_v37 }
 0x17e   :  { %v314_v12 = vld [vmem:[#allocation2] sm:$0xff]  ;;  %v316_v15 = vld [vmem:[#allocation2 + $0x10] sm:$0xff] }
 0x17f   :  { %245 = vst.msk [vmem:[#allocation2 + $0x18] sm:$0xff] %vm22_vm1, %v240_v3  ;;  %275 = vst.msk [vmem:[#allocation3 + $0x8] sm:$0xff] %vm22_vm1, %v271_v5  ;;  %v362_v3 = vunpack.c.h.bf16 %v667_v37 }
 0x180   :  { %v269_v8 = vpop.xlane.xlu1 %268  ;;  %v266_v10 = vpop.xlane.xlu0 %265 }
 0x181   :  { %v273_v9 = vadd.f32 %v269_v8, %v249_v6  ;;  %v272_v11 = vadd.f32 %v266_v10, %v248_v7  ;;  %v363_v10 = vunpack.c.l.bf16 %v665_v28 }
 0x182   :  { %v315_v13 = vld [vmem:[#allocation2 + $0x8] sm:$0xff]  ;;  %v318_v20 = vld [vmem:[#allocation3] sm:$0xff] }
 0x183   :  { %277 = vst.msk [vmem:[#allocation3 + $0x18] sm:$0xff] %vm22_vm1, %v273_v9  ;;  %v322_v14 = vadd.f32 %v315_v13, %v314_v12  ;;  %276 = vst.msk [vmem:[#allocation3 + $0x10] sm:$0xff] %vm22_vm1, %v272_v11  ;;  %v364_v12 = vunpack.c.h.bf16 %v665_v28 }
 0x185   :  { %v324_v17 = vadd.f32 %v322_v14, %v316_v15 }
 0x186   :  { %v317_v16 = vld [vmem:[#allocation2 + $0x18] sm:$0xff]  ;;  %v319_v18 = vld [vmem:[#allocation3 + $0x8] sm:$0xff] }
 0x187   :  { %v326_v19 = vadd.f32 %v324_v17, %v317_v16  ;;  %v323_v21 = vadd.f32 %v319_v18, %v318_v20  ;;  %v365_v18 = vunpack.c.l.bf16 %v669_v38  ;;  %v366_v20 = vunpack.c.h.bf16 %v669_v38 }
 0x189   :  { %v328_v23 = vmul.f32 0.0009765625, %v326_v19 }
 0x18a   :  { %v320_v22 = vld [vmem:[#allocation3 + $0x10] sm:$0xff]  ;;  %v321_v25 = vld [vmem:[#allocation3 + $0x18] sm:$0xff] }
 0x18b   :  { %v325_v24 = vadd.f32 %v323_v21, %v320_v22  ;;  %v330_v29 = vmul.f32 %v328_v23, %v328_v23 }
 0x18d   :  { %v327_v26 = vadd.f32 %v325_v24, %v321_v25 }
 0x18f   :  { %v329_v30 = vmul.f32 0.0009765625, %v327_v26 }
 0x191   :  { %v331_v31 = vsub.f32 %v329_v30, %v330_v29 }
 0x193   :  { %v332_v32 = vmax.f32 %v331_v31, 0.0 }
 0x195   :  { %v333_v33 = vadd.f32 1e-05, %v332_v32 }
 0x197   :  { %560 = vrsqrt.f32 %v333_v33 }
 0x1a4   :  { %v561_v36 = vpop.eup %560 }
 0x1a5   :  { %v340_v39 = vmul.f32 %v561_v36, %v336_v34  ;;  %v339_v40 = vmul.f32 %v561_v36, %v335_v35  ;;  %v341_v42 = vmul.f32 %v561_v36, %v337_v41  ;;  %v342_v44 = vmul.f32 %v561_v36, %v338_v43 }
 0x1a7   :  { %374 = vperm.xlu1 %526, %v340_v39   ;;  %369 = vperm.xlu0 %525, %v339_v40   ;;  %v347_v45 = vmul.f32 %v339_v40, %v328_v23  ;;  %v348_v48 = vmul.f32 %v340_v39, %v328_v23  ;;  %v349_v51 = vmul.f32 %v341_v42, %v328_v23 }
 0x1a8   :  { %v350_v54 = vmul.f32 %v342_v44, %v328_v23 }
 0x1a9   :  { %v351_v47 = vsub.f32 %v343_v46, %v347_v45  ;;  %v352_v50 = vsub.f32 %v344_v49, %v348_v48  ;;  %v353_v53 = vsub.f32 %v345_v52, %v349_v51 }
 0x1aa   :  { %v354_v56 = vsub.f32 %v346_v55, %v350_v54 }
 0x1ab   :  { %379 = vperm.xlu1 %526, %v341_v42  }
 0x1af   :  { %384 = vperm.xlu1 %526, %v342_v44  }
 0x1b3   :  { %397 = vperm.xlu1 %526, %v351_v47  }
 0x1b7   :  { %402 = vperm.xlu1 %526, %v352_v50  }
 0x1bb   :  { %407 = vperm.xlu1 %526, %v353_v53  }
 0x1bf   :  { %412 = vperm.xlu1 %526, %v354_v56  }
 0x222   :  { %v375_v57 = vpop.permute.xlu1 %374  ;;  %v370_v59 = vpop.permute.xlu0 %369 }
 0x223   :  { %v387_v63 = vmul.f32 %v370_v59, %v359_v61  ;;  %v388_v0 = vmul.f32 %v370_v59, %v360_v62  ;;  %v389_v6 = vmul.f32 %v375_v57, %v361_v2  ;;  %v390_v7 = vmul.f32 %v375_v57, %v362_v3 }
 0x226   :  { %v380_v58 = vpop.permute.xlu1 %379 }
 0x227   :  { %v391_v15 = vmul.f32 %v380_v58, %v363_v10  ;;  %v392_v16 = vmul.f32 %v380_v58, %v364_v12 }
 0x22a   :  { %v385_v60 = vpop.permute.xlu1 %384 }
 0x22b   :  { %v393_v28 = vmul.f32 %v385_v60, %v365_v18  ;;  %v394_v24 = vmul.f32 %v385_v60, %v366_v20 }
 0x22e   :  { %v398_v1 = vpop.permute.xlu1 %397 }
 0x22f   :  { %v415_v4 = vadd.f32 %v398_v1, %v387_v63  ;;  %v416_v5 = vadd.f32 %v398_v1, %v388_v0 }
 0x231   :  { %v423_v8 = vmax.f32 %v415_v4, 0.0  ;;  %v424_v9 = vmax.f32 %v416_v5, 0.0 }
 0x232   :  { %v403_v11 = vpop.permute.xlu1 %402 }
 0x233   :  { %v501_v13 = vpack.c.bf16 %v424_v9, %v423_v8  ;;  %v417_v27 = vadd.f32 %v403_v11, %v389_v6  ;;  %v418_v14 = vadd.f32 %v403_v11, %v390_v7 }
 0x235   :  { %455 = vst [vmem:[%s727_s4] sm:$0xff] %v501_v13  ;;  %v425_v37 = vmax.f32 %v417_v27, 0.0  ;;  %v426_v17 = vmax.f32 %v418_v14, 0.0 }
 0x236   :  { %v408_v19 = vpop.permute.xlu1 %407 }
 0x237   :  { %v502_v21 = vpack.c.bf16 %v426_v17, %v425_v37  ;;  %v419_v22 = vadd.f32 %v408_v19, %v391_v15  ;;  %v420_v23 = vadd.f32 %v408_v19, %v392_v16 }
 0x239   :  { %456 = vst [vmem:[%s727_s4 + $0x8] sm:$0xff] %v502_v21  ;;  %v427_v25 = vmax.f32 %v419_v22, 0.0  ;;  %v428_v26 = vmax.f32 %v420_v23, 0.0 }
 0x23a   :  { %v413_v29 = vpop.permute.xlu1 %412 }
 0x23b   :  { %v503_v30 = vpack.c.bf16 %v428_v26, %v427_v25  ;;  %v421_v31 = vadd.f32 %v413_v29, %v393_v28  ;;  %v422_v32 = vadd.f32 %v413_v29, %v394_v24 }
 0x23d   :  { %457 = vst [vmem:[%s727_s4 + $0x10] sm:$0xff] %v503_v30  ;;  %v429_v38 = vmax.f32 %v421_v31, 0.0  ;;  %v430_v33 = vmax.f32 %v422_v32, 0.0 }
 0x23f   :  { %v504_v34 = vpack.c.bf16 %v430_v33, %v429_v38 }
 0x241   :  { %458 = vst [vmem:[%s727_s4 + $0x18] sm:$0xff] %v504_v34 }

// kernel: quick_generator_forward.8
= control target key start
LH: loop header
LB: loop body
LE: loop exit
PB: predicated region body
PF: predicated region fallthrough
CT: control target
= control target key end

     0   :  { %vm254_vm0 = vcmask 1043456   ;;  %v877_v3 = vmov 0   ;;  %vm250_vm1 = vcmask 588800   ;;  %vm22_vm2 = vcmask 7168   ;;  %s1111_s0 = inlined_call_operand.vmem [shape: bf16[72,1024], index: 0, kind: input, shape index: {}]   ;;  %s1112_s1 = inlined_call_operand.vmem [shape: bf16[16,72], index: 1, kind: input, shape index: {}]   ;;  %s1113_s2 = inlined_call_operand.vmem [shape: f32[16,1], index: 2, kind: input, shape index: {}]   ;;  %s1114_s3 = inlined_call_operand.vmem [shape: f32[16,1], index: 3, kind: input, shape index: {}]   ;;  %s1115_s4 = inlined_call_operand.vmem [shape: bf16[16,1024], index: 4, kind: output, shape index: {}]  }
   0x1   :  { %v61_v0 = vld [vmem:[%s1111_s0 + $0x100] sm:$0xff]  ;;  %v62_v1 = vld [vmem:[%s1111_s0 + $0x108] sm:$0xff]  ;;  %311 = vmatprep.mubr.bf16.mxu0 %v877_v3  ;;  %354 = vmatprep.mubr.bf16.mxu1 %v877_v3  ;;  %v63_v39 = vld [vmem:[%s1111_s0 + $0x110] sm:$0xff] }
   0x2   :  { %v53_v2 = vld [vmem:[%s1111_s0 + $0xc0] sm:$0xff]  ;;  %v815_v4 = vcombine.high %v61_v0, %v61_v0  ;;  %v817_v5 = vcombine.high %v62_v1, %v62_v1  ;;  %v814_v6 = vcombine.low %v61_v0, %v61_v0  ;;  %v816_v7 = vcombine.low %v62_v1, %v62_v1  ;;  %v54_v9 = vld [vmem:[%s1111_s0 + $0xc8] sm:$0xff]  ;;  %865 = vset.pattern.permute.xlu1 %v877_v3  ;;  %v64_v40 = vld [vmem:[%s1111_s0 + $0x118] sm:$0xff] }
   0x3   :  { %v57_v8 = vld [vmem:[%s1111_s0 + $0xe0] sm:$0xff]  ;;  %v58_v10 = vld [vmem:[%s1111_s0 + $0xe8] sm:$0xff]  ;;  %864 = vset.pattern.permute.xlu0 %v877_v3  ;;  %v819_v43 = vcombine.high %v63_v39, %v63_v39  ;;  %v821_v44 = vcombine.high %v64_v40, %v64_v40  ;;  %v818_v45 = vcombine.low %v63_v39, %v63_v39  ;;  %v820_v46 = vcombine.low %v64_v40, %v64_v40  ;;  %v55_v47 = vld [vmem:[%s1111_s0 + $0xd0] sm:$0xff] }
   0x4   :  { %v807_v11 = vcombine.high %v53_v2, %v57_v8  ;;  %v809_v12 = vcombine.high %v54_v9, %v58_v10  ;;  %v45_v13 = vld [vmem:[%s1111_s0 + $0x80] sm:$0xff]  ;;  %v46_v15 = vld [vmem:[%s1111_s0 + $0x88] sm:$0xff]  ;;  %822 = vmatprep.subr.msk.bf16.mxu0 %vm254_vm0, %v815_v4  ;;  %824 = vmatprep.subr.msk.bf16.mxu1 %vm254_vm0, %v817_v5  ;;  %v256_v16 = vsel %vm254_vm0, %v814_v6, 0  ;;  %v262_v17 = vsel %vm254_vm0, %v816_v7, 0  ;;  %v59_v48 = vld [vmem:[%s1111_s0 + $0xf0] sm:$0xff] }
   0x5   :  { %v49_v14 = vld [vmem:[%s1111_s0 + $0xa0] sm:$0xff]  ;;  %v50_v18 = vld [vmem:[%s1111_s0 + $0xa8] sm:$0xff]  ;;  %286 = vmatpush1.bf16.msra.mxu0 %v256_v16  ;;  %329 = vmatpush1.bf16.msra.mxu1 %v262_v17  ;;  %v806_v19 = vcombine.low %v53_v2, %v57_v8  ;;  %v808_v20 = vcombine.low %v54_v9, %v58_v10  ;;  %v56_v49 = vld [vmem:[%s1111_s0 + $0xd8] sm:$0xff]  ;;  %v268_v52 = vsel %vm254_vm0, %v818_v45, 0  ;;  %v274_v53 = vsel %vm254_vm0, %v820_v46, 0 }
   0x6   :  { %287 = vmatprep.subr.bf16.mxu0 %v807_v11  ;;  %330 = vmatprep.subr.bf16.mxu1 %v809_v12  ;;  %v799_v21 = vcombine.high %v45_v13, %v49_v14  ;;  %v801_v22 = vcombine.high %v46_v15, %v50_v18  ;;  %v37_v23 = vld [vmem:[%s1111_s0 + $0x40] sm:$0xff]  ;;  %v38_v25 = vld [vmem:[%s1111_s0 + $0x48] sm:$0xff]  ;;  %v798_v27 = vcombine.low %v45_v13, %v49_v14  ;;  %v60_v50 = vld [vmem:[%s1111_s0 + $0xf8] sm:$0xff] }
   0x7   :  { %v41_v24 = vld [vmem:[%s1111_s0 + $0x60] sm:$0xff]  ;;  %v42_v26 = vld [vmem:[%s1111_s0 + $0x68] sm:$0xff]  ;;  %v800_v28 = vcombine.low %v46_v15, %v50_v18  ;;  %v811_v54 = vcombine.high %v55_v47, %v59_v48  ;;  %v813_v55 = vcombine.high %v56_v49, %v60_v50  ;;  %v47_v56 = vld [vmem:[%s1111_s0 + $0x90] sm:$0xff]  ;;  %v810_v60 = vcombine.low %v55_v47, %v59_v48 }
   0x8   :  { %v791_v29 = vcombine.high %v37_v23, %v41_v24  ;;  %v793_v30 = vcombine.high %v38_v25, %v42_v26  ;;  %v29_v31 = vld [vmem:[%s1111_s0] sm:$0xff]  ;;  %v30_v33 = vld [vmem:[%s1111_s0 + $0x8] sm:$0xff]  ;;  %v790_v35 = vcombine.low %v37_v23, %v41_v24  ;;  %v792_v36 = vcombine.low %v38_v25, %v42_v26  ;;  %v51_v57 = vld [vmem:[%s1111_s0 + $0xb0] sm:$0xff] }
   0x9   :  { %288 = vmatpush1.bf16.msra.mxu0 %v806_v19  ;;  %331 = vmatpush1.bf16.msra.mxu1 %v808_v20  ;;  %v33_v32 = vld [vmem:[%s1111_s0 + $0x20] sm:$0xff]  ;;  %v34_v34 = vld [vmem:[%s1111_s0 + $0x28] sm:$0xff]  ;;  %v48_v58 = vld [vmem:[%s1111_s0 + $0x98] sm:$0xff]  ;;  %v812_v61 = vcombine.low %v56_v49, %v60_v50  ;;  %v803_v62 = vcombine.high %v47_v56, %v51_v57  ;;  %v802_v5 = vcombine.low %v47_v56, %v51_v57  ;;  %v878_v18 = vmov 0.0  }
   0xa   :  { %289 = vmatprep.subr.bf16.mxu0 %v799_v21  ;;  %332 = vmatprep.subr.bf16.mxu1 %v801_v22  ;;  %v783_v37 = vcombine.high %v29_v31, %v33_v32  ;;  %v785_v38 = vcombine.high %v30_v33, %v34_v34  ;;  %v782_v41 = vcombine.low %v29_v31, %v33_v32  ;;  %v870_v51 = vld [vmem:[%s1112_s1] sm:$0xff]   ;;  %v52_v59 = vld [vmem:[%s1111_s0 + $0xb8] sm:$0xff]  ;;  %v39_v0 = vld [vmem:[%s1111_s0 + $0x50] sm:$0xff] }
   0xb   :  { %v784_v42 = vcombine.low %v30_v33, %v34_v34  ;;  %v805_v63 = vcombine.high %v48_v58, %v52_v59  ;;  %v43_v1 = vld [vmem:[%s1111_s0 + $0x70] sm:$0xff]  ;;  %v40_v2 = vld [vmem:[%s1111_s0 + $0x58] sm:$0xff]  ;;  %v804_v6 = vcombine.low %v48_v58, %v52_v59  ;;  %23 = vst.msk [vmem:[#allocation2] sm:$0xff] %vm22_vm2, %v878_v18  ;;  %24 = vst.msk [vmem:[#allocation2 + $0x8] sm:$0xff] %vm22_vm2, %v878_v18 }
   0xc   :  { %v44_v4 = vld [vmem:[%s1111_s0 + $0x78] sm:$0xff]  ;;  %v795_v7 = vcombine.high %v39_v0, %v43_v1  ;;  %v31_v9 = vld [vmem:[%s1111_s0 + $0x10] sm:$0xff]  ;;  %v794_v12 = vcombine.low %v39_v0, %v43_v1  ;;  %25 = vst.msk [vmem:[#allocation3] sm:$0xff] %vm22_vm2, %v878_v18  ;;  %26 = vst.msk [vmem:[#allocation3 + $0x8] sm:$0xff] %vm22_vm2, %v878_v18 }
   0xd   :  { %290 = vmatpush1.bf16.msra.mxu0 %v798_v27  ;;  %333 = vmatpush1.bf16.msra.mxu1 %v800_v28  ;;  %v797_v8 = vcombine.high %v40_v2, %v44_v4  ;;  %v35_v10 = vld [vmem:[%s1111_s0 + $0x30] sm:$0xff]  ;;  %v36_v11 = vld [vmem:[%s1111_s0 + $0x38] sm:$0xff]  ;;  %v796_v13 = vcombine.low %v40_v2, %v44_v4 }
   0xe   :  { %291 = vmatprep.subr.bf16.mxu0 %v791_v29  ;;  %334 = vmatprep.subr.bf16.mxu1 %v793_v30  ;;  %v787_v14 = vcombine.high %v31_v9, %v35_v10  ;;  %v786_v16 = vcombine.low %v31_v9, %v35_v10 }
  0x11   :  { %292 = vmatpush1.bf16.msra.mxu0 %v790_v35  ;;  %335 = vmatpush1.bf16.msra.mxu1 %v792_v36 }
  0x12   :  { %293 = vmatprep.subr.bf16.mxu0 %v783_v37  ;;  %336 = vmatprep.subr.bf16.mxu1 %v785_v38 }
  0x15   :  { %294 = vmatpush1.bf16.msra.mxu0 %v782_v41  ;;  %337 = vmatpush1.bf16.msra.mxu1 %v784_v42 }
  0x16   :  { %826 = vmatprep.subr.msk.bf16.mxu0 %vm254_vm0, %v819_v43  ;;  %828 = vmatprep.subr.msk.bf16.mxu1 %vm254_vm0, %v821_v44 }
  0x18   :  { %823 = vmatmul.mubr.msk.bf16.vlgmr.msra.gmra.mxu0 %vm250_vm1, %v870_v51  ;;  %825 = vmatmul.mubr.msk.bf16.vlgmr.msra.gmra.mxu1 %vm250_vm1, %v870_v51 }
  0x19   :  { %372 = vmatpush1.bf16.msra.mxu0 %v268_v52  ;;  %415 = vmatpush1.bf16.msra.mxu1 %v274_v53 }
  0x1a   :  { %373 = vmatprep.subr.bf16.mxu0 %v811_v54  ;;  %416 = vmatprep.subr.bf16.mxu1 %v813_v55 }
  0x1b   :  { %397 = vmatprep.mubr.bf16.mxu0 %v877_v3  ;;  %440 = vmatprep.mubr.bf16.mxu1 %v877_v3  ;;  %v32_v3 = vld [vmem:[%s1111_s0 + $0x18] sm:$0xff] }
  0x1c   :  { %v789_v15 = vcombine.high %v32_v3, %v36_v11  ;;  %v788_v17 = vcombine.low %v32_v3, %v36_v11 }
  0x1d   :  { %374 = vmatpush1.bf16.msra.mxu0 %v810_v60  ;;  %417 = vmatpush1.bf16.msra.mxu1 %v812_v61 }
  0x1e   :  { %375 = vmatprep.subr.bf16.mxu0 %v803_v62  ;;  %418 = vmatprep.subr.bf16.mxu1 %v805_v63 }
  0x21   :  { %376 = vmatpush1.bf16.msra.mxu0 %v802_v5  ;;  %419 = vmatpush1.bf16.msra.mxu1 %v804_v6 }
  0x22   :  { %377 = vmatprep.subr.bf16.mxu0 %v795_v7  ;;  %420 = vmatprep.subr.bf16.mxu1 %v797_v8 }
  0x25   :  { %378 = vmatpush1.bf16.msra.mxu0 %v794_v12  ;;  %421 = vmatpush1.bf16.msra.mxu1 %v796_v13 }
  0x26   :  { %379 = vmatprep.subr.bf16.mxu0 %v787_v14  ;;  %422 = vmatprep.subr.bf16.mxu1 %v789_v15 }
  0x29   :  { %380 = vmatpush1.bf16.msra.mxu0 %v786_v16  ;;  %423 = vmatpush1.bf16.msra.mxu1 %v788_v17 }
  0x2c   :  { %827 = vmatmul.mubr.msk.bf16.vlgmr.msra.gmra.mxu0 %vm250_vm1, %v870_v51  ;;  %829 = vmatmul.mubr.msk.bf16.vlgmr.msra.gmra.mxu1 %vm250_vm1, %v870_v51 }
  0xd8   :  { %v313_v19 = vpop.f32.mrf.mxu0  ;;  %v356_v20 = vpop.f32.mrf.mxu1 }
  0xd9   :  { %v478_v31 = vmul.f32 %v313_v19, %v313_v19  ;;  %v480_v34 = vmul.f32 %v356_v20, %v356_v20 }
  0xda   :  { %v315_v21 = vpop.f32.mrf.mxu0  ;;  %v358_v22 = vpop.f32.mrf.mxu1 }
  0xdb   :  { %v1037_v23 = vpack.c.bf16 %v315_v21, %v313_v19  ;;  %v1039_v24 = vpack.c.bf16 %v358_v22, %v356_v20  ;;  %v479_v32 = vmul.f32 %v315_v21, %v315_v21  ;;  %v453_v33 = vadd.f32 %v315_v21, %v313_v19 }
  0xdc   :  { %v317_v25 = vpop.f32.mrf.mxu0  ;;  %v360_v26 = vpop.f32.mrf.mxu1  ;;  %v481_v40 = vmul.f32 %v358_v22, %v358_v22 }
  0xdd   :  { %v494_v35 = vadd.f32 %v479_v32, %v478_v31  ;;  %v454_v38 = vadd.f32 %v453_v33, %v356_v20  ;;  %v486_v39 = vmul.f32 %v317_v25, %v317_v25  ;;  %v488_v45 = vmul.f32 %v360_v26, %v360_v26  ;;  %v476_v31 = vld [vmem:[#allocation3] sm:$0xff] }
  0xde   :  { %v319_v27 = vpop.f32.mrf.mxu0  ;;  %v362_v28 = vpop.f32.mrf.mxu1 }
  0xdf   :  { %v1041_v29 = vpack.c.bf16 %v319_v27, %v317_v25  ;;  %v1043_v30 = vpack.c.bf16 %v362_v28, %v360_v26  ;;  %v487_v36 = vmul.f32 %v319_v27, %v319_v27  ;;  %v462_v37 = vadd.f32 %v319_v27, %v317_v25  ;;  %v451_v25 = vld [vmem:[#allocation2] sm:$0xff] }
  0xe0   :  { %v495_v41 = vadd.f32 %v494_v35, %v480_v34  ;;  %v455_v44 = vadd.f32 %v454_v38, %v358_v22  ;;  %v489_v53 = vmul.f32 %v362_v28, %v362_v28 }
  0xe1   :  { %v503_v42 = vadd.f32 %v487_v36, %v486_v39  ;;  %v463_v43 = vadd.f32 %v462_v37, %v360_v26  ;;  %v477_v36 = vld [vmem:[#allocation3 + $0x8] sm:$0xff] }
  0xe2   :  { %v496_v48 = vadd.f32 %v495_v41, %v481_v40 }
  0xe3   :  { %v504_v49 = vadd.f32 %v503_v42, %v488_v45  ;;  %v464_v52 = vadd.f32 %v463_v43, %v362_v28  ;;  %v452_v28 = vld [vmem:[#allocation2 + $0x8] sm:$0xff] }
  0xe5   :  { %v505_v0 = vadd.f32 %v504_v49, %v489_v53 }
  0xec   :  { %v399_v46 = vpop.f32.mrf.mxu0  ;;  %v442_v47 = vpop.f32.mrf.mxu1 }
  0xed   :  { %v456_v50 = vadd.f32 %v455_v44, %v399_v46  ;;  %v482_v51 = vmul.f32 %v399_v46, %v399_v46  ;;  %v484_v60 = vmul.f32 %v442_v47, %v442_v47 }
  0xee   :  { %v401_v54 = vpop.f32.mrf.mxu0  ;;  %v444_v55 = vpop.f32.mrf.mxu1 }
  0xef   :  { %v497_v56 = vadd.f32 %v496_v48, %v482_v51  ;;  %v457_v57 = vadd.f32 %v456_v50, %v401_v54  ;;  %v483_v58 = vmul.f32 %v401_v54, %v401_v54  ;;  %v1045_v59 = vpack.c.bf16 %v401_v54, %v399_v46 }
  0xf0   :  { %v1047_v61 = vpack.c.bf16 %v444_v55, %v442_v47  ;;  %v403_v62 = vpop.f32.mrf.mxu0  ;;  %v446_v63 = vpop.f32.mrf.mxu1  ;;  %v485_v17 = vmul.f32 %v444_v55, %v444_v55 }
  0xf1   :  { %v465_v1 = vadd.f32 %v464_v52, %v403_v62  ;;  %v490_v2 = vmul.f32 %v403_v62, %v403_v62  ;;  %v458_v4 = vadd.f32 %v457_v57, %v442_v47  ;;  %v498_v7 = vadd.f32 %v497_v56, %v483_v58 }
  0xf2   :  { %v405_v5 = vpop.f32.mrf.mxu0  ;;  %v448_v6 = vpop.f32.mrf.mxu1  ;;  %v492_v14 = vmul.f32 %v446_v63, %v446_v63 }
  0xf3   :  { %v506_v8 = vadd.f32 %v505_v0, %v490_v2  ;;  %v466_v9 = vadd.f32 %v465_v1, %v405_v5  ;;  %v491_v10 = vmul.f32 %v405_v5, %v405_v5  ;;  %v1049_v3 = vpack.c.bf16 %v405_v5, %v403_v62  ;;  %v617_v0 = vld [vmem:[%s1113_s2] sm:$0xff] }
  0xf4   :  { %v1051_v11 = vpack.c.bf16 %v448_v6, %v446_v63  ;;  %v459_v12 = vadd.f32 %v458_v4, %v444_v55  ;;  %v499_v13 = vadd.f32 %v498_v7, %v484_v60  ;;  %v493_v21 = vmul.f32 %v448_v6, %v448_v6  ;;  %v621_v7 = vld [vmem:[%s1114_s3] sm:$0xff] }
  0xf5   :  { %v507_v15 = vadd.f32 %v506_v8, %v491_v10  ;;  %v467_v16 = vadd.f32 %v466_v9, %v446_v63  ;;  %v618_v63 = vld [vmem:[%s1113_s2 + $0x8] sm:$0xff] }
  0xf6   :  { %460 = vadd.xlane.f32.xlu0 %v459_v12  ;;  %v500_v20 = vadd.f32 %v499_v13, %v485_v17  ;;  %v622_v12 = vld [vmem:[%s1114_s3 + $0x8] sm:$0xff]  ;;  %v638_v17 = vunpack.c.h.bf16 %v1039_v24 }
  0xf7   :  { %v468_v18 = vadd.f32 %v467_v16, %v448_v6  ;;  %v508_v19 = vadd.f32 %v507_v15, %v492_v14  ;;  %v635_v14 = vunpack.c.l.bf16 %v1037_v23  ;;  %v636_v15 = vunpack.c.h.bf16 %v1037_v23 }
  0xf8   :  { %v637_v16 = vunpack.c.l.bf16 %v1039_v24  ;;  %v642_v23 = vunpack.c.h.bf16 %v1047_v61  ;;  %v647_v24 = vunpack.c.l.bf16 %v1049_v3 }
  0xf9   :  { %469 = vadd.xlane.f32.xlu1 %v468_v18  ;;  %v509_v22 = vadd.f32 %v508_v19, %v493_v21  ;;  %v643_v18 = vunpack.c.l.bf16 %v1041_v29  ;;  %v644_v19 = vunpack.c.h.bf16 %v1041_v29  ;;  %v646_v21 = vunpack.c.h.bf16 %v1043_v30 }
  0xfa   :  { %501 = vadd.xlane.f32.xlu0 %v500_v20  ;;  %v645_v20 = vunpack.c.l.bf16 %v1043_v30  ;;  %v649_v29 = vunpack.c.l.bf16 %v1051_v11 }
  0xfd   :  { %510 = vadd.xlane.f32.xlu1 %v509_v22  ;;  %v639_v22 = vunpack.c.l.bf16 %v1045_v59 }
 0x17f   :  { %v461_v26 = vpop.xlane.xlu0 %460 }
 0x180   :  { %v471_v27 = vadd.f32 %v461_v26, %v451_v25  ;;  %v640_v25 = vunpack.c.h.bf16 %v1045_v59  ;;  %v641_v26 = vunpack.c.l.bf16 %v1047_v61 }
 0x182   :  { %474 = vst.msk [vmem:[#allocation2] sm:$0xff] %vm22_vm2, %v471_v27  ;;  %v470_v32 = vpop.xlane.xlu1 %469 }
 0x183   :  { %v502_v33 = vpop.xlane.xlu0 %501  ;;  %v472_v34 = vadd.f32 %v470_v32, %v452_v28  ;;  %v650_v32 = vunpack.c.h.bf16 %v1051_v11 }
 0x184   :  { %v512_v35 = vadd.f32 %v502_v33, %v476_v31  ;;  %v648_v31 = vunpack.c.h.bf16 %v1049_v3 }
 0x185   :  { %475 = vst.msk [vmem:[#allocation2 + $0x8] sm:$0xff] %vm22_vm2, %v472_v34 }
 0x186   :  { %514 = vst.msk [vmem:[#allocation3] sm:$0xff] %vm22_vm2, %v512_v35  ;;  %v511_v37 = vpop.xlane.xlu1 %510 }
 0x187   :  { %v513_v38 = vadd.f32 %v511_v37, %v477_v36 }
 0x189   :  { %515 = vst.msk [vmem:[#allocation3 + $0x8] sm:$0xff] %vm22_vm2, %v513_v38  ;;  %v580_v39 = vld [vmem:[#allocation2] sm:$0xff] }
 0x18a   :  { %v585_v40 = vrot.slane %v580_v39, 4 }
 0x18c   :  { %v581_v41 = vld [vmem:[#allocation2 + $0x8] sm:$0xff]  ;;  %v587_v42 = vadd.f32 %v585_v40, %v580_v39 }
 0x18d   :  { %v582_v43 = vld [vmem:[#allocation3] sm:$0xff]  ;;  %v595_v44 = vrot.slane %v581_v41, 4 }
 0x18e   :  { %v589_v45 = vrot.slane %v582_v43, 4  ;;  %v592_v46 = vadd.f32 %v587_v42, %v581_v41 }
 0x190   :  { %v583_v47 = vld [vmem:[#allocation3 + $0x8] sm:$0xff]  ;;  %v591_v48 = vadd.f32 %v589_v45, %v582_v43  ;;  %v597_v49 = vadd.f32 %v595_v44, %v592_v46 }
 0x191   :  { %v599_v50 = vrot.slane %v583_v47, 4 }
 0x192   :  { %v593_v51 = vadd.f32 %v591_v48, %v583_v47  ;;  %v602_v52 = vmul.f32 0.00024414063, %v597_v49 }
 0x194   :  { %v601_v53 = vadd.f32 %v599_v50, %v593_v51  ;;  %v604_v55 = vmul.f32 %v602_v52, %v602_v52  ;;  %v610_v1 = vrot.slane %v602_v52, 4 }
 0x196   :  { %v603_v54 = vmul.f32 0.00024414063, %v601_v53  ;;  %v612_v6 = vsel %vm254_vm0, %v602_v52, %v610_v1 }
 0x198   :  { %v605_v56 = vsub.f32 %v603_v54, %v604_v55 }
 0x19a   :  { %v606_v57 = vmax.f32 %v605_v56, 0.0 }
 0x19c   :  { %v607_v58 = vadd.f32 1e-05, %v606_v57 }
 0x19e   :  { %875 = vrsqrt.f32 %v607_v58 }
 0x1ab   :  { %v876_v60 = vpop.eup %875 }
 0x1ac   :  { %v614_v62 = vrot.slane %v876_v60, 4 }
 0x1ae   :  { %v616_v2 = vsel %vm254_vm0, %v876_v60, %v614_v62 }
 0x1af   :  { %v620_v4 = vmul.f32 %v618_v63, %v616_v2  ;;  %v619_v5 = vmul.f32 %v617_v0, %v616_v2 }
 0x1b1   :  { %658 = vperm.xlu1 %865, %v620_v4   ;;  %653 = vperm.xlu0 %864, %v619_v5   ;;  %v623_v8 = vmul.f32 %v619_v5, %v612_v6  ;;  %v624_v10 = vmul.f32 %v620_v4, %v612_v6 }
 0x1b3   :  { %v625_v9 = vsub.f32 %v621_v7, %v623_v8  ;;  %v626_v13 = vsub.f32 %v622_v12, %v624_v10 }
 0x1b5   :  { %679 = vperm.xlu1 %865, %v625_v9  }
 0x1b9   :  { %684 = vperm.xlu1 %865, %v626_v13  }
 0x22c   :  { %v659_v27 = vpop.permute.xlu1 %658  ;;  %v654_v28 = vpop.permute.xlu0 %653 }
 0x22d   :  { %v661_v33 = vmul.f32 %v654_v28, %v635_v14  ;;  %v662_v30 = vmul.f32 %v654_v28, %v636_v15  ;;  %v663_v34 = vmul.f32 %v654_v28, %v637_v16  ;;  %v664_v35 = vmul.f32 %v654_v28, %v638_v17 }
 0x22e   :  { %v665_v36 = vmul.f32 %v654_v28, %v639_v22  ;;  %v666_v59 = vmul.f32 %v654_v28, %v640_v25  ;;  %v667_v37 = vmul.f32 %v654_v28, %v641_v26  ;;  %v668_v38 = vmul.f32 %v654_v28, %v642_v23 }
 0x22f   :  { %v669_v39 = vmul.f32 %v659_v27, %v643_v18  ;;  %v670_v61 = vmul.f32 %v659_v27, %v644_v19  ;;  %v671_v40 = vmul.f32 %v659_v27, %v645_v20  ;;  %v672_v41 = vmul.f32 %v659_v27, %v646_v21 }
 0x230   :  { %v680_v42 = vpop.permute.xlu1 %679  ;;  %v673_v43 = vmul.f32 %v659_v27, %v647_v24  ;;  %v674_v44 = vmul.f32 %v659_v27, %v648_v31  ;;  %v675_v3 = vmul.f32 %v659_v27, %v649_v29  ;;  %v676_v45 = vmul.f32 %v659_v27, %v650_v32 }
 0x231   :  { %v687_v46 = vadd.f32 %v680_v42, %v661_v33  ;;  %v688_v47 = vadd.f32 %v680_v42, %v662_v30  ;;  %v689_v11 = vadd.f32 %v680_v42, %v663_v34  ;;  %v690_v48 = vadd.f32 %v680_v42, %v664_v35 }
 0x232   :  { %v691_v49 = vadd.f32 %v680_v42, %v665_v36  ;;  %v692_v50 = vadd.f32 %v680_v42, %v666_v59  ;;  %v693_v51 = vadd.f32 %v680_v42, %v667_v37  ;;  %v694_v52 = vadd.f32 %v680_v42, %v668_v38 }
 0x233   :  { %v703_v53 = vmax.f32 %v687_v46, 0.0  ;;  %v704_v54 = vmax.f32 %v688_v47, 0.0  ;;  %v705_v55 = vmax.f32 %v689_v11, 0.0  ;;  %v706_v56 = vmax.f32 %v690_v48, 0.0 }
 0x234   :  { %v707_v57 = vmax.f32 %v691_v49, 0.0  ;;  %v708_v58 = vmax.f32 %v692_v50, 0.0  ;;  %v709_v60 = vmax.f32 %v693_v51, 0.0  ;;  %v710_v62 = vmax.f32 %v694_v52, 0.0  ;;  %v685_v63 = vpop.permute.xlu1 %684 }
 0x235   :  { %v854_v0 = vpack.c.bf16 %v704_v54, %v703_v53  ;;  %v855_v1 = vpack.c.bf16 %v706_v56, %v705_v55  ;;  %v695_v2 = vadd.f32 %v685_v63, %v669_v39  ;;  %v696_v4 = vadd.f32 %v685_v63, %v670_v61 }
 0x236   :  { %v856_v5 = vpack.c.bf16 %v708_v58, %v707_v57  ;;  %v857_v6 = vpack.c.bf16 %v710_v62, %v709_v60  ;;  %v697_v7 = vadd.f32 %v685_v63, %v671_v40  ;;  %v698_v8 = vadd.f32 %v685_v63, %v672_v41 }
 0x237   :  { %767 = vst [vmem:[%s1115_s4] sm:$0xff] %v854_v0  ;;  %768 = vst [vmem:[%s1115_s4 + $0x8] sm:$0xff] %v855_v1  ;;  %v699_v9 = vadd.f32 %v685_v63, %v673_v43  ;;  %v700_v10 = vadd.f32 %v685_v63, %v674_v44  ;;  %v701_v12 = vadd.f32 %v685_v63, %v675_v3  ;;  %v711_v14 = vmax.f32 %v695_v2, 0.0 }
 0x238   :  { %v702_v13 = vadd.f32 %v685_v63, %v676_v45  ;;  %769 = vst [vmem:[%s1115_s4 + $0x10] sm:$0xff] %v856_v5  ;;  %770 = vst [vmem:[%s1115_s4 + $0x18] sm:$0xff] %v857_v6  ;;  %v712_v15 = vmax.f32 %v696_v4, 0.0  ;;  %v713_v16 = vmax.f32 %v697_v7, 0.0  ;;  %v714_v17 = vmax.f32 %v698_v8, 0.0 }
 0x239   :  { %v715_v18 = vmax.f32 %v699_v9, 0.0  ;;  %v716_v19 = vmax.f32 %v700_v10, 0.0  ;;  %v717_v20 = vmax.f32 %v701_v12, 0.0 }
 0x23a   :  { %v718_v21 = vmax.f32 %v702_v13, 0.0  ;;  %v858_v22 = vpack.c.bf16 %v712_v15, %v711_v14  ;;  %v859_v25 = vpack.c.bf16 %v714_v17, %v713_v16 }
 0x23b   :  { %v860_v26 = vpack.c.bf16 %v716_v19, %v715_v18 }
 0x23c   :  { %v861_v23 = vpack.c.bf16 %v718_v21, %v717_v20  ;;  %771 = vst [vmem:[%s1115_s4 + $0x20] sm:$0xff] %v858_v22  ;;  %772 = vst [vmem:[%s1115_s4 + $0x28] sm:$0xff] %v859_v25 }
 0x23d   :  { %773 = vst [vmem:[%s1115_s4 + $0x30] sm:$0xff] %v860_v26 }
 0x23e   :  { %774 = vst [vmem:[%s1115_s4 + $0x38] sm:$0xff] %v861_v23 }

// kernel: quick_generator_forward.9
= control target key start
LH: loop header
LB: loop body
LE: loop exit
PB: predicated region body
PF: predicated region fallthrough
CT: control target
= control target key end

     0   :  { %vm503_vm0 = vcmask 1041408   ;;  %v1711_v3 = vmov 0   ;;  %vm499_vm1 = vcmask 293888   ;;  %s2244_s0 = inlined_call_operand.vmem [shape: bf16[36,4096], index: 0, kind: input, shape index: {}]   ;;  %s2245_s1 = inlined_call_operand.vmem [shape: bf16[12,36], index: 1, kind: input, shape index: {}]   ;;  %s2246_s2 = inlined_call_operand.vmem [shape: f32[12,4096], index: 2, kind: output, shape index: {}]  }
   0x1   :  { %v78_v0 = vld [vmem:[%s2244_s0 + $0x200] sm:$0x33]  ;;  %v79_v1 = vld [vmem:[%s2244_s0 + $0x208] sm:$0x33]  ;;  %632 = vmatprep.mubr.bf16.mxu0 %v1711_v3  ;;  %675 = vmatprep.mubr.bf16.mxu1 %v1711_v3  ;;  %v80_v23 = vld [vmem:[%s2244_s0 + $0x210] sm:$0x33] }
   0x2   :  { %v46_v2 = vld [vmem:[%s2244_s0 + $0x100] sm:$0xff]  ;;  %v1486_v4 = vcombine.high %v78_v0, %v78_v0  ;;  %v1488_v5 = vcombine.high %v79_v1, %v79_v1  ;;  %v1485_v6 = vcombine.low %v78_v0, %v78_v0  ;;  %v1487_v7 = vcombine.low %v79_v1, %v79_v1  ;;  %v47_v9 = vld [vmem:[%s2244_s0 + $0x108] sm:$0xff]  ;;  %v81_v24 = vld [vmem:[%s2244_s0 + $0x218] sm:$0x33] }
   0x3   :  { %v62_v8 = vld [vmem:[%s2244_s0 + $0x180] sm:$0xff]  ;;  %v63_v10 = vld [vmem:[%s2244_s0 + $0x188] sm:$0xff]  ;;  %v1490_v27 = vcombine.high %v80_v23, %v80_v23  ;;  %v1492_v28 = vcombine.high %v81_v24, %v81_v24  ;;  %v1489_v29 = vcombine.low %v80_v23, %v80_v23  ;;  %v1491_v30 = vcombine.low %v81_v24, %v81_v24  ;;  %v48_v31 = vld [vmem:[%s2244_s0 + $0x110] sm:$0xff] }
   0x4   :  { %v1454_v11 = vcombine.high %v46_v2, %v62_v8  ;;  %v1456_v12 = vcombine.high %v47_v9, %v63_v10  ;;  %v14_v13 = vld [vmem:[%s2244_s0] sm:$0xff]  ;;  %v15_v15 = vld [vmem:[%s2244_s0 + $0x8] sm:$0xff]  ;;  %1517 = vmatprep.subr.msk.bf16.mxu0 %vm503_vm0, %v1486_v4  ;;  %1519 = vmatprep.subr.msk.bf16.mxu1 %vm503_vm0, %v1488_v5  ;;  %v505_v16 = vsel %vm503_vm0, %v1485_v6, 0  ;;  %v511_v17 = vsel %vm503_vm0, %v1487_v7, 0  ;;  %v64_v32 = vld [vmem:[%s2244_s0 + $0x190] sm:$0xff] }
   0x5   :  { %v30_v14 = vld [vmem:[%s2244_s0 + $0x80] sm:$0xff]  ;;  %v31_v18 = vld [vmem:[%s2244_s0 + $0x88] sm:$0xff]  ;;  %611 = vmatpush1.bf16.msra.mxu0 %v505_v16  ;;  %654 = vmatpush1.bf16.msra.mxu1 %v511_v17  ;;  %v1453_v19 = vcombine.low %v46_v2, %v62_v8  ;;  %v1455_v20 = vcombine.low %v47_v9, %v63_v10  ;;  %v49_v33 = vld [vmem:[%s2244_s0 + $0x118] sm:$0xff]  ;;  %v517_v36 = vsel %vm503_vm0, %v1489_v29, 0  ;;  %v523_v37 = vsel %vm503_vm0, %v1491_v30, 0 }
   0x6   :  { %612 = vmatprep.subr.bf16.mxu0 %v1454_v11  ;;  %655 = vmatprep.subr.bf16.mxu1 %v1456_v12  ;;  %v1422_v21 = vcombine.high %v14_v13, %v30_v14  ;;  %v1424_v22 = vcombine.high %v15_v15, %v31_v18  ;;  %v1421_v25 = vcombine.low %v14_v13, %v30_v14  ;;  %v65_v34 = vld [vmem:[%s2244_s0 + $0x198] sm:$0xff]  ;;  %v1784_v35 = vld [vmem:[%s2245_s1] sm:$0x3f]   ;;  %v16_v40 = vld [vmem:[%s2244_s0 + $0x10] sm:$0xff] }
   0x7   :  { %v1423_v26 = vcombine.low %v15_v15, %v31_v18  ;;  %v1458_v38 = vcombine.high %v48_v31, %v64_v32  ;;  %v1460_v39 = vcombine.high %v49_v33, %v65_v34  ;;  %v32_v41 = vld [vmem:[%s2244_s0 + $0x90] sm:$0xff]  ;;  %v17_v42 = vld [vmem:[%s2244_s0 + $0x18] sm:$0xff]  ;;  %v1457_v44 = vcombine.low %v48_v31, %v64_v32  ;;  %v82_v48 = vld [vmem:[%s2244_s0 + $0x220] sm:$0x33] }
   0x8   :  { %v33_v43 = vld [vmem:[%s2244_s0 + $0x98] sm:$0xff]  ;;  %v1459_v45 = vcombine.low %v49_v33, %v65_v34  ;;  %v1426_v46 = vcombine.high %v16_v40, %v32_v41  ;;  %v83_v49 = vld [vmem:[%s2244_s0 + $0x228] sm:$0x33]  ;;  %v1425_v50 = vcombine.low %v16_v40, %v32_v41  ;;  %v1494_v52 = vcombine.high %v82_v48, %v82_v48  ;;  %v50_v56 = vld [vmem:[%s2244_s0 + $0x120] sm:$0xff] }
   0x9   :  { %613 = vmatpush1.bf16.msra.mxu0 %v1453_v19  ;;  %656 = vmatpush1.bf16.msra.mxu1 %v1455_v20  ;;  %v1428_v47 = vcombine.high %v17_v42, %v33_v43  ;;  %v1427_v51 = vcombine.low %v17_v42, %v33_v43  ;;  %v1496_v53 = vcombine.high %v83_v49, %v83_v49  ;;  %v66_v57 = vld [vmem:[%s2244_s0 + $0x1a0] sm:$0xff]  ;;  %v51_v58 = vld [vmem:[%s2244_s0 + $0x128] sm:$0xff]  ;;  %v84_v9 = vld [vmem:[%s2244_s0 + $0x230] sm:$0x33] }
   0xa   :  { %614 = vmatprep.subr.bf16.mxu0 %v1422_v21  ;;  %657 = vmatprep.subr.bf16.mxu1 %v1424_v22  ;;  %v1493_v54 = vcombine.low %v82_v48, %v82_v48  ;;  %v1495_v55 = vcombine.low %v83_v49, %v83_v49  ;;  %v67_v59 = vld [vmem:[%s2244_s0 + $0x1a8] sm:$0xff]  ;;  %v1462_v62 = vcombine.high %v50_v56, %v66_v57  ;;  %v18_v0 = vld [vmem:[%s2244_s0 + $0x20] sm:$0xff]  ;;  %v85_v10 = vld [vmem:[%s2244_s0 + $0x238] sm:$0x33] }
   0xb   :  { %v1464_v63 = vcombine.high %v51_v58, %v67_v59  ;;  %v34_v1 = vld [vmem:[%s2244_s0 + $0xa0] sm:$0xff]  ;;  %v19_v2 = vld [vmem:[%s2244_s0 + $0x28] sm:$0xff]  ;;  %v1461_v5 = vcombine.low %v50_v56, %v66_v57  ;;  %v1463_v6 = vcombine.low %v51_v58, %v67_v59  ;;  %v1498_v13 = vcombine.high %v84_v9, %v84_v9  ;;  %v52_v17 = vld [vmem:[%s2244_s0 + $0x130] sm:$0xff] }
   0xc   :  { %v529_v60 = vsel %vm503_vm0, %v1493_v54, 0  ;;  %v535_v61 = vsel %vm503_vm0, %v1495_v55, 0  ;;  %v35_v4 = vld [vmem:[%s2244_s0 + $0xa8] sm:$0xff]  ;;  %v1430_v7 = vcombine.high %v18_v0, %v34_v1  ;;  %v1429_v11 = vcombine.low %v18_v0, %v34_v1  ;;  %v68_v18 = vld [vmem:[%s2244_s0 + $0x1b0] sm:$0xff]  ;;  %v53_v19 = vld [vmem:[%s2244_s0 + $0x138] sm:$0xff] }
   0xd   :  { %615 = vmatpush1.bf16.msra.mxu0 %v1421_v25  ;;  %658 = vmatpush1.bf16.msra.mxu1 %v1423_v26  ;;  %v1432_v8 = vcombine.high %v19_v2, %v35_v4  ;;  %v1431_v12 = vcombine.low %v19_v2, %v35_v4  ;;  %v1500_v14 = vcombine.high %v85_v10, %v85_v10  ;;  %v69_v20 = vld [vmem:[%s2244_s0 + $0x1b8] sm:$0xff]  ;;  %v20_v25 = vld [vmem:[%s2244_s0 + $0x30] sm:$0xff]  ;;  %v86_v33 = vld [vmem:[%s2244_s0 + $0x240] sm:$0x33] }
   0xe   :  { %1521 = vmatprep.subr.msk.bf16.mxu0 %vm503_vm0, %v1490_v27  ;;  %1523 = vmatprep.subr.msk.bf16.mxu1 %vm503_vm0, %v1492_v28  ;;  %v1497_v15 = vcombine.low %v84_v9, %v84_v9  ;;  %v1499_v16 = vcombine.low %v85_v10, %v85_v10  ;;  %v1466_v23 = vcombine.high %v52_v17, %v68_v18  ;;  %v36_v26 = vld [vmem:[%s2244_s0 + $0xb0] sm:$0xff]  ;;  %v21_v27 = vld [vmem:[%s2244_s0 + $0x38] sm:$0xff]  ;;  %v87_v34 = vld [vmem:[%s2244_s0 + $0x248] sm:$0x33] }
   0xf   :  { %v1468_v24 = vcombine.high %v53_v19, %v69_v20  ;;  %v37_v28 = vld [vmem:[%s2244_s0 + $0xb8] sm:$0xff]  ;;  %v1465_v29 = vcombine.low %v52_v17, %v68_v18  ;;  %v1467_v30 = vcombine.low %v53_v19, %v69_v20  ;;  %v1434_v31 = vcombine.high %v20_v25, %v36_v26  ;;  %v54_v42 = vld [vmem:[%s2244_s0 + $0x140] sm:$0xff]  ;;  %v88_v58 = vld [vmem:[%s2244_s0 + $0x250] sm:$0x33] }
  0x10   :  { %1518 = vmatmul.mubr.msk.bf16.vlgmr.msra.gmra.mxu0 %vm499_vm1, %v1784_v35  ;;  %1520 = vmatmul.mubr.msk.bf16.vlgmr.msra.gmra.mxu1 %vm499_vm1, %v1784_v35  ;;  %v541_v21 = vsel %vm503_vm0, %v1497_v15, 0  ;;  %v547_v22 = vsel %vm503_vm0, %v1499_v16, 0  ;;  %v1436_v32 = vcombine.high %v21_v27, %v37_v28  ;;  %v1501_v40 = vcombine.low %v86_v33, %v86_v33  ;;  %v70_v43 = vld [vmem:[%s2244_s0 + $0x1c0] sm:$0xff]  ;;  %v89_v59 = vld [vmem:[%s2244_s0 + $0x258] sm:$0x33]  ;;  %v56_v2 = vld [vmem:[%s2244_s0 + $0x150] sm:$0xff] }
  0x11   :  { %697 = vmatpush1.bf16.msra.mxu0 %v517_v36  ;;  %740 = vmatpush1.bf16.msra.mxu1 %v523_v37  ;;  %v1433_v36 = vcombine.low %v20_v25, %v36_v26  ;;  %v1435_v37 = vcombine.low %v21_v27, %v37_v28  ;;  %v1503_v41 = vcombine.low %v87_v34, %v87_v34  ;;  %v72_v4 = vld [vmem:[%s2244_s0 + $0x1d0] sm:$0xff]  ;;  %v90_v19 = vld [vmem:[%s2244_s0 + $0x260] sm:$0x33]  ;;  %v91_v20 = vld [vmem:[%s2244_s0 + $0x268] sm:$0x33] }
  0x12   :  { %698 = vmatprep.subr.bf16.mxu0 %v1458_v38  ;;  %741 = vmatprep.subr.bf16.mxu1 %v1460_v39  ;;  %v1502_v38 = vcombine.high %v86_v33, %v86_v33  ;;  %v1504_v39 = vcombine.high %v87_v34, %v87_v34  ;;  %v1470_v48 = vcombine.high %v54_v42, %v70_v43  ;;  %v58_v27 = vld [vmem:[%s2244_s0 + $0x160] sm:$0xff] }
  0x13   :  { %718 = vmatprep.mubr.bf16.mxu0 %v1711_v3  ;;  %761 = vmatprep.mubr.bf16.mxu1 %v1711_v3  ;;  %v1469_v54 = vcombine.low %v54_v42, %v70_v43  ;;  %v1505_v0 = vcombine.low %v88_v58, %v88_v58  ;;  %v1507_v1 = vcombine.low %v89_v59, %v89_v59  ;;  %v74_v28 = vld [vmem:[%s2244_s0 + $0x1e0] sm:$0xff] }
  0x14   :  { %v1474_v9 = vcombine.high %v56_v2, %v72_v4  ;;  %v1473_v15 = vcombine.low %v56_v2, %v72_v4  ;;  %v1509_v25 = vcombine.low %v90_v19, %v90_v19  ;;  %v1511_v26 = vcombine.low %v91_v20, %v91_v20 }
  0x15   :  { %699 = vmatpush1.bf16.msra.mxu0 %v1457_v44  ;;  %742 = vmatpush1.bf16.msra.mxu1 %v1459_v45  ;;  %v55_v44 = vld [vmem:[%s2244_s0 + $0x148] sm:$0xff]  ;;  %v1478_v33 = vcombine.high %v58_v27, %v74_v28 }
  0x16   :  { %700 = vmatprep.subr.bf16.mxu0 %v1426_v46  ;;  %743 = vmatprep.subr.bf16.mxu1 %v1428_v47  ;;  %v71_v45 = vld [vmem:[%s2244_s0 + $0x1c8] sm:$0xff]  ;;  %v553_v46 = vsel %vm503_vm0, %v1501_v40, 0  ;;  %v559_v47 = vsel %vm503_vm0, %v1503_v41, 0  ;;  %v1477_v40 = vcombine.low %v58_v27, %v74_v28 }
  0x17   :  { %v1472_v49 = vcombine.high %v55_v44, %v71_v45  ;;  %v1471_v55 = vcombine.low %v55_v44, %v71_v45  ;;  %v92_v44 = vld [vmem:[%s2244_s0 + $0x270] sm:$0x33]  ;;  %v93_v45 = vld [vmem:[%s2244_s0 + $0x278] sm:$0x33] }
  0x19   :  { %701 = vmatpush1.bf16.msra.mxu0 %v1425_v50  ;;  %744 = vmatpush1.bf16.msra.mxu1 %v1427_v51  ;;  %v22_v50 = vld [vmem:[%s2244_s0 + $0x40] sm:$0xff] }
  0x1a   :  { %1525 = vmatprep.subr.msk.bf16.mxu0 %vm503_vm0, %v1494_v52  ;;  %1527 = vmatprep.subr.msk.bf16.mxu1 %vm503_vm0, %v1496_v53  ;;  %v38_v51 = vld [vmem:[%s2244_s0 + $0xc0] sm:$0xff]  ;;  %v23_v52 = vld [vmem:[%s2244_s0 + $0x48] sm:$0xff] }
  0x1b   :  { %v39_v53 = vld [vmem:[%s2244_s0 + $0xc8] sm:$0xff]  ;;  %v1438_v56 = vcombine.high %v22_v50, %v38_v51 }
  0x1c   :  { %1522 = vmatmul.mubr.msk.bf16.vlgmr.msra.gmra.mxu0 %vm499_vm1, %v1784_v35  ;;  %1524 = vmatmul.mubr.msk.bf16.vlgmr.msra.gmra.mxu1 %vm499_vm1, %v1784_v35  ;;  %v1440_v57 = vcombine.high %v23_v52, %v39_v53 }
  0x1d   :  { %783 = vmatpush1.bf16.msra.mxu0 %v529_v60  ;;  %826 = vmatpush1.bf16.msra.mxu1 %v535_v61  ;;  %v1437_v60 = vcombine.low %v22_v50, %v38_v51  ;;  %v1439_v61 = vcombine.low %v23_v52, %v39_v53  ;;  %v1513_v50 = vcombine.low %v92_v44, %v92_v44  ;;  %v60_v52 = vld [vmem:[%s2244_s0 + $0x170] sm:$0xff] }
  0x1e   :  { %784 = vmatprep.subr.bf16.mxu0 %v1462_v62  ;;  %827 = vmatprep.subr.bf16.mxu1 %v1464_v63  ;;  %v1506_v62 = vcombine.high %v88_v58, %v88_v58  ;;  %v1508_v63 = vcombine.high %v89_v59, %v89_v59  ;;  %v1515_v51 = vcombine.low %v93_v45, %v93_v45  ;;  %v76_v53 = vld [vmem:[%s2244_s0 + $0x1f0] sm:$0xff] }
  0x1f   :  { %804 = vmatprep.mubr.bf16.mxu0 %v1711_v3  ;;  %847 = vmatprep.mubr.bf16.mxu1 %v1711_v3  ;;  %v1482_v58 = vcombine.high %v60_v52, %v76_v53 }
  0x21   :  { %785 = vmatpush1.bf16.msra.mxu0 %v1461_v5  ;;  %828 = vmatpush1.bf16.msra.mxu1 %v1463_v6  ;;  %v57_v5 = vld [vmem:[%s2244_s0 + $0x158] sm:$0xff] }
  0x22   :  { %786 = vmatprep.subr.bf16.mxu0 %v1430_v7  ;;  %829 = vmatprep.subr.bf16.mxu1 %v1432_v8  ;;  %v73_v6 = vld [vmem:[%s2244_s0 + $0x1d8] sm:$0xff]  ;;  %v565_v7 = vsel %vm503_vm0, %v1505_v0, 0  ;;  %v571_v8 = vsel %vm503_vm0, %v1507_v1, 0  ;;  %v1481_v0 = vcombine.low %v60_v52, %v76_v53 }
  0x23   :  { %v1476_v10 = vcombine.high %v57_v5, %v73_v6  ;;  %v1475_v16 = vcombine.low %v57_v5, %v73_v6 }
  0x25   :  { %787 = vmatpush1.bf16.msra.mxu0 %v1429_v11  ;;  %830 = vmatpush1.bf16.msra.mxu1 %v1431_v12  ;;  %v24_v11 = vld [vmem:[%s2244_s0 + $0x50] sm:$0xff] }
  0x26   :  { %1529 = vmatprep.subr.msk.bf16.mxu0 %vm503_vm0, %v1498_v13  ;;  %1531 = vmatprep.subr.msk.bf16.mxu1 %vm503_vm0, %v1500_v14  ;;  %v40_v12 = vld [vmem:[%s2244_s0 + $0xd0] sm:$0xff]  ;;  %v25_v13 = vld [vmem:[%s2244_s0 + $0x58] sm:$0xff] }
  0x27   :  { %v41_v14 = vld [vmem:[%s2244_s0 + $0xd8] sm:$0xff]  ;;  %v1442_v17 = vcombine.high %v24_v11, %v40_v12 }
  0x28   :  { %1526 = vmatmul.mubr.msk.bf16.vlgmr.msra.gmra.mxu0 %vm499_vm1, %v1784_v35  ;;  %1528 = vmatmul.mubr.msk.bf16.vlgmr.msra.gmra.mxu1 %vm499_vm1, %v1784_v35  ;;  %v1444_v18 = vcombine.high %v25_v13, %v41_v14 }
  0x29   :  { %869 = vmatpush1.bf16.msra.mxu0 %v541_v21  ;;  %912 = vmatpush1.bf16.msra.mxu1 %v547_v22  ;;  %v1441_v21 = vcombine.low %v24_v11, %v40_v12  ;;  %v1443_v22 = vcombine.low %v25_v13, %v41_v14 }
  0x2a   :  { %870 = vmatprep.subr.bf16.mxu0 %v1466_v23  ;;  %913 = vmatprep.subr.bf16.mxu1 %v1468_v24  ;;  %v1510_v23 = vcombine.high %v90_v19, %v90_v19  ;;  %v1512_v24 = vcombine.high %v91_v20, %v91_v20 }
  0x2b   :  { %890 = vmatprep.mubr.bf16.mxu0 %v1711_v3  ;;  %933 = vmatprep.mubr.bf16.mxu1 %v1711_v3 }
  0x2d   :  { %871 = vmatpush1.bf16.msra.mxu0 %v1465_v29  ;;  %914 = vmatpush1.bf16.msra.mxu1 %v1467_v30  ;;  %v59_v29 = vld [vmem:[%s2244_s0 + $0x168] sm:$0xff] }
  0x2e   :  { %872 = vmatprep.subr.bf16.mxu0 %v1434_v31  ;;  %915 = vmatprep.subr.bf16.mxu1 %v1436_v32  ;;  %v75_v30 = vld [vmem:[%s2244_s0 + $0x1e8] sm:$0xff]  ;;  %v577_v31 = vsel %vm503_vm0, %v1509_v25, 0  ;;  %v583_v32 = vsel %vm503_vm0, %v1511_v26, 0 }
  0x2f   :  { %v1480_v34 = vcombine.high %v59_v29, %v75_v30  ;;  %v1479_v41 = vcombine.low %v59_v29, %v75_v30 }
  0x31   :  { %873 = vmatpush1.bf16.msra.mxu0 %v1433_v36  ;;  %916 = vmatpush1.bf16.msra.mxu1 %v1435_v37  ;;  %v26_v36 = vld [vmem:[%s2244_s0 + $0x60] sm:$0xff] }
  0x32   :  { %1533 = vmatprep.subr.msk.bf16.mxu0 %vm503_vm0, %v1502_v38  ;;  %1535 = vmatprep.subr.msk.bf16.mxu1 %vm503_vm0, %v1504_v39  ;;  %v42_v37 = vld [vmem:[%s2244_s0 + $0xe0] sm:$0xff]  ;;  %v27_v38 = vld [vmem:[%s2244_s0 + $0x68] sm:$0xff] }
  0x33   :  { %v43_v39 = vld [vmem:[%s2244_s0 + $0xe8] sm:$0xff]  ;;  %v1446_v42 = vcombine.high %v26_v36, %v42_v37 }
  0x34   :  { %1530 = vmatmul.mubr.msk.bf16.vlgmr.msra.gmra.mxu0 %vm499_vm1, %v1784_v35  ;;  %1532 = vmatmul.mubr.msk.bf16.vlgmr.msra.gmra.mxu1 %vm499_vm1, %v1784_v35  ;;  %v1448_v43 = vcombine.high %v27_v38, %v43_v39 }
  0x35   :  { %955 = vmatpush1.bf16.msra.mxu0 %v553_v46  ;;  %998 = vmatpush1.bf16.msra.mxu1 %v559_v47  ;;  %v1445_v46 = vcombine.low %v26_v36, %v42_v37  ;;  %v1447_v47 = vcombine.low %v27_v38, %v43_v39 }
  0x36   :  { %956 = vmatprep.subr.bf16.mxu0 %v1470_v48  ;;  %999 = vmatprep.subr.bf16.mxu1 %v1472_v49  ;;  %v1514_v48 = vcombine.high %v92_v44, %v92_v44  ;;  %v1516_v49 = vcombine.high %v93_v45, %v93_v45 }
  0x37   :  { %976 = vmatprep.mubr.bf16.mxu0 %v1711_v3  ;;  %1019 = vmatprep.mubr.bf16.mxu1 %v1711_v3 }
  0x39   :  { %957 = vmatpush1.bf16.msra.mxu0 %v1469_v54  ;;  %1000 = vmatpush1.bf16.msra.mxu1 %v1471_v55  ;;  %v61_v54 = vld [vmem:[%s2244_s0 + $0x178] sm:$0xff] }
  0x3a   :  { %958 = vmatprep.subr.bf16.mxu0 %v1438_v56  ;;  %1001 = vmatprep.subr.bf16.mxu1 %v1440_v57  ;;  %v77_v55 = vld [vmem:[%s2244_s0 + $0x1f8] sm:$0xff]  ;;  %v589_v56 = vsel %vm503_vm0, %v1513_v50, 0  ;;  %v595_v57 = vsel %vm503_vm0, %v1515_v51, 0 }
  0x3b   :  { %v1484_v59 = vcombine.high %v61_v54, %v77_v55  ;;  %v1483_v1 = vcombine.low %v61_v54, %v77_v55 }
  0x3d   :  { %959 = vmatpush1.bf16.msra.mxu0 %v1437_v60  ;;  %1002 = vmatpush1.bf16.msra.mxu1 %v1439_v61  ;;  %v28_v60 = vld [vmem:[%s2244_s0 + $0x70] sm:$0xff] }
  0x3e   :  { %1537 = vmatprep.subr.msk.bf16.mxu0 %vm503_vm0, %v1506_v62  ;;  %1539 = vmatprep.subr.msk.bf16.mxu1 %vm503_vm0, %v1508_v63  ;;  %v44_v61 = vld [vmem:[%s2244_s0 + $0xf0] sm:$0xff]  ;;  %v29_v62 = vld [vmem:[%s2244_s0 + $0x78] sm:$0xff] }
  0x3f   :  { %v45_v63 = vld [vmem:[%s2244_s0 + $0xf8] sm:$0xff]  ;;  %v1450_v2 = vcombine.high %v28_v60, %v44_v61  ;;  %v1449_v5 = vcombine.low %v28_v60, %v44_v61 }
  0x40   :  { %1534 = vmatmul.mubr.msk.bf16.vlgmr.msra.gmra.mxu0 %vm499_vm1, %v1784_v35  ;;  %1536 = vmatmul.mubr.msk.bf16.vlgmr.msra.gmra.mxu1 %vm499_vm1, %v1784_v35  ;;  %v1452_v4 = vcombine.high %v29_v62, %v45_v63  ;;  %v1451_v6 = vcombine.low %v29_v62, %v45_v63 }
  0x41   :  { %1041 = vmatpush1.bf16.msra.mxu0 %v565_v7  ;;  %1084 = vmatpush1.bf16.msra.mxu1 %v571_v8 }
  0x42   :  { %1042 = vmatprep.subr.bf16.mxu0 %v1474_v9  ;;  %1085 = vmatprep.subr.bf16.mxu1 %v1476_v10 }
  0x43   :  { %1062 = vmatprep.mubr.bf16.mxu0 %v1711_v3  ;;  %1105 = vmatprep.mubr.bf16.mxu1 %v1711_v3 }
  0x45   :  { %1043 = vmatpush1.bf16.msra.mxu0 %v1473_v15  ;;  %1086 = vmatpush1.bf16.msra.mxu1 %v1475_v16 }
  0x46   :  { %1044 = vmatprep.subr.bf16.mxu0 %v1442_v17  ;;  %1087 = vmatprep.subr.bf16.mxu1 %v1444_v18 }
  0x49   :  { %1045 = vmatpush1.bf16.msra.mxu0 %v1441_v21  ;;  %1088 = vmatpush1.bf16.msra.mxu1 %v1443_v22 }
  0x4a   :  { %1541 = vmatprep.subr.msk.bf16.mxu0 %vm503_vm0, %v1510_v23  ;;  %1543 = vmatprep.subr.msk.bf16.mxu1 %vm503_vm0, %v1512_v24 }
  0x4c   :  { %1538 = vmatmul.mubr.msk.bf16.vlgmr.msra.gmra.mxu0 %vm499_vm1, %v1784_v35  ;;  %1540 = vmatmul.mubr.msk.bf16.vlgmr.msra.gmra.mxu1 %vm499_vm1, %v1784_v35 }
  0x4d   :  { %1127 = vmatpush1.bf16.msra.mxu0 %v577_v31  ;;  %1170 = vmatpush1.bf16.msra.mxu1 %v583_v32 }
  0x4e   :  { %1128 = vmatprep.subr.bf16.mxu0 %v1478_v33  ;;  %1171 = vmatprep.subr.bf16.mxu1 %v1480_v34 }
  0x4f   :  { %1148 = vmatprep.mubr.bf16.mxu0 %v1711_v3  ;;  %1191 = vmatprep.mubr.bf16.mxu1 %v1711_v3 }
  0x51   :  { %1129 = vmatpush1.bf16.msra.mxu0 %v1477_v40  ;;  %1172 = vmatpush1.bf16.msra.mxu1 %v1479_v41 }
  0x52   :  { %1130 = vmatprep.subr.bf16.mxu0 %v1446_v42  ;;  %1173 = vmatprep.subr.bf16.mxu1 %v1448_v43 }
  0x55   :  { %1131 = vmatpush1.bf16.msra.mxu0 %v1445_v46  ;;  %1174 = vmatpush1.bf16.msra.mxu1 %v1447_v47 }
  0x56   :  { %1545 = vmatprep.subr.msk.bf16.mxu0 %vm503_vm0, %v1514_v48  ;;  %1547 = vmatprep.subr.msk.bf16.mxu1 %vm503_vm0, %v1516_v49 }
  0x58   :  { %1542 = vmatmul.mubr.msk.bf16.vlgmr.msra.gmra.mxu0 %vm499_vm1, %v1784_v35  ;;  %1544 = vmatmul.mubr.msk.bf16.vlgmr.msra.gmra.mxu1 %vm499_vm1, %v1784_v35 }
  0x59   :  { %1213 = vmatpush1.bf16.msra.mxu0 %v589_v56  ;;  %1256 = vmatpush1.bf16.msra.mxu1 %v595_v57 }
  0x5a   :  { %1214 = vmatprep.subr.bf16.mxu0 %v1482_v58  ;;  %1257 = vmatprep.subr.bf16.mxu1 %v1484_v59 }
  0x5b   :  { %1234 = vmatprep.mubr.bf16.mxu0 %v1711_v3  ;;  %1277 = vmatprep.mubr.bf16.mxu1 %v1711_v3 }
  0x5d   :  { %1215 = vmatpush1.bf16.msra.mxu0 %v1481_v0  ;;  %1258 = vmatpush1.bf16.msra.mxu1 %v1483_v1 }
  0x5e   :  { %1216 = vmatprep.subr.bf16.mxu0 %v1450_v2  ;;  %1259 = vmatprep.subr.bf16.mxu1 %v1452_v4 }
  0x61   :  { %1217 = vmatpush1.bf16.msra.mxu0 %v1449_v5  ;;  %1260 = vmatpush1.bf16.msra.mxu1 %v1451_v6 }
  0x64   :  { %1546 = vmatmul.mubr.msk.bf16.vlgmr.msra.gmra.mxu0 %vm499_vm1, %v1784_v35  ;;  %1548 = vmatmul.mubr.msk.bf16.vlgmr.msra.gmra.mxu1 %vm499_vm1, %v1784_v35 }
  0xd0   :  { %v634_v7 = vpop.f32.mrf.mxu0  ;;  %v677_v8 = vpop.f32.mrf.mxu1 }
  0xd1   :  { %1583 = vtanh.f32 %v634_v7 }
  0xd2   :  { %1585 = vtanh.f32 %v677_v8  ;;  %v636_v9 = vpop.f32.mrf.mxu0  ;;  %v679_v3 = vpop.f32.mrf.mxu1 }
  0xd3   :  { %1587 = vtanh.f32 %v636_v9 }
  0xd4   :  { %1589 = vtanh.f32 %v679_v3  ;;  %v638_v10 = vpop.f32.mrf.mxu0  ;;  %v681_v11 = vpop.f32.mrf.mxu1 }
  0xd5   :  { %1591 = vtanh.f32 %v638_v10 }
  0xd6   :  { %1593 = vtanh.f32 %v681_v11  ;;  %v640_v12 = vpop.f32.mrf.mxu0  ;;  %v683_v13 = vpop.f32.mrf.mxu1 }
  0xd7   :  { %1595 = vtanh.f32 %v640_v12 }
  0xd8   :  { %1597 = vtanh.f32 %v683_v13 }
  0xdc   :  { %v720_v14 = vpop.f32.mrf.mxu0  ;;  %v763_v15 = vpop.f32.mrf.mxu1 }
  0xdd   :  { %1599 = vtanh.f32 %v720_v14 }
  0xde   :  { %v1584_v35 = vpop.eup %1583  ;;  %1601 = vtanh.f32 %v763_v15  ;;  %v722_v16 = vpop.f32.mrf.mxu0 }
  0xdf   :  { %v765_v17 = vpop.f32.mrf.mxu1  ;;  %v1586_v18 = vpop.eup %1585  ;;  %1352 = vst [vmem:[%s2246_s2] sm:$0xff] %v1584_v35  ;;  %1603 = vtanh.f32 %v722_v16 }
  0xe0   :  { %v1588_v19 = vpop.eup %1587  ;;  %1354 = vst [vmem:[%s2246_s2 + $0x10] sm:$0xff] %v1586_v18  ;;  %1605 = vtanh.f32 %v765_v17  ;;  %v724_v20 = vpop.f32.mrf.mxu0 }
  0xe1   :  { %v767_v21 = vpop.f32.mrf.mxu1  ;;  %v1590_v22 = vpop.eup %1589  ;;  %1353 = vst [vmem:[%s2246_s2 + $0x8] sm:$0xff] %v1588_v19  ;;  %1607 = vtanh.f32 %v724_v20 }
  0xe2   :  { %v1592_v23 = vpop.eup %1591  ;;  %1355 = vst [vmem:[%s2246_s2 + $0x18] sm:$0xff] %v1590_v22  ;;  %1609 = vtanh.f32 %v767_v21  ;;  %v726_v24 = vpop.f32.mrf.mxu0 }
  0xe3   :  { %v769_v25 = vpop.f32.mrf.mxu1  ;;  %v1594_v26 = vpop.eup %1593  ;;  %1384 = vst [vmem:[%s2246_s2 + $0x100] sm:$0xf] %v1592_v23  ;;  %1611 = vtanh.f32 %v726_v24 }
  0xe4   :  { %v1596_v27 = vpop.eup %1595  ;;  %1386 = vst [vmem:[%s2246_s2 + $0x110] sm:$0xf] %v1594_v26  ;;  %1613 = vtanh.f32 %v769_v25 }
  0xe5   :  { %v1598_v28 = vpop.eup %1597  ;;  %1385 = vst [vmem:[%s2246_s2 + $0x108] sm:$0xf] %v1596_v27 }
  0xe6   :  { %1387 = vst [vmem:[%s2246_s2 + $0x118] sm:$0xf] %v1598_v28 }
  0xe8   :  { %v806_v29 = vpop.f32.mrf.mxu0  ;;  %v849_v30 = vpop.f32.mrf.mxu1 }
  0xe9   :  { %1615 = vtanh.f32 %v806_v29 }
  0xea   :  { %v1600_v31 = vpop.eup %1599  ;;  %1617 = vtanh.f32 %v849_v30  ;;  %v808_v32 = vpop.f32.mrf.mxu0 }
  0xeb   :  { %v851_v33 = vpop.f32.mrf.mxu1  ;;  %v1602_v34 = vpop.eup %1601  ;;  %1356 = vst [vmem:[%s2246_s2 + $0x20] sm:$0xff] %v1600_v31  ;;  %1619 = vtanh.f32 %v808_v32 }
  0xec   :  { %v1604_v36 = vpop.eup %1603  ;;  %1358 = vst [vmem:[%s2246_s2 + $0x30] sm:$0xff] %v1602_v34  ;;  %1621 = vtanh.f32 %v851_v33  ;;  %v810_v37 = vpop.f32.mrf.mxu0 }
  0xed   :  { %v853_v38 = vpop.f32.mrf.mxu1  ;;  %v1606_v39 = vpop.eup %1605  ;;  %1357 = vst [vmem:[%s2246_s2 + $0x28] sm:$0xff] %v1604_v36  ;;  %1623 = vtanh.f32 %v810_v37 }
  0xee   :  { %v1608_v40 = vpop.eup %1607  ;;  %1359 = vst [vmem:[%s2246_s2 + $0x38] sm:$0xff] %v1606_v39  ;;  %1625 = vtanh.f32 %v853_v38  ;;  %v812_v41 = vpop.f32.mrf.mxu0 }
  0xef   :  { %v855_v42 = vpop.f32.mrf.mxu1  ;;  %v1610_v43 = vpop.eup %1609  ;;  %1388 = vst [vmem:[%s2246_s2 + $0x120] sm:$0xf] %v1608_v40  ;;  %1627 = vtanh.f32 %v812_v41 }
  0xf0   :  { %v1612_v44 = vpop.eup %1611  ;;  %1390 = vst [vmem:[%s2246_s2 + $0x130] sm:$0xf] %v1610_v43  ;;  %1629 = vtanh.f32 %v855_v42 }
  0xf1   :  { %v1614_v45 = vpop.eup %1613  ;;  %1389 = vst [vmem:[%s2246_s2 + $0x128] sm:$0xf] %v1612_v44 }
  0xf2   :  { %1391 = vst [vmem:[%s2246_s2 + $0x138] sm:$0xf] %v1614_v45 }
  0xf4   :  { %v892_v46 = vpop.f32.mrf.mxu0  ;;  %v935_v47 = vpop.f32.mrf.mxu1 }
  0xf5   :  { %1631 = vtanh.f32 %v892_v46 }
  0xf6   :  { %v1616_v48 = vpop.eup %1615  ;;  %1633 = vtanh.f32 %v935_v47  ;;  %v894_v49 = vpop.f32.mrf.mxu0 }
  0xf7   :  { %v937_v50 = vpop.f32.mrf.mxu1  ;;  %v1618_v51 = vpop.eup %1617  ;;  %1360 = vst [vmem:[%s2246_s2 + $0x40] sm:$0xff] %v1616_v48  ;;  %1635 = vtanh.f32 %v894_v49 }
  0xf8   :  { %v1620_v52 = vpop.eup %1619  ;;  %1362 = vst [vmem:[%s2246_s2 + $0x50] sm:$0xff] %v1618_v51  ;;  %1637 = vtanh.f32 %v937_v50  ;;  %v896_v53 = vpop.f32.mrf.mxu0 }
  0xf9   :  { %v939_v54 = vpop.f32.mrf.mxu1  ;;  %v1622_v55 = vpop.eup %1621  ;;  %1361 = vst [vmem:[%s2246_s2 + $0x48] sm:$0xff] %v1620_v52  ;;  %1639 = vtanh.f32 %v896_v53 }
  0xfa   :  { %v1624_v56 = vpop.eup %1623  ;;  %1363 = vst [vmem:[%s2246_s2 + $0x58] sm:$0xff] %v1622_v55  ;;  %1641 = vtanh.f32 %v939_v54  ;;  %v898_v57 = vpop.f32.mrf.mxu0 }
  0xfb   :  { %v941_v58 = vpop.f32.mrf.mxu1  ;;  %v1626_v59 = vpop.eup %1625  ;;  %1392 = vst [vmem:[%s2246_s2 + $0x140] sm:$0xf] %v1624_v56  ;;  %1643 = vtanh.f32 %v898_v57 }
  0xfc   :  { %v1628_v60 = vpop.eup %1627  ;;  %1394 = vst [vmem:[%s2246_s2 + $0x150] sm:$0xf] %v1626_v59  ;;  %1645 = vtanh.f32 %v941_v58 }
  0xfd   :  { %v1630_v61 = vpop.eup %1629  ;;  %1393 = vst [vmem:[%s2246_s2 + $0x148] sm:$0xf] %v1628_v60 }
  0xfe   :  { %1395 = vst [vmem:[%s2246_s2 + $0x158] sm:$0xf] %v1630_v61 }
 0x100   :  { %v978_v62 = vpop.f32.mrf.mxu0  ;;  %v1021_v63 = vpop.f32.mrf.mxu1 }
 0x101   :  { %1647 = vtanh.f32 %v978_v62 }
 0x102   :  { %v1632_v0 = vpop.eup %1631  ;;  %1649 = vtanh.f32 %v1021_v63  ;;  %v980_v1 = vpop.f32.mrf.mxu0 }
 0x103   :  { %v1023_v2 = vpop.f32.mrf.mxu1  ;;  %v1634_v4 = vpop.eup %1633  ;;  %1364 = vst [vmem:[%s2246_s2 + $0x60] sm:$0xff] %v1632_v0  ;;  %1651 = vtanh.f32 %v980_v1 }
 0x104   :  { %v1636_v5 = vpop.eup %1635  ;;  %1366 = vst [vmem:[%s2246_s2 + $0x70] sm:$0xff] %v1634_v4  ;;  %1653 = vtanh.f32 %v1023_v2  ;;  %v982_v6 = vpop.f32.mrf.mxu0 }
 0x105   :  { %v1025_v7 = vpop.f32.mrf.mxu1  ;;  %v1638_v8 = vpop.eup %1637  ;;  %1365 = vst [vmem:[%s2246_s2 + $0x68] sm:$0xff] %v1636_v5  ;;  %1655 = vtanh.f32 %v982_v6 }
 0x106   :  { %v1640_v9 = vpop.eup %1639  ;;  %1367 = vst [vmem:[%s2246_s2 + $0x78] sm:$0xff] %v1638_v8  ;;  %1657 = vtanh.f32 %v1025_v7  ;;  %v984_v3 = vpop.f32.mrf.mxu0 }
 0x107   :  { %v1027_v10 = vpop.f32.mrf.mxu1  ;;  %v1642_v11 = vpop.eup %1641  ;;  %1396 = vst [vmem:[%s2246_s2 + $0x160] sm:$0xf] %v1640_v9  ;;  %1659 = vtanh.f32 %v984_v3 }
 0x108   :  { %v1644_v12 = vpop.eup %1643  ;;  %1398 = vst [vmem:[%s2246_s2 + $0x170] sm:$0xf] %v1642_v11  ;;  %1661 = vtanh.f32 %v1027_v10 }
 0x109   :  { %v1646_v13 = vpop.eup %1645  ;;  %1397 = vst [vmem:[%s2246_s2 + $0x168] sm:$0xf] %v1644_v12 }
 0x10a   :  { %1399 = vst [vmem:[%s2246_s2 + $0x178] sm:$0xf] %v1646_v13 }
 0x10c   :  { %v1064_v14 = vpop.f32.mrf.mxu0  ;;  %v1107_v15 = vpop.f32.mrf.mxu1 }
 0x10d   :  { %1663 = vtanh.f32 %v1064_v14 }
 0x10e   :  { %v1648_v35 = vpop.eup %1647  ;;  %1665 = vtanh.f32 %v1107_v15  ;;  %v1066_v16 = vpop.f32.mrf.mxu0 }
 0x10f   :  { %v1109_v17 = vpop.f32.mrf.mxu1  ;;  %v1650_v18 = vpop.eup %1649  ;;  %1368 = vst [vmem:[%s2246_s2 + $0x80] sm:$0xff] %v1648_v35  ;;  %1667 = vtanh.f32 %v1066_v16 }
 0x110   :  { %v1652_v19 = vpop.eup %1651  ;;  %1370 = vst [vmem:[%s2246_s2 + $0x90] sm:$0xff] %v1650_v18  ;;  %1669 = vtanh.f32 %v1109_v17  ;;  %v1068_v20 = vpop.f32.mrf.mxu0 }
 0x111   :  { %v1111_v21 = vpop.f32.mrf.mxu1  ;;  %v1654_v22 = vpop.eup %1653  ;;  %1369 = vst [vmem:[%s2246_s2 + $0x88] sm:$0xff] %v1652_v19  ;;  %1671 = vtanh.f32 %v1068_v20 }
 0x112   :  { %v1656_v23 = vpop.eup %1655  ;;  %1371 = vst [vmem:[%s2246_s2 + $0x98] sm:$0xff] %v1654_v22  ;;  %1673 = vtanh.f32 %v1111_v21  ;;  %v1070_v24 = vpop.f32.mrf.mxu0 }
 0x113   :  { %v1113_v25 = vpop.f32.mrf.mxu1  ;;  %v1658_v26 = vpop.eup %1657  ;;  %1400 = vst [vmem:[%s2246_s2 + $0x180] sm:$0xf] %v1656_v23  ;;  %1675 = vtanh.f32 %v1070_v24 }
 0x114   :  { %v1660_v27 = vpop.eup %1659  ;;  %1402 = vst [vmem:[%s2246_s2 + $0x190] sm:$0xf] %v1658_v26  ;;  %1677 = vtanh.f32 %v1113_v25 }
 0x115   :  { %v1662_v28 = vpop.eup %1661  ;;  %1401 = vst [vmem:[%s2246_s2 + $0x188] sm:$0xf] %v1660_v27 }
 0x116   :  { %1403 = vst [vmem:[%s2246_s2 + $0x198] sm:$0xf] %v1662_v28 }
 0x118   :  { %v1150_v29 = vpop.f32.mrf.mxu0  ;;  %v1193_v30 = vpop.f32.mrf.mxu1 }
 0x119   :  { %1679 = vtanh.f32 %v1150_v29 }
 0x11a   :  { %v1664_v31 = vpop.eup %1663  ;;  %1681 = vtanh.f32 %v1193_v30  ;;  %v1152_v32 = vpop.f32.mrf.mxu0 }
 0x11b   :  { %v1195_v33 = vpop.f32.mrf.mxu1  ;;  %v1666_v34 = vpop.eup %1665  ;;  %1372 = vst [vmem:[%s2246_s2 + $0xa0] sm:$0xff] %v1664_v31  ;;  %1683 = vtanh.f32 %v1152_v32 }
 0x11c   :  { %v1668_v36 = vpop.eup %1667  ;;  %1374 = vst [vmem:[%s2246_s2 + $0xb0] sm:$0xff] %v1666_v34  ;;  %1685 = vtanh.f32 %v1195_v33  ;;  %v1154_v37 = vpop.f32.mrf.mxu0 }
 0x11d   :  { %v1197_v38 = vpop.f32.mrf.mxu1  ;;  %v1670_v39 = vpop.eup %1669  ;;  %1373 = vst [vmem:[%s2246_s2 + $0xa8] sm:$0xff] %v1668_v36  ;;  %1687 = vtanh.f32 %v1154_v37 }
 0x11e   :  { %v1672_v40 = vpop.eup %1671  ;;  %1375 = vst [vmem:[%s2246_s2 + $0xb8] sm:$0xff] %v1670_v39  ;;  %1689 = vtanh.f32 %v1197_v38  ;;  %v1156_v41 = vpop.f32.mrf.mxu0 }
 0x11f   :  { %v1199_v42 = vpop.f32.mrf.mxu1  ;;  %v1674_v43 = vpop.eup %1673  ;;  %1404 = vst [vmem:[%s2246_s2 + $0x1a0] sm:$0xf] %v1672_v40  ;;  %1691 = vtanh.f32 %v1156_v41 }
 0x120   :  { %v1676_v44 = vpop.eup %1675  ;;  %1406 = vst [vmem:[%s2246_s2 + $0x1b0] sm:$0xf] %v1674_v43  ;;  %1693 = vtanh.f32 %v1199_v42 }
 0x121   :  { %v1678_v45 = vpop.eup %1677  ;;  %1405 = vst [vmem:[%s2246_s2 + $0x1a8] sm:$0xf] %v1676_v44 }
 0x122   :  { %1407 = vst [vmem:[%s2246_s2 + $0x1b8] sm:$0xf] %v1678_v45 }
 0x124   :  { %v1236_v46 = vpop.f32.mrf.mxu0  ;;  %v1279_v47 = vpop.f32.mrf.mxu1 }
 0x125   :  { %1695 = vtanh.f32 %v1236_v46 }
 0x126   :  { %v1680_v48 = vpop.eup %1679  ;;  %1697 = vtanh.f32 %v1279_v47  ;;  %v1238_v49 = vpop.f32.mrf.mxu0 }
 0x127   :  { %v1281_v50 = vpop.f32.mrf.mxu1  ;;  %v1682_v51 = vpop.eup %1681  ;;  %1376 = vst [vmem:[%s2246_s2 + $0xc0] sm:$0xff] %v1680_v48  ;;  %1699 = vtanh.f32 %v1238_v49 }
 0x128   :  { %v1684_v52 = vpop.eup %1683  ;;  %1378 = vst [vmem:[%s2246_s2 + $0xd0] sm:$0xff] %v1682_v51  ;;  %1701 = vtanh.f32 %v1281_v50  ;;  %v1240_v53 = vpop.f32.mrf.mxu0 }
 0x129   :  { %v1283_v54 = vpop.f32.mrf.mxu1  ;;  %v1686_v55 = vpop.eup %1685  ;;  %1377 = vst [vmem:[%s2246_s2 + $0xc8] sm:$0xff] %v1684_v52  ;;  %1703 = vtanh.f32 %v1240_v53 }
 0x12a   :  { %v1688_v56 = vpop.eup %1687  ;;  %1379 = vst [vmem:[%s2246_s2 + $0xd8] sm:$0xff] %v1686_v55  ;;  %1705 = vtanh.f32 %v1283_v54  ;;  %v1242_v57 = vpop.f32.mrf.mxu0 }
 0x12b   :  { %v1285_v58 = vpop.f32.mrf.mxu1  ;;  %v1690_v59 = vpop.eup %1689  ;;  %1408 = vst [vmem:[%s2246_s2 + $0x1c0] sm:$0xf] %v1688_v56  ;;  %1707 = vtanh.f32 %v1242_v57 }
 0x12c   :  { %v1692_v60 = vpop.eup %1691  ;;  %1410 = vst [vmem:[%s2246_s2 + $0x1d0] sm:$0xf] %v1690_v59  ;;  %1709 = vtanh.f32 %v1285_v58 }
 0x12d   :  { %v1694_v61 = vpop.eup %1693  ;;  %1409 = vst [vmem:[%s2246_s2 + $0x1c8] sm:$0xf] %v1692_v60 }
 0x12e   :  { %1411 = vst [vmem:[%s2246_s2 + $0x1d8] sm:$0xf] %v1694_v61 }
 0x132   :  { %v1696_v62 = vpop.eup %1695 }
 0x133   :  { %v1698_v63 = vpop.eup %1697  ;;  %1380 = vst [vmem:[%s2246_s2 + $0xe0] sm:$0xff] %v1696_v62 }
 0x134   :  { %v1700_v0 = vpop.eup %1699  ;;  %1382 = vst [vmem:[%s2246_s2 + $0xf0] sm:$0xff] %v1698_v63 }
 0x135   :  { %v1702_v1 = vpop.eup %1701  ;;  %1381 = vst [vmem:[%s2246_s2 + $0xe8] sm:$0xff] %v1700_v0 }
 0x136   :  { %v1704_v2 = vpop.eup %1703  ;;  %1383 = vst [vmem:[%s2246_s2 + $0xf8] sm:$0xff] %v1702_v1 }
 0x137   :  { %v1706_v4 = vpop.eup %1705  ;;  %1412 = vst [vmem:[%s2246_s2 + $0x1e0] sm:$0xf] %v1704_v2 }
 0x138   :  { %v1708_v5 = vpop.eup %1707  ;;  %1414 = vst [vmem:[%s2246_s2 + $0x1f0] sm:$0xf] %v1706_v4 }
 0x139   :  { %v1710_v6 = vpop.eup %1709  ;;  %1413 = vst [vmem:[%s2246_s2 + $0x1e8] sm:$0xf] %v1708_v5 }
 0x13a   :  { %1415 = vst [vmem:[%s2246_s2 + $0x1f8] sm:$0xf] %v1710_v6 }

</bundles_post_ra>
